<compile_context>
chip_gen: v7x
topology: tpu7x:2x2x1
jax: 0.10.0
libtpu: 0.0.40
codegen_flags: <defaults>
</compile_context>

<pallas_src>
import jax
import jax.numpy as jnp
from jax.experimental import pallas as pl
from jax.experimental.pallas import tpu as pltpu

EPS = 1e-5
LANE = 128
VMEM_LIMIT = 48 * 1024 * 1024   # <= v7x's 64 MiB physical VMEM, fine on v5e/v6e


# ----------------------------- helpers ------------------------------------- #

def _round_up(x, m):
    return ((x + m - 1) // m) * m


def _pick_batch_tile(npc, h, w, cp):
    """Largest batch tile dividing the per-core batch that keeps the fused
    bf16 patch + f32 accumulator + halo scratch comfortably inside VMEM."""
    budget_elems = 128 * 1024                       # BT*H*W*CP element budget
    max_bt = max(1, budget_elems // max(1, h * w * cp))
    bt = 1
    for cand in range(1, npc + 1):
        if npc % cand == 0 and cand <= max_bt:
            bt = cand
    return bt


def _grid_layout(n, h, w, cp):
    """(num_cores, steps_per_core, batch_tile) for the batch grid."""
    nc = 2 if (n >= 2 and n % 2 == 0) else 1        # v7x: shard batch on 2 TCs
    npc = n // nc
    bt = _pick_batch_tile(npc, h, w, cp)
    return nc, npc // bt, bt


# ----------------------------- Pallas kernels ------------------------------ #

def _conv1_kernel(x_ref, w_ref, b_ref, y_ref, sum_ref, sq_ref, xpad_ref):
    """3x3 conv as ONE big-K MXU matmul over a VMEM-built halo patch, + bias;
    accumulates per-core BN sum / sum-of-squares."""
    @pl.when(pl.program_id(1) == 0)
    def _():
        sum_ref[...] = jnp.zeros_like(sum_ref)
        sq_ref[...] = jnp.zeros_like(sq_ref)
        xpad_ref[...] = jnp.zeros_like(xpad_ref)    # halo border stays zero

    BT, H, W, CP = x_ref.shape
    M = BT * H * W

    # Place the bf16 input into the halo'd scratch interior (no casts).
    for b in range(BT):
        xpad_ref[b, 1:H + 1, 1:W + 1, :] = x_ref[b]

    # Gather the 9 shifted taps straight from the scratch ref into one
    # (M, 9*CP) bf16 patch and run a single K = 9*CP matmul: accumulation
    # happens inside the MXU (MRB in-place on v7x), no per-tap VPU adds.
    taps = [xpad_ref[:, dy:dy + H, dx:dx + W, :].reshape(M, CP)
            for dy in range(3) for dx in range(3)]
    patch = jnp.concatenate(taps, axis=-1)
    acc = jnp.dot(patch, w_ref[...], preferred_element_type=jnp.float32)
    acc = acc + b_ref[...]

    y_ref[...] = acc.reshape(BT, H, W, CP).astype(y_ref.dtype)
    sum_ref[...] += jnp.sum(acc, axis=0, keepdims=True)[None]       # (1,1,CP)
    sq_ref[...] += jnp.sum(acc * acc, axis=0, keepdims=True)[None]


def _bn_relu_conv2_kernel(y1_ref, s1_ref, t1_ref, w_ref, b_ref,
                          y_ref, sum_ref, sq_ref, hpad_ref):
    """BN1(scale/shift) + ReLU + 3x3 conv2 (fused big-K matmul) + bias;
    accumulates per-core BN2 sum / sum-of-squares.  h1 never touches HBM."""
    @pl.when(pl.program_id(1) == 0)
    def _():
        sum_ref[...] = jnp.zeros_like(sum_ref)
        sq_ref[...] = jnp.zeros_like(sq_ref)
        hpad_ref[...] = jnp.zeros_like(hpad_ref)    # halo border stays zero

    BT, H, W, CP = y1_ref.shape
    M = BT * H * W

    # BN1 + ReLU in f32 (scale/shift precomputed from global batch stats),
    # then a single bf16 cast before the interior store into the bf16 scratch.
    h1 = y1_ref[...].astype(jnp.float32).reshape(M, CP)
    h1 = jnp.maximum(h1 * s1_ref[...] + t1_ref[...], 0.0)
    h1 = h1.astype(hpad_ref.dtype).reshape(BT, H, W, CP)
    for b in range(BT):
        hpad_ref[b, 1:H + 1, 1:W + 1, :] = h1[b]

    taps = [hpad_ref[:, dy:dy + H, dx:dx + W, :].reshape(M, CP)
            for dy in range(3) for dx in range(3)]
    patch = jnp.concatenate(taps, axis=-1)
    acc = jnp.dot(patch, w_ref[...], preferred_element_type=jnp.float32)
    acc = acc + b_ref[...]

    y_ref[...] = acc.reshape(BT, H, W, CP).astype(y_ref.dtype)
    sum_ref[...] += jnp.sum(acc, axis=0, keepdims=True)[None]
    sq_ref[...] += jnp.sum(acc * acc, axis=0, keepdims=True)[None]


def _bn_add_relu_kernel(y2_ref, res_ref, s2_ref, t2_ref, o_ref):
    """BN2(scale/shift) + residual add + ReLU.  Pure memory-bound pass:
    bf16 in (conv2 out + residual), bf16 out."""
    BT, H, W, CP = o_ref.shape
    M = BT * H * W
    y = y2_ref[...].astype(jnp.float32).reshape(M, CP)
    y = y * s2_ref[...] + t2_ref[...]
    y = y + res_ref[...].astype(jnp.float32).reshape(M, CP)
    o_ref[...] = jnp.maximum(y, 0.0).reshape(BT, H, W, CP).astype(o_ref.dtype)


# ------------------------------ pallas_call wrappers ------------------------ #

def _conv1_call(x, w, b, out_dtype):
    N, H, W, CP = x.shape
    NC, SPC, BT = _grid_layout(N, H, W, CP)
    WP2 = _round_up(W + 2, 8)
    flops = 2 * N * H * W * 9 * CP * CP
    bytes_accessed = (x.size * 2 + w.size * 2 + b.size * 4
                      + N * H * W * CP * 2 + 2 * NC * 8 * CP * 4)
    return pl.pallas_call(
        _conv1_kernel,
        grid=(NC, SPC),
        in_specs=[
            pl.BlockSpec((BT, H, W, CP), lambda c, i: (c * SPC + i, 0, 0, 0)),
            pl.BlockSpec((9 * CP, CP), lambda c, i: (0, 0)),       # fused weights
            pl.BlockSpec((1, CP), lambda c, i: (0, 0)),            # bias
        ],
        out_specs=[
            pl.BlockSpec((BT, H, W, CP), lambda c, i: (c * SPC + i, 0, 0, 0)),
            pl.BlockSpec((1, 8, CP), lambda c, i: (c, 0, 0)),      # per-core sum
            pl.BlockSpec((1, 8, CP), lambda c, i: (c, 0, 0)),      # per-core sum-sq
        ],
        out_shape=[
            jax.ShapeDtypeStruct((N, H, W, CP), out_dtype),
            jax.ShapeDtypeStruct((NC, 8, CP), jnp.float32),
            jax.ShapeDtypeStruct((NC, 8, CP), jnp.float32),
        ],
        scratch_shapes=[pltpu.VMEM((BT, H + 2, WP2, CP), jnp.bfloat16)],
        compiler_params=pltpu.CompilerParams(
            dimension_semantics=("parallel", "arbitrary"),
            vmem_limit_bytes=VMEM_LIMIT),
        cost_estimate=pl.CostEstimate(flops=flops, transcendentals=0,
                                      bytes_accessed=bytes_accessed),
    )(x, w, b)


def _bn_relu_conv2_call(y1, scale1, shift1, w, b, out_dtype):
    N, H, W, CP = y1.shape
    NC, SPC, BT = _grid_layout(N, H, W, CP)
    WP2 = _round_up(W + 2, 8)
    flops = 2 * N * H * W * 9 * CP * CP
    bytes_accessed = (y1.size * 2 + w.size * 2 + 3 * CP * 4
                      + N * H * W * CP * 2 + 2 * NC * 8 * CP * 4)
    return pl.pallas_call(
        _bn_relu_conv2_kernel,
        grid=(NC, SPC),
        in_specs=[
            pl.BlockSpec((BT, H, W, CP), lambda c, i: (c * SPC + i, 0, 0, 0)),
            pl.BlockSpec((1, CP), lambda c, i: (0, 0)),            # BN1 scale
            pl.BlockSpec((1, CP), lambda c, i: (0, 0)),            # BN1 shift
            pl.BlockSpec((9 * CP, CP), lambda c, i: (0, 0)),       # fused weights
            pl.BlockSpec((1, CP), lambda c, i: (0, 0)),            # bias
        ],
        out_specs=[
            pl.BlockSpec((BT, H, W, CP), lambda c, i: (c * SPC + i, 0, 0, 0)),
            pl.BlockSpec((1, 8, CP), lambda c, i: (c, 0, 0)),
            pl.BlockSpec((1, 8, CP), lambda c, i: (c, 0, 0)),
        ],
        out_shape=[
            jax.ShapeDtypeStruct((N, H, W, CP), out_dtype),
            jax.ShapeDtypeStruct((NC, 8, CP), jnp.float32),
            jax.ShapeDtypeStruct((NC, 8, CP), jnp.float32),
        ],
        scratch_shapes=[pltpu.VMEM((BT, H + 2, WP2, CP), jnp.bfloat16)],
        compiler_params=pltpu.CompilerParams(
            dimension_semantics=("parallel", "arbitrary"),
            vmem_limit_bytes=VMEM_LIMIT),
        cost_estimate=pl.CostEstimate(flops=flops, transcendentals=0,
                                      bytes_accessed=bytes_accessed),
    )(y1, scale1, shift1, w, b)


def _bn_add_relu_call(y2, residual, scale2, shift2):
    N, H, W, CP = y2.shape
    NC, SPC, BT = _grid_layout(N, H, W, CP)
    return pl.pallas_call(
        _bn_add_relu_kernel,
        grid=(NC, SPC),
        in_specs=[
            pl.BlockSpec((BT, H, W, CP), lambda c, i: (c * SPC + i, 0, 0, 0)),
            pl.BlockSpec((BT, H, W, CP), lambda c, i: (c * SPC + i, 0, 0, 0)),
            pl.BlockSpec((1, CP), lambda c, i: (0, 0)),            # BN2 scale
            pl.BlockSpec((1, CP), lambda c, i: (0, 0)),            # BN2 shift
        ],
        out_specs=pl.BlockSpec((BT, H, W, CP), lambda c, i: (c * SPC + i, 0, 0, 0)),
        out_shape=jax.ShapeDtypeStruct((N, H, W, CP), jnp.bfloat16),
        compiler_params=pltpu.CompilerParams(
            dimension_semantics=("parallel", "parallel"),
            vmem_limit_bytes=VMEM_LIMIT),
    )(y2, residual, scale2, shift2)


# --------------------------------- JAX glue --------------------------------- #

def _prep_weight(w_oihw, cp):
    """(Cout, Cin, 3, 3) torch layout -> (9*CP, CP) bf16, taps stacked along K
    in t = dy*3 + dx order (matches the in-kernel patch concatenation)."""
    cout, cin = w_oihw.shape[0], w_oihw.shape[1]
    w = jnp.transpose(w_oihw.astype(jnp.float32), (2, 3, 1, 0)).reshape(9, cin, cout)
    w = jnp.pad(w, ((0, 0), (0, cp - cin), (0, cp - cout)))
    return w.reshape(9 * cp, cp).astype(jnp.bfloat16)


def _pad_vec(v, cp):
    v = v.astype(jnp.float32)
    return jnp.pad(v, (0, cp - v.shape[0])).reshape(1, cp)


def _reduce_stats(p):
    """(NC, 8, CP) per-core partials (row 0 of each core block is the sum,
    replicated across the 8 sublanes) -> (1, CP)."""
    return p[:, 0, :].sum(axis=0, keepdims=True)


def _bn_scale_shift(s, q, gamma, beta, count):
    mean = s / count
    var = jnp.maximum(q / count - mean * mean, 0.0)   # single-pass (biased) variance
    scale = gamma * jax.lax.rsqrt(var + EPS)
    shift = beta - mean * scale
    return scale, shift


@jax.jit
def residual_block_forward(x_nchw, params):
    """Pallas implementation of ResidualBlock.forward (stride=1, downsample=None)."""
    N, C, H, W = x_nchw.shape
    CP = _round_up(C, LANE)                           # lane-dense channel padding

    # Single layout pass: NCHW -> NHWC, channel pad, bf16 cast.  The bf16
    # tensor is both the pass-1 input and the pass-3 residual (no HBM halo).
    # TODO(synk): when chaining residual blocks, keep activations NHWC+CP-padded
    # between blocks to avoid repeating this transpose/pad per block.
    x_nhwc = jnp.transpose(x_nchw, (0, 2, 3, 1))
    x_nhwc = jnp.pad(x_nhwc, ((0, 0), (0, 0), (0, 0), (0, CP - C)))
    x_bf16 = x_nhwc.astype(jnp.bfloat16)

    w1 = _prep_weight(params["w1"], CP)
    w2 = _prep_weight(params["w2"], CP)
    b1 = _pad_vec(params["b1"], CP)
    b2 = _pad_vec(params["b2"], CP)
    g1 = _pad_vec(params["g1"], CP)
    be1 = _pad_vec(params["beta1"], CP)
    g2 = _pad_vec(params["g2"], CP)
    be2 = _pad_vec(params["beta2"], CP)

    count = N * H * W

    # pass 1: conv1 + bias (halo built in VMEM), BN1 batch statistics
    y1, s1p, q1p = _conv1_call(x_bf16, w1, b1, jnp.bfloat16)
    scale1, shift1 = _bn_scale_shift(_reduce_stats(s1p), _reduce_stats(q1p),
                                     g1, be1, count)

    # pass 2: BN1 + ReLU + conv2 + bias (halo rebuilt in VMEM), BN2 statistics
    y2, s2p, q2p = _bn_relu_conv2_call(y1, scale1, shift1, w2, b2, jnp.bfloat16)
    scale2, shift2 = _bn_scale_shift(_reduce_stats(s2p), _reduce_stats(q2p),
                                     g2, be2, count)

    # pass 3: BN2 + residual add + ReLU (bf16 in / bf16 out, memory-bound)
    out = _bn_add_relu_call(y2, x_bf16, scale2, shift2)

    out = out[..., :C].astype(jnp.float32)            # drop padded channels
    return jnp.transpose(out, (0, 3, 1, 2))           # back to NCHW


# ---------------------------- pure-JAX reference ---------------------------- #

def _ref_forward(x, params):
    def conv(x, w, b):
        y = jax.lax.conv_general_dilated(
            x, w, (1, 1), ((1, 1), (1, 1)),
            dimension_numbers=("NCHW", "OIHW", "NCHW"))
        return y + b[None, :, None, None]

    def bn(x, g, beta):
        mean = x.mean(axis=(0, 2, 3), keepdims=True)
        var = ((x - mean) ** 2).mean(axis=(0, 2, 3), keepdims=True)
        return (x - mean) * jax.lax.rsqrt(var + EPS) * g[None, :, None, None] \
            + beta[None, :, None, None]

    out = jax.nn.relu(bn(conv(x, params["w1"], params["b1"]),
                         params["g1"], params["beta1"]))
    out = bn(conv(out, params["w2"], params["b2"]), params["g2"], params["beta2"])
    return jax.nn.relu(out + x)


# ---------------------------------- main ------------------------------------ #

if __name__ == "__main__":
    N, C, H, W = 2, 4, 16, 16          # in_channels == out_channels, stride=1
    key = jax.random.PRNGKey(0)
    kx, kw1, kb1, kw2, kb2 = jax.random.split(key, 5)

    x = jax.random.normal(kx, (N, C, H, W), dtype=jnp.float32)

    params = {
        "w1": 0.1 * jax.random.normal(kw1, (C, C, 3, 3), dtype=jnp.float32),
        "b1": 0.1 * jax.random.normal(kb1, (C,), dtype=jnp.float32),
        "g1": jnp.ones((C,), jnp.float32),
        "beta1": jnp.zeros((C,), jnp.float32),
        "w2": 0.1 * jax.random.normal(kw2, (C, C, 3, 3), dtype=jnp.float32),
        "b2": 0.1 * jax.random.normal(kb2, (C,), dtype=jnp.float32),
        "g2": jnp.ones((C,), jnp.float32),
        "beta2": jnp.zeros((C,), jnp.float32),
    }

    out = jax.block_until_ready(residual_block_forward(x, params))
    ref = _ref_forward(x, params)

    assert out.shape == (N, C, H, W)
    # bf16 matmul operands + bf16 inter-pass / residual / output activations
    assert jnp.allclose(out, ref, atol=5e-2, rtol=5e-2), "mismatch vs JAX reference"

    print("KERNEL_OK")
</pallas_src>

<mosaic_0001>
module attributes {stable_mosaic.version = 11 : i64} {
  func.func @_conv1_kernel(%arg0: i32, %arg1: i32, %arg2: memref<1x16x16x128xbf16, #tpu.memory_space<vmem>>, %arg3: memref<1152x128xbf16, #tpu.memory_space<vmem>>, %arg4: memref<1x128xf32, #tpu.memory_space<vmem>>, %arg5: memref<1x16x16x128xbf16, #tpu.memory_space<vmem>>, %arg6: memref<1x8x128xf32, #tpu.memory_space<vmem>>, %arg7: memref<1x8x128xf32, #tpu.memory_space<vmem>>, %arg8: memref<1x18x24x128xbf16, #tpu.memory_space<vmem>>) attributes {dimension_semantics = [#tpu.dimension_semantics<parallel>, #tpu.dimension_semantics<arbitrary>], iteration_bounds = array<i64: 2, 1>, scalar_prefetch = 0 : i64, scratch_operands = 1 : i64, tpu.core_type = #tpu.core_type<tc>, window_params = [{transform_indices = @transform_0, window_bounds = array<i64: 1, 16, 16, 128>}, {pipeline_mode = #tpu.pipeline_mode<synchronous>, transform_indices = @transform_1, window_bounds = array<i64: 1152, 128>}, {pipeline_mode = #tpu.pipeline_mode<synchronous>, transform_indices = @transform_2, window_bounds = array<i64: 1, 128>}, {transform_indices = @transform_3, window_bounds = array<i64: 1, 16, 16, 128>}, {transform_indices = @transform_4, window_bounds = array<i64: 1, 8, 128>}, {transform_indices = @transform_5, window_bounds = array<i64: 1, 8, 128>}]} {
    %c0_i32 = arith.constant 0 : i32
    %0 = arith.cmpi eq, %arg1, %c0_i32 : i32
    %1 = arith.extui %0 : i1 to i32
    %c0_i32_0 = arith.constant 0 : i32
    %2 = arith.cmpi ne, %1, %c0_i32_0 : i32
    scf.if %2 {
      %cst_64 = arith.constant 0.000000e+00 : f32
      %50 = vector.broadcast %cst_64 : f32 to vector<1x8x128xf32>
      %c0_65 = arith.constant 0 : index
      %c0_66 = arith.constant 0 : index
      %c0_67 = arith.constant 0 : index
      %51 = vector.load %arg6[%c0_65, %c0_66, %c0_67] : memref<1x8x128xf32, #tpu.memory_space<vmem>>, vector<1x8x128xf32>
      tpu.vector_store %arg6[%c0_65, %c0_66, %c0_67], %50 {strides = array<i32>} : memref<1x8x128xf32, #tpu.memory_space<vmem>>, vector<1x8x128xf32>,
      %cst_68 = arith.constant 0.000000e+00 : f32
      %52 = vector.broadcast %cst_68 : f32 to vector<1x8x128xf32>
      %c0_69 = arith.constant 0 : index
      %c0_70 = arith.constant 0 : index
      %c0_71 = arith.constant 0 : index
      %53 = vector.load %arg7[%c0_69, %c0_70, %c0_71] : memref<1x8x128xf32, #tpu.memory_space<vmem>>, vector<1x8x128xf32>
      tpu.vector_store %arg7[%c0_69, %c0_70, %c0_71], %52 {strides = array<i32>} : memref<1x8x128xf32, #tpu.memory_space<vmem>>, vector<1x8x128xf32>,
      %cst_72 = arith.constant 0.000000e+00 : bf16
      %54 = vector.broadcast %cst_72 : bf16 to vector<1x18x24x128xbf16>
      %c0_73 = arith.constant 0 : index
      %c0_74 = arith.constant 0 : index
      %c0_75 = arith.constant 0 : index
      %c0_76 = arith.constant 0 : index
      %55 = vector.load %arg8[%c0_73, %c0_74, %c0_75, %c0_76] : memref<1x18x24x128xbf16, #tpu.memory_space<vmem>>, vector<1x18x24x128xbf16>
      tpu.vector_store %arg8[%c0_73, %c0_74, %c0_75, %c0_76], %54 {strides = array<i32>} : memref<1x18x24x128xbf16, #tpu.memory_space<vmem>>, vector<1x18x24x128xbf16>,
    } else {
    }
    %c0 = arith.constant 0 : index
    %c0_1 = arith.constant 0 : index
    %c0_2 = arith.constant 0 : index
    %c0_3 = arith.constant 0 : index
    %3 = vector.load %arg2[%c0, %c0_1, %c0_2, %c0_3] : memref<1x16x16x128xbf16, #tpu.memory_space<vmem>>, vector<1x16x16x128xbf16>
    %4 = vector.shape_cast %3 : vector<1x16x16x128xbf16> to vector<16x16x128xbf16>
    %c0_4 = arith.constant 0 : index
    %c1 = arith.constant 1 : index
    %c1_5 = arith.constant 1 : index
    %c0_6 = arith.constant 0 : index
    %5 = vector.load %arg8[%c0_4, %c1, %c1_5, %c0_6] : memref<1x18x24x128xbf16, #tpu.memory_space<vmem>>, vector<1x16x16x128xbf16>
    %6 = vector.shape_cast %5 : vector<1x16x16x128xbf16> to vector<16x16x128xbf16>
    %7 = vector.shape_cast %4 : vector<16x16x128xbf16> to vector<1x16x16x128xbf16>
    tpu.vector_store %arg8[%c0_4, %c1, %c1_5, %c0_6], %7 {strides = array<i32>} : memref<1x18x24x128xbf16, #tpu.memory_space<vmem>>, vector<1x16x16x128xbf16>,
    %c0_7 = arith.constant 0 : index
    %c0_8 = arith.constant 0 : index
    %c0_9 = arith.constant 0 : index
    %c0_10 = arith.constant 0 : index
    %8 = vector.load %arg8[%c0_7, %c0_8, %c0_9, %c0_10] : memref<1x18x24x128xbf16, #tpu.memory_space<vmem>>, vector<1x16x16x128xbf16>
    %9 = vector.shape_cast %8 : vector<1x16x16x128xbf16> to vector<256x128xbf16>
    %c0_11 = arith.constant 0 : index
    %c0_12 = arith.constant 0 : index
    %c1_13 = arith.constant 1 : index
    %c0_14 = arith.constant 0 : index
    %10 = vector.load %arg8[%c0_11, %c0_12, %c1_13, %c0_14] : memref<1x18x24x128xbf16, #tpu.memory_space<vmem>>, vector<1x16x16x128xbf16>
    %11 = vector.shape_cast %10 : vector<1x16x16x128xbf16> to vector<256x128xbf16>
    %c0_15 = arith.constant 0 : index
    %c0_16 = arith.constant 0 : index
    %c2 = arith.constant 2 : index
    %c0_17 = arith.constant 0 : index
    %12 = vector.load %arg8[%c0_15, %c0_16, %c2, %c0_17] : memref<1x18x24x128xbf16, #tpu.memory_space<vmem>>, vector<1x16x16x128xbf16>
    %13 = vector.shape_cast %12 : vector<1x16x16x128xbf16> to vector<256x128xbf16>
    %c0_18 = arith.constant 0 : index
    %c1_19 = arith.constant 1 : index
    %c0_20 = arith.constant 0 : index
    %c0_21 = arith.constant 0 : index
    %14 = vector.load %arg8[%c0_18, %c1_19, %c0_20, %c0_21] : memref<1x18x24x128xbf16, #tpu.memory_space<vmem>>, vector<1x16x16x128xbf16>
    %15 = vector.shape_cast %14 : vector<1x16x16x128xbf16> to vector<256x128xbf16>
    %c0_22 = arith.constant 0 : index
    %c1_23 = arith.constant 1 : index
    %c1_24 = arith.constant 1 : index
    %c0_25 = arith.constant 0 : index
    %16 = vector.load %arg8[%c0_22, %c1_23, %c1_24, %c0_25] : memref<1x18x24x128xbf16, #tpu.memory_space<vmem>>, vector<1x16x16x128xbf16>
    %17 = vector.shape_cast %16 : vector<1x16x16x128xbf16> to vector<256x128xbf16>
    %c0_26 = arith.constant 0 : index
    %c1_27 = arith.constant 1 : index
    %c2_28 = arith.constant 2 : index
    %c0_29 = arith.constant 0 : index
    %18 = vector.load %arg8[%c0_26, %c1_27, %c2_28, %c0_29] : memref<1x18x24x128xbf16, #tpu.memory_space<vmem>>, vector<1x16x16x128xbf16>
    %19 = vector.shape_cast %18 : vector<1x16x16x128xbf16> to vector<256x128xbf16>
    %c0_30 = arith.constant 0 : index
    %c2_31 = arith.constant 2 : index
    %c0_32 = arith.constant 0 : index
    %c0_33 = arith.constant 0 : index
    %20 = vector.load %arg8[%c0_30, %c2_31, %c0_32, %c0_33] : memref<1x18x24x128xbf16, #tpu.memory_space<vmem>>, vector<1x16x16x128xbf16>
    %21 = vector.shape_cast %20 : vector<1x16x16x128xbf16> to vector<256x128xbf16>
    %c0_34 = arith.constant 0 : index
    %c2_35 = arith.constant 2 : index
    %c1_36 = arith.constant 1 : index
    %c0_37 = arith.constant 0 : index
    %22 = vector.load %arg8[%c0_34, %c2_35, %c1_36, %c0_37] : memref<1x18x24x128xbf16, #tpu.memory_space<vmem>>, vector<1x16x16x128xbf16>
    %23 = vector.shape_cast %22 : vector<1x16x16x128xbf16> to vector<256x128xbf16>
    %c0_38 = arith.constant 0 : index
    %c2_39 = arith.constant 2 : index
    %c2_40 = arith.constant 2 : index
    %c0_41 = arith.constant 0 : index
    %24 = vector.load %arg8[%c0_38, %c2_39, %c2_40, %c0_41] : memref<1x18x24x128xbf16, #tpu.memory_space<vmem>>, vector<1x16x16x128xbf16>
    %25 = vector.shape_cast %24 : vector<1x16x16x128xbf16> to vector<256x128xbf16>
    %26 = tpu.concatenate %9, %11, %13, %15, %17, %19, %21, %23, %25 in 1 : vector<256x128xbf16>, vector<256x128xbf16>, vector<256x128xbf16>, vector<256x128xbf16>, vector<256x128xbf16>, vector<256x128xbf16>, vector<256x128xbf16>, vector<256x128xbf16>, vector<256x128xbf16> -> vector<256x1152xbf16>
    %c0_42 = arith.constant 0 : index
    %c0_43 = arith.constant 0 : index
    %27 = vector.load %arg3[%c0_42, %c0_43] : memref<1152x128xbf16, #tpu.memory_space<vmem>>, vector<1152x128xbf16>
    %cst = arith.constant dense<0.000000e+00> : vector<256x128xf32>
    %28 = tpu.matmul %26, %27, %cst {dimension_numbers = #tpu.dot_dimension_numbers<[1], [0], [0], [1], [0, 0, 1, 1], [], []>} : vector<256x1152xbf16>, vector<1152x128xbf16>, vector<256x128xf32> -> vector<256x128xf32>
    %c0_44 = arith.constant 0 : index
    %c0_45 = arith.constant 0 : index
    %29 = vector.load %arg4[%c0_44, %c0_45] : memref<1x128xf32, #tpu.memory_space<vmem>>, vector<1x128xf32>
    %30 = vector.broadcast %29 : vector<1x128xf32> to vector<256x128xf32>
    %31 = arith.addf %28, %30 : vector<256x128xf32>
    %32 = vector.shape_cast %31 : vector<256x128xf32> to vector<1x16x16x128xf32>
    %33 = arith.truncf %32 : vector<1x16x16x128xf32> to vector<1x16x16x128xbf16>
    %c0_46 = arith.constant 0 : index
    %c0_47 = arith.constant 0 : index
    %c0_48 = arith.constant 0 : index
    %c0_49 = arith.constant 0 : index
    %34 = vector.load %arg5[%c0_46, %c0_47, %c0_48, %c0_49] : memref<1x16x16x128xbf16, #tpu.memory_space<vmem>>, vector<1x16x16x128xbf16>
    tpu.vector_store %arg5[%c0_46, %c0_47, %c0_48, %c0_49], %33 {strides = array<i32>} : memref<1x16x16x128xbf16, #tpu.memory_space<vmem>>, vector<1x16x16x128xbf16>,
    %c0_50 = arith.constant 0 : index
    %c0_51 = arith.constant 0 : index
    %c0_52 = arith.constant 0 : index
    %35 = vector.load %arg6[%c0_50, %c0_51, %c0_52] : memref<1x8x128xf32, #tpu.memory_space<vmem>>, vector<1x8x128xf32>
    %cst_53 = arith.constant dense<0.000000e+00> : vector<128xf32>
    %36 = vector.multi_reduction <add>, %31, %cst_53 [0] : vector<256x128xf32> to vector<128xf32>
    %37 = vector.shape_cast %36 : vector<128xf32> to vector<1x128xf32>
    %38 = vector.shape_cast %37 : vector<1x128xf32> to vector<1x1x128xf32>
    %39 = vector.broadcast %38 : vector<1x1x128xf32> to vector<1x8x128xf32>
    %40 = arith.addf %35, %39 : vector<1x8x128xf32>
    %c0_54 = arith.constant 0 : index
    %c0_55 = arith.constant 0 : index
    %c0_56 = arith.constant 0 : index
    %41 = vector.load %arg6[%c0_54, %c0_55, %c0_56] : memref<1x8x128xf32, #tpu.memory_space<vmem>>, vector<1x8x128xf32>
    tpu.vector_store %arg6[%c0_54, %c0_55, %c0_56], %40 {strides = array<i32>} : memref<1x8x128xf32, #tpu.memory_space<vmem>>, vector<1x8x128xf32>,
    %c0_57 = arith.constant 0 : index
    %c0_58 = arith.constant 0 : index
    %c0_59 = arith.constant 0 : index
    %42 = vector.load %arg7[%c0_57, %c0_58, %c0_59] : memref<1x8x128xf32, #tpu.memory_space<vmem>>, vector<1x8x128xf32>
    %43 = arith.mulf %31, %31 : vector<256x128xf32>
    %cst_60 = arith.constant dense<0.000000e+00> : vector<128xf32>
    %44 = vector.multi_reduction <add>, %43, %cst_60 [0] : vector<256x128xf32> to vector<128xf32>
    %45 = vector.shape_cast %44 : vector<128xf32> to vector<1x128xf32>
    %46 = vector.shape_cast %45 : vector<1x128xf32> to vector<1x1x128xf32>
    %47 = vector.broadcast %46 : vector<1x1x128xf32> to vector<1x8x128xf32>
    %48 = arith.addf %42, %47 : vector<1x8x128xf32>
    %c0_61 = arith.constant 0 : index
    %c0_62 = arith.constant 0 : index
    %c0_63 = arith.constant 0 : index
    %49 = vector.load %arg7[%c0_61, %c0_62, %c0_63] : memref<1x8x128xf32, #tpu.memory_space<vmem>>, vector<1x8x128xf32>
    tpu.vector_store %arg7[%c0_61, %c0_62, %c0_63], %48 {strides = array<i32>} : memref<1x8x128xf32, #tpu.memory_space<vmem>>, vector<1x8x128xf32>,
    return
  }
  func.func @transform_0(%arg0: i32, %arg1: i32) -> (i32, i32, i32, i32) {
    %c1_i32 = arith.constant 1 : i32
    %0 = arith.muli %arg0, %c1_i32 : i32
    %1 = arith.addi %0, %arg1 : i32
    %c0_i32 = arith.constant 0 : i32
    %c0_i32_0 = arith.constant 0 : i32
    %c0_i32_1 = arith.constant 0 : i32
    %c0_i32_2 = arith.constant 0 : i32
    return %1, %c0_i32, %c0_i32_0, %c0_i32_1 : i32, i32, i32, i32
  }
  func.func @transform_1(%arg0: i32, %arg1: i32) -> (i32, i32) {
    %c0_i32 = arith.constant 0 : i32
    %c0_i32_0 = arith.constant 0 : i32
    %c0_i32_1 = arith.constant 0 : i32
    return %c0_i32, %c0_i32_0 : i32, i32
  }
  func.func @transform_2(%arg0: i32, %arg1: i32) -> (i32, i32) {
    %c0_i32 = arith.constant 0 : i32
    %c0_i32_0 = arith.constant 0 : i32
    %c0_i32_1 = arith.constant 0 : i32
    return %c0_i32, %c0_i32_0 : i32, i32
  }
  func.func @transform_3(%arg0: i32, %arg1: i32) -> (i32, i32, i32, i32) {
    %c1_i32 = arith.constant 1 : i32
    %0 = arith.muli %arg0, %c1_i32 : i32
    %1 = arith.addi %0, %arg1 : i32
    %c0_i32 = arith.constant 0 : i32
    %c0_i32_0 = arith.constant 0 : i32
    %c0_i32_1 = arith.constant 0 : i32
    %c0_i32_2 = arith.constant 0 : i32
    return %1, %c0_i32, %c0_i32_0, %c0_i32_1 : i32, i32, i32, i32
  }
  func.func @transform_4(%arg0: i32, %arg1: i32) -> (i32, i32, i32) {
    %c0_i32 = arith.constant 0 : i32
    %c0_i32_0 = arith.constant 0 : i32
    %c0_i32_1 = arith.constant 0 : i32
    return %arg0, %c0_i32, %c0_i32_0 : i32, i32, i32
  }
  func.func @transform_5(%arg0: i32, %arg1: i32) -> (i32, i32, i32) {
    %c0_i32 = arith.constant 0 : i32
    %c0_i32_0 = arith.constant 0 : i32
    %c0_i32_1 = arith.constant 0 : i32
    return %arg0, %c0_i32, %c0_i32_0 : i32, i32, i32
  }
}

module attributes {stable_mosaic.version = 11 : i64} {
  func.func @_bn_relu_conv2_kernel(%arg0: i32, %arg1: i32, %arg2: memref<1x16x16x128xbf16, #tpu.memory_space<vmem>>, %arg3: memref<1x128xf32, #tpu.memory_space<vmem>>, %arg4: memref<1x128xf32, #tpu.memory_space<vmem>>, %arg5: memref<1152x128xbf16, #tpu.memory_space<vmem>>, %arg6: memref<1x128xf32, #tpu.memory_space<vmem>>, %arg7: memref<1x16x16x128xbf16, #tpu.memory_space<vmem>>, %arg8: memref<1x8x128xf32, #tpu.memory_space<vmem>>, %arg9: memref<1x8x128xf32, #tpu.memory_space<vmem>>, %arg10: memref<1x18x24x128xbf16, #tpu.memory_space<vmem>>) attributes {dimension_semantics = [#tpu.dimension_semantics<parallel>, #tpu.dimension_semantics<arbitrary>], iteration_bounds = array<i64: 2, 1>, scalar_prefetch = 0 : i64, scratch_operands = 1 : i64, tpu.core_type = #tpu.core_type<tc>, window_params = [{transform_indices = @transform_0, window_bounds = array<i64: 1, 16, 16, 128>}, {pipeline_mode = #tpu.pipeline_mode<synchronous>, transform_indices = @transform_1, window_bounds = array<i64: 1, 128>}, {pipeline_mode = #tpu.pipeline_mode<synchronous>, transform_indices = @transform_2, window_bounds = array<i64: 1, 128>}, {pipeline_mode = #tpu.pipeline_mode<synchronous>, transform_indices = @transform_3, window_bounds = array<i64: 1152, 128>}, {pipeline_mode = #tpu.pipeline_mode<synchronous>, transform_indices = @transform_4, window_bounds = array<i64: 1, 128>}, {transform_indices = @transform_5, window_bounds = array<i64: 1, 16, 16, 128>}, {transform_indices = @transform_6, window_bounds = array<i64: 1, 8, 128>}, {transform_indices = @transform_7, window_bounds = array<i64: 1, 8, 128>}]} {
    %c0_i32 = arith.constant 0 : i32
    %0 = arith.cmpi eq, %arg1, %c0_i32 : i32
    %1 = arith.extui %0 : i1 to i32
    %c0_i32_0 = arith.constant 0 : i32
    %2 = arith.cmpi ne, %1, %c0_i32_0 : i32
    scf.if %2 {
      %cst_69 = arith.constant 0.000000e+00 : f32
      %62 = vector.broadcast %cst_69 : f32 to vector<1x8x128xf32>
      %c0_70 = arith.constant 0 : index
      %c0_71 = arith.constant 0 : index
      %c0_72 = arith.constant 0 : index
      %63 = vector.load %arg8[%c0_70, %c0_71, %c0_72] : memref<1x8x128xf32, #tpu.memory_space<vmem>>, vector<1x8x128xf32>
      tpu.vector_store %arg8[%c0_70, %c0_71, %c0_72], %62 {strides = array<i32>} : memref<1x8x128xf32, #tpu.memory_space<vmem>>, vector<1x8x128xf32>,
      %cst_73 = arith.constant 0.000000e+00 : f32
      %64 = vector.broadcast %cst_73 : f32 to vector<1x8x128xf32>
      %c0_74 = arith.constant 0 : index
      %c0_75 = arith.constant 0 : index
      %c0_76 = arith.constant 0 : index
      %65 = vector.load %arg9[%c0_74, %c0_75, %c0_76] : memref<1x8x128xf32, #tpu.memory_space<vmem>>, vector<1x8x128xf32>
      tpu.vector_store %arg9[%c0_74, %c0_75, %c0_76], %64 {strides = array<i32>} : memref<1x8x128xf32, #tpu.memory_space<vmem>>, vector<1x8x128xf32>,
      %cst_77 = arith.constant 0.000000e+00 : bf16
      %66 = vector.broadcast %cst_77 : bf16 to vector<1x18x24x128xbf16>
      %c0_78 = arith.constant 0 : index
      %c0_79 = arith.constant 0 : index
      %c0_80 = arith.constant 0 : index
      %c0_81 = arith.constant 0 : index
      %67 = vector.load %arg10[%c0_78, %c0_79, %c0_80, %c0_81] : memref<1x18x24x128xbf16, #tpu.memory_space<vmem>>, vector<1x18x24x128xbf16>
      tpu.vector_store %arg10[%c0_78, %c0_79, %c0_80, %c0_81], %66 {strides = array<i32>} : memref<1x18x24x128xbf16, #tpu.memory_space<vmem>>, vector<1x18x24x128xbf16>,
    } else {
    }
    %c0 = arith.constant 0 : index
    %c0_1 = arith.constant 0 : index
    %c0_2 = arith.constant 0 : index
    %c0_3 = arith.constant 0 : index
    %3 = vector.load %arg2[%c0, %c0_1, %c0_2, %c0_3] : memref<1x16x16x128xbf16, #tpu.memory_space<vmem>>, vector<1x16x16x128xbf16>
    %4 = arith.extf %3 : vector<1x16x16x128xbf16> to vector<1x16x16x128xf32>
    %5 = vector.shape_cast %4 : vector<1x16x16x128xf32> to vector<256x128xf32>
    %c0_4 = arith.constant 0 : index
    %c0_5 = arith.constant 0 : index
    %6 = vector.load %arg3[%c0_4, %c0_5] : memref<1x128xf32, #tpu.memory_space<vmem>>, vector<1x128xf32>
    %7 = vector.broadcast %6 : vector<1x128xf32> to vector<256x128xf32>
    %8 = arith.mulf %5, %7 : vector<256x128xf32>
    %c0_6 = arith.constant 0 : index
    %c0_7 = arith.constant 0 : index
    %9 = vector.load %arg4[%c0_6, %c0_7] : memref<1x128xf32, #tpu.memory_space<vmem>>, vector<1x128xf32>
    %10 = vector.broadcast %9 : vector<1x128xf32> to vector<256x128xf32>
    %11 = arith.addf %8, %10 : vector<256x128xf32>
    %cst = arith.constant 0.000000e+00 : f32
    %12 = vector.broadcast %cst : f32 to vector<256x128xf32>
    %13 = arith.maximumf %11, %12 : vector<256x128xf32>
    %14 = arith.truncf %13 : vector<256x128xf32> to vector<256x128xbf16>
    %15 = vector.shape_cast %14 : vector<256x128xbf16> to vector<1x16x16x128xbf16>
    %16 = vector.shape_cast %15 : vector<1x16x16x128xbf16> to vector<16x16x128xbf16>
    %c0_8 = arith.constant 0 : index
    %c1 = arith.constant 1 : index
    %c1_9 = arith.constant 1 : index
    %c0_10 = arith.constant 0 : index
    %17 = vector.load %arg10[%c0_8, %c1, %c1_9, %c0_10] : memref<1x18x24x128xbf16, #tpu.memory_space<vmem>>, vector<1x16x16x128xbf16>
    %18 = vector.shape_cast %17 : vector<1x16x16x128xbf16> to vector<16x16x128xbf16>
    %19 = vector.shape_cast %16 : vector<16x16x128xbf16> to vector<1x16x16x128xbf16>
    tpu.vector_store %arg10[%c0_8, %c1, %c1_9, %c0_10], %19 {strides = array<i32>} : memref<1x18x24x128xbf16, #tpu.memory_space<vmem>>, vector<1x16x16x128xbf16>,
    %c0_11 = arith.constant 0 : index
    %c0_12 = arith.constant 0 : index
    %c0_13 = arith.constant 0 : index
    %c0_14 = arith.constant 0 : index
    %20 = vector.load %arg10[%c0_11, %c0_12, %c0_13, %c0_14] : memref<1x18x24x128xbf16, #tpu.memory_space<vmem>>, vector<1x16x16x128xbf16>
    %21 = vector.shape_cast %20 : vector<1x16x16x128xbf16> to vector<256x128xbf16>
    %c0_15 = arith.constant 0 : index
    %c0_16 = arith.constant 0 : index
    %c1_17 = arith.constant 1 : index
    %c0_18 = arith.constant 0 : index
    %22 = vector.load %arg10[%c0_15, %c0_16, %c1_17, %c0_18] : memref<1x18x24x128xbf16, #tpu.memory_space<vmem>>, vector<1x16x16x128xbf16>
    %23 = vector.shape_cast %22 : vector<1x16x16x128xbf16> to vector<256x128xbf16>
    %c0_19 = arith.constant 0 : index
    %c0_20 = arith.constant 0 : index
    %c2 = arith.constant 2 : index
    %c0_21 = arith.constant 0 : index
    %24 = vector.load %arg10[%c0_19, %c0_20, %c2, %c0_21] : memref<1x18x24x128xbf16, #tpu.memory_space<vmem>>, vector<1x16x16x128xbf16>
    %25 = vector.shape_cast %24 : vector<1x16x16x128xbf16> to vector<256x128xbf16>
    %c0_22 = arith.constant 0 : index
    %c1_23 = arith.constant 1 : index
    %c0_24 = arith.constant 0 : index
    %c0_25 = arith.constant 0 : index
    %26 = vector.load %arg10[%c0_22, %c1_23, %c0_24, %c0_25] : memref<1x18x24x128xbf16, #tpu.memory_space<vmem>>, vector<1x16x16x128xbf16>
    %27 = vector.shape_cast %26 : vector<1x16x16x128xbf16> to vector<256x128xbf16>
    %c0_26 = arith.constant 0 : index
    %c1_27 = arith.constant 1 : index
    %c1_28 = arith.constant 1 : index
    %c0_29 = arith.constant 0 : index
    %28 = vector.load %arg10[%c0_26, %c1_27, %c1_28, %c0_29] : memref<1x18x24x128xbf16, #tpu.memory_space<vmem>>, vector<1x16x16x128xbf16>
    %29 = vector.shape_cast %28 : vector<1x16x16x128xbf16> to vector<256x128xbf16>
    %c0_30 = arith.constant 0 : index
    %c1_31 = arith.constant 1 : index
    %c2_32 = arith.constant 2 : index
    %c0_33 = arith.constant 0 : index
    %30 = vector.load %arg10[%c0_30, %c1_31, %c2_32, %c0_33] : memref<1x18x24x128xbf16, #tpu.memory_space<vmem>>, vector<1x16x16x128xbf16>
    %31 = vector.shape_cast %30 : vector<1x16x16x128xbf16> to vector<256x128xbf16>
    %c0_34 = arith.constant 0 : index
    %c2_35 = arith.constant 2 : index
    %c0_36 = arith.constant 0 : index
    %c0_37 = arith.constant 0 : index
    %32 = vector.load %arg10[%c0_34, %c2_35, %c0_36, %c0_37] : memref<1x18x24x128xbf16, #tpu.memory_space<vmem>>, vector<1x16x16x128xbf16>
    %33 = vector.shape_cast %32 : vector<1x16x16x128xbf16> to vector<256x128xbf16>
    %c0_38 = arith.constant 0 : index
    %c2_39 = arith.constant 2 : index
    %c1_40 = arith.constant 1 : index
    %c0_41 = arith.constant 0 : index
    %34 = vector.load %arg10[%c0_38, %c2_39, %c1_40, %c0_41] : memref<1x18x24x128xbf16, #tpu.memory_space<vmem>>, vector<1x16x16x128xbf16>
    %35 = vector.shape_cast %34 : vector<1x16x16x128xbf16> to vector<256x128xbf16>
    %c0_42 = arith.constant 0 : index
    %c2_43 = arith.constant 2 : index
    %c2_44 = arith.constant 2 : index
    %c0_45 = arith.constant 0 : index
    %36 = vector.load %arg10[%c0_42, %c2_43, %c2_44, %c0_45] : memref<1x18x24x128xbf16, #tpu.memory_space<vmem>>, vector<1x16x16x128xbf16>
    %37 = vector.shape_cast %36 : vector<1x16x16x128xbf16> to vector<256x128xbf16>
    %38 = tpu.concatenate %21, %23, %25, %27, %29, %31, %33, %35, %37 in 1 : vector<256x128xbf16>, vector<256x128xbf16>, vector<256x128xbf16>, vector<256x128xbf16>, vector<256x128xbf16>, vector<256x128xbf16>, vector<256x128xbf16>, vector<256x128xbf16>, vector<256x128xbf16> -> vector<256x1152xbf16>
    %c0_46 = arith.constant 0 : index
    %c0_47 = arith.constant 0 : index
    %39 = vector.load %arg5[%c0_46, %c0_47] : memref<1152x128xbf16, #tpu.memory_space<vmem>>, vector<1152x128xbf16>
    %cst_48 = arith.constant dense<0.000000e+00> : vector<256x128xf32>
    %40 = tpu.matmul %38, %39, %cst_48 {dimension_numbers = #tpu.dot_dimension_numbers<[1], [0], [0], [1], [0, 0, 1, 1], [], []>} : vector<256x1152xbf16>, vector<1152x128xbf16>, vector<256x128xf32> -> vector<256x128xf32>
    %c0_49 = arith.constant 0 : index
    %c0_50 = arith.constant 0 : index
    %41 = vector.load %arg6[%c0_49, %c0_50] : memref<1x128xf32, #tpu.memory_space<vmem>>, vector<1x128xf32>
    %42 = vector.broadcast %41 : vector<1x128xf32> to vector<256x128xf32>
    %43 = arith.addf %40, %42 : vector<256x128xf32>
    %44 = vector.shape_cast %43 : vector<256x128xf32> to vector<1x16x16x128xf32>
    %45 = arith.truncf %44 : vector<1x16x16x128xf32> to vector<1x16x16x128xbf16>
    %c0_51 = arith.constant 0 : index
    %c0_52 = arith.constant 0 : index
    %c0_53 = arith.constant 0 : index
    %c0_54 = arith.constant 0 : index
    %46 = vector.load %arg7[%c0_51, %c0_52, %c0_53, %c0_54] : memref<1x16x16x128xbf16, #tpu.memory_space<vmem>>, vector<1x16x16x128xbf16>
    tpu.vector_store %arg7[%c0_51, %c0_52, %c0_53, %c0_54], %45 {strides = array<i32>} : memref<1x16x16x128xbf16, #tpu.memory_space<vmem>>, vector<1x16x16x128xbf16>,
    %c0_55 = arith.constant 0 : index
    %c0_56 = arith.constant 0 : index
    %c0_57 = arith.constant 0 : index
    %47 = vector.load %arg8[%c0_55, %c0_56, %c0_57] : memref<1x8x128xf32, #tpu.memory_space<vmem>>, vector<1x8x128xf32>
    %cst_58 = arith.constant dense<0.000000e+00> : vector<128xf32>
    %48 = vector.multi_reduction <add>, %43, %cst_58 [0] : vector<256x128xf32> to vector<128xf32>
    %49 = vector.shape_cast %48 : vector<128xf32> to vector<1x128xf32>
    %50 = vector.shape_cast %49 : vector<1x128xf32> to vector<1x1x128xf32>
    %51 = vector.broadcast %50 : vector<1x1x128xf32> to vector<1x8x128xf32>
    %52 = arith.addf %47, %51 : vector<1x8x128xf32>
    %c0_59 = arith.constant 0 : index
    %c0_60 = arith.constant 0 : index
    %c0_61 = arith.constant 0 : index
    %53 = vector.load %arg8[%c0_59, %c0_60, %c0_61] : memref<1x8x128xf32, #tpu.memory_space<vmem>>, vector<1x8x128xf32>
    tpu.vector_store %arg8[%c0_59, %c0_60, %c0_61], %52 {strides = array<i32>} : memref<1x8x128xf32, #tpu.memory_space<vmem>>, vector<1x8x128xf32>,
    %c0_62 = arith.constant 0 : index
    %c0_63 = arith.constant 0 : index
    %c0_64 = arith.constant 0 : index
    %54 = vector.load %arg9[%c0_62, %c0_63, %c0_64] : memref<1x8x128xf32, #tpu.memory_space<vmem>>, vector<1x8x128xf32>
    %55 = arith.mulf %43, %43 : vector<256x128xf32>
    %cst_65 = arith.constant dense<0.000000e+00> : vector<128xf32>
    %56 = vector.multi_reduction <add>, %55, %cst_65 [0] : vector<256x128xf32> to vector<128xf32>
    %57 = vector.shape_cast %56 : vector<128xf32> to vector<1x128xf32>
    %58 = vector.shape_cast %57 : vector<1x128xf32> to vector<1x1x128xf32>
    %59 = vector.broadcast %58 : vector<1x1x128xf32> to vector<1x8x128xf32>
    %60 = arith.addf %54, %59 : vector<1x8x128xf32>
    %c0_66 = arith.constant 0 : index
    %c0_67 = arith.constant 0 : index
    %c0_68 = arith.constant 0 : index
    %61 = vector.load %arg9[%c0_66, %c0_67, %c0_68] : memref<1x8x128xf32, #tpu.memory_space<vmem>>, vector<1x8x128xf32>
    tpu.vector_store %arg9[%c0_66, %c0_67, %c0_68], %60 {strides = array<i32>} : memref<1x8x128xf32, #tpu.memory_space<vmem>>, vector<1x8x128xf32>,
    return
  }
  func.func @transform_0(%arg0: i32, %arg1: i32) -> (i32, i32, i32, i32) {
    %c1_i32 = arith.constant 1 : i32
    %0 = arith.muli %arg0, %c1_i32 : i32
    %1 = arith.addi %0, %arg1 : i32
    %c0_i32 = arith.constant 0 : i32
    %c0_i32_0 = arith.constant 0 : i32
    %c0_i32_1 = arith.constant 0 : i32
    %c0_i32_2 = arith.constant 0 : i32
    return %1, %c0_i32, %c0_i32_0, %c0_i32_1 : i32, i32, i32, i32
  }
  func.func @transform_1(%arg0: i32, %arg1: i32) -> (i32, i32) {
    %c0_i32 = arith.constant 0 : i32
    %c0_i32_0 = arith.constant 0 : i32
    %c0_i32_1 = arith.constant 0 : i32
    return %c0_i32, %c0_i32_0 : i32, i32
  }
  func.func @transform_2(%arg0: i32, %arg1: i32) -> (i32, i32) {
    %c0_i32 = arith.constant 0 : i32
    %c0_i32_0 = arith.constant 0 : i32
    %c0_i32_1 = arith.constant 0 : i32
    return %c0_i32, %c0_i32_0 : i32, i32
  }
  func.func @transform_3(%arg0: i32, %arg1: i32) -> (i32, i32) {
    %c0_i32 = arith.constant 0 : i32
    %c0_i32_0 = arith.constant 0 : i32
    %c0_i32_1 = arith.constant 0 : i32
    return %c0_i32, %c0_i32_0 : i32, i32
  }
  func.func @transform_4(%arg0: i32, %arg1: i32) -> (i32, i32) {
    %c0_i32 = arith.constant 0 : i32
    %c0_i32_0 = arith.constant 0 : i32
    %c0_i32_1 = arith.constant 0 : i32
    return %c0_i32, %c0_i32_0 : i32, i32
  }
  func.func @transform_5(%arg0: i32, %arg1: i32) -> (i32, i32, i32, i32) {
    %c1_i32 = arith.constant 1 : i32
    %0 = arith.muli %arg0, %c1_i32 : i32
    %1 = arith.addi %0, %arg1 : i32
    %c0_i32 = arith.constant 0 : i32
    %c0_i32_0 = arith.constant 0 : i32
    %c0_i32_1 = arith.constant 0 : i32
    %c0_i32_2 = arith.constant 0 : i32
    return %1, %c0_i32, %c0_i32_0, %c0_i32_1 : i32, i32, i32, i32
  }
  func.func @transform_6(%arg0: i32, %arg1: i32) -> (i32, i32, i32) {
    %c0_i32 = arith.constant 0 : i32
    %c0_i32_0 = arith.constant 0 : i32
    %c0_i32_1 = arith.constant 0 : i32
    return %arg0, %c0_i32, %c0_i32_0 : i32, i32, i32
  }
  func.func @transform_7(%arg0: i32, %arg1: i32) -> (i32, i32, i32) {
    %c0_i32 = arith.constant 0 : i32
    %c0_i32_0 = arith.constant 0 : i32
    %c0_i32_1 = arith.constant 0 : i32
    return %arg0, %c0_i32, %c0_i32_0 : i32, i32, i32
  }
}

module attributes {stable_mosaic.version = 11 : i64} {
  func.func @_bn_add_relu_kernel(%arg0: i32, %arg1: i32, %arg2: memref<1x16x16x128xbf16, #tpu.memory_space<vmem>>, %arg3: memref<1x16x16x128xbf16, #tpu.memory_space<vmem>>, %arg4: memref<1x128xf32, #tpu.memory_space<vmem>>, %arg5: memref<1x128xf32, #tpu.memory_space<vmem>>, %arg6: memref<1x16x16x128xbf16, #tpu.memory_space<vmem>>) attributes {dimension_semantics = [#tpu.dimension_semantics<parallel>, #tpu.dimension_semantics<parallel>], iteration_bounds = array<i64: 2, 1>, scalar_prefetch = 0 : i64, scratch_operands = 0 : i64, tpu.core_type = #tpu.core_type<tc>, window_params = [{transform_indices = @transform_0, window_bounds = array<i64: 1, 16, 16, 128>}, {transform_indices = @transform_1, window_bounds = array<i64: 1, 16, 16, 128>}, {pipeline_mode = #tpu.pipeline_mode<synchronous>, transform_indices = @transform_2, window_bounds = array<i64: 1, 128>}, {pipeline_mode = #tpu.pipeline_mode<synchronous>, transform_indices = @transform_3, window_bounds = array<i64: 1, 128>}, {transform_indices = @transform_4, window_bounds = array<i64: 1, 16, 16, 128>}]} {
    %c0 = arith.constant 0 : index
    %c0_0 = arith.constant 0 : index
    %c0_1 = arith.constant 0 : index
    %c0_2 = arith.constant 0 : index
    %0 = vector.load %arg2[%c0, %c0_0, %c0_1, %c0_2] : memref<1x16x16x128xbf16, #tpu.memory_space<vmem>>, vector<1x16x16x128xbf16>
    %1 = arith.extf %0 : vector<1x16x16x128xbf16> to vector<1x16x16x128xf32>
    %2 = vector.shape_cast %1 : vector<1x16x16x128xf32> to vector<256x128xf32>
    %c0_3 = arith.constant 0 : index
    %c0_4 = arith.constant 0 : index
    %3 = vector.load %arg4[%c0_3, %c0_4] : memref<1x128xf32, #tpu.memory_space<vmem>>, vector<1x128xf32>
    %4 = vector.broadcast %3 : vector<1x128xf32> to vector<256x128xf32>
    %5 = arith.mulf %2, %4 : vector<256x128xf32>
    %c0_5 = arith.constant 0 : index
    %c0_6 = arith.constant 0 : index
    %6 = vector.load %arg5[%c0_5, %c0_6] : memref<1x128xf32, #tpu.memory_space<vmem>>, vector<1x128xf32>
    %7 = vector.broadcast %6 : vector<1x128xf32> to vector<256x128xf32>
    %8 = arith.addf %5, %7 : vector<256x128xf32>
    %c0_7 = arith.constant 0 : index
    %c0_8 = arith.constant 0 : index
    %c0_9 = arith.constant 0 : index
    %c0_10 = arith.constant 0 : index
    %9 = vector.load %arg3[%c0_7, %c0_8, %c0_9, %c0_10] : memref<1x16x16x128xbf16, #tpu.memory_space<vmem>>, vector<1x16x16x128xbf16>
    %10 = arith.extf %9 : vector<1x16x16x128xbf16> to vector<1x16x16x128xf32>
    %11 = vector.shape_cast %10 : vector<1x16x16x128xf32> to vector<256x128xf32>
    %12 = arith.addf %8, %11 : vector<256x128xf32>
    %cst = arith.constant 0.000000e+00 : f32
    %13 = vector.broadcast %cst : f32 to vector<256x128xf32>
    %14 = arith.maximumf %12, %13 : vector<256x128xf32>
    %15 = vector.shape_cast %14 : vector<256x128xf32> to vector<1x16x16x128xf32>
    %16 = arith.truncf %15 : vector<1x16x16x128xf32> to vector<1x16x16x128xbf16>
    %c0_11 = arith.constant 0 : index
    %c0_12 = arith.constant 0 : index
    %c0_13 = arith.constant 0 : index
    %c0_14 = arith.constant 0 : index
    %17 = vector.load %arg6[%c0_11, %c0_12, %c0_13, %c0_14] : memref<1x16x16x128xbf16, #tpu.memory_space<vmem>>, vector<1x16x16x128xbf16>
    tpu.vector_store %arg6[%c0_11, %c0_12, %c0_13, %c0_14], %16 {strides = array<i32>} : memref<1x16x16x128xbf16, #tpu.memory_space<vmem>>, vector<1x16x16x128xbf16>,
    return
  }
  func.func @transform_0(%arg0: i32, %arg1: i32) -> (i32, i32, i32, i32) {
    %c1_i32 = arith.constant 1 : i32
    %0 = arith.muli %arg0, %c1_i32 : i32
    %1 = arith.addi %0, %arg1 : i32
    %c0_i32 = arith.constant 0 : i32
    %c0_i32_0 = arith.constant 0 : i32
    %c0_i32_1 = arith.constant 0 : i32
    %c0_i32_2 = arith.constant 0 : i32
    return %1, %c0_i32, %c0_i32_0, %c0_i32_1 : i32, i32, i32, i32
  }
  func.func @transform_1(%arg0: i32, %arg1: i32) -> (i32, i32, i32, i32) {
    %c1_i32 = arith.constant 1 : i32
    %0 = arith.muli %arg0, %c1_i32 : i32
    %1 = arith.addi %0, %arg1 : i32
    %c0_i32 = arith.constant 0 : i32
    %c0_i32_0 = arith.constant 0 : i32
    %c0_i32_1 = arith.constant 0 : i32
    %c0_i32_2 = arith.constant 0 : i32
    return %1, %c0_i32, %c0_i32_0, %c0_i32_1 : i32, i32, i32, i32
  }
  func.func @transform_2(%arg0: i32, %arg1: i32) -> (i32, i32) {
    %c0_i32 = arith.constant 0 : i32
    %c0_i32_0 = arith.constant 0 : i32
    %c0_i32_1 = arith.constant 0 : i32
    return %c0_i32, %c0_i32_0 : i32, i32
  }
  func.func @transform_3(%arg0: i32, %arg1: i32) -> (i32, i32) {
    %c0_i32 = arith.constant 0 : i32
    %c0_i32_0 = arith.constant 0 : i32
    %c0_i32_1 = arith.constant 0 : i32
    return %c0_i32, %c0_i32_0 : i32, i32
  }
  func.func @transform_4(%arg0: i32, %arg1: i32) -> (i32, i32, i32, i32) {
    %c1_i32 = arith.constant 1 : i32
    %0 = arith.muli %arg0, %c1_i32 : i32
    %1 = arith.addi %0, %arg1 : i32
    %c0_i32 = arith.constant 0 : i32
    %c0_i32_0 = arith.constant 0 : i32
    %c0_i32_1 = arith.constant 0 : i32
    %c0_i32_2 = arith.constant 0 : i32
    return %1, %c0_i32, %c0_i32_0, %c0_i32_1 : i32, i32, i32, i32
  }
}

</mosaic_0001>

<bundles_post_ra>
// kernel: residual_block_forward.5
= control target key start
LH: loop header
LB: loop body
LE: loop exit
PB: predicated region body
PF: predicated region fallthrough
CT: control target
= control target key end

     0   :  { %s1166_s15 = smov 0   ;;  %s1168_s16 = smov 0   ;;  %s1335_s0 = inlined_call_operand.vmem [shape: bf16[2,16,16,128], index: 0, kind: input, shape index: {}]   ;;  %s1336_s1 = inlined_call_operand.vmem [shape: bf16[2,16,16,128], index: 1, kind: input, shape index: {}]   ;;  %s1337_s2 = inlined_call_operand.vmem [shape: f32[1,128], index: 2, kind: input, shape index: {}]   ;;  %s1338_s3 = inlined_call_operand.vmem [shape: f32[1,128], index: 3, kind: input, shape index: {}]   ;;  %s1339_s4 = inlined_call_operand.vmem [shape: bf16[2,16,16,128], index: 4, kind: output, shape index: {}]  }
   0x1   :  { %s1170_s17 = smov 0  }
   0x2 LB: > { %s26_s18 = sadd.s32 1, %s1135_s16  ;;  %p762_p0 = scmp.ge.s32.totalorder %s1139_s17, 1  ;;  %s1139_s17 = sphi %s1170_s17, %s14_s17   ;;  %s1135_s16 = sphi %s1168_s16, %s1341_s16   ;;  %s1131_s15 = sphi %s1166_s15, %s1340_s15  }
   0x3   : > { %p28_p1 = scmp.ge.s32.totalorder %s26_s18, 2  ;;  %p194_p2 = scmp.lt.s32.totalorder %s1139_s17, 3 }
   0x5   : > { %s1343_s18 = smov (%p28_p1, %s26_s18), 0  ;;  %p195_p3 = pnand %p762_p0, %p194_p2 }
   0x6   : > { %p229_p4 = scmp.lt.s32.totalorder (!%p195_p3), %s1131_s15, 1  ;;  %v1201_v0 = vld [vmem:[%s1337_s2] ss:$0 sm:$0xff] (!%p195_p3) }
   0x7   : > { %198 = sbr.rel (%p195_p3) target bundleno = 77 (0x4d), region = 36  ;;  %v1212_v11 = vld [vmem:[%s1338_s3] ss:$0 sm:$0xff] (!%p195_p3) }
   0xe   : > { %s1345_s15 = smov (!%p229_p4, %s1131_s15), 1 }
   0xf   : > { %s1184_s19 = sshll.u32 %s1345_s15, 7 }
  0x10   : > { %s1190_s22 = scalar_lea.vmem %s1335_s0, %s1184_s19  ;;  %s1196_s25 = scalar_lea.vmem %s1336_s1, %s1184_s19 }
  0x11   : > { %v841_v1 = vld [vmem:[%s1190_s22] sm:$0xff]   ;;  %v1048_v3 = vld [vmem:[%s1190_s22 + $0x8] sm:$0xff]   ;;  %v1049_v9 = vld [vmem:[%s1190_s22 + $0x10] sm:$0xff]   ;;  %s1235_s6 = scalar_lea.vmem %s1339_s4, %s1184_s19 }
  0x12   : > { %v905_v2 = vld [vmem:[%s1196_s25] sm:$0xff]   ;;  %v842_v4 = vunpack.c.l.bf16 %v841_v1  ;;  %v843_v5 = vunpack.c.h.bf16 %v841_v1  ;;  %v1063_v8 = vld [vmem:[%s1196_s25 + $0x8] sm:$0xff]   ;;  %v1064_v10 = vld [vmem:[%s1196_s25 + $0x10] sm:$0xff]   ;;  %v846_v12 = vunpack.c.l.bf16 %v1048_v3  ;;  %v847_v13 = vunpack.c.h.bf16 %v1048_v3 }
  0x13   : > { %v906_v6 = vunpack.c.l.bf16 %v905_v2  ;;  %v907_v7 = vunpack.c.h.bf16 %v905_v2  ;;  %v910_v14 = vunpack.c.l.bf16 %v1063_v8  ;;  %v911_v15 = vunpack.c.h.bf16 %v1063_v8  ;;  %v1050_v20 = vld [vmem:[%s1190_s22 + $0x18] sm:$0xff]   ;;  %v1051_v46 = vld [vmem:[%s1190_s22 + $0x20] sm:$0xff]   ;;  %v1052_v56 = vld [vmem:[%s1190_s22 + $0x28] sm:$0xff]  }
  0x14   : > { %v320_v16 = vmul.f32 %v842_v4, %v1201_v0  ;;  %v321_v17 = vmul.f32 %v843_v5, %v1201_v0  ;;  %v850_v18 = vunpack.c.l.bf16 %v1049_v9  ;;  %v851_v19 = vunpack.c.h.bf16 %v1049_v9  ;;  %v1065_v41 = vld [vmem:[%s1196_s25 + $0x18] sm:$0xff]   ;;  %v1066_v51 = vld [vmem:[%s1196_s25 + $0x20] sm:$0xff]   ;;  %v1067_v61 = vld [vmem:[%s1196_s25 + $0x28] sm:$0xff]  }
  0x15   : > { %v322_v21 = vmul.f32 %v846_v12, %v1201_v0  ;;  %v323_v22 = vmul.f32 %v847_v13, %v1201_v0  ;;  %v914_v23 = vunpack.c.l.bf16 %v1064_v10  ;;  %v915_v24 = vunpack.c.h.bf16 %v1064_v10  ;;  %v1068_v8 = vld [vmem:[%s1196_s25 + $0x30] sm:$0xff]  }
  0x16   : > { %v359_v25 = vadd.f32 %v1212_v11, %v320_v16  ;;  %v360_v26 = vadd.f32 %v1212_v11, %v321_v17  ;;  %v324_v27 = vmul.f32 %v850_v18, %v1201_v0  ;;  %v325_v28 = vmul.f32 %v851_v19, %v1201_v0 }
  0x17   : > { %v361_v29 = vadd.f32 %v1212_v11, %v322_v21  ;;  %v362_v30 = vadd.f32 %v1212_v11, %v323_v22  ;;  %v854_v31 = vunpack.c.l.bf16 %v1050_v20  ;;  %v855_v32 = vunpack.c.h.bf16 %v1050_v20  ;;  %v1054_v22 = vld [vmem:[%s1190_s22 + $0x38] sm:$0xff]  }
  0x18   : > { %v455_v33 = vadd.f32 %v906_v6, %v359_v25  ;;  %v456_v34 = vadd.f32 %v907_v7, %v360_v26  ;;  %v363_v35 = vadd.f32 %v1212_v11, %v324_v27  ;;  %v364_v36 = vadd.f32 %v1212_v11, %v325_v28  ;;  %v1053_v7 = vld [vmem:[%s1190_s22 + $0x30] sm:$0xff]  }
  0x19   : > { %v457_v37 = vadd.f32 %v910_v14, %v361_v29  ;;  %v458_v38 = vadd.f32 %v911_v15, %v362_v30  ;;  %v326_v39 = vmul.f32 %v854_v31, %v1201_v0  ;;  %v327_v40 = vmul.f32 %v855_v32, %v1201_v0  ;;  %v1069_v31 = vld [vmem:[%s1196_s25 + $0x38] sm:$0xff]  }
  0x1a   : > { %v487_v42 = vmax.f32 %v455_v33, 0.0  ;;  %v488_v43 = vmax.f32 %v456_v34, 0.0  ;;  %v459_v44 = vadd.f32 %v914_v23, %v363_v35  ;;  %v460_v45 = vadd.f32 %v915_v24, %v364_v36 }
  0x1b   : > { %v489_v47 = vmax.f32 %v457_v37, 0.0  ;;  %v490_v48 = vmax.f32 %v458_v38, 0.0  ;;  %v365_v49 = vadd.f32 %v1212_v11, %v326_v39  ;;  %v366_v50 = vadd.f32 %v1212_v11, %v327_v40  ;;  %v1055_v40 = vld [vmem:[%s1190_s22 + $0x40] sm:$0xff]  }
  0x1c   : > { %v971_v52 = vpack.c.bf16 %v488_v43, %v487_v42  ;;  %v491_v53 = vmax.f32 %v459_v44, 0.0  ;;  %v492_v54 = vmax.f32 %v460_v45, 0.0  ;;  %v918_v55 = vunpack.c.l.bf16 %v1065_v41 }
  0x1d   : > { %v976_v57 = vpack.c.bf16 %v490_v48, %v489_v47  ;;  %v919_v58 = vunpack.c.h.bf16 %v1065_v41  ;;  %v858_v59 = vunpack.c.l.bf16 %v1051_v46  ;;  %v859_v60 = vunpack.c.h.bf16 %v1051_v46 }
  0x1e   : > { %972 = vst [vmem:[%s1235_s6] sm:$0xff] %v971_v52   ;;  %v981_v62 = vpack.c.bf16 %v492_v54, %v491_v53  ;;  %v461_v63 = vadd.f32 %v918_v55, %v365_v49  ;;  %v922_v1 = vunpack.c.l.bf16 %v1066_v51  ;;  %v923_v2 = vunpack.c.h.bf16 %v1066_v51  ;;  %v1070_v49 = vld [vmem:[%s1196_s25 + $0x40] sm:$0xff]   ;;  %v1056_v54 = vld [vmem:[%s1190_s22 + $0x48] sm:$0xff]  }
  0x1f   : > { %1078 = vst [vmem:[%s1235_s6 + $0x8] sm:$0xff] %v976_v57   ;;  %v462_v3 = vadd.f32 %v919_v58, %v366_v50  ;;  %v328_v4 = vmul.f32 %v858_v59, %v1201_v0  ;;  %v329_v5 = vmul.f32 %v859_v60, %v1201_v0  ;;  %v862_v6 = vunpack.c.l.bf16 %v1052_v56 }
  0x20   : > { %1079 = vst [vmem:[%s1235_s6 + $0x10] sm:$0xff] %v981_v62   ;;  %v493_v9 = vmax.f32 %v461_v63, 0.0  ;;  %v863_v10 = vunpack.c.h.bf16 %v1052_v56  ;;  %v926_v12 = vunpack.c.l.bf16 %v1067_v61  ;;  %v927_v13 = vunpack.c.h.bf16 %v1067_v61  ;;  %v1071_v63 = vld [vmem:[%s1196_s25 + $0x48] sm:$0xff]  }
  0x21   : > { %v494_v14 = vmax.f32 %v462_v3, 0.0  ;;  %v367_v15 = vadd.f32 %v1212_v11, %v328_v4  ;;  %v368_v16 = vadd.f32 %v1212_v11, %v329_v5  ;;  %v330_v17 = vmul.f32 %v862_v6, %v1201_v0  ;;  %v1057_v5 = vld [vmem:[%s1190_s22 + $0x50] sm:$0xff]  }
  0x22   : > { %v331_v18 = vmul.f32 %v863_v10, %v1201_v0  ;;  %v866_v19 = vunpack.c.l.bf16 %v1053_v7  ;;  %v867_v20 = vunpack.c.h.bf16 %v1053_v7  ;;  %v930_v21 = vunpack.c.l.bf16 %v1068_v8  ;;  %v1072_v10 = vld [vmem:[%s1196_s25 + $0x50] sm:$0xff]  }
  0x23   : > { %v986_v23 = vpack.c.bf16 %v494_v14, %v493_v9  ;;  %v463_v24 = vadd.f32 %v922_v1, %v367_v15  ;;  %v464_v25 = vadd.f32 %v923_v2, %v368_v16  ;;  %v369_v26 = vadd.f32 %v1212_v11, %v330_v17 }
  0x24   : > { %v370_v27 = vadd.f32 %v1212_v11, %v331_v18  ;;  %v332_v28 = vmul.f32 %v866_v19, %v1201_v0  ;;  %v333_v29 = vmul.f32 %v867_v20, %v1201_v0  ;;  %v931_v30 = vunpack.c.h.bf16 %v1068_v8  ;;  %v1058_v20 = vld [vmem:[%s1190_s22 + $0x58] sm:$0xff]  }
  0x25   : > { %1080 = vst [vmem:[%s1235_s6 + $0x18] sm:$0xff] %v986_v23   ;;  %v495_v32 = vmax.f32 %v463_v24, 0.0  ;;  %v496_v33 = vmax.f32 %v464_v25, 0.0  ;;  %v465_v34 = vadd.f32 %v926_v12, %v369_v26  ;;  %v870_v35 = vunpack.c.l.bf16 %v1054_v22 }
  0x26   : > { %v466_v36 = vadd.f32 %v927_v13, %v370_v27  ;;  %v371_v37 = vadd.f32 %v1212_v11, %v332_v28  ;;  %v372_v38 = vadd.f32 %v1212_v11, %v333_v29  ;;  %v871_v39 = vunpack.c.h.bf16 %v1054_v22  ;;  %v1073_v29 = vld [vmem:[%s1196_s25 + $0x58] sm:$0xff]  }
  0x27   : > { %v991_v41 = vpack.c.bf16 %v496_v33, %v495_v32  ;;  %v497_v42 = vmax.f32 %v465_v34, 0.0  ;;  %v334_v43 = vmul.f32 %v870_v35, %v1201_v0  ;;  %v934_v44 = vunpack.c.l.bf16 %v1069_v31 }
  0x28   : > { %v498_v45 = vmax.f32 %v466_v36, 0.0  ;;  %v467_v46 = vadd.f32 %v930_v21, %v371_v37  ;;  %v468_v47 = vadd.f32 %v931_v30, %v372_v38  ;;  %v335_v48 = vmul.f32 %v871_v39, %v1201_v0  ;;  %v1059_v38 = vld [vmem:[%s1190_s22 + $0x60] sm:$0xff]  }
  0x29   : > { %1081 = vst [vmem:[%s1235_s6 + $0x20] sm:$0xff] %v991_v41   ;;  %v373_v50 = vadd.f32 %v1212_v11, %v334_v43  ;;  %v935_v51 = vunpack.c.h.bf16 %v1069_v31  ;;  %v874_v52 = vunpack.c.l.bf16 %v1055_v40  ;;  %v875_v53 = vunpack.c.h.bf16 %v1055_v40  ;;  %v1074_v43 = vld [vmem:[%s1196_s25 + $0x60] sm:$0xff]  }
  0x2a   : > { %v996_v55 = vpack.c.bf16 %v498_v45, %v497_v42  ;;  %v499_v56 = vmax.f32 %v467_v46, 0.0  ;;  %v500_v57 = vmax.f32 %v468_v47, 0.0  ;;  %v374_v58 = vadd.f32 %v1212_v11, %v335_v48 }
  0x2b   : > { %v469_v59 = vadd.f32 %v934_v44, %v373_v50  ;;  %v336_v60 = vmul.f32 %v874_v52, %v1201_v0  ;;  %v337_v61 = vmul.f32 %v875_v53, %v1201_v0  ;;  %v938_v62 = vunpack.c.l.bf16 %v1070_v49  ;;  %v1060_v52 = vld [vmem:[%s1190_s22 + $0x68] sm:$0xff]  }
  0x2c   : > { %1082 = vst [vmem:[%s1235_s6 + $0x28] sm:$0xff] %v996_v55   ;;  %v1001_v1 = vpack.c.bf16 %v500_v57, %v499_v56  ;;  %v470_v2 = vadd.f32 %v935_v51, %v374_v58  ;;  %v939_v3 = vunpack.c.h.bf16 %v1070_v49  ;;  %v878_v4 = vunpack.c.l.bf16 %v1056_v54 }
  0x2d   : > { %v501_v6 = vmax.f32 %v469_v59, 0.0  ;;  %v375_v7 = vadd.f32 %v1212_v11, %v336_v60  ;;  %v376_v8 = vadd.f32 %v1212_v11, %v337_v61  ;;  %v879_v9 = vunpack.c.h.bf16 %v1056_v54  ;;  %v1075_v61 = vld [vmem:[%s1196_s25 + $0x68] sm:$0xff]  }
  0x2e   : > { %1083 = vst [vmem:[%s1235_s6 + $0x30] sm:$0xff] %v1001_v1   ;;  %v502_v12 = vmax.f32 %v470_v2, 0.0  ;;  %v338_v13 = vmul.f32 %v878_v4, %v1201_v0  ;;  %v942_v14 = vunpack.c.l.bf16 %v1071_v63  ;;  %v943_v15 = vunpack.c.h.bf16 %v1071_v63 }
  0x2f   : > { %v471_v16 = vadd.f32 %v938_v62, %v375_v7  ;;  %v472_v17 = vadd.f32 %v939_v3, %v376_v8  ;;  %v339_v18 = vmul.f32 %v879_v9, %v1201_v0  ;;  %v882_v19 = vunpack.c.l.bf16 %v1057_v5  ;;  %v1061_v3 = vld [vmem:[%s1190_s22 + $0x70] sm:$0xff]  }
  0x30   : > { %v1006_v21 = vpack.c.bf16 %v502_v12, %v501_v6  ;;  %v377_v22 = vadd.f32 %v1212_v11, %v338_v13  ;;  %v883_v23 = vunpack.c.h.bf16 %v1057_v5  ;;  %v946_v24 = vunpack.c.l.bf16 %v1072_v10  ;;  %v1076_v13 = vld [vmem:[%s1196_s25 + $0x70] sm:$0xff]  }
  0x31   : > { %v503_v25 = vmax.f32 %v471_v16, 0.0  ;;  %v504_v26 = vmax.f32 %v472_v17, 0.0  ;;  %v378_v27 = vadd.f32 %v1212_v11, %v339_v18  ;;  %v340_v28 = vmul.f32 %v882_v19, %v1201_v0 }
  0x32   : > { %1084 = vst [vmem:[%s1235_s6 + $0x38] sm:$0xff] %v1006_v21   ;;  %v473_v30 = vadd.f32 %v942_v14, %v377_v22  ;;  %v341_v31 = vmul.f32 %v883_v23, %v1201_v0  ;;  %v947_v32 = vunpack.c.h.bf16 %v1072_v10  ;;  %v886_v33 = vunpack.c.l.bf16 %v1058_v20  ;;  %v1062_v22 = vld [vmem:[%s1190_s22 + $0x78] sm:$0xff]  }
  0x33   : > { %v1011_v34 = vpack.c.bf16 %v504_v26, %v503_v25  ;;  %v474_v35 = vadd.f32 %v943_v15, %v378_v27  ;;  %v379_v36 = vadd.f32 %v1212_v11, %v340_v28  ;;  %v887_v37 = vunpack.c.h.bf16 %v1058_v20  ;;  %v1077_v27 = vld [vmem:[%s1196_s25 + $0x78] sm:$0xff]  }
  0x34   : > { %v505_v39 = vmax.f32 %v473_v30, 0.0  ;;  %v380_v40 = vadd.f32 %v1212_v11, %v341_v31  ;;  %v342_v41 = vmul.f32 %v886_v33, %v1201_v0  ;;  %v950_v42 = vunpack.c.l.bf16 %v1073_v29 }
  0x35   : > { %1085 = vst [vmem:[%s1235_s6 + $0x40] sm:$0xff] %v1011_v34   ;;  %v506_v44 = vmax.f32 %v474_v35, 0.0  ;;  %v475_v45 = vadd.f32 %v946_v24, %v379_v36  ;;  %v343_v46 = vmul.f32 %v887_v37, %v1201_v0  ;;  %v951_v47 = vunpack.c.h.bf16 %v1073_v29 }
  0x36   : > { %v476_v48 = vadd.f32 %v947_v32, %v380_v40  ;;  %v381_v49 = vadd.f32 %v1212_v11, %v342_v41  ;;  %v890_v50 = vunpack.c.l.bf16 %v1059_v38  ;;  %v891_v51 = vunpack.c.h.bf16 %v1059_v38 }
  0x37   : > { %v1016_v53 = vpack.c.bf16 %v506_v44, %v505_v39  ;;  %v507_v54 = vmax.f32 %v475_v45, 0.0  ;;  %v382_v55 = vadd.f32 %v1212_v11, %v343_v46  ;;  %v954_v56 = vunpack.c.l.bf16 %v1074_v43 }
  0x38   : > { %v508_v57 = vmax.f32 %v476_v48, 0.0  ;;  %v477_v58 = vadd.f32 %v950_v42, %v381_v49  ;;  %v344_v59 = vmul.f32 %v890_v50, %v1201_v0  ;;  %v345_v60 = vmul.f32 %v891_v51, %v1201_v0 }
  0x39   : > { %1086 = vst [vmem:[%s1235_s6 + $0x48] sm:$0xff] %v1016_v53   ;;  %v478_v62 = vadd.f32 %v951_v47, %v382_v55  ;;  %v955_v63 = vunpack.c.h.bf16 %v1074_v43  ;;  %v894_v1 = vunpack.c.l.bf16 %v1060_v52  ;;  %v895_v2 = vunpack.c.h.bf16 %v1060_v52 }
  0x3a   : > { %v1021_v4 = vpack.c.bf16 %v508_v57, %v507_v54  ;;  %v509_v5 = vmax.f32 %v477_v58, 0.0  ;;  %v383_v6 = vadd.f32 %v1212_v11, %v344_v59  ;;  %v384_v7 = vadd.f32 %v1212_v11, %v345_v60 }
  0x3b   : > { %v510_v8 = vmax.f32 %v478_v62, 0.0  ;;  %v346_v9 = vmul.f32 %v894_v1, %v1201_v0  ;;  %v347_v10 = vmul.f32 %v895_v2, %v1201_v0  ;;  %v958_v12 = vunpack.c.l.bf16 %v1075_v61 }
  0x3c   : > { %1087 = vst [vmem:[%s1235_s6 + $0x50] sm:$0xff] %v1021_v4   ;;  %v479_v14 = vadd.f32 %v954_v56, %v383_v6  ;;  %v480_v15 = vadd.f32 %v955_v63, %v384_v7  ;;  %v959_v16 = vunpack.c.h.bf16 %v1075_v61  ;;  %v898_v17 = vunpack.c.l.bf16 %v1061_v3 }
  0x3d   : > { %v1026_v18 = vpack.c.bf16 %v510_v8, %v509_v5  ;;  %v385_v19 = vadd.f32 %v1212_v11, %v346_v9  ;;  %v386_v20 = vadd.f32 %v1212_v11, %v347_v10  ;;  %v899_v21 = vunpack.c.h.bf16 %v1061_v3 }
  0x3e   : > { %v511_v23 = vmax.f32 %v479_v14, 0.0  ;;  %v512_v24 = vmax.f32 %v480_v15, 0.0  ;;  %v348_v25 = vmul.f32 %v898_v17, %v1201_v0  ;;  %v962_v26 = vunpack.c.l.bf16 %v1076_v13 }
  0x3f   : > { %1088 = vst [vmem:[%s1235_s6 + $0x58] sm:$0xff] %v1026_v18   ;;  %v481_v28 = vadd.f32 %v958_v12, %v385_v19  ;;  %v482_v29 = vadd.f32 %v959_v16, %v386_v20  ;;  %v349_v30 = vmul.f32 %v899_v21, %v1201_v0  ;;  %v963_v31 = vunpack.c.h.bf16 %v1076_v13 }
  0x40   : > { %v1031_v32 = vpack.c.bf16 %v512_v24, %v511_v23  ;;  %v387_v33 = vadd.f32 %v1212_v11, %v348_v25  ;;  %v902_v34 = vunpack.c.l.bf16 %v1062_v22  ;;  %v903_v35 = vunpack.c.h.bf16 %v1062_v22 }
  0x41   : > { %v513_v36 = vmax.f32 %v481_v28, 0.0  ;;  %v514_v37 = vmax.f32 %v482_v29, 0.0  ;;  %v388_v38 = vadd.f32 %v1212_v11, %v349_v30  ;;  %v966_v39 = vunpack.c.l.bf16 %v1077_v27 }
  0x42   : > { %1089 = vst [vmem:[%s1235_s6 + $0x60] sm:$0xff] %v1031_v32   ;;  %v483_v40 = vadd.f32 %v962_v26, %v387_v33  ;;  %v350_v41 = vmul.f32 %v902_v34, %v1201_v0  ;;  %v351_v42 = vmul.f32 %v903_v35, %v1201_v0  ;;  %v967_v43 = vunpack.c.h.bf16 %v1077_v27 }
  0x43   : > { %v1036_v44 = vpack.c.bf16 %v514_v37, %v513_v36  ;;  %v484_v45 = vadd.f32 %v963_v31, %v388_v38 }
  0x44   : > { %v515_v46 = vmax.f32 %v483_v40, 0.0  ;;  %v389_v47 = vadd.f32 %v1212_v11, %v350_v41  ;;  %v390_v48 = vadd.f32 %v1212_v11, %v351_v42 }
  0x45   : > { %1090 = vst [vmem:[%s1235_s6 + $0x68] sm:$0xff] %v1036_v44   ;;  %v516_v49 = vmax.f32 %v484_v45, 0.0 }
  0x46   : > { %v485_v50 = vadd.f32 %v966_v39, %v389_v47  ;;  %v486_v51 = vadd.f32 %v967_v43, %v390_v48 }
  0x47   : > { %v1041_v52 = vpack.c.bf16 %v516_v49, %v515_v46 }
  0x48   : > { %v517_v53 = vmax.f32 %v485_v50, 0.0  ;;  %v518_v54 = vmax.f32 %v486_v51, 0.0 }
  0x49   : > { %1091 = vst [vmem:[%s1235_s6 + $0x70] sm:$0xff] %v1041_v52  }
  0x4a   : > { %v1046_v55 = vpack.c.bf16 %v518_v54, %v517_v53 }
  0x4c   : > { %1092 = vst [vmem:[%s1235_s6 + $0x78] sm:$0xff] %v1046_v55  }
  0x4d PF: > { %s14_s17 = sadd.s32 1, %s1139_s17   ;;  %s1340_s15 = smov %s1135_s16 }
  0x4e   : > { %p11_p5 = scmp.ge.s32.totalorder %s14_s17, 4   ;;  %s1341_s16 = smov %s1343_s18 }
  0x50   :  { %13 = sbr.rel (!%p11_p5) target bundleno = 2 (0x2), region = 69 }

// kernel: residual_block_forward.3
= control target key start
LH: loop header
LB: loop body
LE: loop exit
PB: predicated region body
PF: predicated region fallthrough
CT: control target
= control target key end

     0   :  { %s6237_s18 = smov 0   ;;  %s6239_s19 = smov 0   ;;  %s8563_s0 = inlined_call_operand.vmem [shape: bf16[2,16,16,128], index: 0, kind: input, shape index: {}]   ;;  %s8564_s1 = inlined_call_operand.vmem [shape: bf16[1152,128], index: 1, kind: input, shape index: {}]   ;;  %s8565_s2 = inlined_call_operand.vmem [shape: f32[1,128], index: 2, kind: input, shape index: {}]   ;;  %s8566_s3 = inlined_call_operand.vmem [shape: bf16[2,16,16,128], index: 3, kind: output, shape index: {0}]   ;;  %s8567_s4 = inlined_call_operand.vmem [shape: f32[2,8,128], index: 4, kind: output, shape index: {1}]   ;;  %s8568_s5 = inlined_call_operand.vmem [shape: f32[2,8,128], index: 5, kind: output, shape index: {2}]  }
   0x1   :  { %s6241_s20 = smov 0  }
   0x2 LB: > { %s28_s21 = sadd.s32 1, %s6200_s19  ;;  %p5052_p0 = scmp.ge.s32.totalorder %s6204_s20, 1  ;;  %s6204_s20 = sphi %s6241_s20, %s16_s20   ;;  %s6200_s19 = sphi %s6239_s19, %s8646_s19   ;;  %s6196_s18 = sphi %s6237_s18, %s8645_s18  }
   0x3   : > { %p30_p1 = scmp.ge.s32.totalorder %s28_s21, 2  ;;  %p210_p2 = scmp.lt.s32.totalorder %s6204_s20, 3 }
   0x5   : > { %s8648_s21 = smov (%p30_p1, %s28_s21), 0  ;;  %p211_p3 = pnand %p5052_p0, %p210_p2 }
   0x7   : > { %214 = sbr.rel (%p211_p3) target bundleno = 654 (0x28e), region = 32 }
   0xe   : > { %v6049_v0 = vld [vmem:[%s8564_s1 + $0x40] sm:$0xff]   ;;  %v6206_v2 = vmov 0   ;;  %v6051_v3 = vld [vmem:[%s8564_s1 + $0x48] sm:$0xff]   ;;  %v6053_v5 = vld [vmem:[%s8564_s1 + $0x50] sm:$0xff]   ;;  %p249_p4 = scmp.lt.s32.totalorder %s6196_s18, 1  ;;  %vm1303_vm0 = vcmask 1042432  }
   0xf   : > { %v6050_v1 = vld [vmem:[%s8564_s1] sm:$0xff]   ;;  %277 = vst [vmem:[#allocation2] sm:$0xf] %v6206_v2  ;;  %278 = vst [vmem:[#allocation2 + $0x4] sm:$0xf] %v6206_v2  ;;  %5487 = vmatprep.subr.bf16.mxu0 %v6049_v0  ;;  %6007 = vmatprep.subr.bf16.mxu1 %v6049_v0  ;;  %v6052_v4 = vld [vmem:[%s8564_s1 + $0x8] sm:$0xff]  }
  0x10   : > { %279 = vst [vmem:[#allocation2 + $0x8] sm:$0xf] %v6206_v2  ;;  %280 = vst [vmem:[#allocation2 + $0xc] sm:$0xf] %v6206_v2  ;;  %5488 = vmatpush3.bf16.msra.mxu0 %v6050_v1  ;;  %6015 = vmatpush3.bf16.msra.mxu1 %v6050_v1  ;;  %v6054_v6 = vld [vmem:[%s8564_s1 + $0x10] sm:$0xff]   ;;  %v6055_v7 = vld [vmem:[%s8564_s1 + $0x58] sm:$0xff]  }
  0x11   : > { %281 = vst [vmem:[#allocation2 + $0x10] sm:$0xf] %v6206_v2  ;;  %282 = vst [vmem:[#allocation2 + $0x14] sm:$0xf] %v6206_v2  ;;  %5489 = vmatprep.subr.bf16.mxu0 %v6051_v3  ;;  %6008 = vmatprep.subr.bf16.mxu1 %v6051_v3  ;;  %s8650_s18 = smov (!%p249_p4, %s6196_s18), 1  ;;  %v6056_v8 = vld [vmem:[%s8564_s1 + $0x18] sm:$0xff]  }
  0x12   : > { %283 = vst [vmem:[#allocation2 + $0x18] sm:$0xf] %v6206_v2  ;;  %284 = vst [vmem:[#allocation2 + $0x1c] sm:$0xf] %v6206_v2  ;;  %v6057_v9 = vld [vmem:[%s8564_s1 + $0x60] sm:$0xff]   ;;  %s5358_s15 = sshll.u32 %s8650_s18, 7 }
  0x13   : > { %285 = vst [vmem:[#allocation2 + $0x20] sm:$0xf] %v6206_v2  ;;  %286 = vst [vmem:[#allocation2 + $0x24] sm:$0xf] %v6206_v2  ;;  %vm1304_vm1 = vcmask 1046532   ;;  %v6058_v10 = vld [vmem:[%s8564_s1 + $0x20] sm:$0xff]   ;;  %s6300_s26 = scalar_lea.vmem %s8563_s0, %s5358_s15  ;;  %s8485_s22 = scalar_lea.vmem %s8566_s3, %s5358_s15 }
  0x14   : > { %287 = vst [vmem:[#allocation2 + $0x28] sm:$0xf] %v6206_v2  ;;  %288 = vst [vmem:[#allocation2 + $0x2c] sm:$0xf] %v6206_v2  ;;  %5490 = vmatpush3.bf16.msra.mxu0 %v6052_v4  ;;  %6016 = vmatpush3.bf16.msra.mxu1 %v6052_v4  ;;  %vm687_vm2 = vcmask 1043456   ;;  %v6059_v11 = vld [vmem:[%s8564_s1 + $0x68] sm:$0xff]  }
  0x15   : > { %289 = vst [vmem:[#allocation2 + $0x30] sm:$0xf] %v6206_v2  ;;  %290 = vst [vmem:[#allocation2 + $0x34] sm:$0xf] %v6206_v2  ;;  %5491 = vmatprep.subr.bf16.mxu0 %v6053_v5  ;;  %6009 = vmatprep.subr.bf16.mxu1 %v6053_v5  ;;  %vm694_vm3 = vcmask 1040384   ;;  %v6060_v15 = vld [vmem:[%s8564_s1 + $0x28] sm:$0xff]  }
  0x16   : > { %291 = vst [vmem:[#allocation2 + $0x38] sm:$0xf] %v6206_v2  ;;  %292 = vst [vmem:[#allocation2 + $0x3c] sm:$0xf] %v6206_v2  ;;  %v6302_v12 = vld [vmem:[#allocation2] sm:$0xf] }
  0x17   : > { %293 = vst [vmem:[#allocation2 + $0x40] sm:$0xf] %v6206_v2  ;;  %294 = vst [vmem:[#allocation2 + $0x44] sm:$0xf] %v6206_v2  ;;  %v6304_v13 = vld [vmem:[#allocation2 + $0x4] sm:$0xf] }
  0x18   : > { %295 = vst [vmem:[#allocation2 + $0x48] sm:$0xf] %v6206_v2  ;;  %296 = vst [vmem:[#allocation2 + $0x4c] sm:$0xf] %v6206_v2  ;;  %5492 = vmatpush3.bf16.msra.mxu0 %v6054_v6  ;;  %6017 = vmatpush3.bf16.msra.mxu1 %v6054_v6  ;;  %v836_v14 = vld [vmem:[#allocation2 + $0x8] sm:$0x1]  ;;  %v5107_v1 = vcombine.low %v6302_v12, %v6304_v13 }
  0x19   : > { %297 = vst [vmem:[#allocation2 + $0x50] sm:$0xf] %v6206_v2  ;;  %298 = vst [vmem:[#allocation2 + $0x54] sm:$0xf] %v6206_v2  ;;  %5493 = vmatprep.subr.bf16.mxu0 %v6055_v7  ;;  %6010 = vmatprep.subr.bf16.mxu1 %v6055_v7  ;;  %vm852_vm4 = vsmask.f32 3328 }
  0x1a   : > { %299 = vst [vmem:[#allocation2 + $0x58] sm:$0xf] %v6206_v2  ;;  %300 = vst [vmem:[#allocation2 + $0x5c] sm:$0xf] %v6206_v2  ;;  %vm853_vm5 = vsmask.f32 7440 }
  0x1b   : > { %301 = vst [vmem:[#allocation2 + $0x60] sm:$0xf] %v6206_v2  ;;  %302 = vst [vmem:[#allocation2 + $0x64] sm:$0xf] %v6206_v2  ;;  %v856_v16 = vshrl.u32 %v6302_v12, 16  ;;  %v859_v17 = vshll.u32 %v6302_v12, 16 }
  0x1c   : > { %303 = vst [vmem:[#allocation2 + $0x68] sm:$0xf] %v6206_v2  ;;  %304 = vst [vmem:[#allocation2 + $0x6c] sm:$0xf] %v6206_v2  ;;  %5494 = vmatpush3.bf16.msra.mxu0 %v6056_v8  ;;  %6018 = vmatpush3.bf16.msra.mxu1 %v6056_v8  ;;  %v865_v18 = vshll.u32 %v6304_v13, 16  ;;  %v869_v19 = vshrl.u32 %v6304_v13, 16 }
  0x1d   : > { %305 = vst [vmem:[#allocation2 + $0x70] sm:$0xf] %v6206_v2  ;;  %306 = vst [vmem:[#allocation2 + $0x74] sm:$0xf] %v6206_v2  ;;  %5495 = vmatprep.subr.bf16.mxu0 %v6057_v9  ;;  %6011 = vmatprep.subr.bf16.mxu1 %v6057_v9  ;;  %v875_v20 = vshll.u32 %v836_v14, 16  ;;  %v1308_v21 = vrot.slane %v6304_v13, 5 }
  0x1e   : > { %307 = vst [vmem:[#allocation2 + $0x78] sm:$0xf] %v6206_v2  ;;  %308 = vst [vmem:[#allocation2 + $0x7c] sm:$0xf] %v6206_v2  ;;  %v353_v22 = vld [vmem:[%s6300_s26 + $0x58] sm:$0xf] }
  0x1f   : > { %309 = vst [vmem:[#allocation2 + $0x80] sm:$0xf] %v6206_v2  ;;  %310 = vst [vmem:[#allocation2 + $0x84] sm:$0xf] %v6206_v2  ;;  %v858_v23 = vrot.slane %v856_v16, 4  ;;  %v861_v24 = vrot.slane %v859_v17, 5 }
  0x20   : > { %311 = vst [vmem:[#allocation2 + $0x88] sm:$0xf] %v6206_v2  ;;  %312 = vst [vmem:[#allocation2 + $0x8c] sm:$0xf] %v6206_v2  ;;  %5496 = vmatpush3.bf16.msra.mxu0 %v6058_v10  ;;  %6019 = vmatpush3.bf16.msra.mxu1 %v6058_v10  ;;  %v1311_v26 = vrot.slane %v836_v14, 5  ;;  %v554_v28 = vshrl.u32 %v353_v22, 16 }
  0x21   : > { %313 = vst [vmem:[#allocation2 + $0x90] sm:$0xf] %v6206_v2  ;;  %314 = vst [vmem:[#allocation2 + $0x94] sm:$0xf] %v6206_v2  ;;  %v354_v27 = vld [vmem:[%s6300_s26 + $0x5c] sm:$0xf]  ;;  %5497 = vmatprep.subr.bf16.mxu0 %v6059_v11  ;;  %6012 = vmatprep.subr.bf16.mxu1 %v6059_v11  ;;  %v862_v36 = vor.u32 %v861_v24, %v858_v23 }
  0x22   : > { %315 = vst [vmem:[#allocation2 + $0x98] sm:$0xf] %v6206_v2  ;;  %316 = vst [vmem:[#allocation2 + $0x9c] sm:$0xf] %v6206_v2  ;;  %v6061_v29 = vld [vmem:[%s8564_s1 + $0x70] sm:$0xff]   ;;  %v867_v30 = vrot.slane %v865_v18, 5 }
  0x23   : > { %317 = vst [vmem:[#allocation2 + $0xa0] sm:$0xf] %v6206_v2  ;;  %318 = vst [vmem:[#allocation2 + $0xa4] sm:$0xf] %v6206_v2  ;;  %v871_v31 = vrot.slane %v869_v19, 4  ;;  %v877_v32 = vrot.slane %v875_v20, 5 }
  0x24   : > { %319 = vst [vmem:[#allocation2 + $0xa8] sm:$0xf] %v6206_v2  ;;  %320 = vst [vmem:[#allocation2 + $0xac] sm:$0xf] %v6206_v2  ;;  %v1310_v33 = vrot.slane %v1308_v21, 4  ;;  %v6062_v34 = vld [vmem:[%s8564_s1 + $0x30] sm:$0xff]   ;;  %5498 = vmatpush3.bf16.msra.mxu0 %v6060_v15  ;;  %6020 = vmatpush3.bf16.msra.mxu1 %v6060_v15 }
  0x25   : > { %321 = vst [vmem:[#allocation2 + $0xb0] sm:$0xf] %v6206_v2  ;;  %322 = vst [vmem:[#allocation2 + $0xb4] sm:$0xf] %v6206_v2  ;;  %vm363_vm8 = vsmask.f32 256  ;;  %v872_v38 = vor.u32 %v871_v31, %v867_v30  ;;  %5499 = vmatprep.subr.bf16.mxu0 %v6061_v29  ;;  %6013 = vmatprep.subr.bf16.mxu1 %v6061_v29 }
  0x26   : > { %323 = vst [vmem:[#allocation2 + $0xb8] sm:$0xf] %v6206_v2  ;;  %324 = vst [vmem:[#allocation2 + $0xbc] sm:$0xf] %v6206_v2  ;;  %vm364_vm9 = vsmask.f32 4368 }
  0x27   : > { %325 = vst [vmem:[#allocation2 + $0xc0] sm:$0xf] %v6206_v2  ;;  %326 = vst [vmem:[#allocation2 + $0xc4] sm:$0xf] %v6206_v2  ;;  %v556_v37 = vrot.slane %v554_v28, 7  ;;  %v557_v41 = vshll.u32 %v353_v22, 16 }
  0x28   : > { %327 = vst [vmem:[#allocation2 + $0xc8] sm:$0xf] %v6206_v2  ;;  %328 = vst [vmem:[#allocation2 + $0xcc] sm:$0xf] %v6206_v2  ;;  %v562_v42 = vshrl.u32 %v354_v27, 16  ;;  %v6063_v44 = vld [vmem:[%s8564_s1 + $0x78] sm:$0xff]   ;;  %5500 = vmatpush3.bf16.msra.mxu0 %v6062_v34  ;;  %6021 = vmatpush3.bf16.msra.mxu1 %v6062_v34 }
  0x29   : > { %329 = vst [vmem:[#allocation2 + $0xd0] sm:$0xf] %v6206_v2  ;;  %330 = vst [vmem:[#allocation2 + $0xd4] sm:$0xf] %v6206_v2  ;;  %v769_v43 = vld [vmem:[#allocation2 + $0x90] sm:$0xf]  ;;  %v559_v51 = vor.u32 %v557_v41, %v556_v37  ;;  %5501 = vmatprep.subr.bf16.mxu0 %v6063_v44  ;;  %6014 = vmatprep.subr.bf16.mxu1 %v6063_v44 }
  0x2a   : > { %vm6317_vm6 = vmor %vm1303_vm0, %vm1304_vm1  ;;  %v863_v45 = vrot.slane %v862_v36, 4  ;;  %v560_v46 = vrot.slane %v556_v37, 4  ;;  %v565_v47 = vshll.u32 %v354_v27, 16  ;;  %vm688_vm11 = vsmask.f32 7938  ;;  %v6064_v55 = vld [vmem:[%s8564_s1 + $0x38] sm:$0xff]  }
  0x2b   : > { %vm6332_vm7 = vmor %vm852_vm4, %vm853_vm5  ;;  %v6338_v39 = vsel %vm6317_vm6, %v1310_v33, %v1311_v26  ;;  %v8583_v48 = vmov 0  ;;  %v773_v49 = vld [vmem:[#allocation2 + $0x98] sm:$0x1]  ;;  %v873_v50 = vrot.slane %v872_v38, 4  ;;  %v564_v52 = vrot.slane %v562_v42, 7  ;;  %v6067_v61 = vld [vmem:[%s8564_s1 + $0xc0] sm:$0xff]  }
  0x2c   : > { %vm6341_vm10 = vmor %vm363_vm8, %vm364_vm9  ;;  %v868_v54 = vsel %vm6332_vm7, %v863_v45, %v867_v30  ;;  %v6068_v0 = vld [vmem:[%s8564_s1 + $0x140] sm:$0xff]   ;;  %5502 = vmatpush3.bf16.msra.mxu0 %v6064_v55  ;;  %6022 = vmatpush3.bf16.msra.mxu1 %v6064_v55  ;;  %v690_v9 = vld [vmem:[#allocation2 + $0xc] sm:$0xf]  ;;  %s5057_s15 = sshll.u32 %s8650_s18, 3 }
  0x2d   : > { %vm6350_vm12 = vmand %vm694_vm3, %vm363_vm8  ;;  %v878_v56 = vsel %vm6332_vm7, %v873_v50, %v877_v32  ;;  %v567_v57 = vor.u32 %v565_v47, %v564_v52  ;;  %v569_v58 = vrot.slane %v564_v52, 4  ;;  %v331_v2 = vld [vmem:[%s6300_s26] sm:$0xf]  ;;  %v332_v3 = vld [vmem:[%s6300_s26 + $0x4] sm:$0xf]  ;;  %5599 = vmatprep.subr.bf16.mxu1 %v6067_v61  ;;  %5711 = vmatprep.subr.bf16.mxu0 %v6068_v0  ;;  %s265_s25 = scalar_lea.vmem %s8567_s4, %s5057_s15  ;;  %s269_s29 = scalar_lea.vmem %s8568_s5, %s5057_s15 }
  0x2e   : > { %v8584_v48 = vsel %vm6350_vm12, 4294967295, %v8583_v48  ;;  %vm6355_vm13 = vmand %vm687_vm2, %vm688_vm11  ;;  %v5123_v60 = vcombine.low %v868_v54, %v878_v56  ;;  %v6070_v4 = vld [vmem:[%s8564_s1 + $0x100] sm:$0xff]   ;;  %v367_v5 = vshrl.u32 %v331_v2, 16  ;;  %v370_v6 = vshll.u32 %v331_v2, 16  ;;  %v696_v12 = vld [vmem:[#allocation2 + $0x14] sm:$0x1] }
  0x2f   : > { %8585 = vst [vmem:[#allocation3_spill] sm:$0xff] %v8584_v48  ;;  %v770_v59 = vsel %vm6355_vm13, %v559_v51, %v769_v43  ;;  %v568_v62 = vsel %vm6341_vm10, %v560_v46, %v567_v57  ;;  %v774_v63 = vsel %vm6350_vm12, %v569_v58, %v773_v49  ;;  %v375_v7 = vshrl.u32 %v332_v3, 16  ;;  %v355_v10 = vld [vmem:[%s6300_s26 + $0x60] sm:$0xf]  ;;  %v356_v11 = vld [vmem:[%s6300_s26 + $0x64] sm:$0xf] }
  0x30   : > { %771 = vst [vmem:[#allocation2 + $0x90] sm:$0xf] %v770_v59  ;;  %3874 = vmatprep.mubr.bf16.mxu0 %v5123_v60  ;;  %772 = vst [vmem:[#allocation2 + $0x94] sm:$0xf] %v568_v62  ;;  %v378_v8 = vshll.u32 %v332_v3, 16  ;;  %v369_v14 = vrot.slane %v367_v5, 7 }
  0x31   : > { %775 = vst [vmem:[#allocation2 + $0x98] sm:$0x1] %v774_v63  ;;  %v377_v15 = vrot.slane %v375_v7, 7  ;;  %v571_v16 = vshrl.u32 %v355_v10, 16  ;;  %v574_v17 = vshll.u32 %v355_v10, 16  ;;  %v579_v18 = vshrl.u32 %v356_v11, 16  ;;  %3875 = vmatmul.mubr.bf16.vlgmr.msra.gmra.mrb[0].mxu0 %v5107_v1 }
  0x32   : > { %v582_v19 = vshll.u32 %v356_v11, 16  ;;  %v372_v22 = vor.u32 %v370_v6, %v369_v14  ;;  %v373_v23 = vrot.slane %v369_v14, 4  ;;  %5712 = vmatpush3.bf16.msra.mxu0 %v6070_v4  ;;  %v776_v31 = vld [vmem:[#allocation2 + $0x9c] sm:$0xf]  ;;  %v780_v44 = vld [vmem:[#allocation2 + $0xa4] sm:$0x1] }
  0x33   : > { %v380_v24 = vor.u32 %v378_v8, %v377_v15  ;;  %v382_v26 = vrot.slane %v377_v15, 4  ;;  %v573_v29 = vrot.slane %v571_v16, 7  ;;  %v581_v30 = vrot.slane %v579_v18, 7  ;;  %v6078_v57 = vld [vmem:[%s8564_s1 + $0x148] sm:$0xff]   ;;  %v6069_v15 = vld [vmem:[%s8564_s1 + $0x80] sm:$0xff]  }
  0x34   : > { %v691_v36 = vsel %vm6355_vm13, %v372_v22, %v690_v9  ;;  %v6080_v60 = vld [vmem:[%s8564_s1 + $0x108] sm:$0xff]   ;;  %5713 = vmatprep.subr.bf16.mxu0 %v6078_v57 }
  0x35   : > { %v381_v34 = vsel %vm6341_vm10, %v373_v23, %v380_v24  ;;  %v697_v37 = vsel %vm6350_vm12, %v382_v26, %v696_v12  ;;  %692 = vst [vmem:[#allocation2 + $0xc] sm:$0xf] %v691_v36  ;;  %v576_v46 = vor.u32 %v574_v17, %v573_v29  ;;  %v577_v51 = vrot.slane %v573_v29, 4  ;;  %v333_v63 = vld [vmem:[%s6300_s26 + $0x8] sm:$0xf]  ;;  %v6075_v36 = vld [vmem:[%s8564_s1 + $0xd0] sm:$0xff]  }
  0x36   : > { %693 = vst [vmem:[#allocation2 + $0x10] sm:$0xf] %v381_v34  ;;  %698 = vst [vmem:[#allocation2 + $0x14] sm:$0x1] %v697_v37  ;;  %v584_v54 = vor.u32 %v582_v19, %v581_v30  ;;  %v586_v55 = vrot.slane %v581_v30, 4  ;;  %5714 = vmatpush3.bf16.msra.mxu0 %v6080_v60  ;;  %v384_v2 = vshrl.u32 %v333_v63, 16 }
  0x37   : > { %v6387_v20 = vld [vmem:[#allocation2 + $0x90] sm:$0xf]  ;;  %v6391_v32 = vld [vmem:[#allocation2 + $0x94] sm:$0xf]  ;;  %v777_v56 = vsel %vm6355_vm13, %v576_v46, %v776_v31  ;;  %v334_v11 = vld [vmem:[%s6300_s26 + $0xc] sm:$0xf] }
  0x38   : > { %v1144_v27 = vshrl.u32 %v6387_v20, 16  ;;  %v1147_v28 = vshll.u32 %v6387_v20, 16  ;;  %v6393_v33 = vld [vmem:[#allocation2 + $0x98] sm:$0x1]  ;;  %v1153_v42 = vshll.u32 %v6391_v32, 16  ;;  %v1157_v43 = vshrl.u32 %v6391_v32, 16 }
  0x39   : > { %v1163_v45 = vshll.u32 %v6393_v33, 16  ;;  %778 = vst [vmem:[#allocation2 + $0x9c] sm:$0xf] %v777_v56  ;;  %v585_v61 = vsel %vm6341_vm10, %v577_v51, %v584_v54  ;;  %v781_v62 = vsel %vm6350_vm12, %v586_v55, %v780_v44  ;;  %v5119_v3 = vcombine.low %v6387_v20, %v6391_v32  ;;  %v6071_v18 = vld [vmem:[%s8564_s1 + $0xc8] sm:$0xff]   ;;  %v699_v46 = vld [vmem:[#allocation2 + $0x18] sm:$0xf] }
  0x3a   : > { %v1146_v38 = vrot.slane %v1144_v27, 4  ;;  %v1149_v41 = vrot.slane %v1147_v28, 5  ;;  %v1155_v49 = vrot.slane %v1153_v42, 5  ;;  %v1159_v50 = vrot.slane %v1157_v43, 4  ;;  %779 = vst [vmem:[#allocation2 + $0xa0] sm:$0xf] %v585_v61 }
  0x3b   : > { %v1165_v52 = vrot.slane %v1163_v45, 5  ;;  %782 = vst [vmem:[#allocation2 + $0xa4] sm:$0x1] %v781_v62  ;;  %v387_v17 = vshll.u32 %v333_v63, 16  ;;  %v386_v23 = vrot.slane %v384_v2, 7  ;;  %v392_v29 = vshrl.u32 %v334_v11, 16 }
  0x3c   : > { %v1150_v47 = vor.u32 %v1149_v41, %v1146_v38  ;;  %v1160_v59 = vor.u32 %v1159_v50, %v1155_v49  ;;  %v6421_v4 = vld [vmem:[#allocation2 + $0xc] sm:$0xf]  ;;  %v395_v37 = vshll.u32 %v334_v11, 16  ;;  %v357_v54 = vld [vmem:[%s6300_s26 + $0x68] sm:$0xf]  ;;  %v6076_v63 = vld [vmem:[%s8564_s1 + $0x90] sm:$0xff]  }
  0x3d   : > { %v6423_v5 = vld [vmem:[#allocation2 + $0x10] sm:$0xf]  ;;  %v6425_v6 = vld [vmem:[#allocation2 + $0x14] sm:$0x1]  ;;  %v880_v8 = vshrl.u32 %v6421_v4, 16  ;;  %v883_v9 = vshll.u32 %v6421_v4, 16  ;;  %v389_v43 = vor.u32 %v387_v17, %v386_v23 }
  0x3e   : > { %v1151_v58 = vrot.slane %v1150_v47, 4  ;;  %v1161_v1 = vrot.slane %v1160_v59, 4  ;;  %v889_v10 = vshll.u32 %v6423_v5, 16  ;;  %v893_v12 = vshrl.u32 %v6423_v5, 16  ;;  %v6072_v30 = vld [vmem:[%s8564_s1 + $0x88] sm:$0xff]  }
  0x3f   : > { %v899_v16 = vshll.u32 %v6425_v6, 16  ;;  %v882_v19 = vrot.slane %v880_v8, 4  ;;  %v885_v20 = vrot.slane %v883_v9, 5  ;;  %v390_v44 = vrot.slane %v386_v23, 4  ;;  %v358_v59 = vld [vmem:[%s6300_s26 + $0x6c] sm:$0xf] }
  0x40   : > { %v1156_v0 = vsel %vm6332_vm7, %v1151_v58, %v1155_v49  ;;  %v1166_v7 = vsel %vm6332_vm7, %v1161_v1, %v1165_v52  ;;  %v891_v22 = vrot.slane %v889_v10, 5  ;;  %v895_v26 = vrot.slane %v893_v12, 4  ;;  %v6442_v28 = vld [vmem:[#allocation2 + $0x9c] sm:$0xf]  ;;  %v703_v52 = vld [vmem:[#allocation2 + $0x20] sm:$0x1] }
  0x41   : > { %v5135_v14 = vcombine.low %v1156_v0, %v1166_v7  ;;  %v901_v27 = vrot.slane %v899_v16, 5  ;;  %v886_v31 = vor.u32 %v885_v20, %v882_v19  ;;  %v1168_v32 = vshrl.u32 %v6442_v28, 16  ;;  %v6452_v41 = vld [vmem:[#allocation2 + $0xa0] sm:$0xf]  ;;  %v6079_v12 = vld [vmem:[%s8564_s1 + $0x98] sm:$0xff]  }
  0x42   : > { %v1171_v34 = vshll.u32 %v6442_v28, 16  ;;  %v896_v38 = vor.u32 %v895_v26, %v891_v22  ;;  %v849_v42 = vld [vmem:[#allocation2 + $0xa4] sm:$0x1]  ;;  %v394_v45 = vrot.slane %v392_v29, 7  ;;  %v1177_v51 = vshll.u32 %v6452_v41, 16 }
  0x43   : > { %3970 = vmatprep.mubr.bf16.mxu1 %v5135_v14  ;;  %v887_v47 = vrot.slane %v886_v31, 4  ;;  %v1170_v49 = vrot.slane %v1168_v32, 4  ;;  %v1181_v56 = vshrl.u32 %v6452_v41, 16  ;;  %v1187_v57 = vshll.u32 %v849_v42, 16  ;;  %v6090_v14 = vld [vmem:[%s8564_s1 + $0x150] sm:$0xff]   ;;  %v6083_v26 = vld [vmem:[%s8564_s1 + $0xe0] sm:$0xff]  }
  0x44   : > { %3971 = vmatmul.mubr.bf16.vlgmr.msra.gmra.mrb[0].mxu1 %v5119_v3  ;;  %v1173_v50 = vrot.slane %v1171_v34, 5  ;;  %v897_v55 = vrot.slane %v896_v38, 4  ;;  %v5108_v58 = vcombine.low %v6421_v4, %v6423_v5  ;;  %v1179_v62 = vrot.slane %v1177_v51, 5  ;;  %v6077_v4 = vld [vmem:[%s8564_s1 + $0xd8] sm:$0xff]   ;;  %v335_v19 = vld [vmem:[%s6300_s26 + $0x10] sm:$0xf]  ;;  %5715 = vmatprep.subr.bf16.mxu0 %v6090_v14 }
  0x45   : > { %5600 = vmatpush3.bf16.msra.mxu1 %v6069_v15  ;;  %v892_v60 = vsel %vm6332_vm7, %v887_v47, %v891_v22  ;;  %v397_v0 = vor.u32 %v395_v37, %v394_v45  ;;  %v1183_v2 = vrot.slane %v1181_v56, 4  ;;  %v1189_v3 = vrot.slane %v1187_v57, 5  ;;  %v783_v32 = vld [vmem:[#allocation2 + $0xa8] sm:$0xf]  ;;  %v787_v42 = vld [vmem:[#allocation2 + $0xb0] sm:$0x1] }
  0x46   : > { %5601 = vmatprep.subr.bf16.mxu1 %v6071_v18  ;;  %v1174_v61 = vor.u32 %v1173_v50, %v1170_v49  ;;  %v902_v1 = vsel %vm6332_vm7, %v897_v55, %v901_v27  ;;  %v399_v7 = vrot.slane %v394_v45, 4  ;;  %v700_v11 = vsel %vm6355_vm13, %v389_v43, %v699_v46  ;;  %v336_v27 = vld [vmem:[%s6300_s26 + $0x14] sm:$0xf]  ;;  %v706_v51 = vld [vmem:[#allocation2 + $0x24] sm:$0xf] }
  0x47   : > { %v5124_v8 = vcombine.low %v892_v60, %v902_v1  ;;  %v398_v10 = vsel %vm6341_vm10, %v390_v44, %v397_v0  ;;  %v1184_v15 = vor.u32 %v1183_v2, %v1179_v62  ;;  %701 = vst [vmem:[#allocation2 + $0x18] sm:$0xf] %v700_v11  ;;  %v588_v17 = vshrl.u32 %v357_v54, 16  ;;  %v6092_v45 = vld [vmem:[%s8564_s1 + $0x110] sm:$0xff]   ;;  %v6084_v55 = vld [vmem:[%s8564_s1 + $0xa0] sm:$0xff]  }
  0x48   : > { %v1175_v9 = vrot.slane %v1174_v61, 4  ;;  %702 = vst [vmem:[#allocation2 + $0x1c] sm:$0xf] %v398_v10  ;;  %v704_v16 = vsel %vm6350_vm12, %v399_v7, %v703_v52  ;;  %v591_v18 = vshll.u32 %v357_v54, 16  ;;  %v596_v22 = vshrl.u32 %v358_v59, 16  ;;  %5716 = vmatpush3.bf16.msra.mxu0 %v6092_v45 }
  0x49   : > { %5602 = vmatpush3.bf16.msra.mxu1 %v6072_v30  ;;  %3882 = vmatprep.mubr.bf16.mxu0 %v5124_v8  ;;  %705 = vst [vmem:[#allocation2 + $0x20] sm:$0x1] %v704_v16  ;;  %v599_v23 = vshll.u32 %v358_v59, 16  ;;  %v401_v29 = vshrl.u32 %v335_v19, 16  ;;  %v1185_v30 = vrot.slane %v1184_v15, 4  ;;  %v590_v31 = vrot.slane %v588_v17, 7 }
  0x4a   : > { %5603 = vmatprep.subr.bf16.mxu1 %v6075_v36  ;;  %v1180_v20 = vsel %vm6332_vm7, %v1175_v9, %v1179_v62  ;;  %3883 = vmatmul.mubr.bf16.gmra.mrb[4].mxu0 %v5108_v58  ;;  %v404_v34 = vshll.u32 %v335_v19, 16  ;;  %v409_v36 = vshrl.u32 %v336_v27, 16  ;;  %v5120_v37 = vcombine.low %v6442_v28, %v6452_v41  ;;  %v359_v52 = vld [vmem:[%s6300_s26 + $0x70] sm:$0xf]  ;;  %v710_v57 = vld [vmem:[#allocation2 + $0x2c] sm:$0x1] }
  0x4b   : > { %v598_v38 = vrot.slane %v596_v22, 7  ;;  %v403_v43 = vrot.slane %v401_v29, 7  ;;  %v412_v44 = vshll.u32 %v336_v27, 16  ;;  %v1190_v46 = vsel %vm6332_vm7, %v1185_v30, %v1189_v3  ;;  %v360_v62 = vld [vmem:[%s6300_s26 + $0x74] sm:$0xf]  ;;  %v6085_v3 = vld [vmem:[%s8564_s1 + $0xe8] sm:$0xff]  }
  0x4c   : > { %v593_v47 = vor.u32 %v591_v18, %v590_v31  ;;  %v594_v49 = vrot.slane %v590_v31, 4  ;;  %v411_v50 = vrot.slane %v409_v36, 7  ;;  %v5136_v54 = vcombine.low %v1180_v20, %v1190_v46  ;;  %v6089_v30 = vld [vmem:[%s8564_s1 + $0xf0] sm:$0xff]  }
  0x4d   : > { %5604 = vmatpush3.bf16.msra.mxu1 %v6076_v63  ;;  %v601_v28 = vor.u32 %v599_v23, %v598_v38  ;;  %v603_v41 = vrot.slane %v598_v38, 4  ;;  %v406_v56 = vor.u32 %v404_v34, %v403_v43  ;;  %v407_v59 = vrot.slane %v403_v43, 4  ;;  %v790_v23 = vld [vmem:[#allocation2 + $0xb4] sm:$0xf] }
  0x4e   : > { %5605 = vmatprep.subr.bf16.mxu1 %v6077_v4  ;;  %v784_v58 = vsel %vm6355_vm13, %v593_v47, %v783_v32  ;;  %v414_v60 = vor.u32 %v412_v44, %v411_v50  ;;  %v416_v61 = vrot.slane %v411_v50, 4  ;;  %3978 = vmatprep.mubr.bf16.mxu1 %v5136_v54  ;;  %v6503_v63 = vld [vmem:[#allocation2 + $0x18] sm:$0xf]  ;;  %v605_v7 = vshrl.u32 %v359_v52, 16 }
  0x4f   : > { %v6505_v0 = vld [vmem:[#allocation2 + $0x1c] sm:$0xf]  ;;  %v602_v1 = vsel %vm6341_vm10, %v594_v49, %v601_v28  ;;  %785 = vst [vmem:[#allocation2 + $0xa8] sm:$0xf] %v784_v58  ;;  %v788_v2 = vsel %vm6350_vm12, %v603_v41, %v787_v42  ;;  %v707_v4 = vsel %vm6355_vm13, %v406_v56, %v706_v51  ;;  %3979 = vmatmul.mubr.bf16.gmra.mrb[4].mxu1 %v5120_v37  ;;  %v904_v9 = vshrl.u32 %v6503_v63, 16  ;;  %v6091_v37 = vld [vmem:[%s8564_s1 + $0xb0] sm:$0xff]  }
  0x50   : > { %v6516_v8 = vld [vmem:[#allocation2 + $0x20] sm:$0x1]  ;;  %v907_v10 = vshll.u32 %v6503_v63, 16  ;;  %v913_v11 = vshll.u32 %v6505_v0, 16  ;;  %v917_v14 = vshrl.u32 %v6505_v0, 16  ;;  %v415_v16 = vsel %vm6341_vm10, %v407_v59, %v414_v60  ;;  %v6093_v44 = vld [vmem:[%s8564_s1 + $0xf8] sm:$0xff]  }
  0x51   : > { %5606 = vmatpush3.bf16.msra.mxu1 %v6079_v12  ;;  %786 = vst [vmem:[#allocation2 + $0xac] sm:$0xf] %v602_v1  ;;  %789 = vst [vmem:[#allocation2 + $0xb0] sm:$0x1] %v788_v2  ;;  %v923_v15 = vshll.u32 %v6516_v8, 16  ;;  %v6086_v12 = vld [vmem:[%s8564_s1 + $0xa8] sm:$0xff]   ;;  %v711_v17 = vsel %vm6350_vm12, %v416_v61, %v710_v57  ;;  %v5109_v49 = vcombine.low %v6503_v63, %v6505_v0 }
  0x52   : > { %5607 = vmatprep.subr.bf16.mxu1 %v6083_v26  ;;  %708 = vst [vmem:[#allocation2 + $0x24] sm:$0xf] %v707_v4  ;;  %v906_v18 = vrot.slane %v904_v9, 4  ;;  %v909_v19 = vrot.slane %v907_v10, 5  ;;  %v915_v20 = vrot.slane %v913_v11, 5  ;;  %v919_v22 = vrot.slane %v917_v14, 4 }
  0x53   : > { %709 = vst [vmem:[#allocation2 + $0x28] sm:$0xf] %v415_v16  ;;  %712 = vst [vmem:[#allocation2 + $0x2c] sm:$0x1] %v711_v17  ;;  %v6530_v26 = vrot.slane %v605_v7, 7  ;;  %v608_v27 = vshll.u32 %v359_v52, 16 }
  0x54   : > { %v613_v29 = vshrl.u32 %v360_v62, 16  ;;  %v910_v31 = vor.u32 %v909_v19, %v906_v18  ;;  %v920_v32 = vor.u32 %v919_v22, %v915_v20  ;;  %v925_v34 = vrot.slane %v923_v15, 5  ;;  %v6094_v60 = vld [vmem:[%s8564_s1 + $0xb8] sm:$0xff]   ;;  %v6097_v18 = vld [vmem:[%s8564_s1 + $0x1c0] sm:$0xff]  }
  0x55   : > { %5608 = vmatpush3.bf16.msra.mxu1 %v6084_v55  ;;  %v616_v36 = vshll.u32 %v360_v62, 16  ;;  %v610_v38 = vor.u32 %v608_v27, %v6530_v26  ;;  %v611_v42 = vrot.slane %v6530_v26, 4  ;;  %v6100_v14 = vld [vmem:[%s8564_s1 + $0x118] sm:$0xff]   ;;  %v6105_v19 = vld [vmem:[%s8564_s1 + $0x160] sm:$0xff]  }
  0x56   : > { %5609 = vmatprep.subr.bf16.mxu1 %v6085_v3  ;;  %v6540_v43 = vrot.slane %v613_v29, 7  ;;  %v911_v45 = vrot.slane %v910_v31, 4  ;;  %v921_v46 = vrot.slane %v920_v32, 4  ;;  %v6545_v47 = vld [vmem:[#allocation2 + $0xa8] sm:$0xf]  ;;  %v6099_v3 = vld [vmem:[%s8564_s1 + $0x158] sm:$0xff]  }
  0x57   : > { %v1192_v52 = vshrl.u32 %v6545_v47, 16  ;;  %v1195_v54 = vshll.u32 %v6545_v47, 16  ;;  %v791_v41 = vsel %vm6355_vm13, %v610_v38, %v790_v23  ;;  %v337_v27 = vld [vmem:[%s6300_s26 + $0x18] sm:$0xf]  ;;  %5717 = vmatprep.subr.bf16.mxu0 %v6099_v3 }
  0x58   : > { %v6549_v50 = vld [vmem:[#allocation2 + $0xac] sm:$0xf]  ;;  %v850_v51 = vld [vmem:[#allocation2 + $0xb0] sm:$0x1]  ;;  %v618_v28 = vor.u32 %v616_v36, %v6540_v43  ;;  %v916_v55 = vsel %vm6332_vm7, %v911_v45, %v915_v20  ;;  %v926_v56 = vsel %vm6332_vm7, %v921_v46, %v925_v34  ;;  %792 = vst [vmem:[#allocation2 + $0xb4] sm:$0xf] %v791_v41  ;;  %5718 = vmatpush3.bf16.msra.mxu0 %v6100_v14 }
  0x59   : > { %5610 = vmatpush3.bf16.msra.mxu1 %v6086_v12  ;;  %v1201_v57 = vshll.u32 %v6549_v50, 16  ;;  %v1205_v58 = vshrl.u32 %v6549_v50, 16  ;;  %v6562_v59 = vld [vmem:[#allocation2 + $0x24] sm:$0xf]  ;;  %v5125_v61 = vcombine.low %v916_v55, %v926_v56  ;;  %v1194_v62 = vrot.slane %v1192_v52, 4  ;;  %5719 = vmatprep.subr.bf16.mxu0 %v6105_v19  ;;  %v6111_v56 = vld [vmem:[%s8564_s1 + $0x168] sm:$0xff]  }
  0x5a   : > { %5611 = vmatprep.subr.bf16.mxu1 %v6089_v30  ;;  %v1197_v63 = vrot.slane %v1195_v54, 5  ;;  %v1211_v1 = vshll.u32 %v850_v51, 16  ;;  %v6567_v2 = vld [vmem:[#allocation2 + $0x28] sm:$0xf]  ;;  %v5121_v9 = vcombine.low %v6545_v47, %v6549_v50  ;;  %v6574_v10 = vld [vmem:[#allocation2 + $0x2c] sm:$0x1]  ;;  %v619_v32 = vsel %vm6341_vm10, %v611_v42, %v618_v28 }
  0x5b   : > { %v1203_v4 = vrot.slane %v1201_v57, 5  ;;  %v1207_v7 = vrot.slane %v1205_v58, 4  ;;  %v928_v11 = vshrl.u32 %v6562_v59, 16  ;;  %3890 = vmatprep.mubr.bf16.mxu0 %v5125_v61  ;;  %v931_v16 = vshll.u32 %v6562_v59, 16  ;;  %v794_v34 = vld [vmem:[#allocation2 + $0xbc] sm:$0x1] }
  0x5c   : > { %v1198_v15 = vor.u32 %v1197_v63, %v1194_v62  ;;  %v1213_v12 = vrot.slane %v1211_v1, 5  ;;  %v937_v17 = vshll.u32 %v6567_v2, 16  ;;  %3891 = vmatmul.mubr.bf16.gmra.mrb[8].mxu0 %v5109_v49  ;;  %v941_v23 = vshrl.u32 %v6567_v2, 16  ;;  %v6107_v36 = vld [vmem:[%s8564_s1 + $0x120] sm:$0xff]   ;;  %793 = vst [vmem:[#allocation2 + $0xb8] sm:$0xf] %v619_v32 }
  0x5d   : > { %5612 = vmatpush3.bf16.msra.mxu1 %v6091_v37  ;;  %v1208_v20 = vor.u32 %v1207_v7, %v1203_v4  ;;  %v930_v22 = vrot.slane %v928_v11, 4  ;;  %v947_v26 = vshll.u32 %v6574_v10, 16  ;;  %v933_v30 = vrot.slane %v931_v16, 5  ;;  %v338_v52 = vld [vmem:[%s6300_s26 + $0x1c] sm:$0xf]  ;;  %5720 = vmatpush3.bf16.msra.mxu0 %v6107_v36  ;;  %v6112_v62 = vld [vmem:[%s8564_s1 + $0x128] sm:$0xff]  }
  0x5e   : > { %5613 = vmatprep.subr.bf16.mxu1 %v6093_v44  ;;  %v1199_v29 = vrot.slane %v1198_v15, 4  ;;  %v939_v31 = vrot.slane %v937_v17, 5  ;;  %v943_v38 = vrot.slane %v941_v23, 4  ;;  %v620_v45 = vrot.slane %v6540_v43, 4  ;;  %v6613_v61 = vld [vmem:[#allocation2 + $0xc] sm:$0xf]  ;;  %5721 = vmatprep.subr.bf16.mxu0 %v6111_v56 }
  0x5f   : > { %v1209_v37 = vrot.slane %v1208_v20, 4  ;;  %v949_v44 = vrot.slane %v947_v26, 5  ;;  %v934_v49 = vor.u32 %v933_v30, %v930_v22  ;;  %v6599_v51 = vld [vmem:[#allocation2 + $0xb4] sm:$0xf]  ;;  %v5110_v42 = vcombine.low %v6562_v59, %v6567_v2  ;;  %v713_v7 = vld [vmem:[#allocation2 + $0x30] sm:$0xf] }
  0x60   : > { %v1204_v46 = vsel %vm6332_vm7, %v1199_v29, %v1203_v4  ;;  %v418_v54 = vshrl.u32 %v337_v27, 16  ;;  %v944_v41 = vor.u32 %v943_v38, %v939_v31  ;;  %v795_v43 = vsel %vm6350_vm12, %v620_v45, %v794_v34  ;;  %v6618_v11 = vld [vmem:[#allocation2 + $0x10] sm:$0xf]  ;;  %v717_v20 = vld [vmem:[#allocation2 + $0x38] sm:$0x1] }
  0x61   : > { %5614 = vmatpush3.bf16.msra.mxu1 %v6094_v60  ;;  %v1214_v28 = vsel %vm6332_vm7, %v1209_v37, %v1213_v12  ;;  %v1216_v55 = vshrl.u32 %v6599_v51, 16  ;;  %v935_v58 = vrot.slane %v934_v49, 4  ;;  %796 = vst [vmem:[#allocation2 + $0xbc] sm:$0x1] %v795_v43  ;;  %v1219_v59 = vshll.u32 %v6599_v51, 16  ;;  %5722 = vmatpush3.bf16.msra.mxu0 %v6112_v62 }
  0x62   : > { %5823 = vmatprep.subr.bf16.mxu1 %v6097_v18  ;;  %v5137_v57 = vcombine.low %v1204_v46, %v1214_v28  ;;  %v420_v60 = vrot.slane %v418_v54, 7  ;;  %v945_v63 = vrot.slane %v944_v41, 4  ;;  %v421_v3 = vshll.u32 %v337_v27, 16  ;;  %v1239_v32 = vld [vmem:[#allocation2] sm:$0xe]  ;;  %v6119_v28 = vld [vmem:[%s8564_s1 + $0x170] sm:$0xff]  }
  0x63   : > { %v1218_v1 = vrot.slane %v1216_v55, 4  ;;  %v426_v4 = vshrl.u32 %v338_v52, 16  ;;  %v940_v14 = vsel %vm6332_vm7, %v935_v58, %v939_v31  ;;  %v1221_v15 = vrot.slane %v1219_v59, 5  ;;  %v6628_v26 = vld [vmem:[#allocation2 + $0xb8] sm:$0xf]  ;;  %5723 = vmatprep.subr.bf16.mxu0 %v6119_v28 }
  0x64   : > { %3986 = vmatprep.mubr.bf16.mxu1 %v5137_v57  ;;  %v424_v12 = vrot.slane %v420_v60, 4  ;;  %v429_v16 = vshll.u32 %v338_v52, 16  ;;  %v950_v17 = vsel %vm6332_vm7, %v945_v63, %v949_v44  ;;  %v423_v18 = vor.u32 %v421_v3, %v420_v60  ;;  %v339_v44 = vld [vmem:[%s6300_s26 + $0x20] sm:$0xf]  ;;  %v340_v57 = vld [vmem:[%s6300_s26 + $0x24] sm:$0xf] }
  0x65   : > { %3987 = vmatmul.mubr.bf16.gmra.mrb[8].mxu1 %v5121_v9  ;;  %v428_v19 = vrot.slane %v426_v4, 7  ;;  %v1467_v22 = vshrl.u32 %v6613_v61, 16  ;;  %v5126_v23 = vcombine.low %v940_v14, %v950_v17  ;;  %v1222_v27 = vor.u32 %v1221_v15, %v1218_v1 }
  0x66   : > { %v1470_v29 = vshll.u32 %v6613_v61, 16  ;;  %v1476_v30 = vshll.u32 %v6618_v11, 16  ;;  %v1225_v47 = vshll.u32 %v6628_v26, 16  ;;  %v1229_v50 = vshrl.u32 %v6628_v26, 16 }
  0x67   : > { %v5122_v9 = vcombine.low %v6599_v51, %v6628_v26  ;;  %v431_v31 = vor.u32 %v429_v16, %v428_v19  ;;  %3898 = vmatprep.mubr.bf16.mxu0 %v5126_v23  ;;  %v1223_v34 = vrot.slane %v1222_v27, 4  ;;  %v433_v36 = vrot.slane %v428_v19, 4  ;;  %v720_v23 = vld [vmem:[#allocation2 + $0x3c] sm:$0xf]  ;;  %v6703_v51 = vld [vmem:[%s6300_s26 + $0x2c] sm:$0xf] }
  0x68   : > { %v714_v37 = vsel %vm6355_vm13, %v423_v18, %v713_v7  ;;  %v1469_v38 = vrot.slane %v1467_v22, 4  ;;  %v851_v45 = vld [vmem:[#allocation2 + $0xbc] sm:$0x1]  ;;  %v1227_v46 = vrot.slane %v1225_v47, 5  ;;  %v1231_v49 = vrot.slane %v1229_v50, 4  ;;  %3899 = vmatmul.mubr.bf16.gmra.mrb[12].mxu0 %v5110_v42  ;;  %v6120_v42 = vld [vmem:[%s8564_s1 + $0x130] sm:$0xff]  }
  0x69   : > { %v432_v52 = vsel %vm6341_vm10, %v424_v12, %v431_v31  ;;  %715 = vst [vmem:[#allocation2 + $0x30] sm:$0xf] %v714_v37  ;;  %v1472_v54 = vrot.slane %v1470_v29, 5  ;;  %v1235_v41 = vshll.u32 %v851_v45, 16  ;;  %v718_v43 = vsel %vm6350_vm12, %v433_v36, %v717_v20  ;;  %5724 = vmatpush3.bf16.msra.mxu0 %v6120_v42  ;;  %v6666_v18 = vld [vmem:[#allocation2 + $0x18] sm:$0xf] }
  0x6a   : > { %716 = vst [vmem:[#allocation2 + $0x34] sm:$0xf] %v432_v52  ;;  %v6646_v55 = vrot.slane %v1476_v30, 5  ;;  %v1480_v56 = vshrl.u32 %v6618_v11, 16  ;;  %v1228_v58 = vsel %vm6332_vm7, %v1223_v34, %v1227_v46  ;;  %v1232_v59 = vor.u32 %v1231_v49, %v1227_v46  ;;  %719 = vst [vmem:[#allocation2 + $0x38] sm:$0x1] %v718_v43 }
  0x6b   : > { %v1473_v60 = vor.u32 %v1472_v54, %v1469_v38  ;;  %v5155_v62 = vcombine.low %v6613_v61, %v6618_v11  ;;  %v1237_v63 = vrot.slane %v1235_v41, 5  ;;  %v5059_v3 = vrot.slane %v1239_v32, 9  ;;  %v724_v50 = vld [vmem:[#allocation2 + $0x44] sm:$0x1]  ;;  %v6681_v38 = vld [vmem:[#allocation2 + $0x1c] sm:$0xf] }
  0x6c   : > { %v1482_v1 = vrot.slane %v1480_v56, 4  ;;  %v435_v4 = vshrl.u32 %v339_v44, 16  ;;  %v1233_v7 = vrot.slane %v1232_v59, 4  ;;  %v438_v15 = vshll.u32 %v339_v44, 16  ;;  %v1240_v54 = vld [vmem:[#allocation2 + $0xc] sm:$0xe] }
  0x6d   : > { %v6657_v14 = vrot.slane %v1473_v60, 4  ;;  %v443_v12 = vshrl.u32 %v340_v57, 16  ;;  %v6664_v17 = vsel %vm6317_vm6, %v5059_v3, %v1308_v21  ;;  %v446_v11 = vshll.u32 %v340_v57, 16  ;;  %v341_v57 = vld [vmem:[%s6300_s26 + $0x28] sm:$0xf]  ;;  %v6125_v26 = vld [vmem:[%s8564_s1 + $0x178] sm:$0xff]  }
  0x6e   : > { %v1483_v16 = vor.u32 %v1482_v1, %v6646_v55  ;;  %v437_v61 = vrot.slane %v435_v4, 7  ;;  %v1238_v19 = vsel %vm6332_vm7, %v1233_v7, %v1237_v63  ;;  %v5139_v20 = vcombine.low %v6664_v17, %v6338_v39  ;;  %v6098_v7 = vld [vmem:[%s8564_s1 + $0x180] sm:$0xff]   ;;  %5725 = vmatprep.subr.bf16.mxu0 %v6125_v26 }
  0x6f   : > { %v445_v22 = vrot.slane %v443_v12, 7  ;;  %v1491_v27 = vshrl.u32 %v6666_v18, 16  ;;  %v5138_v29 = vcombine.low %v1228_v58, %v1238_v19  ;;  %v1494_v1 = vshll.u32 %v6666_v18, 16 }
  0x70   : > { %v6673_v13 = vld [vmem:[#allocation2 + $0x30] sm:$0xf]  ;;  %v6675_v30 = vrot.slane %v1483_v16, 4  ;;  %v440_v21 = vor.u32 %v438_v15, %v437_v61  ;;  %v441_v47 = vrot.slane %v437_v61, 4  ;;  %v5156_v15 = vcombine.low %v6666_v18, %v6681_v38 }
  0x71   : > { %v6677_v31 = vld [vmem:[#allocation2 + $0x34] sm:$0xf]  ;;  %v952_v32 = vshrl.u32 %v6673_v13, 16  ;;  %v955_v34 = vshll.u32 %v6673_v13, 16  ;;  %v448_v36 = vor.u32 %v446_v11, %v445_v22  ;;  %v450_v37 = vrot.slane %v445_v22, 4  ;;  %3994 = vmatprep.mubr.bf16.mxu1 %v5138_v29 }
  0x72   : > { %v6683_v44 = vld [vmem:[#allocation2 + $0x38] sm:$0x1]  ;;  %v961_v45 = vshll.u32 %v6677_v31, 16  ;;  %v965_v46 = vshrl.u32 %v6677_v31, 16  ;;  %v5111_v49 = vcombine.low %v6673_v13, %v6677_v31  ;;  %v721_v52 = vsel %vm6355_vm13, %v440_v21, %v720_v23  ;;  %3995 = vmatmul.mubr.bf16.gmra.mrb[12].mxu1 %v5122_v9  ;;  %v6722_v23 = vld [vmem:[#allocation2 + $0x24] sm:$0xf] }
  0x73   : > { %v954_v28 = vrot.slane %v952_v32, 4  ;;  %v957_v41 = vrot.slane %v955_v34, 5  ;;  %v971_v43 = vshll.u32 %v6683_v44, 16  ;;  %v449_v56 = vsel %vm6341_vm10, %v441_v47, %v448_v36  ;;  %722 = vst [vmem:[#allocation2 + $0x3c] sm:$0xf] %v721_v52  ;;  %4035 = vmatprep.mubr.bf16.mxu1 %v5155_v62  ;;  %v6126_v62 = vld [vmem:[%s8564_s1 + $0x138] sm:$0xff]  }
  0x74   : > { %v963_v42 = vrot.slane %v961_v45, 5  ;;  %v967_v58 = vrot.slane %v965_v46, 4  ;;  %723 = vst [vmem:[#allocation2 + $0x40] sm:$0xf] %v449_v56  ;;  %v725_v59 = vsel %vm6350_vm12, %v450_v37, %v724_v50  ;;  %v6700_v60 = vrot.slane %v1491_v27, 4  ;;  %5726 = vmatpush3.bf16.msra.mxu0 %v6126_v62  ;;  %v6131_v34 = vld [vmem:[%s8564_s1 + $0x200] sm:$0xff]  }
  0x75   : > { %v958_v9 = vor.u32 %v957_v41, %v954_v28  ;;  %v973_v63 = vrot.slane %v971_v43, 5  ;;  %726 = vst [vmem:[#allocation2 + $0x44] sm:$0x1] %v725_v59  ;;  %v5060_v12 = vrot.slane %v1240_v54, 9  ;;  %v1315_v16 = vrot.slane %v6423_v5, 5  ;;  %v6106_v5 = vld [vmem:[%s8564_s1 + $0x1c8] sm:$0xff]   ;;  %5959 = vmatprep.subr.bf16.mxu0 %v6131_v34 }
  0x76   : > { %v968_v4 = vor.u32 %v967_v58, %v963_v42  ;;  %v6719_v11 = vrot.slane %v1494_v1, 5  ;;  %v1318_v19 = vrot.slane %v6425_v6, 5  ;;  %v452_v22 = vshrl.u32 %v341_v57, 16  ;;  %v6767_v62 = vld [vmem:[#allocation2 + $0x28] sm:$0xf]  ;;  %v6116_v13 = vld [vmem:[%s8564_s1 + $0x190] sm:$0xff]  }
  0x77   : > { %v959_v61 = vrot.slane %v958_v9, 4  ;;  %v6726_v29 = vsel %vm6317_vm6, %v5060_v12, %v1315_v16  ;;  %v1317_v21 = vrot.slane %v1315_v16, 4  ;;  %v455_v18 = vshll.u32 %v341_v57, 16  ;;  %v727_v57 = vld [vmem:[#allocation2 + $0x48] sm:$0xf] }
  0x78   : > { %v969_v27 = vrot.slane %v968_v4, 4  ;;  %v454_v50 = vrot.slane %v452_v22, 7  ;;  %v460_v6 = vshrl.u32 %v6703_v51, 16  ;;  %v463_v32 = vshll.u32 %v6703_v51, 16  ;;  %v6115_v51 = vld [vmem:[%s8564_s1 + $0x1d0] sm:$0xff]  }
  0x79   : > { %v964_v47 = vsel %vm6332_vm7, %v959_v61, %v963_v42  ;;  %v1319_v45 = vsel %vm6317_vm6, %v1317_v21, %v1318_v19  ;;  %v1515_v46 = vshrl.u32 %v6722_v23, 16  ;;  %v1518_v52 = vshll.u32 %v6722_v23, 16  ;;  %v1241_v16 = vld [vmem:[#allocation2 + $0x18] sm:$0xe]  ;;  %v731_v22 = vld [vmem:[#allocation2 + $0x50] sm:$0x1] }
  0x7a   : > { %v974_v36 = vsel %vm6332_vm7, %v969_v27, %v973_v63  ;;  %v6740_v37 = vld [vmem:[#allocation2 + $0x3c] sm:$0xf]  ;;  %4036 = vmatmul.mubr.bf16.vlgmr.msra.gmra.mrb[16].mxu1 %v5139_v20  ;;  %v5140_v56 = vcombine.low %v6726_v29, %v1319_v45  ;;  %v457_v17 = vor.u32 %v455_v18, %v454_v50  ;;  %v6108_v20 = vld [vmem:[%s8564_s1 + $0x188] sm:$0xff]   ;;  %v458_v1 = vrot.slane %v454_v50, 4  ;;  %v344_v50 = vld [vmem:[%s6300_s26 + $0x34] sm:$0xf] }
  0x7b   : > { %v5127_v54 = vcombine.low %v964_v47, %v974_v36  ;;  %v6749_v28 = vld [vmem:[#allocation2 + $0x40] sm:$0xf]  ;;  %v976_v41 = vshrl.u32 %v6740_v37, 16  ;;  %v979_v43 = vshll.u32 %v6740_v37, 16  ;;  %5824 = vmatpush3.bf16.msra.mxu1 %v6098_v7  ;;  %4043 = vmatprep.mubr.bf16.mxu1 %v5156_v15  ;;  %v462_v15 = vrot.slane %v460_v6, 7 }
  0x7c   : > { %v6754_v42 = vld [vmem:[#allocation2 + $0x44] sm:$0x1]  ;;  %v985_v58 = vshll.u32 %v6749_v28, 16  ;;  %v989_v59 = vshrl.u32 %v6749_v28, 16  ;;  %v5112_v39 = vcombine.low %v6740_v37, %v6749_v28  ;;  %5825 = vmatprep.subr.bf16.mxu1 %v6106_v5  ;;  %v728_v12 = vsel %vm6355_vm13, %v457_v17, %v727_v57  ;;  %v343_v47 = vld [vmem:[%s6300_s26 + $0x30] sm:$0xf] }
  0x7d   : > { %3906 = vmatprep.mubr.bf16.mxu0 %v5127_v54  ;;  %v978_v26 = vrot.slane %v976_v41, 4  ;;  %v981_v9 = vrot.slane %v979_v43, 5  ;;  %v995_v63 = vshll.u32 %v6754_v42, 16  ;;  %729 = vst [vmem:[#allocation2 + $0x48] sm:$0xf] %v728_v12  ;;  %v6774_v27 = vrot.slane %v1515_v46, 4 }
  0x7e   : > { %3907 = vmatmul.mubr.bf16.gmra.mrb[16].mxu0 %v5111_v49  ;;  %v987_v4 = vrot.slane %v985_v58, 5  ;;  %v991_v7 = vrot.slane %v989_v59, 4  ;;  %v6776_v29 = vrot.slane %v1518_v52, 5  ;;  %v465_v21 = vor.u32 %v463_v32, %v462_v15  ;;  %v6123_v46 = vld [vmem:[%s8564_s1 + $0x1d8] sm:$0xff]  }
  0x7f   : > { %v982_v61 = vor.u32 %v981_v9, %v978_v26  ;;  %v997_v19 = vrot.slane %v995_v63, 5  ;;  %v467_v18 = vrot.slane %v462_v15, 4  ;;  %5826 = vmatpush3.bf16.msra.mxu1 %v6108_v20  ;;  %v5157_v34 = vcombine.low %v6722_v23, %v6767_v62  ;;  %v6124_v58 = vld [vmem:[%s8564_s1 + $0x198] sm:$0xff]   ;;  %v6130_v26 = vld [vmem:[%s8564_s1 + $0x1e0] sm:$0xff]  }
  0x80   : > { %v992_v49 = vor.u32 %v991_v7, %v987_v4  ;;  %v5061_v36 = vrot.slane %v1241_v16, 9  ;;  %v1322_v45 = vrot.slane %v6505_v0, 5  ;;  %5827 = vmatprep.subr.bf16.mxu1 %v6115_v51  ;;  %v466_v32 = vsel %vm6341_vm10, %v458_v1, %v465_v21  ;;  %v734_v51 = vld [vmem:[#allocation2 + $0x54] sm:$0xf] }
  0x81   : > { %v983_v6 = vrot.slane %v982_v61, 4  ;;  %v732_v54 = vsel %vm6350_vm12, %v467_v18, %v731_v22  ;;  %v1325_v41 = vrot.slane %v6516_v8, 5  ;;  %730 = vst [vmem:[#allocation2 + $0x4c] sm:$0xf] %v466_v32  ;;  %v469_v57 = vshrl.u32 %v343_v47, 16 }
  0x82   : > { %v993_v52 = vrot.slane %v992_v49, 4  ;;  %4044 = vmatmul.mubr.bf16.gmra.mrb[20].mxu1 %v5140_v56  ;;  %733 = vst [vmem:[#allocation2 + $0x50] sm:$0x1] %v732_v54  ;;  %v1323_v0 = vsel %vm6317_vm6, %v5061_v36, %v1322_v45  ;;  %v1324_v43 = vrot.slane %v1322_v45, 4  ;;  %v472_v8 = vshll.u32 %v343_v47, 16  ;;  %v6132_v45 = vld [vmem:[%s8564_s1 + $0x1a0] sm:$0xff]  }
  0x83   : > { %v988_v23 = vsel %vm6332_vm7, %v983_v6, %v987_v4  ;;  %4051 = vmatprep.mubr.bf16.mxu1 %v5157_v34  ;;  %v477_v17 = vshrl.u32 %v344_v50, 16  ;;  %v480_v20 = vshll.u32 %v344_v50, 16  ;;  %v1424_v56 = vld [vmem:[#allocation2 + $0x30] sm:$0xf]  ;;  %5828 = vmatpush3.bf16.msra.mxu1 %v6116_v13  ;;  %v471_v1 = vrot.slane %v469_v57, 7 }
  0x84   : > { %v998_v59 = vsel %vm6332_vm7, %v993_v52, %v997_v19  ;;  %v1326_v63 = vsel %vm6317_vm6, %v1324_v43, %v1325_v41  ;;  %v738_v4 = vld [vmem:[#allocation2 + $0x5c] sm:$0x1]  ;;  %v6809_v7 = vld [vmem:[#allocation2 + $0x34] sm:$0xf]  ;;  %v1539_v15 = vshrl.u32 %v1424_v56, 16  ;;  %5829 = vmatprep.subr.bf16.mxu1 %v6123_v46  ;;  %v1542_v19 = vshll.u32 %v1424_v56, 16 }
  0x85   : > { %v5128_v9 = vcombine.low %v988_v23, %v998_v59  ;;  %v6811_v12 = vld [vmem:[#allocation2 + $0x48] sm:$0xf]  ;;  %v5141_v16 = vcombine.low %v1323_v0, %v1326_v63  ;;  %v479_v61 = vrot.slane %v477_v17, 7  ;;  %v474_v21 = vor.u32 %v472_v8, %v471_v1  ;;  %v1242_v47 = vld [vmem:[#allocation2 + $0x24] sm:$0xe] }
  0x86   : > { %v1000_v13 = vshrl.u32 %v6811_v12, 16  ;;  %v1003_v49 = vshll.u32 %v6811_v12, 16  ;;  %v475_v18 = vrot.slane %v471_v1, 4  ;;  %v6819_v34 = vrot.slane %v1539_v15, 4  ;;  %v6135_v46 = vld [vmem:[%s8564_s1 + $0x1e8] sm:$0xff]  }
  0x87   : > { %3914 = vmatprep.mubr.bf16.mxu0 %v5128_v9  ;;  %v482_v50 = vor.u32 %v480_v20, %v479_v61  ;;  %v484_v6 = vrot.slane %v479_v61, 4  ;;  %v6821_v36 = vrot.slane %v1542_v19, 5  ;;  %5830 = vmatpush3.bf16.msra.mxu1 %v6124_v58  ;;  %v735_v37 = vsel %vm6355_vm13, %v474_v21, %v734_v51  ;;  %v345_v54 = vld [vmem:[%s6300_s26 + $0x38] sm:$0xf]  ;;  %v346_v41 = vld [vmem:[%s6300_s26 + $0x3c] sm:$0xf] }
  0x88   : > { %3915 = vmatmul.mubr.bf16.gmra.mrb[20].mxu0 %v5112_v39  ;;  %v1002_v52 = vrot.slane %v1000_v13, 4  ;;  %v1005_v32 = vrot.slane %v1003_v49, 5  ;;  %v5158_v39 = vcombine.low %v1424_v56, %v6809_v7  ;;  %5831 = vmatprep.subr.bf16.mxu1 %v6130_v26  ;;  %v6834_v23 = vld [vmem:[#allocation2 + $0x4c] sm:$0xf]  ;;  %736 = vst [vmem:[#allocation2 + $0x54] sm:$0xf] %v735_v37 }
  0x89   : > { %v6836_v0 = vld [vmem:[#allocation2 + $0x50] sm:$0x1]  ;;  %v483_v43 = vsel %vm6341_vm10, %v475_v18, %v482_v50  ;;  %v739_v57 = vsel %vm6350_vm12, %v484_v6, %v738_v4  ;;  %v5062_v58 = vrot.slane %v1242_v47, 9  ;;  %v1329_v59 = vrot.slane %v6567_v2, 5  ;;  %v6137_v56 = vld [vmem:[%s8564_s1 + $0x1a8] sm:$0xff]  }
  0x8a   : > { %v1006_v8 = vor.u32 %v1005_v32, %v1002_v52  ;;  %v1009_v17 = vshll.u32 %v6834_v23, 16  ;;  %v1013_v20 = vshrl.u32 %v6834_v23, 16  ;;  %v1019_v51 = vshll.u32 %v6836_v0, 16  ;;  %4052 = vmatmul.mubr.bf16.gmra.mrb[24].mxu1 %v5141_v16  ;;  %737 = vst [vmem:[#allocation2 + $0x58] sm:$0xf] %v483_v43  ;;  %v6140_v61 = vld [vmem:[%s8564_s1 + $0x1f0] sm:$0xff]  }
  0x8b   : > { %740 = vst [vmem:[#allocation2 + $0x5c] sm:$0x1] %v739_v57  ;;  %4059 = vmatprep.mubr.bf16.mxu1 %v5158_v39  ;;  %v1330_v26 = vsel %vm6317_vm6, %v5062_v58, %v1329_v59  ;;  %v1331_v9 = vrot.slane %v1329_v59, 4  ;;  %v1332_v2 = vrot.slane %v6574_v10, 5  ;;  %5832 = vmatpush3.bf16.msra.mxu1 %v6132_v45  ;;  %v5113_v15 = vcombine.low %v6811_v12, %v6834_v23  ;;  %v6854_v16 = vld [vmem:[#allocation2 + $0x3c] sm:$0xf] }
  0x8c   : > { %v1007_v63 = vrot.slane %v1006_v8, 4  ;;  %v1011_v1 = vrot.slane %v1009_v17, 5  ;;  %v1015_v4 = vrot.slane %v1013_v20, 4  ;;  %5833 = vmatprep.subr.bf16.mxu1 %v6135_v46  ;;  %v486_v13 = vshrl.u32 %v345_v54, 16  ;;  %v6861_v21 = vld [vmem:[#allocation2 + $0x40] sm:$0xf] }
  0x8d   : > { %v1333_v19 = vsel %vm6317_vm6, %v1331_v9, %v1332_v2  ;;  %v489_v49 = vshll.u32 %v345_v54, 16  ;;  %v494_v10 = vshrl.u32 %v346_v41, 16  ;;  %v1021_v47 = vrot.slane %v1019_v51, 5  ;;  %v1243_v32 = vld [vmem:[#allocation2 + $0x30] sm:$0xe]  ;;  %v6145_v59 = vld [vmem:[%s8564_s1 + $0x1f8] sm:$0xff]  }
  0x8e   : > { %v1016_v18 = vor.u32 %v1015_v4, %v1011_v1  ;;  %v5142_v50 = vcombine.low %v1330_v26, %v1333_v19  ;;  %v497_v6 = vshll.u32 %v346_v41, 16  ;;  %v1012_v12 = vsel %vm6332_vm7, %v1007_v63, %v1011_v1  ;;  %v6142_v37 = vld [vmem:[%s8564_s1 + $0x1b0] sm:$0xff]   ;;  %v741_v43 = vld [vmem:[#allocation2 + $0x60] sm:$0xf]  ;;  %v745_v4 = vld [vmem:[#allocation2 + $0x68] sm:$0x1] }
  0x8f   : > { %v488_v45 = vrot.slane %v486_v13, 7  ;;  %v496_v46 = vrot.slane %v494_v10, 7  ;;  %v1563_v52 = vshrl.u32 %v6854_v16, 16  ;;  %5834 = vmatpush3.bf16.msra.mxu1 %v6137_v56  ;;  %v6869_v54 = vld [vmem:[#allocation2 + $0x54] sm:$0xf]  ;;  %v1566_v57 = vshll.u32 %v6854_v16, 16 }
  0x90   : > { %v1017_v39 = vrot.slane %v1016_v18, 4  ;;  %v5159_v58 = vcombine.low %v6854_v16, %v6861_v21  ;;  %5835 = vmatprep.subr.bf16.mxu1 %v6140_v61  ;;  %v1024_v20 = vshrl.u32 %v6869_v54, 16  ;;  %v1027_v51 = vshll.u32 %v6869_v54, 16  ;;  %v347_v61 = vld [vmem:[%s6300_s26 + $0x40] sm:$0xf] }
  0x91   : > { %v6878_v8 = vld [vmem:[#allocation2 + $0x58] sm:$0xf]  ;;  %v491_v56 = vor.u32 %v489_v49, %v488_v45  ;;  %v499_v26 = vor.u32 %v497_v6, %v496_v46  ;;  %v5063_v18 = vrot.slane %v1243_v32, 9  ;;  %v492_v24 = vrot.slane %v488_v45, 4 }
  0x92   : > { %v6880_v17 = vld [vmem:[#allocation2 + $0x5c] sm:$0x1]  ;;  %v1022_v9 = vsel %vm6332_vm7, %v1017_v39, %v1021_v47  ;;  %v1033_v2 = vshll.u32 %v6878_v8, 16  ;;  %v1037_v63 = vshrl.u32 %v6878_v8, 16  ;;  %4060 = vmatmul.mubr.bf16.gmra.mrb[28].mxu1 %v5142_v50  ;;  %v1026_v13 = vrot.slane %v1024_v20, 4 }
  0x93   : > { %v1043_v1 = vshll.u32 %v6880_v17, 16  ;;  %v5129_v19 = vcombine.low %v1012_v12, %v1022_v9  ;;  %v1029_v10 = vrot.slane %v1027_v51, 5  ;;  %4067 = vmatprep.mubr.bf16.mxu1 %v5159_v58  ;;  %5836 = vmatpush3.bf16.msra.mxu1 %v6142_v37  ;;  %v6147_v49 = vld [vmem:[%s8564_s1 + $0x1b8] sm:$0xff]   ;;  %v5114_v39 = vcombine.low %v6869_v54, %v6878_v8  ;;  %v348_v54 = vld [vmem:[%s6300_s26 + $0x44] sm:$0xf] }
  0x94   : > { %v1035_v47 = vrot.slane %v1033_v2, 5  ;;  %v1039_v6 = vrot.slane %v1037_v63, 4  ;;  %5837 = vmatprep.subr.bf16.mxu1 %v6145_v59  ;;  %v501_v20 = vrot.slane %v496_v46, 4  ;;  %v742_v32 = vsel %vm6355_vm13, %v491_v56, %v741_v43  ;;  %v748_v56 = vld [vmem:[#allocation2 + $0x6c] sm:$0xf] }
  0x95   : > { %3922 = vmatprep.mubr.bf16.mxu0 %v5129_v19  ;;  %v1030_v50 = vor.u32 %v1029_v10, %v1026_v13  ;;  %v1045_v12 = vrot.slane %v1043_v1, 5  ;;  %v500_v58 = vsel %vm6341_vm10, %v492_v24, %v499_v26  ;;  %743 = vst [vmem:[#allocation2 + $0x60] sm:$0xf] %v742_v32  ;;  %v6899_v51 = vrot.slane %v1563_v52, 4  ;;  %v1428_v19 = vld [vmem:[#allocation2 + $0x48] sm:$0xf] }
  0x96   : > { %3923 = vmatmul.mubr.bf16.gmra.mrb[24].mxu0 %v5113_v15  ;;  %v1040_v37 = vor.u32 %v1039_v6, %v1035_v47  ;;  %v1336_v9 = vrot.slane %v6677_v31, 5  ;;  %744 = vst [vmem:[#allocation2 + $0x64] sm:$0xf] %v500_v58  ;;  %v746_v59 = vsel %vm6350_vm12, %v501_v20, %v745_v4  ;;  %v1339_v46 = vrot.slane %v6683_v44, 5  ;;  %v6914_v13 = vld [vmem:[#allocation2 + $0x4c] sm:$0xf] }
  0x97   : > { %v1031_v45 = vrot.slane %v1030_v50, 4  ;;  %v503_v2 = vshrl.u32 %v347_v61, 16  ;;  %5838 = vmatpush3.bf16.msra.mxu1 %v6147_v49  ;;  %747 = vst [vmem:[#allocation2 + $0x68] sm:$0x1] %v746_v59  ;;  %v506_v52 = vshll.u32 %v347_v61, 16  ;;  %v511_v63 = vshrl.u32 %v348_v54, 16 }
  0x98   : > { %v1041_v15 = vrot.slane %v1040_v37, 4  ;;  %v1337_v24 = vsel %vm6317_vm6, %v5063_v18, %v1336_v9  ;;  %v1338_v43 = vrot.slane %v1336_v9, 4  ;;  %v514_v1 = vshll.u32 %v348_v54, 16  ;;  %v1244_v49 = vld [vmem:[#allocation2 + $0x3c] sm:$0xe] }
  0x99   : > { %v1036_v31 = vsel %vm6332_vm7, %v1031_v45, %v1035_v47  ;;  %v505_v26 = vrot.slane %v503_v2, 7  ;;  %v1587_v10 = vshrl.u32 %v1428_v19, 16  ;;  %v1590_v18 = vshll.u32 %v1428_v19, 16  ;;  %v752_v37 = vld [vmem:[#allocation2 + $0x74] sm:$0x1] }
  0x9a   : > { %v1046_v44 = vsel %vm6332_vm7, %v1041_v15, %v1045_v12  ;;  %v1340_v4 = vsel %vm6317_vm6, %v1338_v43, %v1339_v46  ;;  %v6918_v47 = vrot.slane %v1566_v57, 5  ;;  %v513_v32 = vrot.slane %v511_v63, 7  ;;  %v349_v59 = vld [vmem:[%s6300_s26 + $0x48] sm:$0xf] }
  0x9b   : > { %v5130_v61 = vcombine.low %v1036_v31, %v1046_v44  ;;  %v5143_v6 = vcombine.low %v1337_v24, %v1340_v4  ;;  %v508_v50 = vor.u32 %v506_v52, %v505_v26  ;;  %v509_v20 = vrot.slane %v505_v26, 4  ;;  %v350_v52 = vld [vmem:[%s6300_s26 + $0x4c] sm:$0xf] }
  0x9c   : > { %v6920_v12 = vrot.slane %v1587_v10, 4  ;;  %v6922_v58 = vrot.slane %v1590_v18, 5  ;;  %v6924_v9 = vld [vmem:[#allocation2 + $0x60] sm:$0xf]  ;;  %v5160_v57 = vcombine.low %v1428_v19, %v6914_v13  ;;  %v5064_v54 = vrot.slane %v1244_v49, 9 }
  0x9d   : > { %3930 = vmatprep.mubr.bf16.mxu0 %v5130_v61  ;;  %4068 = vmatmul.mubr.bf16.gmra.mrb[32].mxu1 %v5143_v6  ;;  %v749_v16 = vsel %vm6355_vm13, %v508_v50, %v748_v56  ;;  %v1343_v45 = vrot.slane %v6749_v28, 5  ;;  %v6931_v46 = vld [vmem:[#allocation2 + $0x64] sm:$0xf]  ;;  %v1048_v2 = vshrl.u32 %v6924_v9, 16  ;;  %v1051_v15 = vshll.u32 %v6924_v9, 16 }
  0x9e   : > { %3931 = vmatmul.mubr.bf16.gmra.mrb[28].mxu0 %v5114_v39  ;;  %v516_v24 = vor.u32 %v514_v1, %v513_v32  ;;  %v518_v43 = vrot.slane %v513_v32, 4  ;;  %750 = vst [vmem:[#allocation2 + $0x6c] sm:$0xf] %v749_v16  ;;  %v6936_v31 = vld [vmem:[#allocation2 + $0x68] sm:$0x1]  ;;  %v1057_v56 = vshll.u32 %v6931_v46, 16  ;;  %4075 = vmatprep.mubr.bf16.mxu1 %v5160_v57 }
  0x9f   : > { %v1061_v26 = vshrl.u32 %v6931_v46, 16  ;;  %v1344_v28 = vsel %vm6317_vm6, %v5064_v54, %v1343_v45  ;;  %v1050_v39 = vrot.slane %v1048_v2, 4  ;;  %v1053_v63 = vrot.slane %v1051_v15, 5 }
  0xa0   : > { %v1067_v19 = vshll.u32 %v6936_v31, 16  ;;  %v517_v1 = vsel %vm6341_vm10, %v509_v20, %v516_v24  ;;  %v1059_v44 = vrot.slane %v1057_v56, 5  ;;  %v753_v10 = vsel %vm6350_vm12, %v518_v43, %v752_v37  ;;  %v755_v37 = vld [vmem:[#allocation2 + $0x78] sm:$0xf] }
  0xa1   : > { %v1063_v4 = vrot.slane %v1061_v26, 4  ;;  %751 = vst [vmem:[#allocation2 + $0x70] sm:$0xf] %v517_v1  ;;  %v1345_v18 = vrot.slane %v1343_v45, 4  ;;  %v1054_v49 = vor.u32 %v1053_v63, %v1050_v39  ;;  %754 = vst [vmem:[#allocation2 + $0x74] sm:$0x1] %v753_v10  ;;  %v5115_v20 = vcombine.low %v6924_v9, %v6931_v46 }
  0xa2   : > { %v1069_v61 = vrot.slane %v1067_v19, 5  ;;  %v1346_v6 = vrot.slane %v6754_v42, 5  ;;  %v520_v50 = vshrl.u32 %v349_v59, 16  ;;  %v523_v16 = vshll.u32 %v349_v59, 16  ;;  %v1430_v45 = vld [vmem:[#allocation2 + $0x54] sm:$0xf] }
  0xa3   : > { %v1064_v32 = vor.u32 %v1063_v4, %v1059_v44  ;;  %v528_v57 = vshrl.u32 %v350_v52, 16  ;;  %v531_v54 = vshll.u32 %v350_v52, 16  ;;  %v1055_v2 = vrot.slane %v1054_v49, 4  ;;  %v6960_v49 = vld [vmem:[#allocation2 + $0x58] sm:$0xf] }
  0xa4   : > { %v1347_v15 = vsel %vm6317_vm6, %v1345_v18, %v1346_v6  ;;  %v522_v24 = vrot.slane %v520_v50, 7  ;;  %v1611_v39 = vshrl.u32 %v1430_v45, 16  ;;  %v759_v18 = vld [vmem:[#allocation2 + $0x80] sm:$0x1] }
  0xa5   : > { %v1065_v43 = vrot.slane %v1064_v32, 4  ;;  %v6952_v56 = vld [vmem:[#allocation2 + $0x6c] sm:$0xf]  ;;  %v5144_v26 = vcombine.low %v1344_v28, %v1347_v15  ;;  %v530_v42 = vrot.slane %v528_v57, 7  ;;  %v1060_v59 = vsel %vm6332_vm7, %v1055_v2, %v1059_v44 }
  0xa6   : > { %v1072_v52 = vshrl.u32 %v6952_v56, 16  ;;  %v1075_v63 = vshll.u32 %v6952_v56, 16  ;;  %v525_v9 = vor.u32 %v523_v16, %v522_v24  ;;  %v526_v1 = vrot.slane %v522_v24, 4  ;;  %v1245_v16 = vld [vmem:[#allocation2 + $0x48] sm:$0xe] }
  0xa7   : > { %v1070_v19 = vsel %vm6332_vm7, %v1065_v43, %v1069_v61  ;;  %4076 = vmatmul.mubr.bf16.gmra.mrb[36].mxu1 %v5144_v26  ;;  %v533_v4 = vor.u32 %v531_v54, %v530_v42  ;;  %v535_v10 = vrot.slane %v530_v42, 4  ;;  %v1614_v26 = vshll.u32 %v1430_v45, 16  ;;  %v351_v42 = vld [vmem:[%s6300_s26 + $0x50] sm:$0xf] }
  0xa8   : > { %v5131_v28 = vcombine.low %v1060_v59, %v1070_v19  ;;  %v6962_v6 = vld [vmem:[#allocation2 + $0x70] sm:$0xf]  ;;  %v1074_v50 = vrot.slane %v1072_v52, 4  ;;  %v1077_v44 = vrot.slane %v1075_v63, 5  ;;  %v756_v32 = vsel %vm6355_vm13, %v525_v9, %v755_v37  ;;  %v6966_v57 = vld [vmem:[#allocation2 + $0x74] sm:$0x1] }
  0xa9   : > { %v1081_v61 = vshll.u32 %v6962_v6, 16  ;;  %v1085_v54 = vshrl.u32 %v6962_v6, 16  ;;  %v534_v15 = vsel %vm6341_vm10, %v526_v1, %v533_v4  ;;  %757 = vst [vmem:[#allocation2 + $0x78] sm:$0xf] %v756_v32  ;;  %v1091_v43 = vshll.u32 %v6966_v57, 16 }
  0xaa   : > { %3938 = vmatprep.mubr.bf16.mxu0 %v5131_v28  ;;  %v1078_v24 = vor.u32 %v1077_v44, %v1074_v50  ;;  %758 = vst [vmem:[#allocation2 + $0x7c] sm:$0xf] %v534_v15  ;;  %v760_v37 = vsel %vm6350_vm12, %v535_v10, %v759_v18  ;;  %v5116_v63 = vcombine.low %v6952_v56, %v6962_v6  ;;  %v6979_v9 = vrot.slane %v1611_v39, 4  ;;  %v352_v19 = vld [vmem:[%s6300_s26 + $0x54] sm:$0xf] }
  0xab   : > { %3939 = vmatmul.mubr.bf16.gmra.mrb[32].mxu0 %v5115_v20  ;;  %v1083_v59 = vrot.slane %v1081_v61, 5  ;;  %v1087_v52 = vrot.slane %v1085_v54, 4  ;;  %761 = vst [vmem:[#allocation2 + $0x80] sm:$0x1] %v760_v37  ;;  %v1093_v4 = vrot.slane %v1091_v43, 5  ;;  %v5161_v28 = vcombine.low %v1430_v45, %v6960_v49 }
  0xac   : > { %8588 = vst [vmem:[#allocation4_spill] sm:$0xff] %v6979_v9  ;;  %v1079_v1 = vrot.slane %v1078_v24, 4  ;;  %v5065_v50 = vrot.slane %v1245_v16, 9  ;;  %v1350_v10 = vrot.slane %v6834_v23, 5  ;;  %v1353_v18 = vrot.slane %v6836_v0, 5 }
  0xad   : > { %v1088_v44 = vor.u32 %v1087_v52, %v1083_v59  ;;  %v537_v20 = vshrl.u32 %v351_v42, 16  ;;  %v6985_v32 = vld [vmem:[#allocation2 + $0x60] sm:$0xf]  ;;  %v6989_v61 = vrot.slane %v1614_v26, 5  ;;  %4083 = vmatprep.mubr.bf16.mxu1 %v5161_v28  ;;  %v545_v54 = vshrl.u32 %v352_v19, 16 }
  0xae   : > { %v1084_v56 = vsel %vm6332_vm7, %v1079_v1, %v1083_v59  ;;  %v1352_v45 = vrot.slane %v1350_v10, 4  ;;  %v540_v16 = vshll.u32 %v351_v42, 16  ;;  %v548_v24 = vshll.u32 %v352_v19, 16  ;;  %v762_v19 = vld [vmem:[#allocation2 + $0x84] sm:$0xf] }
  0xaf   : > { %8589 = vst [vmem:[#allocation5_spill] sm:$0xff] %v6989_v61  ;;  %v1089_v15 = vrot.slane %v1088_v44, 4  ;;  %v1351_v23 = vsel %vm6317_vm6, %v5065_v50, %v1350_v10  ;;  %v539_v0 = vrot.slane %v537_v20, 7  ;;  %v547_v37 = vrot.slane %v545_v54, 7  ;;  %v766_v20 = vld [vmem:[#allocation2 + $0x8c] sm:$0x1] }
  0xb0   : > { %v6992_v43 = vld [vmem:[#allocation2 + $0x78] sm:$0xf]  ;;  %v1635_v52 = vshrl.u32 %v6985_v32, 16  ;;  %v1354_v42 = vsel %vm6317_vm6, %v1352_v45, %v1353_v18  ;;  %v7010_v18 = vld [vmem:[#allocation2 + $0x64] sm:$0xf]  ;;  %v1638_v61 = vshll.u32 %v6985_v32, 16 }
  0xb1   : > { %v1094_v26 = vsel %vm6332_vm7, %v1089_v15, %v1093_v4  ;;  %v6999_v59 = vld [vmem:[#allocation2 + $0x7c] sm:$0xf]  ;;  %v1096_v1 = vshrl.u32 %v6992_v43, 16  ;;  %v1099_v28 = vshll.u32 %v6992_v43, 16  ;;  %v5145_v2 = vcombine.low %v1351_v23, %v1354_v42  ;;  %v1246_v9 = vld [vmem:[#allocation2 + $0x54] sm:$0xe] }
  0xb2   : > { %v5132_v44 = vcombine.low %v1084_v56, %v1094_v26  ;;  %v7005_v39 = vld [vmem:[#allocation2 + $0x80] sm:$0x1]  ;;  %v1105_v50 = vshll.u32 %v6999_v59, 16  ;;  %v1109_v10 = vshrl.u32 %v6999_v59, 16  ;;  %v542_v5 = vor.u32 %v540_v16, %v539_v0 }
  0xb3   : > { %v1098_v54 = vrot.slane %v1096_v1, 4  ;;  %v1101_v4 = vrot.slane %v1099_v28, 5  ;;  %v1115_v15 = vshll.u32 %v7005_v39, 16  ;;  %v543_v3 = vrot.slane %v539_v0, 4  ;;  %4084 = vmatmul.mubr.bf16.gmra.mrb[40].mxu1 %v5145_v2 }
  0xb4   : > { %3946 = vmatprep.mubr.bf16.mxu0 %v5132_v44  ;;  %v1107_v41 = vrot.slane %v1105_v50, 5  ;;  %v1111_v22 = vrot.slane %v1109_v10, 4  ;;  %v550_v45 = vor.u32 %v548_v24, %v547_v37  ;;  %v552_v26 = vrot.slane %v547_v37, 4  ;;  %v1434_v44 = vld [vmem:[#allocation2 + $0x6c] sm:$0xf] }
  0xb5   : > { %3947 = vmatmul.mubr.bf16.gmra.mrb[36].mxu0 %v5116_v63  ;;  %v1102_v56 = vor.u32 %v1101_v4, %v1098_v54  ;;  %v1117_v28 = vrot.slane %v1115_v15, 5  ;;  %v763_v23 = vsel %vm6355_vm13, %v542_v5, %v762_v19  ;;  %v5162_v63 = vcombine.low %v6985_v32, %v7010_v18  ;;  %v7022_v24 = vld [vmem:[#allocation2 + $0x70] sm:$0xf]  ;;  %v1850_v10 = vld [vmem:[#allocation2 + $0xc] sm:$0xe] }
  0xb6   : > { %v1112_v1 = vor.u32 %v1111_v22, %v1107_v41  ;;  %v551_v0 = vsel %vm6341_vm10, %v543_v3, %v550_v45  ;;  %764 = vst [vmem:[#allocation2 + $0x84] sm:$0xf] %v763_v23  ;;  %v767_v2 = vsel %vm6350_vm12, %v552_v26, %v766_v20  ;;  %v1450_v22 = vld [vmem:[#allocation2 + $0x14] sm:$0x1]  ;;  %v5066_v5 = vrot.slane %v1246_v9, 9 }
  0xb7   : > { %v1103_v16 = vrot.slane %v1102_v56, 4  ;;  %765 = vst [vmem:[#allocation2 + $0x88] sm:$0xf] %v551_v0  ;;  %768 = vst [vmem:[#allocation2 + $0x8c] sm:$0x1] %v767_v2  ;;  %v1357_v19 = vrot.slane %v6878_v8, 5  ;;  %v5117_v20 = vcombine.low %v6992_v43, %v6999_v59  ;;  %4091 = vmatprep.mubr.bf16.mxu1 %v5162_v63 }
  0xb8   : > { %v1113_v37 = vrot.slane %v1112_v1, 4  ;;  %v1360_v50 = vrot.slane %v6880_v17, 5  ;;  %v7030_v54 = vrot.slane %v1635_v52, 4  ;;  %v1659_v32 = vshrl.u32 %v1434_v44, 16  ;;  %v1247_v4 = vld [vmem:[#allocation2 + $0x60] sm:$0xe] }
  0xb9   : > { %v1108_v3 = vsel %vm6332_vm7, %v1103_v16, %v1107_v41  ;;  %v7034_v9 = vrot.slane %v1638_v61, 5  ;;  %v1358_v8 = vsel %vm6317_vm6, %v5066_v5, %v1357_v19  ;;  %v1359_v17 = vrot.slane %v1357_v19, 4  ;;  %v6169_v23 = vld [vmem:[#allocation2 + $0x10] sm:$0xf]  ;;  %v7067_v41 = vld [vmem:[#allocation2 + $0x7c] sm:$0xf] }
  0xba   : > { %v1118_v15 = vsel %vm6332_vm7, %v1113_v37, %v1117_v28  ;;  %v1662_v45 = vshll.u32 %v1434_v44, 16  ;;  %v1486_v26 = vshll.u32 %v1450_v22, 16  ;;  %v7041_v52 = vrot.slane %v1659_v32, 4 }
  0xbb   : > { %v5133_v56 = vcombine.low %v1108_v3, %v1118_v15  ;;  %v1361_v43 = vsel %vm6317_vm6, %v1359_v17, %v1360_v50  ;;  %v5163_v1 = vcombine.low %v1434_v44, %v7022_v24  ;;  %v1916_v28 = vrot.slane %v6169_v23, 5 }
  0xbc   : > { %v5146_v61 = vcombine.low %v1358_v8, %v1361_v43  ;;  %v5075_v16 = vrot.slane %v1850_v10, 9  ;;  %v5067_v0 = vrot.slane %v1247_v4, 9  ;;  %v1364_v2 = vrot.slane %v6931_v46, 5 }
  0xbd   : > { %3954 = vmatprep.mubr.bf16.mxu0 %v5133_v56  ;;  %v7045_v63 = vld [vmem:[#allocation2 + $0x84] sm:$0xf]  ;;  %v7047_v37 = vrot.slane %v1486_v26, 5  ;;  %v1918_v5 = vrot.slane %v1916_v28, 4  ;;  %v1919_v19 = vrot.slane %v1450_v22, 5  ;;  %v1367_v50 = vrot.slane %v6936_v31, 5 }
  0xbe   : > { %3955 = vmatmul.mubr.bf16.gmra.mrb[40].mxu0 %v5117_v20  ;;  %v7050_v3 = vld [vmem:[#allocation2 + $0x88] sm:$0xf]  ;;  %v7052_v44 = vld [vmem:[#allocation2 + $0x8c] sm:$0x1]  ;;  %v1120_v32 = vshrl.u32 %v7045_v63, 16  ;;  %v1123_v10 = vshll.u32 %v7045_v63, 16  ;;  %4092 = vmatmul.mubr.bf16.gmra.mrb[44].mxu1 %v5146_v61  ;;  %v1365_v8 = vsel %vm6317_vm6, %v5067_v0, %v1364_v2  ;;  %v1917_v43 = vsel %vm6317_vm6, %v5075_v16, %v1916_v28 }
  0xbf   : > { %v1129_v46 = vshll.u32 %v7050_v3, 16  ;;  %v1133_v20 = vshrl.u32 %v7050_v3, 16  ;;  %v1139_v4 = vshll.u32 %v7052_v44, 16  ;;  %v7059_v15 = vrot.slane %v1662_v45, 5  ;;  %4099 = vmatprep.mubr.bf16.mxu1 %v5163_v1  ;;  %v1436_v61 = vld [vmem:[#allocation2 + $0x78] sm:$0xf] }
  0xc0   : > { %v1122_v22 = vrot.slane %v1120_v32, 4  ;;  %v1125_v31 = vrot.slane %v1123_v10, 5  ;;  %v1366_v17 = vrot.slane %v1364_v2, 4  ;;  %v1920_v23 = vsel %vm6317_vm6, %v1918_v5, %v1919_v19  ;;  %v1451_v16 = vld [vmem:[#allocation2 + $0x20] sm:$0x1] }
  0xc1   : > { %v1131_v56 = vrot.slane %v1129_v46, 5  ;;  %v1135_v26 = vrot.slane %v1133_v20, 4  ;;  %v1479_v0 = vsel %vm6332_vm7, %v6657_v14, %v6646_v55  ;;  %v1489_v28 = vsel %vm6332_vm7, %v6675_v30, %v7047_v37  ;;  %v1851_v2 = vld [vmem:[#allocation2 + $0x18] sm:$0xe]  ;;  %v1248_v46 = vld [vmem:[#allocation2 + $0x6c] sm:$0xe] }
  0xc2   : > { %v1126_v45 = vor.u32 %v1125_v31, %v1122_v22  ;;  %v1368_v1 = vsel %vm6317_vm6, %v1366_v17, %v1367_v50  ;;  %v1141_v19 = vrot.slane %v1139_v4, 5  ;;  %v5118_v32 = vcombine.low %v7045_v63, %v7050_v3  ;;  %v6170_v17 = vld [vmem:[#allocation2 + $0x1c] sm:$0xf] }
  0xc3   : > { %v1136_v5 = vor.u32 %v1135_v26, %v1131_v56  ;;  %v5147_v10 = vcombine.low %v1365_v8, %v1368_v1  ;;  %v5187_v20 = vcombine.low %v1917_v43, %v1920_v23  ;;  %v1683_v22 = vshrl.u32 %v1436_v61, 16 }
  0xc4   : > { %v1127_v50 = vrot.slane %v1126_v45, 4  ;;  %v5164_v31 = vcombine.low %v1436_v61, %v7067_v41  ;;  %v5076_v14 = vrot.slane %v1851_v2, 9  ;;  %v1923_v42 = vrot.slane %v6170_v17, 5  ;;  %v7090_v45 = vld [vmem:[#allocation2 + $0x84] sm:$0xf] }
  0xc5   : > { %v1137_v55 = vrot.slane %v1136_v5, 4  ;;  %v1926_v48 = vrot.slane %v1451_v16, 5  ;;  %v5068_v37 = vrot.slane %v1248_v46, 9  ;;  %v1371_v4 = vrot.slane %v6962_v6, 5  ;;  %v7094_v6 = vld [vmem:[#allocation2 + $0x2c] sm:$0x1] }
  0xc6   : > { %v1132_v30 = vsel %vm6332_vm7, %v1127_v50, %v1131_v56  ;;  %4100 = vmatmul.mubr.bf16.gmra.mrb[48].mxu1 %v5147_v10  ;;  %v1374_v63 = vrot.slane %v6966_v57, 5  ;;  %v1686_v26 = vshll.u32 %v1436_v61, 16  ;;  %v1925_v43 = vrot.slane %v1923_v42, 4  ;;  %v1852_v57 = vld [vmem:[#allocation2 + $0x24] sm:$0xe] }
  0xc7   : > { %v1142_v8 = vsel %vm6332_vm7, %v1137_v55, %v1141_v19  ;;  %4107 = vmatprep.mubr.bf16.mxu1 %v5164_v31  ;;  %v1497_v23 = vor.u32 %v6719_v11, %v6700_v60  ;;  %v1372_v56 = vsel %vm6317_vm6, %v5068_v37, %v1371_v4  ;;  %v1373_v2 = vrot.slane %v1371_v4, 4  ;;  %v7102_v46 = vld [vmem:[#allocation2 + $0x88] sm:$0xf] }
  0xc8   : > { %v5134_v1 = vcombine.low %v1132_v30, %v1142_v8  ;;  %v1500_v5 = vshll.u32 %v6170_v17, 16  ;;  %v1924_v19 = vsel %vm6317_vm6, %v5076_v14, %v1923_v42  ;;  %v1927_v61 = vsel %vm6317_vm6, %v1925_v43, %v1926_v48 }
  0xc9   : > { %v8590_v10 = vshrl.u32 %v6681_v38, 16  ;;  %v1510_v11 = vshll.u32 %v1451_v16, 16  ;;  %v5171_v50 = vcombine.low %v1479_v0, %v1489_v28  ;;  %v1696_v31 = vshrl.u32 %v7067_v41, 16  ;;  %v1249_v38 = vld [vmem:[#allocation2 + $0x78] sm:$0xe] }
  0xca   : > { %3962 = vmatprep.mubr.bf16.mxu0 %v5134_v1  ;;  %v1375_v55 = vsel %vm6317_vm6, %v1373_v2, %v1374_v63  ;;  %v1502_v17 = vrot.slane %v1500_v5, 5  ;;  %v7107_v30 = vrot.slane %v1683_v22, 4  ;;  %v7109_v42 = vrot.slane %v1686_v26, 5  ;;  %v6171_v2 = vld [vmem:[#allocation2 + $0x28] sm:$0xf] }
  0xcb   : > { %v1506_v60 = vrot.slane %v8590_v10, 4  ;;  %3963 = vmatmul.mubr.bf16.gmra.mrb[44].mxu0 %v5118_v32  ;;  %v5148_v48 = vcombine.low %v1372_v56, %v1375_v55  ;;  %v1498_v14 = vrot.slane %v1497_v23, 4  ;;  %v5188_v16 = vcombine.low %v1924_v19, %v1927_v61 }
  0xcc   : > { %4196 = vmatprep.mubr.bf16.mxu0 %v5187_v20  ;;  %v1707_v4 = vshrl.u32 %v7090_v45, 16  ;;  %v5165_v0 = vcombine.low %v7090_v45, %v7102_v46  ;;  %v1512_v28 = vrot.slane %v1510_v11, 5  ;;  %v5077_v8 = vrot.slane %v1852_v57, 9  ;;  %v7121_v57 = vld [vmem:[#allocation2 + $0x90] sm:$0xf] }
  0xcd   : > { %v1507_v37 = vor.u32 %v1506_v60, %v1502_v17  ;;  %v1930_v63 = vrot.slane %v6767_v62, 5  ;;  %v1933_v32 = vrot.slane %v7094_v6, 5  ;;  %v5069_v26 = vrot.slane %v1249_v38, 9  ;;  %v1853_v60 = vld [vmem:[#allocation2 + $0x30] sm:$0xe] }
  0xce   : > { %4108 = vmatmul.mubr.bf16.gmra.mrb[52].mxu1 %v5148_v48  ;;  %v1378_v43 = vrot.slane %v6999_v59, 5  ;;  %v1381_v20 = vrot.slane %v7005_v39, 5  ;;  %v1710_v23 = vshll.u32 %v7090_v45, 16  ;;  %v1521_v56 = vor.u32 %v6776_v29, %v6774_v27  ;;  %v7129_v45 = vld [vmem:[#allocation2 + $0x94] sm:$0xf] }
  0xcf   : > { %v1508_v22 = vrot.slane %v1507_v37, 4  ;;  %4115 = vmatprep.mubr.bf16.mxu1 %v5165_v0  ;;  %v1932_v1 = vrot.slane %v1930_v63, 4  ;;  %v1524_v5 = vshll.u32 %v6171_v2, 16  ;;  %v1503_v19 = vsel %vm6332_vm7, %v1498_v14, %v1502_v17  ;;  %v6136_v17 = vld [vmem:[%s8564_s1 + $0x208] sm:$0xff]   ;;  %v1250_v48 = vld [vmem:[#allocation2 + $0x84] sm:$0xe] }
  0xd0   : > { %v1379_v61 = vsel %vm6317_vm6, %v5069_v26, %v1378_v43  ;;  %v1380_v59 = vrot.slane %v1378_v43, 4  ;;  %v8591_v39 = vshrl.u32 %v6767_v62, 16  ;;  %v7135_v29 = vsel %vm6317_vm6, %v5077_v8, %v1930_v63  ;;  %v1453_v62 = vld [vmem:[#allocation2 + $0x38] sm:$0x1] }
  0xd1   : > { %v1513_v27 = vsel %vm6332_vm7, %v1508_v22, %v1512_v28  ;;  %v1934_v11 = vsel %vm6317_vm6, %v1932_v1, %v1933_v32  ;;  %v1526_v55 = vrot.slane %v1524_v5, 5  ;;  %v1534_v37 = vshll.u32 %v7094_v6, 16  ;;  %v6172_v32 = vld [vmem:[%s8564_s1 + $0x200] sm:$0xff]  }
  0xd2   : > { %v1530_v10 = vrot.slane %v8591_v39, 4  ;;  %v1382_v38 = vsel %vm6317_vm6, %v1380_v59, %v1381_v20  ;;  %v7146_v0 = vrot.slane %v1707_v4, 4  ;;  %v1522_v8 = vrot.slane %v1521_v56, 4  ;;  %v6141_v56 = vld [vmem:[%s8564_s1 + $0x210] sm:$0xff]  }
  0xd3   : > { %4197 = vmatmul.mubr.bf16.vlgmr.msra.gmra.mrb[48].mxu0 %v5171_v50  ;;  %v5149_v28 = vcombine.low %v1379_v61, %v1382_v38  ;;  %v5172_v22 = vcombine.low %v1503_v19, %v1513_v27  ;;  %v5189_v26 = vcombine.low %v7135_v29, %v1934_v11  ;;  %v1536_v43 = vrot.slane %v1534_v37, 5  ;;  %v6173_v29 = vld [vmem:[#allocation2 + $0x34] sm:$0xf]  ;;  %v7170_v11 = vld [vmem:[#allocation2 + $0x9c] sm:$0xf] }
  0xd4   : > { %v1531_v63 = vor.u32 %v1530_v10, %v1526_v55  ;;  %5960 = vmatpush3.bf16.msra.mxu0 %v6172_v32  ;;  %4204 = vmatprep.mubr.bf16.mxu0 %v5188_v16  ;;  %v5166_v20 = vcombine.low %v7121_v57, %v7129_v45  ;;  %v1731_v50 = vshrl.u32 %v7121_v57, 16  ;;  %v5078_v4 = vrot.slane %v1853_v60, 9  ;;  %v1854_v32 = vld [vmem:[#allocation2 + $0x3c] sm:$0xe] }
  0xd5   : > { %5961 = vmatprep.subr.bf16.mxu0 %v6136_v17  ;;  %v1937_v1 = vrot.slane %v6809_v7, 5  ;;  %v1940_v16 = vrot.slane %v1453_v62, 5  ;;  %v5070_v2 = vrot.slane %v1250_v48, 9  ;;  %v1385_v5 = vrot.slane %v7050_v3, 5 }
  0xd6   : > { %v1532_v6 = vrot.slane %v1531_v63, 4  ;;  %4116 = vmatmul.mubr.bf16.gmra.mrb[56].mxu1 %v5149_v28  ;;  %v1388_v19 = vrot.slane %v7052_v44, 5  ;;  %v1527_v61 = vsel %vm6332_vm7, %v1522_v8, %v1526_v55  ;;  %v1734_v39 = vshll.u32 %v7121_v57, 16  ;;  %v6146_v55 = vld [vmem:[%s8564_s1 + $0x218] sm:$0xff]   ;;  %v7181_v28 = vld [vmem:[#allocation2 + $0xa0] sm:$0xf] }
  0xd7   : > { %4123 = vmatprep.mubr.bf16.mxu1 %v5166_v20  ;;  %v1939_v10 = vrot.slane %v1937_v1, 4  ;;  %v1386_v60 = vsel %vm6317_vm6, %v5070_v2, %v1385_v5  ;;  %v1387_v27 = vrot.slane %v1385_v5, 4  ;;  %v1545_v3 = vor.u32 %v6821_v36, %v6819_v34  ;;  %v1454_v63 = vld [vmem:[#allocation2 + $0x44] sm:$0x1] }
  0xd8   : > { %v1537_v59 = vsel %vm6332_vm7, %v1532_v6, %v1536_v43  ;;  %5962 = vmatpush3.bf16.msra.mxu0 %v6136_v17  ;;  %v1548_v44 = vshll.u32 %v6173_v29, 16  ;;  %v7175_v48 = vrot.slane %v1710_v23, 5  ;;  %v7177_v57 = vrot.slane %v1731_v50, 4  ;;  %v1251_v6 = vld [vmem:[#allocation2 + $0x90] sm:$0xe] }
  0xd9   : > { %v8592_v17 = vshrl.u32 %v6809_v7, 16  ;;  %v1558_v37 = vshll.u32 %v1453_v62, 16  ;;  %5963 = vmatprep.subr.bf16.mxu0 %v6141_v56  ;;  %v1938_v34 = vsel %vm6317_vm6, %v5078_v4, %v1937_v1  ;;  %v1941_v36 = vsel %vm6317_vm6, %v1939_v10, %v1940_v16  ;;  %v6174_v10 = vld [vmem:[#allocation2 + $0x94] sm:$0xf] }
  0xda   : > { %v1389_v8 = vsel %vm6317_vm6, %v1387_v27, %v1388_v19  ;;  %v1550_v23 = vrot.slane %v1548_v44, 5  ;;  %v5173_v43 = vcombine.low %v1527_v61, %v1537_v59  ;;  %v7189_v7 = vrot.slane %v1734_v39, 5  ;;  %v6150_v61 = vld [vmem:[%s8564_s1 + $0x220] sm:$0xff]  }
  0xdb   : > { %v1554_v38 = vrot.slane %v8592_v17, 4  ;;  %4205 = vmatmul.mubr.bf16.gmra.mrb[52].mxu0 %v5172_v22  ;;  %v5150_v20 = vcombine.low %v1386_v60, %v1389_v8  ;;  %v1546_v50 = vrot.slane %v1545_v3, 4  ;;  %v1560_v1 = vrot.slane %v1558_v37, 5 }
  0xdc   : > { %4212 = vmatprep.mubr.bf16.mxu0 %v5189_v26  ;;  %v5167_v16 = vcombine.low %v7170_v11, %v7181_v28  ;;  %5964 = vmatpush3.bf16.msra.mxu0 %v6141_v56  ;;  %v5190_v2 = vcombine.low %v1938_v34, %v1941_v36  ;;  %v5079_v5 = vrot.slane %v1854_v32, 9  ;;  %v1944_v19 = vrot.slane %v6861_v21, 5  ;;  %v1444_v36 = vld [vmem:[#allocation2 + $0xa8] sm:$0xf]  ;;  %v7221_v32 = vld [vmem:[#allocation2 + $0xac] sm:$0xf] }
  0xdd   : > { %v1555_v4 = vor.u32 %v1554_v38, %v1550_v23  ;;  %v1947_v22 = vrot.slane %v1454_v63, 5  ;;  %5965 = vmatprep.subr.bf16.mxu0 %v6146_v55  ;;  %v1755_v26 = vshrl.u32 %v7170_v11, 16  ;;  %v5071_v39 = vrot.slane %v1251_v6, 9 }
  0xde   : > { %4124 = vmatmul.mubr.bf16.gmra.mrb[60].mxu1 %v5150_v20  ;;  %v1392_v60 = vrot.slane %v6174_v10, 5  ;;  %v1946_v27 = vrot.slane %v1944_v19, 4  ;;  %v1569_v56 = vor.u32 %v6918_v47, %v6899_v51  ;;  %v1572_v3 = vshll.u32 %v6861_v21, 16  ;;  %v6153_v51 = vld [vmem:[%s8564_s1 + $0x228] sm:$0xff]   ;;  %v7223_v20 = vld [vmem:[#allocation2 + $0x50] sm:$0x1] }
  0xdf   : > { %v1556_v59 = vrot.slane %v1555_v4, 4  ;;  %4131 = vmatprep.mubr.bf16.mxu1 %v5167_v16  ;;  %v8593_v29 = vshrl.u32 %v6861_v21, 16  ;;  %v1551_v17 = vsel %vm6332_vm7, %v1546_v50, %v1550_v23  ;;  %v7215_v21 = vsel %vm6317_vm6, %v5079_v5, %v1944_v19  ;;  %v1855_v16 = vld [vmem:[#allocation2 + $0x48] sm:$0xe] }
  0xe0   : > { %v1393_v37 = vsel %vm6317_vm6, %v5071_v39, %v1392_v60  ;;  %v1394_v34 = vrot.slane %v1392_v60, 4  ;;  %5966 = vmatpush3.bf16.msra.mxu0 %v6146_v55  ;;  %v7219_v47 = vsel %vm6317_vm6, %v1946_v27, %v1947_v22  ;;  %v1574_v8 = vrot.slane %v1572_v3, 5 }
  0xe1   : > { %v1578_v44 = vrot.slane %v8593_v29, 4  ;;  %v1561_v38 = vsel %vm6332_vm7, %v1556_v59, %v1560_v1  ;;  %v1582_v23 = vshll.u32 %v1454_v63, 16  ;;  %5967 = vmatprep.subr.bf16.mxu0 %v6150_v61  ;;  %v7225_v55 = vrot.slane %v1755_v26, 4  ;;  %v1252_v59 = vld [vmem:[#allocation2 + $0x9c] sm:$0xe] }
  0xe2   : > { %v1758_v6 = vshll.u32 %v7170_v11, 16  ;;  %v8594_v4 = vrot.slane %v6393_v33, 5  ;;  %v5174_v5 = vcombine.low %v1551_v17, %v1561_v38  ;;  %v1570_v19 = vrot.slane %v1569_v56, 4  ;;  %v6156_v33 = vld [vmem:[%s8564_s1 + $0x230] sm:$0xff]   ;;  %v6175_v29 = vld [vmem:[#allocation2 + $0xa0] sm:$0xf] }
  0xe3   : > { %4213 = vmatmul.mubr.bf16.gmra.mrb[56].mxu0 %v5173_v43  ;;  %v1579_v22 = vor.u32 %v1578_v44, %v1574_v8  ;;  %v5191_v26 = vcombine.low %v7215_v21, %v7219_v47  ;;  %v1584_v39 = vrot.slane %v1582_v23, 5  ;;  %v1779_v11 = vshrl.u32 %v1444_v36, 16  ;;  %v6176_v17 = vld [vmem:[#allocation2 + $0xa4] sm:$0x1] }
  0xe4   : > { %v1396_v1 = vsel %vm6317_vm6, %v1394_v34, %v8594_v4  ;;  %4220 = vmatprep.mubr.bf16.mxu0 %v5190_v2  ;;  %v5168_v10 = vcombine.low %v1444_v36, %v7221_v32  ;;  %5968 = vmatpush3.bf16.msra.mxu0 %v6150_v61  ;;  %v5080_v43 = vrot.slane %v1855_v16, 9  ;;  %v1951_v27 = vrot.slane %v6914_v13, 5 }
  0xe5   : > { %v5151_v63 = vcombine.low %v1393_v37, %v1396_v1  ;;  %v1580_v60 = vrot.slane %v1579_v22, 4  ;;  %v1954_v56 = vrot.slane %v7223_v20, 5  ;;  %5969 = vmatprep.subr.bf16.mxu0 %v6153_v51  ;;  %v1782_v2 = vshll.u32 %v1444_v36, 16  ;;  %v7254_v1 = vld [vmem:[#allocation2 + $0xb4] sm:$0xf]  ;;  %v6159_v22 = vld [vmem:[%s8564_s1 + $0x238] sm:$0xff]  }
  0xe6   : > { %v5072_v3 = vrot.slane %v1252_v59, 9  ;;  %v1399_v44 = vrot.slane %v6175_v29, 5  ;;  %v1402_v38 = vrot.slane %v6176_v17, 5  ;;  %v1575_v61 = vsel %vm6332_vm7, %v1570_v19, %v1574_v8  ;;  %v7265_v19 = vld [vmem:[#allocation2 + $0xb8] sm:$0xf] }
  0xe7   : > { %4132 = vmatmul.mubr.bf16.gmra.mrb[64].mxu1 %v5151_v63  ;;  %v1953_v37 = vrot.slane %v1951_v27, 4  ;;  %v1593_v34 = vor.u32 %v6922_v58, %v6920_v12  ;;  %v1596_v21 = vshll.u32 %v6914_v13, 16  ;;  %v1585_v47 = vsel %vm6332_vm7, %v1580_v60, %v1584_v39  ;;  %v1456_v29 = vld [vmem:[#allocation2 + $0x5c] sm:$0x1] }
  0xe8   : > { %4139 = vmatprep.mubr.bf16.mxu1 %v5168_v10  ;;  %v7250_v36 = vsel %vm6317_vm6, %v5080_v43, %v1951_v27  ;;  %v1400_v23 = vsel %vm6317_vm6, %v5072_v3, %v1399_v44  ;;  %v1401_v4 = vrot.slane %v1399_v44, 4  ;;  %5970 = vmatpush3.bf16.msra.mxu0 %v6153_v51  ;;  %v8595_v58 = vshrl.u32 %v6914_v13, 16  ;;  %v1856_v13 = vld [vmem:[#allocation2 + $0x54] sm:$0xe] }
  0xe9   : > { %v7258_v8 = vsel %vm6317_vm6, %v1953_v37, %v1954_v56  ;;  %v7260_v12 = vrot.slane %v1596_v21, 5  ;;  %v1606_v63 = vshll.u32 %v7223_v20, 16  ;;  %5971 = vmatprep.subr.bf16.mxu0 %v6156_v33  ;;  %v7270_v59 = vrot.slane %v1758_v6, 5  ;;  %v1253_v56 = vld [vmem:[#allocation2 + $0xa8] sm:$0xe] }
  0xea   : > { %v1602_v16 = vrot.slane %v8595_v58, 4  ;;  %v7272_v51 = vrot.slane %v1779_v11, 4  ;;  %v7274_v39 = vrot.slane %v1782_v2, 5  ;;  %v1403_v10 = vsel %vm6317_vm6, %v1401_v4, %v1402_v38  ;;  %v1457_v20 = vld [vmem:[#allocation2 + $0x68] sm:$0x1] }
  0xeb   : > { %4221 = vmatmul.mubr.bf16.gmra.mrb[60].mxu0 %v5174_v5  ;;  %v5175_v60 = vcombine.low %v1575_v61, %v1585_v47  ;;  %v5152_v43 = vcombine.low %v1400_v23, %v1403_v10  ;;  %v5192_v6 = vcombine.low %v7250_v36, %v7258_v8  ;;  %v1594_v11 = vrot.slane %v1593_v34, 4  ;;  %v6177_v61 = vld [vmem:[#allocation2 + $0xac] sm:$0xf]  ;;  %v6178_v34 = vld [vmem:[#allocation2 + $0xb0] sm:$0x1]  ;;  %v8596_v47 = vld [vmem:[#allocation4_spill] sm:$0xff] }
  0xec   : > { %v1603_v27 = vor.u32 %v1602_v16, %v7260_v12  ;;  %4228 = vmatprep.mubr.bf16.mxu0 %v5191_v26  ;;  %v1608_v3 = vrot.slane %v1606_v63, 5  ;;  %v5169_v2 = vcombine.low %v7254_v1, %v7265_v19  ;;  %5972 = vmatpush3.bf16.msra.mxu0 %v6156_v33  ;;  %v1803_v5 = vshrl.u32 %v7254_v1, 16  ;;  %v8597_v36 = vld [vmem:[#allocation5_spill] sm:$0xff]  ;;  %v361_v16 = vld [vmem:[%s6300_s26 + $0x78] sm:$0xf] }
  0xed   : > { %v5081_v17 = vrot.slane %v1856_v13, 9  ;;  %v1958_v38 = vrot.slane %v6960_v49, 5  ;;  %5973 = vmatprep.subr.bf16.mxu0 %v6159_v22  ;;  %v5073_v26 = vrot.slane %v1253_v56, 9  ;;  %v1406_v37 = vrot.slane %v6177_v61, 5 }
  0xee   : > { %v1604_v44 = vrot.slane %v1603_v27, 4  ;;  %v1409_v21 = vrot.slane %v6178_v34, 5  ;;  %v1617_v23 = vor.u32 %v8597_v36, %v8596_v47  ;;  %v1806_v33 = vshll.u32 %v7254_v1, 16  ;;  %v362_v27 = vld [vmem:[%s6300_s26 + $0x7c] sm:$0xf] }
  0xef   : > { %4140 = vmatmul.mubr.bf16.gmra.mrb[68].mxu1 %v5152_v43  ;;  %v1960_v4 = vrot.slane %v1958_v38, 4  ;;  %v1961_v8 = vrot.slane %v1456_v29, 5  ;;  %v1620_v58 = vshll.u32 %v6960_v49, 16  ;;  %v1599_v63 = vsel %vm6332_vm7, %v1594_v11, %v7260_v12  ;;  %v1857_v36 = vld [vmem:[#allocation2 + $0x60] sm:$0xe] }
  0xf0   : > { %4147 = vmatprep.mubr.bf16.mxu1 %v5169_v2  ;;  %v1609_v10 = vsel %vm6332_vm7, %v1604_v44, %v1608_v3  ;;  %v1407_v13 = vsel %vm6317_vm6, %v5073_v26, %v1406_v37  ;;  %v1408_v43 = vrot.slane %v1406_v37, 4  ;;  %5974 = vmatpush3.bf16.msra.mxu0 %v6159_v22  ;;  %v1959_v56 = vsel %vm6317_vm6, %v5081_v17, %v1958_v38  ;;  %v797_v38 = vld [vmem:[#allocation2 + $0xc0] sm:$0xf]  ;;  %v7381_v1 = vld [vmem:[#allocation2 + $0x24] sm:$0xf] }
  0xf1   : > { %v1622_v2 = vrot.slane %v1620_v58, 5  ;;  %v8598_v61 = vshrl.u32 %v6960_v49, 16  ;;  %v1630_v47 = vshll.u32 %v1456_v29, 16  ;;  %v1618_v11 = vrot.slane %v1617_v23, 4  ;;  %v1254_v58 = vld [vmem:[#allocation2 + $0xb4] sm:$0xe] }
  0xf2   : > { %v1410_v12 = vsel %vm6317_vm6, %v1408_v43, %v1409_v21  ;;  %v622_v3 = vshrl.u32 %v361_v16, 16  ;;  %v625_v44 = vshll.u32 %v361_v16, 16  ;;  %v1962_v22 = vsel %vm6317_vm6, %v1960_v4, %v1961_v8  ;;  %v6179_v4 = vld [vmem:[#allocation2 + $0xb8] sm:$0xf] }
  0xf3   : > { %v1626_v34 = vrot.slane %v8598_v61, 4  ;;  %4229 = vmatmul.mubr.bf16.gmra.mrb[64].mxu0 %v5175_v60  ;;  %v5153_v26 = vcombine.low %v1407_v13, %v1410_v12  ;;  %v1632_v17 = vrot.slane %v1630_v47, 5  ;;  %v630_v29 = vshrl.u32 %v362_v27, 16  ;;  %v6180_v12 = vld [vmem:[#allocation2 + $0xbc] sm:$0x1] }
  0xf4   : > { %4236 = vmatprep.mubr.bf16.mxu0 %v5192_v6  ;;  %v624_v49 = vrot.slane %v622_v3, 7  ;;  %v633_v61 = vshll.u32 %v362_v27, 16  ;;  %v5082_v50 = vrot.slane %v1857_v36, 9  ;;  %v5176_v62 = vcombine.low %v1599_v63, %v1609_v10 }
  0xf5   : > { %v1627_v37 = vor.u32 %v1626_v34, %v1622_v2  ;;  %v1965_v23 = vrot.slane %v7010_v18, 5  ;;  %v1968_v16 = vrot.slane %v1457_v20, 5  ;;  %v7308_v14 = vrot.slane %v630_v29, 7  ;;  %v7334_v29 = vld [vmem:[#allocation2 + $0x1c] sm:$0xf] }
  0xf6   : > { %v627_v60 = vor.u32 %v625_v44, %v624_v49  ;;  %v628_v43 = vrot.slane %v624_v49, 4  ;;  %v1413_v8 = vrot.slane %v6179_v4, 5  ;;  %v5193_v13 = vcombine.low %v1959_v56, %v1962_v22  ;;  %v7324_v44 = vld [vmem:[#allocation2 + $0x74] sm:$0x1]  ;;  %v1858_v22 = vld [vmem:[#allocation2 + $0x6c] sm:$0xe] }
  0xf7   : > { %v1628_v21 = vrot.slane %v1627_v37, 4  ;;  %4148 = vmatmul.mubr.bf16.gmra.mrb[72].mxu1 %v5153_v26  ;;  %v1623_v6 = vsel %vm6332_vm7, %v1618_v11, %v1622_v2  ;;  %v1967_v34 = vrot.slane %v1965_v23, 4  ;;  %v5074_v47 = vrot.slane %v1254_v58, 9 }
  0xf8   : > { %v635_v10 = vor.u32 %v633_v61, %v7308_v14  ;;  %v798_v27 = vsel %vm6355_vm13, %v627_v60, %v797_v38  ;;  %v1966_v36 = vsel %vm6317_vm6, %v5082_v50, %v1965_v23  ;;  %v1416_v3 = vrot.slane %v6180_v12, 5  ;;  %v7330_v38 = vld [vmem:[#allocation2 + $0x18] sm:$0xf] }
  0xf9   : > { %v1633_v63 = vsel %vm6332_vm7, %v1628_v21, %v1632_v17  ;;  %799 = vst [vmem:[#allocation2 + $0xc0] sm:$0xf] %v798_v27  ;;  %v1969_v56 = vsel %vm6317_vm6, %v1967_v34, %v1968_v16  ;;  %v1641_v2 = vor.u32 %v7034_v9, %v7030_v54  ;;  %v1644_v11 = vshll.u32 %v7010_v18, 16 }
  0xfa   : > { %v636_v53 = vsel %vm6341_vm10, %v628_v43, %v635_v10  ;;  %v1415_v26 = vrot.slane %v1413_v8, 4  ;;  %v8599_v50 = vshrl.u32 %v7010_v18, 16  ;;  %v1654_v17 = vshll.u32 %v1457_v20, 16  ;;  %v7338_v20 = vld [vmem:[#allocation2 + $0x20] sm:$0x1] }
  0xfb   : > { %4237 = vmatmul.mubr.bf16.gmra.mrb[68].mxu0 %v5176_v62  ;;  %v5177_v58 = vcombine.low %v1623_v6, %v1633_v63  ;;  %800 = vst [vmem:[#allocation2 + $0xc4] sm:$0xf] %v636_v53  ;;  %v5194_v49 = vcombine.low %v1966_v36, %v1969_v56  ;;  %v1414_v54 = vsel %vm6317_vm6, %v5074_v47, %v1413_v8  ;;  %v1646_v9 = vrot.slane %v1644_v11, 5 }
  0xfc   : > { %v1650_v37 = vrot.slane %v8599_v50, 4  ;;  %4244 = vmatprep.mubr.bf16.mxu0 %v5193_v13  ;;  %v1642_v40 = vrot.slane %v1641_v2, 4  ;;  %v5083_v61 = vrot.slane %v1858_v22, 9  ;;  %v1972_v21 = vrot.slane %v7022_v24, 5 }
  0xfd   : > { %v1975_v18 = vrot.slane %v7324_v44, 5  ;;  %v1656_v62 = vrot.slane %v1654_v17, 5  ;;  %v2076_v16 = vshrl.u32 %v7330_v38, 16  ;;  %v2079_v60 = vshll.u32 %v7330_v38, 16 }
  0xfe   : > { %v1651_v23 = vor.u32 %v1650_v37, %v1646_v9  ;;  %v1417_v43 = vsel %vm6317_vm6, %v1415_v26, %v1416_v3  ;;  %v1974_v4 = vrot.slane %v1972_v21, 4  ;;  %v2085_v8 = vshll.u32 %v7334_v29, 16 }
  0xff   : > { %v2089_v13 = vshrl.u32 %v7334_v29, 16  ;;  %v2078_v34 = vrot.slane %v2076_v16, 4  ;;  %v2081_v47 = vrot.slane %v2079_v60, 5  ;;  %v2095_v63 = vshll.u32 %v7338_v20, 16 }
 0x100   : > { %v1652_v6 = vrot.slane %v1651_v23, 4  ;;  %v7347_v10 = vld [vmem:[#allocation2 + $0xc0] sm:$0xf]  ;;  %v7351_v27 = vsel %vm6317_vm6, %v5083_v61, %v1972_v21  ;;  %v7355_v36 = vsel %vm6317_vm6, %v1974_v4, %v1975_v18  ;;  %v2087_v56 = vrot.slane %v2085_v8, 5  ;;  %v1859_v61 = vld [vmem:[#allocation2 + $0x78] sm:$0xe] }
 0x101   : > { %v2091_v12 = vrot.slane %v2089_v13, 4  ;;  %v7359_v3 = vrot.slane %v1803_v5, 4  ;;  %v1647_v2 = vsel %vm6332_vm7, %v1642_v40, %v1646_v9  ;;  %v1665_v22 = vor.u32 %v7059_v15, %v7041_v52  ;;  %v7378_v15 = vld [vmem:[#allocation2 + $0x80] sm:$0x1] }
 0x102   : > { %v1657_v11 = vsel %vm6332_vm7, %v1652_v6, %v1656_v62  ;;  %v7367_v53 = vld [vmem:[#allocation2 + $0xc4] sm:$0xf]  ;;  %v5154_v26 = vcombine.low %v1414_v54, %v1417_v43  ;;  %v2082_v50 = vor.u32 %v2081_v47, %v2078_v34  ;;  %v2097_v17 = vrot.slane %v2095_v63, 5  ;;  %v7395_v34 = vld [vmem:[#allocation2 + $0x28] sm:$0xf] }
 0x103   : > { %v2092_v37 = vor.u32 %v2091_v12, %v2087_v56  ;;  %v7371_v5 = vrot.slane %v1806_v33, 5  ;;  %4245 = vmatmul.mubr.bf16.gmra.mrb[72].mxu0 %v5177_v58  ;;  %v5170_v9 = vcombine.low %v7347_v10, %v7367_v53  ;;  %v5195_v52 = vcombine.low %v7351_v27, %v7355_v36  ;;  %v7402_v27 = vld [vmem:[#allocation2 + $0x2c] sm:$0x1] }
 0x104   : > { %4252 = vmatprep.mubr.bf16.mxu0 %v5194_v49  ;;  %v5178_v54 = vcombine.low %v1647_v2, %v1657_v11  ;;  %v2083_v40 = vrot.slane %v2082_v50, 4  ;;  %v1668_v23 = vshll.u32 %v7022_v24, 16  ;;  %v7383_v33 = vpop.f32.mrb[0].mxu0  ;;  %v1666_v58 = vrot.slane %v1665_v22, 4 }
 0x105   : > { %v2093_v18 = vrot.slane %v2092_v37, 4  ;;  %4155 = vmatprep.mubr.bf16.mxu1 %v5170_v9  ;;  %v8600_v62 = vshrl.u32 %v7022_v24, 16  ;;  %v1678_v60 = vshll.u32 %v7324_v44, 16  ;;  %v5084_v43 = vrot.slane %v1859_v61, 9  ;;  %v7388_v4 = vpop.f32.mrb[1].mxu0 }
 0x106   : > { %4156 = vmatmul.mubr.bf16.gmra.mrb[76].mxu1 %v5154_v26  ;;  %v2088_v49 = vsel %vm6332_vm7, %v2083_v40, %v2087_v56  ;;  %v1670_v13 = vrot.slane %v1668_v23, 5  ;;  %v1979_v6 = vrot.slane %v7067_v41, 5  ;;  %v7397_v47 = vpop.f32.mrb[2].mxu0  ;;  %v5203_v44 = vcombine.low %v7330_v38, %v7334_v29 }
 0x107   : > { %v1674_v16 = vrot.slane %v8600_v62, 4  ;;  %v2098_v8 = vsel %vm6332_vm7, %v2093_v18, %v2097_v17  ;;  %v1982_v63 = vrot.slane %v7378_v15, 5  ;;  %v2100_v36 = vshrl.u32 %v7381_v1, 16  ;;  %v7405_v56 = vpop.f32.mrb[3].mxu0 }
 0x108   : > { %v5219_v24 = vcombine.low %v2088_v49, %v2098_v8  ;;  %v1680_v2 = vrot.slane %v1678_v60, 5  ;;  %v1980_v11 = vsel %vm6317_vm6, %v5084_v43, %v1979_v6  ;;  %v1981_v22 = vrot.slane %v1979_v6, 4  ;;  %v1860_v8 = vld [vmem:[#allocation2 + $0x84] sm:$0xe] }
 0x109   : > { %v1675_v12 = vor.u32 %v1674_v16, %v1670_v13  ;;  %v2102_v26 = vrot.slane %v2100_v36, 4  ;;  %v2103_v50 = vshll.u32 %v7381_v1, 16  ;;  %v2109_v38 = vshll.u32 %v7395_v34, 16 }
 0x10a   : > { %4357 = vmatprep.mubr.bf16.mxu1 %v5219_v24  ;;  %v2113_v37 = vshrl.u32 %v7395_v34, 16  ;;  %v1671_v17 = vsel %vm6332_vm7, %v1666_v58, %v1670_v13  ;;  %v1983_v9 = vsel %vm6317_vm6, %v1981_v22, %v1982_v63  ;;  %v2119_v40 = vshll.u32 %v7402_v27, 16  ;;  %v1460_v63 = vld [vmem:[#allocation2 + $0x8c] sm:$0x1] }
 0x10b   : > { %v1676_v61 = vrot.slane %v1675_v12, 4  ;;  %4253 = vmatmul.mubr.bf16.gmra.mrb[76].mxu0 %v5178_v54  ;;  %v5196_v18 = vcombine.low %v1980_v11, %v1983_v9  ;;  %v2105_v23 = vrot.slane %v2103_v50, 5  ;;  %v2111_v62 = vrot.slane %v2109_v38, 5  ;;  %v7428_v50 = vld [vmem:[#allocation2 + $0x30] sm:$0xf] }
 0x10c   : > { %v2115_v16 = vrot.slane %v2113_v37, 4  ;;  %4260 = vmatprep.mubr.bf16.mxu0 %v5195_v52  ;;  %v2121_v43 = vrot.slane %v2119_v40, 5  ;;  %v1689_v49 = vor.u32 %v7109_v42, %v7107_v30  ;;  %v1692_v58 = vshll.u32 %v7067_v41, 16  ;;  %v7432_v38 = vld [vmem:[#allocation2 + $0x34] sm:$0xf] }
 0x10d   : > { %v1681_v60 = vsel %vm6332_vm7, %v1676_v61, %v1680_v2  ;;  %v2106_v6 = vor.u32 %v2105_v23, %v2102_v26  ;;  %v1698_v54 = vrot.slane %v1696_v31, 4  ;;  %v1702_v12 = vshll.u32 %v7378_v15, 16  ;;  %v7434_v37 = vld [vmem:[#allocation2 + $0x38] sm:$0x1] }
 0x10e   : > { %v5179_v13 = vcombine.low %v1671_v17, %v1681_v60  ;;  %v2116_v24 = vor.u32 %v2115_v16, %v2111_v62  ;;  %4358 = vmatmul.mubr.bf16.vlgmr.msra.gmra.mrb[80].mxu1 %v5203_v44  ;;  %v1690_v36 = vrot.slane %v1689_v49, 4  ;;  %v1694_v52 = vrot.slane %v1692_v58, 5 }
 0x10f   : > { %v5204_v2 = vcombine.low %v7381_v1, %v7395_v34  ;;  %v2107_v11 = vrot.slane %v2106_v6, 4  ;;  %v5085_v42 = vrot.slane %v1860_v8, 9  ;;  %v1986_v22 = vrot.slane %v7102_v46, 5 }
 0x110   : > { %v2117_v30 = vrot.slane %v2116_v24, 4  ;;  %v1695_v41 = vsel %vm6332_vm7, %v1690_v36, %v1694_v52  ;;  %v1699_v31 = vor.u32 %v1698_v54, %v1694_v52  ;;  %v1704_v26 = vrot.slane %v1702_v12, 5 }
 0x111   : > { %v1989_v44 = vrot.slane %v1460_v63, 5  ;;  %v2112_v15 = vsel %vm6332_vm7, %v2107_v11, %v2111_v62  ;;  %v1987_v17 = vsel %vm6317_vm6, %v5085_v42, %v1986_v22  ;;  %v1988_v61 = vrot.slane %v1986_v22, 4  ;;  %v7455_v42 = vld [vmem:[#allocation2 + $0x98] sm:$0x1] }
 0x112   : > { %v2122_v1 = vsel %vm6332_vm7, %v2117_v30, %v2121_v43  ;;  %v1700_v40 = vrot.slane %v1699_v31, 4  ;;  %v2124_v23 = vshrl.u32 %v7428_v50, 16  ;;  %v2127_v16 = vshll.u32 %v7428_v50, 16 }
 0x113   : > { %v5220_v9 = vcombine.low %v2112_v15, %v2122_v1  ;;  %4261 = vmatmul.mubr.bf16.gmra.mrb[80].mxu0 %v5179_v13  ;;  %v1990_v60 = vsel %vm6317_vm6, %v1988_v61, %v1989_v44  ;;  %v2133_v49 = vshll.u32 %v7432_v38, 16  ;;  %v2137_v62 = vshrl.u32 %v7432_v38, 16  ;;  %v1861_v13 = vld [vmem:[#allocation2 + $0x90] sm:$0xe]  ;;  %v7464_v1 = vld [vmem:[#allocation2 + $0x3c] sm:$0xf] }
 0x114   : > { %v2143_v43 = vshll.u32 %v7434_v37, 16  ;;  %4268 = vmatprep.mubr.bf16.mxu0 %v5196_v18  ;;  %v1705_v8 = vsel %vm6332_vm7, %v1700_v40, %v1704_v26  ;;  %v5197_v6 = vcombine.low %v1987_v17, %v1990_v60  ;;  %v2126_v24 = vrot.slane %v2124_v23, 4 }
 0x115   : > { %4365 = vmatprep.mubr.bf16.mxu1 %v5220_v9  ;;  %v2129_v54 = vrot.slane %v2127_v16, 5  ;;  %v5180_v52 = vcombine.low %v1695_v41, %v1705_v8  ;;  %v2135_v12 = vrot.slane %v2133_v49, 5  ;;  %v2139_v11 = vrot.slane %v2137_v62, 4  ;;  %v7472_v49 = vld [vmem:[#allocation2 + $0x40] sm:$0xf] }
 0x116   : > { %v2145_v30 = vrot.slane %v2143_v43, 5  ;;  %4366 = vmatmul.mubr.bf16.gmra.mrb[84].mxu1 %v5204_v2  ;;  %v1713_v31 = vor.u32 %v7175_v48, %v7146_v0  ;;  %v1716_v26 = vshll.u32 %v7102_v46, 16  ;;  %v8601_v44 = vshrl.u32 %v7102_v46, 16  ;;  %8602 = vst [vmem:[#allocation4_spill] sm:$0xff] %v7472_v49 }
 0x117   : > { %v7449_v58 = vpop.f32.mrb[0].mxu1  ;;  %v2130_v18 = vor.u32 %v2129_v54, %v2126_v24  ;;  %v2140_v17 = vor.u32 %v2139_v11, %v2135_v12  ;;  %v1726_v61 = vshll.u32 %v1460_v63, 16  ;;  %v5205_v9 = vcombine.low %v7428_v50, %v7432_v38  ;;  %v7481_v24 = vld [vmem:[#allocation2 + $0x44] sm:$0x1] }
 0x118   : > { %v7453_v36 = vpop.f32.mrb[1].mxu1  ;;  %v1722_v15 = vrot.slane %v8601_v44, 4  ;;  %v5086_v40 = vrot.slane %v1861_v13, 9  ;;  %v1714_v23 = vrot.slane %v1713_v31, 4  ;;  %v1718_v16 = vrot.slane %v1716_v26, 5  ;;  %8603 = vst [vmem:[#allocation5_spill] sm:$0xff] %v7481_v24 }
 0x119   : > { %v7457_v22 = vpop.f32.mrb[2].mxu1  ;;  %v2131_v2 = vrot.slane %v2130_v18, 4  ;;  %v1993_v0 = vrot.slane %v7129_v45, 5  ;;  %v2141_v48 = vrot.slane %v2140_v17, 4  ;;  %v1728_v60 = vrot.slane %v1726_v61, 5 }
 0x11a   : > { %v7466_v41 = vpop.f32.mrb[3].mxu1  ;;  %v1996_v46 = vrot.slane %v7455_v42, 5  ;;  %v2148_v62 = vshrl.u32 %v7464_v1, 16  ;;  %v1719_v50 = vsel %vm6332_vm7, %v1714_v23, %v1718_v16  ;;  %v1723_v43 = vor.u32 %v1722_v15, %v1718_v16 }
 0x11b   : > { %v2136_v63 = vsel %vm6332_vm7, %v2131_v2, %v2135_v12  ;;  %v1994_v8 = vsel %vm6317_vm6, %v5086_v40, %v1993_v0  ;;  %4269 = vmatmul.mubr.bf16.gmra.mrb[84].mxu0 %v5180_v52  ;;  %v2146_v54 = vsel %vm6332_vm7, %v2141_v48, %v2145_v30  ;;  %v1995_v13 = vrot.slane %v1993_v0, 4  ;;  %v1862_v0 = vld [vmem:[#allocation2 + $0x9c] sm:$0xe] }
 0x11c   : > { %v2150_v11 = vrot.slane %v2148_v62, 4  ;;  %v2151_v18 = vshll.u32 %v7464_v1, 16  ;;  %4276 = vmatprep.mubr.bf16.mxu0 %v5197_v6  ;;  %v5221_v31 = vcombine.low %v2136_v63, %v2146_v54  ;;  %v1724_v12 = vrot.slane %v1723_v43, 4  ;;  %v7501_v54 = vld [vmem:[#allocation2 + $0xa4] sm:$0x1] }
 0x11d   : > { %v2157_v26 = vshll.u32 %v7472_v49, 16  ;;  %v2161_v44 = vshrl.u32 %v7472_v49, 16  ;;  %v7488_v15 = vpop.f32.mrb[4].mxu0  ;;  %v1997_v17 = vsel %vm6317_vm6, %v1995_v13, %v1996_v46  ;;  %v2167_v61 = vshll.u32 %v7481_v24, 16 }
 0x11e   : > { %v2153_v52 = vrot.slane %v2151_v18, 5  ;;  %v1737_v30 = vor.u32 %v7189_v7, %v7177_v57  ;;  %v7495_v40 = vpop.f32.mrb[5].mxu0  ;;  %4373 = vmatprep.mubr.bf16.mxu1 %v5221_v31  ;;  %v1729_v6 = vsel %vm6332_vm7, %v1724_v12, %v1728_v60  ;;  %v5198_v2 = vcombine.low %v1994_v8, %v1997_v17  ;;  %v7509_v31 = vld [vmem:[#allocation2 + $0x48] sm:$0xf] }
 0x11f   : > { %v2159_v23 = vrot.slane %v2157_v26, 5  ;;  %v2163_v16 = vrot.slane %v2161_v44, 4  ;;  %v7499_v48 = vpop.f32.mrb[6].mxu0  ;;  %v5181_v62 = vcombine.low %v1719_v50, %v1729_v6  ;;  %4374 = vmatmul.mubr.bf16.gmra.mrb[88].mxu1 %v5205_v9  ;;  %v2169_v63 = vrot.slane %v2167_v61, 5  ;;  %v7514_v26 = vld [vmem:[#allocation2 + $0x4c] sm:$0xf] }
 0x120   : > { %v2154_v46 = vor.u32 %v2153_v52, %v2150_v11  ;;  %v1738_v43 = vrot.slane %v1737_v30, 4  ;;  %v7503_v57 = vpop.f32.mrb[7].mxu0  ;;  %v1740_v13 = vshll.u32 %v7129_v45, 16  ;;  %v8604_v60 = vshrl.u32 %v7129_v45, 16  ;;  %8605 = vst [vmem:[#allocation6_spill] sm:$0xff] %v7514_v26 }
 0x121   : > { %v2164_v7 = vor.u32 %v2163_v16, %v2159_v23  ;;  %v1750_v18 = vshll.u32 %v7455_v42, 16  ;;  %v5206_v9 = vcombine.low %v7464_v1, %v7472_v49  ;;  %v5087_v50 = vrot.slane %v1862_v0, 9 }
 0x122   : > { %v1746_v8 = vrot.slane %v8604_v60, 4  ;;  %v2155_v12 = vrot.slane %v2154_v46, 4  ;;  %v2000_v11 = vrot.slane %v7181_v28, 5  ;;  %v1742_v17 = vrot.slane %v1740_v13, 5  ;;  %v7517_v45 = vpop.f32.mrb[4].mxu1 }
 0x123   : > { %v2165_v44 = vrot.slane %v2164_v7, 4  ;;  %v1752_v52 = vrot.slane %v1750_v18, 5  ;;  %v2003_v61 = vrot.slane %v7501_v54, 5  ;;  %4277 = vmatmul.mubr.bf16.gmra.mrb[88].mxu0 %v5181_v62  ;;  %v2172_v6 = vshrl.u32 %v7509_v31, 16  ;;  %v7524_v16 = vpop.f32.mrb[5].mxu1 }
 0x124   : > { %v2160_v42 = vsel %vm6332_vm7, %v2155_v12, %v2159_v23  ;;  %v2001_v30 = vsel %vm6317_vm6, %v5087_v50, %v2000_v11  ;;  %v2002_v1 = vrot.slane %v2000_v11, 4  ;;  %4284 = vmatprep.mubr.bf16.mxu0 %v5198_v2  ;;  %v1743_v46 = vsel %vm6332_vm7, %v1738_v43, %v1742_v17  ;;  %v7530_v62 = vld [vmem:[#allocation2 + $0x50] sm:$0x1]  ;;  %v7533_v13 = vpop.f32.mrb[6].mxu1 }
 0x125   : > { %v2170_v0 = vsel %vm6332_vm7, %v2165_v44, %v2169_v63  ;;  %v1747_v7 = vor.u32 %v1746_v8, %v1742_v17  ;;  %8606 = vst [vmem:[#allocation7_spill] sm:$0xff] %v7530_v62  ;;  %v2175_v23 = vshll.u32 %v7509_v31, 16  ;;  %v2174_v12 = vrot.slane %v2172_v6, 4  ;;  %v7538_v50 = vpop.f32.mrb[7].mxu1 }
 0x126   : > { %v5222_v60 = vcombine.low %v2160_v42, %v2170_v0  ;;  %v2004_v18 = vsel %vm6317_vm6, %v2002_v1, %v2003_v61  ;;  %v2181_v2 = vshll.u32 %v7514_v26, 16  ;;  %v2185_v43 = vshrl.u32 %v7514_v26, 16 }
 0x127   : > { %v1748_v63 = vrot.slane %v1747_v7, 4  ;;  %v5199_v11 = vcombine.low %v2001_v30, %v2004_v18  ;;  %v2177_v44 = vrot.slane %v2175_v23, 5  ;;  %v2191_v17 = vshll.u32 %v7530_v62, 16  ;;  %v1863_v23 = vld [vmem:[#allocation2 + $0xa8] sm:$0xe] }
 0x128   : > { %4381 = vmatprep.mubr.bf16.mxu1 %v5222_v60  ;;  %v2183_v8 = vrot.slane %v2181_v2, 5  ;;  %v1761_v42 = vor.u32 %v7270_v59, %v7225_v55  ;;  %v1764_v0 = vshll.u32 %v7181_v28, 16  ;;  %v2187_v6 = vrot.slane %v2185_v43, 4  ;;  %v1463_v62 = vld [vmem:[#allocation2 + $0xb0] sm:$0x1] }
 0x129   : > { %v1753_v61 = vsel %vm6332_vm7, %v1748_v63, %v1752_v52  ;;  %4382 = vmatmul.mubr.bf16.gmra.mrb[92].mxu1 %v5206_v9  ;;  %v2178_v1 = vor.u32 %v2177_v44, %v2174_v12  ;;  %v8607_v30 = vshrl.u32 %v7181_v28, 16  ;;  %v2193_v60 = vrot.slane %v2191_v17, 5  ;;  %v7552_v52 = vld [vmem:[#allocation2 + $0x54] sm:$0xf]  ;;  %v7557_v63 = vld [vmem:[#allocation2 + $0x58] sm:$0xf] }
 0x12a   : > { %v5182_v18 = vcombine.low %v1743_v46, %v1753_v61  ;;  %v1762_v2 = vrot.slane %v1761_v42, 4  ;;  %v1766_v21 = vrot.slane %v1764_v0, 5  ;;  %v2188_v49 = vor.u32 %v2187_v6, %v2183_v8  ;;  %8608 = vst [vmem:[#allocation8_spill] sm:$0xff] %v7557_v63 }
 0x12b   : > { %v1770_v7 = vrot.slane %v8607_v30, 4  ;;  %v2179_v24 = vrot.slane %v2178_v1, 4  ;;  %v1774_v55 = vshll.u32 %v7501_v54, 16  ;;  %v5207_v59 = vcombine.low %v7509_v31, %v7514_v26  ;;  %v7566_v1 = vld [vmem:[#allocation2 + $0x5c] sm:$0x1] }
 0x12c   : > { %4285 = vmatmul.mubr.bf16.gmra.mrb[92].mxu0 %v5182_v18  ;;  %v1767_v28 = vsel %vm6332_vm7, %v1762_v2, %v1766_v21  ;;  %v5088_v12 = vrot.slane %v1863_v23, 9  ;;  %v2007_v46 = vrot.slane %v7221_v32, 5  ;;  %v2189_v54 = vrot.slane %v2188_v49, 4  ;;  %8609 = vst [vmem:[#allocation9_spill] sm:$0xff] %v7566_v1 }
 0x12d   : > { %v1771_v9 = vor.u32 %v1770_v7, %v1766_v21  ;;  %4292 = vmatprep.mubr.bf16.mxu0 %v5199_v11  ;;  %v2184_v44 = vsel %vm6332_vm7, %v2179_v24, %v2183_v8  ;;  %v1776_v43 = vrot.slane %v1774_v55, 5  ;;  %v2010_v17 = vrot.slane %v1463_v62, 5 }
 0x12e   : > { %v2008_v42 = vsel %vm6317_vm6, %v5088_v12, %v2007_v46  ;;  %v2009_v0 = vrot.slane %v2007_v46, 4  ;;  %v2196_v61 = vshrl.u32 %v7552_v52, 16  ;;  %v2194_v21 = vsel %vm6332_vm7, %v2189_v54, %v2193_v60 }
 0x12f   : > { %v1772_v31 = vrot.slane %v1771_v9, 4  ;;  %v2199_v11 = vshll.u32 %v7552_v52, 16  ;;  %v2205_v6 = vshll.u32 %v7557_v63, 16  ;;  %v2209_v49 = vshrl.u32 %v7557_v63, 16  ;;  %v7571_v24 = vpop.f32.mrb[8].mxu0 }
 0x130   : > { %v5223_v8 = vcombine.low %v2184_v44, %v2194_v21  ;;  %v2011_v7 = vsel %vm6317_vm6, %v2009_v0, %v2010_v17  ;;  %v2198_v23 = vrot.slane %v2196_v61, 4  ;;  %v7577_v18 = vpop.f32.mrb[9].mxu0  ;;  %v2215_v54 = vshll.u32 %v7566_v1, 16 }
 0x131   : > { %v1777_v30 = vsel %vm6332_vm7, %v1772_v31, %v1776_v43  ;;  %v5200_v2 = vcombine.low %v2008_v42, %v2011_v7  ;;  %v2201_v55 = vrot.slane %v2199_v11, 5  ;;  %v2207_v9 = vrot.slane %v2205_v6, 5  ;;  %v7579_v12 = vpop.f32.mrb[10].mxu0  ;;  %v1864_v31 = vld [vmem:[#allocation2 + $0xb4] sm:$0xe] }
 0x132   : > { %v5183_v60 = vcombine.low %v1767_v28, %v1777_v30  ;;  %4389 = vmatprep.mubr.bf16.mxu1 %v5223_v8  ;;  %v2211_v46 = vrot.slane %v2209_v49, 4  ;;  %v1785_v44 = vor.u32 %v7274_v39, %v7272_v51  ;;  %v1788_v43 = vshll.u32 %v7221_v32, 16  ;;  %v7585_v17 = vpop.f32.mrb[11].mxu0  ;;  %v7591_v11 = vld [vmem:[#allocation2 + $0xbc] sm:$0x1] }
 0x133   : > { %4390 = vmatmul.mubr.bf16.gmra.mrb[96].mxu1 %v5207_v59  ;;  %v2202_v0 = vor.u32 %v2201_v55, %v2198_v23  ;;  %v8610_v28 = vshrl.u32 %v7221_v32, 16  ;;  %v1798_v61 = vshll.u32 %v1463_v62, 16  ;;  %v5208_v21 = vcombine.low %v7552_v52, %v7557_v63  ;;  %v7593_v8 = vld [vmem:[#allocation2 + $0x60] sm:$0xf]  ;;  %v7596_v23 = vld [vmem:[#allocation2 + $0x64] sm:$0xf] }
 0x134   : > { %4293 = vmatmul.mubr.bf16.gmra.mrb[96].mxu0 %v5183_v60  ;;  %v2212_v6 = vor.u32 %v2211_v46, %v2207_v9  ;;  %v2217_v49 = vrot.slane %v2215_v54, 5  ;;  %v1786_v51 = vrot.slane %v1785_v44, 4  ;;  %v1790_v39 = vrot.slane %v1788_v43, 5 }
 0x135   : > { %v1794_v42 = vrot.slane %v8610_v28, 4  ;;  %4300 = vmatprep.mubr.bf16.mxu0 %v5200_v2  ;;  %v2203_v30 = vrot.slane %v2202_v0, 4  ;;  %v1800_v59 = vrot.slane %v1798_v61, 5  ;;  %v5089_v7 = vrot.slane %v1864_v31, 9  ;;  %v7610_v28 = vld [vmem:[#allocation2 + $0x68] sm:$0x1] }
 0x136   : > { %v2014_v32 = vrot.slane %v7265_v19, 5  ;;  %v2213_v62 = vrot.slane %v2212_v6, 4  ;;  %v1791_v52 = vsel %vm6332_vm7, %v1786_v51, %v1790_v39  ;;  %v2017_v60 = vrot.slane %v7591_v11, 5 }
 0x137   : > { %v1795_v55 = vor.u32 %v1794_v42, %v1790_v39  ;;  %v2208_v46 = vsel %vm6332_vm7, %v2203_v30, %v2207_v9  ;;  %v2220_v44 = vshrl.u32 %v7593_v8, 16  ;;  %v2223_v42 = vshll.u32 %v7593_v8, 16 }
 0x138   : > { %v2015_v2 = vsel %vm6317_vm6, %v5089_v7, %v2014_v32  ;;  %v2016_v54 = vrot.slane %v2014_v32, 4  ;;  %v7606_v43 = vpop.f32.mrb[8].mxu1  ;;  %v2218_v31 = vsel %vm6332_vm7, %v2213_v62, %v2217_v49  ;;  %v2229_v61 = vshll.u32 %v7596_v23, 16 }
 0x139   : > { %v1796_v0 = vrot.slane %v1795_v55, 4  ;;  %v7614_v6 = vpop.f32.mrb[9].mxu1  ;;  %v5224_v9 = vcombine.low %v2208_v46, %v2218_v31  ;;  %v2222_v39 = vrot.slane %v2220_v44, 4  ;;  %v2233_v30 = vshrl.u32 %v7596_v23, 16 }
 0x13a   : > { %v2018_v51 = vsel %vm6317_vm6, %v2016_v54, %v2017_v60  ;;  %v7619_v7 = vpop.f32.mrb[10].mxu1  ;;  %v2225_v62 = vrot.slane %v2223_v42, 5  ;;  %v2231_v55 = vrot.slane %v2229_v61, 5  ;;  %v2239_v46 = vshll.u32 %v7610_v28, 16 }
 0x13b   : > { %v1801_v49 = vsel %vm6332_vm7, %v1796_v0, %v1800_v59  ;;  %v5201_v32 = vcombine.low %v2015_v2, %v2018_v51  ;;  %v7623_v1 = vpop.f32.mrb[11].mxu1  ;;  %4397 = vmatprep.mubr.bf16.mxu1 %v5224_v9  ;;  %v2235_v26 = vrot.slane %v2233_v30, 4  ;;  %v1809_v60 = vor.u32 %v7371_v5, %v7359_v3  ;;  %v7628_v54 = vpop.f32.mrb[12].mxu0 }
 0x13c   : > { %v5184_v63 = vcombine.low %v1791_v52, %v1801_v49  ;;  %4398 = vmatmul.mubr.bf16.gmra.mrb[100].mxu1 %v5208_v21  ;;  %v2226_v44 = vor.u32 %v2225_v62, %v2222_v39  ;;  %v1812_v31 = vshll.u32 %v7265_v19, 16  ;;  %v8611_v59 = vshrl.u32 %v7265_v19, 16  ;;  %v7634_v42 = vpop.f32.mrb[13].mxu0  ;;  %v7662_v62 = vld [vmem:[#allocation2 + $0x70] sm:$0xf] }
 0x13d   : > { %v1822_v0 = vshll.u32 %v7591_v11, 16  ;;  %v1827_v52 = vshrl.u32 %v7347_v10, 16  ;;  %v1830_v61 = vshll.u32 %v7347_v10, 16  ;;  %v2236_v9 = vor.u32 %v2235_v26, %v2231_v55  ;;  %v7638_v5 = vpop.f32.mrb[14].mxu0 }
 0x13e   : > { %v1818_v2 = vrot.slane %v8611_v59, 4  ;;  %4301 = vmatmul.mubr.bf16.gmra.mrb[100].mxu0 %v5184_v63  ;;  %v2241_v3 = vrot.slane %v2239_v46, 5  ;;  %v2227_v21 = vrot.slane %v2226_v44, 4  ;;  %v1810_v51 = vrot.slane %v1809_v60, 4  ;;  %v7644_v11 = vpop.f32.mrb[15].mxu0 }
 0x13f   : > { %4308 = vmatprep.mubr.bf16.mxu0 %v5201_v32  ;;  %v1814_v39 = vrot.slane %v1812_v31, 5  ;;  %v7642_v19 = vadd.f32 %v7388_v4, %v7383_v33  ;;  %v2237_v30 = vrot.slane %v2236_v9, 4  ;;  %v7648_v49 = vadd.f32 %v7453_v36, %v7449_v58  ;;  %v7660_v32 = vld [vmem:[#allocation2 + $0x6c] sm:$0xf]  ;;  %v1865_v31 = vld [vmem:[#allocation2 + $0xc0] sm:$0xe] }
 0x140   : > { %v7652_v10 = vadd.f32 %v7405_v56, %v7397_v47  ;;  %v7656_v26 = vadd.f32 %v7466_v41, %v7457_v22  ;;  %v2232_v63 = vsel %vm6332_vm7, %v2227_v21, %v2231_v55  ;;  %v1824_v4 = vrot.slane %v1822_v0, 5  ;;  %v801_v56 = vld [vmem:[#allocation2 + $0xc8] sm:$0x1]  ;;  %v7668_v22 = vld [vmem:[#allocation2 + $0x74] sm:$0x1] }
 0x141   : > { %8612 = vst [vmem:[#allocation10_spill] sm:$0xff] %v7648_v49  ;;  %v1819_v33 = vor.u32 %v1818_v2, %v1814_v39  ;;  %v1829_v46 = vrot.slane %v1827_v52, 4  ;;  %v1832_v58 = vrot.slane %v1830_v61, 5  ;;  %v2242_v36 = vsel %vm6332_vm7, %v2237_v30, %v2241_v3 }
 0x142   : > { %8613 = vst [vmem:[#allocation11_spill] sm:$0xff] %v7656_v26  ;;  %v5209_v47 = vcombine.low %v7593_v8, %v7596_v23  ;;  %v5225_v41 = vcombine.low %v2232_v63, %v2242_v36  ;;  %v1815_v55 = vsel %vm6332_vm7, %v1810_v51, %v1814_v39  ;;  %v637_v44 = vrot.slane %v7308_v14, 4 }
 0x143   : > { %v1820_v60 = vrot.slane %v1819_v33, 4  ;;  %v1840_v59 = vshrl.u32 %v7367_v53, 16  ;;  %v2244_v2 = vshrl.u32 %v7660_v32, 16  ;;  %v2247_v0 = vshll.u32 %v7660_v32, 16 }
 0x144   : > { %v2253_v52 = vshll.u32 %v7662_v62, 16  ;;  %4405 = vmatprep.mubr.bf16.mxu1 %v5225_v41  ;;  %v802_v9 = vsel %vm6350_vm12, %v637_v44, %v801_v56  ;;  %v2257_v3 = vshrl.u32 %v7662_v62, 16  ;;  %v2263_v14 = vshll.u32 %v7668_v22, 16 }
 0x145   : > { %v1825_v8 = vsel %vm6332_vm7, %v1820_v60, %v1824_v4  ;;  %4406 = vmatmul.mubr.bf16.gmra.mrb[104].mxu1 %v5209_v47  ;;  %803 = vst [vmem:[#allocation2 + $0xc8] sm:$0x1] %v802_v9  ;;  %v5090_v51 = vrot.slane %v1865_v31, 9  ;;  %v2246_v39 = vrot.slane %v2244_v2, 4  ;;  %v7683_v30 = vpop.f32.mrb[12].mxu1  ;;  %v2021_v63 = vrot.slane %v7367_v53, 5 }
 0x146   : > { %v5185_v21 = vcombine.low %v1815_v55, %v1825_v8  ;;  %v2249_v33 = vrot.slane %v2247_v0, 5  ;;  %v2255_v36 = vrot.slane %v2253_v52, 5  ;;  %v2259_v41 = vrot.slane %v2257_v3, 4  ;;  %v7686_v4 = vpop.f32.mrb[13].mxu1 }
 0x147   : > { %v2265_v56 = vrot.slane %v2263_v14, 5  ;;  %v1833_v60 = vor.u32 %v1832_v58, %v1829_v46  ;;  %v1836_v44 = vshll.u32 %v7367_v53, 16  ;;  %v1842_v61 = vrot.slane %v1840_v59, 4  ;;  %v7689_v55 = vpop.f32.mrb[14].mxu1  ;;  %v7709_v58 = vld [vmem:[#allocation2 + $0x78] sm:$0xf] }
 0x148   : > { %4309 = vmatmul.mubr.bf16.gmra.mrb[104].mxu0 %v5185_v21  ;;  %v2250_v47 = vor.u32 %v2249_v33, %v2246_v39  ;;  %v2260_v31 = vor.u32 %v2259_v41, %v2255_v36  ;;  %v7693_v2 = vadd.f32 %v7495_v40, %v7488_v15  ;;  %v7697_v0 = vadd.f32 %v7524_v16, %v7517_v45  ;;  %v7699_v52 = vpop.f32.mrb[15].mxu1  ;;  %v7719_v14 = vld [vmem:[#allocation2 + $0x80] sm:$0x1] }
 0x149   : > { %v1834_v8 = vrot.slane %v1833_v60, 4  ;;  %v1838_v9 = vrot.slane %v1836_v44, 5  ;;  %v7703_v53 = vadd.f32 %v7503_v57, %v7499_v48  ;;  %v7707_v46 = vadd.f32 %v7538_v50, %v7533_v13  ;;  %v7717_v57 = vld [vmem:[#allocation2 + $0x7c] sm:$0xf] }
 0x14a   : > { %8615 = vst [vmem:[#allocation3_spill] sm:$0xff] %v7697_v0  ;;  %v2022_v15 = vsel %vm6317_vm6, %v5090_v51, %v2021_v63  ;;  %v2251_v40 = vrot.slane %v2250_v47, 4  ;;  %v2261_v45 = vrot.slane %v2260_v31, 4  ;;  %v2023_v16 = vrot.slane %v2021_v63, 4  ;;  %v2459_v63 = vld [vmem:[#allocation2 + $0x18] sm:$0xe] }
 0x14b   : > { %8616 = vst [vmem:[#allocation12_spill] sm:$0xff] %v7707_v46  ;;  %v1839_v59 = vsel %vm6332_vm7, %v1834_v8, %v1838_v9  ;;  %v1843_v3 = vor.u32 %v1842_v61, %v1838_v9  ;;  %v5210_v48 = vcombine.low %v7660_v32, %v7662_v62  ;;  %v2268_v51 = vshrl.u32 %v7709_v58, 16 }
 0x14c   : > { %v1465_v13 = vld [vmem:[#allocation2 + $0xc8] sm:$0x1]  ;;  %v2256_v50 = vsel %vm6332_vm7, %v2251_v40, %v2255_v36  ;;  %v2266_v21 = vsel %vm6332_vm7, %v2261_v45, %v2265_v56  ;;  %v2271_v39 = vshll.u32 %v7709_v58, 16  ;;  %v2277_v31 = vshll.u32 %v7717_v57, 16 }
 0x14d   : > { %v2024_v33 = vrot.slane %v1465_v13, 5  ;;  %v5226_v41 = vcombine.low %v2256_v50, %v2266_v21  ;;  %v1844_v60 = vrot.slane %v1843_v3, 4  ;;  %v1846_v32 = vshll.u32 %v1465_v13, 16  ;;  %v7727_v44 = vpop.f32.mrb[16].mxu1 }
 0x14e   : > { %v2270_v61 = vrot.slane %v2268_v51, 4  ;;  %v2273_v47 = vrot.slane %v2271_v39, 5  ;;  %v2281_v36 = vshrl.u32 %v7717_v57, 16  ;;  %v7731_v8 = vpop.f32.mrb[17].mxu1  ;;  %v2287_v40 = vshll.u32 %v7719_v14, 16 }
 0x14f   : > { %v2025_v56 = vsel %vm6317_vm6, %v2023_v16, %v2024_v33  ;;  %4413 = vmatprep.mubr.bf16.mxu1 %v5226_v41  ;;  %v1848_v9 = vrot.slane %v1846_v32, 5  ;;  %v5091_v45 = vrot.slane %v2459_v63, 9  ;;  %v7736_v3 = vpop.f32.mrb[18].mxu1  ;;  %v2279_v21 = vrot.slane %v2277_v31, 5  ;;  %v2460_v39 = vld [vmem:[#allocation2 + $0x24] sm:$0xe] }
 0x150   : > { %v5202_v13 = vcombine.low %v2022_v15, %v2025_v56  ;;  %4414 = vmatmul.mubr.bf16.gmra.mrb[108].mxu1 %v5210_v48  ;;  %v2274_v50 = vor.u32 %v2273_v47, %v2270_v61  ;;  %v2283_v51 = vrot.slane %v2281_v36, 4  ;;  %v7740_v0 = vpop.f32.mrb[19].mxu1  ;;  %v2535_v26 = vrot.slane %v7402_v27, 5 }
 0x151   : > { %v7738_v46 = vpop.f32.mrb[16].mxu0  ;;  %v1849_v16 = vsel %vm6332_vm7, %v1844_v60, %v1848_v9  ;;  %v2525_v33 = vrot.slane %v7334_v29, 5  ;;  %v2528_v63 = vrot.slane %v7338_v20, 5  ;;  %v2289_v61 = vrot.slane %v2287_v40, 5 }
 0x152   : > { %v7747_v41 = vpop.f32.mrb[17].mxu0  ;;  %4316 = vmatprep.mubr.bf16.mxu0 %v5202_v13  ;;  %v5186_v15 = vcombine.low %v1839_v59, %v1849_v16  ;;  %v2275_v48 = vrot.slane %v2274_v50, 4  ;;  %v2284_v32 = vor.u32 %v2283_v51, %v2279_v21  ;;  %v5092_v36 = vrot.slane %v2460_v39, 9  ;;  %v7774_v50 = vld [vmem:[#allocation2 + $0x84] sm:$0xf] }
 0x153   : > { %v7749_v47 = vpop.f32.mrb[18].mxu0  ;;  %v2526_v31 = vsel %vm6317_vm6, %v5091_v45, %v2525_v33  ;;  %v2527_v27 = vrot.slane %v2525_v33, 4  ;;  %v2532_v60 = vrot.slane %v7395_v34, 5  ;;  %v7760_v59 = vadd.f32 %v7577_v18, %v7571_v24  ;;  %v7784_v51 = vld [vmem:[#allocation2 + $0x8c] sm:$0x1] }
 0x154   : > { %v7754_v56 = vpop.f32.mrb[19].mxu0  ;;  %4317 = vmatmul.mubr.bf16.gmra.mrb[108].mxu0 %v5186_v15  ;;  %v2280_v29 = vsel %vm6332_vm7, %v2275_v48, %v2279_v21  ;;  %v2285_v20 = vrot.slane %v2284_v32, 4  ;;  %v7764_v9 = vadd.f32 %v7614_v6, %v7606_v43  ;;  %v7772_v13 = vadd.f32 %v7585_v17, %v7579_v12  ;;  %v7776_v21 = vld [vmem:[#allocation2 + $0x88] sm:$0xf]  ;;  %v2461_v39 = vld [vmem:[#allocation2 + $0x30] sm:$0xe] }
 0x155   : > { %v2529_v40 = vsel %vm6317_vm6, %v2527_v27, %v2528_v63  ;;  %v2533_v34 = vsel %vm6317_vm6, %v5092_v36, %v2532_v60  ;;  %v2534_v45 = vrot.slane %v2532_v60, 4  ;;  %v7778_v24 = vpop.f32.mrb[20].mxu1  ;;  %v5211_v6 = vcombine.low %v7709_v58, %v7717_v57 }
 0x156   : > { %8617 = vst [vmem:[#allocation13_spill] sm:$0xff] %v7764_v9  ;;  %v2290_v18 = vsel %vm6332_vm7, %v2285_v20, %v2289_v61  ;;  %v5235_v43 = vcombine.low %v2526_v31, %v2529_v40  ;;  %v7786_v16 = vpop.f32.mrb[21].mxu1  ;;  %v7792_v33 = vadd.f32 %v7623_v1, %v7619_v7  ;;  %v2292_v48 = vshrl.u32 %v7774_v50, 16  ;;  %v2462_v1 = vld [vmem:[#allocation2 + $0x3c] sm:$0xe] }
 0x157   : > { %v5227_v12 = vcombine.low %v2280_v29, %v2290_v18  ;;  %v2536_v17 = vsel %vm6317_vm6, %v2534_v45, %v2535_v26  ;;  %v7794_v63 = vpop.f32.mrb[22].mxu1  ;;  %v2295_v58 = vshll.u32 %v7774_v50, 16  ;;  %v2301_v32 = vshll.u32 %v7776_v21, 16 }
 0x158   : > { %8618 = vst [vmem:[#allocation14_spill] sm:$0xff] %v7792_v33  ;;  %5975 = vmatprep.mubr.bf16.mxu0 %v5235_v43  ;;  %v5236_v15 = vcombine.low %v2533_v34, %v2536_v17  ;;  %v7799_v61 = vpop.f32.mrb[23].mxu1  ;;  %v2305_v31 = vshrl.u32 %v7776_v21, 16  ;;  %v2311_v26 = vshll.u32 %v7784_v51, 16  ;;  %v5093_v27 = vrot.slane %v2461_v39, 9 }
 0x159   : > { %4421 = vmatprep.mubr.bf16.mxu1 %v5227_v12  ;;  %v2294_v7 = vrot.slane %v2292_v48, 4  ;;  %v2297_v36 = vrot.slane %v2295_v58, 5  ;;  %v2303_v60 = vrot.slane %v2301_v32, 5  ;;  %v2539_v29 = vrot.slane %v7432_v38, 5  ;;  %v7816_v38 = vld [vmem:[%s8565_s2] ss:$0 sm:$0xff] }
 0x15a   : > { %4422 = vmatmul.mubr.bf16.gmra.mrb[112].mxu1 %v5211_v6  ;;  %v2307_v40 = vrot.slane %v2305_v31, 4  ;;  %v2313_v34 = vrot.slane %v2311_v26, 5  ;;  %v2542_v45 = vrot.slane %v7434_v37, 5  ;;  %v5094_v6 = vrot.slane %v2462_v1, 9  ;;  %v8619_v58 = vld [vmem:[#allocation4_spill] sm:$0xff]  ;;  %v8620_v37 = vld [vmem:[#allocation5_spill] sm:$0xff] }
 0x15b   : > { %v7804_v20 = vpop.f32.mrb[20].mxu0  ;;  %v2298_v43 = vor.u32 %v2297_v36, %v2294_v7  ;;  %v2540_v39 = vsel %vm6317_vm6, %v5093_v27, %v2539_v29  ;;  %v2541_v12 = vrot.slane %v2539_v29, 4  ;;  %v2546_v32 = vrot.slane %v8619_v58, 5  ;;  %v7844_v33 = vld [vmem:[#allocation2 + $0x94] sm:$0xf] }
 0x15c   : > { %v7807_v18 = vpop.f32.mrb[21].mxu0  ;;  %5976 = vmatmul.mubr.bf16.vlgmr.msra.gmra.mrb[112].mxu0 %v5236_v15  ;;  %v2308_v48 = vor.u32 %v2307_v40, %v2303_v60  ;;  %v2549_v31 = vrot.slane %v8620_v37, 5  ;;  %v7822_v15 = vadd.f32 %v7634_v42, %v7628_v54  ;;  %v7832_v36 = vadd.f32 %v7686_v4, %v7683_v30  ;;  %v7838_v40 = vld [vmem:[#allocation2 + $0x90] sm:$0xf] }
 0x15d   : > { %v7811_v17 = vpop.f32.mrb[22].mxu0  ;;  %v7826_v27 = vpop.f32.mrb[24].mxu1  ;;  %v2299_v1 = vrot.slane %v2298_v43, 4  ;;  %v2543_v7 = vsel %vm6317_vm6, %v2541_v12, %v2542_v45  ;;  %v7836_v29 = vadd.f32 %v7644_v11, %v7638_v5  ;;  %v2547_v43 = vsel %vm6317_vm6, %v5094_v6, %v2546_v32 }
 0x15e   : > { %v7824_v26 = vpop.f32.mrb[23].mxu0  ;;  %8621 = vst [vmem:[#allocation4_spill] sm:$0xff] %v7832_v36  ;;  %v7840_v54 = vpop.f32.mrb[25].mxu1  ;;  %v2309_v42 = vrot.slane %v2308_v48, 4  ;;  %v5237_v58 = vcombine.low %v2540_v39, %v2543_v7  ;;  %v2548_v37 = vrot.slane %v2546_v32, 4  ;;  %v3877_v30 = vadd.f32 %v7642_v19, %v7816_v38 }
 0x15f   : > { %v7846_v45 = vpop.f32.mrb[26].mxu1  ;;  %v7852_v5 = vadd.f32 %v7652_v10, %v7816_v38  ;;  %v2304_v11 = vsel %vm6332_vm7, %v2299_v1, %v2303_v60  ;;  %v5212_v4 = vcombine.low %v7774_v50, %v7776_v21  ;;  %v7858_v39 = vld [vmem:[#allocation2 + $0x98] sm:$0x1]  ;;  %v7868_v10 = vadd.f32 %v7699_v52, %v7689_v55  ;;  %v2463_v48 = vld [vmem:[#allocation2 + $0x48] sm:$0xe] }
 0x160   : > { %8622 = vst [vmem:[#allocation5_spill] sm:$0xff] %v7858_v39  ;;  %v7860_v12 = vpop.f32.mrb[27].mxu1  ;;  %v2314_v6 = vsel %vm6332_vm7, %v2309_v42, %v2313_v34  ;;  %5979 = vmatprep.mubr.bf16.mxu0 %v5237_v58  ;;  %v2550_v19 = vsel %vm6317_vm6, %v2548_v37, %v2549_v31  ;;  %v2316_v60 = vshrl.u32 %v7838_v40, 16  ;;  %v2319_v1 = vshll.u32 %v7838_v40, 16  ;;  %v2464_v55 = vld [vmem:[#allocation2 + $0x54] sm:$0xe] }
 0x161   : > { %8623 = vst [vmem:[#allocation15_spill] sm:$0xff] %v7860_v12  ;;  %8624 = vst [vmem:[#allocation16_spill] sm:$0xff] %v7868_v10  ;;  %v5228_v32 = vcombine.low %v2304_v11, %v2314_v6  ;;  %v5238_v50 = vcombine.low %v2547_v43, %v2550_v19  ;;  %v2325_v7 = vshll.u32 %v7844_v33, 16  ;;  %v7875_v34 = vadd.f32 %v7693_v2, %v7816_v38  ;;  %v8625_v43 = vld [vmem:[#allocation6_spill] sm:$0xff] }
 0x162   : > { %v2318_v42 = vrot.slane %v2316_v60, 4  ;;  %v2329_v31 = vshrl.u32 %v7844_v33, 16  ;;  %v2335_v58 = vshll.u32 %v7858_v39, 16  ;;  %v2321_v52 = vrot.slane %v2319_v1, 5  ;;  %v8626_v60 = vld [vmem:[#allocation7_spill] sm:$0xff] }
 0x163   : > { %4429 = vmatprep.mubr.bf16.mxu1 %v5228_v32  ;;  %v2327_v37 = vrot.slane %v2325_v7, 5  ;;  %v5095_v11 = vrot.slane %v2463_v48, 9  ;;  %v2553_v6 = vrot.slane %v8625_v43, 5  ;;  %v7882_v19 = vadd.f32 %v7703_v53, %v7816_v38  ;;  %v8627_v43 = vld [vmem:[#allocation8_spill] sm:$0xff]  ;;  %v8628_v53 = vld [vmem:[#allocation9_spill] sm:$0xff] }
 0x164   : > { %5980 = vmatmul.mubr.bf16.gmra.mrb[116].mxu0 %v5238_v50  ;;  %4430 = vmatmul.mubr.bf16.gmra.mrb[116].mxu1 %v5212_v4  ;;  %v2331_v2 = vrot.slane %v2329_v31, 4  ;;  %v2337_v10 = vrot.slane %v2335_v58, 5  ;;  %v2556_v36 = vrot.slane %v8626_v60, 5  ;;  %v2322_v49 = vor.u32 %v2321_v52, %v2318_v42  ;;  %v7913_v60 = vld [vmem:[#allocation2 + $0xa0] sm:$0xf] }
 0x165   : > { %v7885_v9 = vpop.f32.mrb[28].mxu1  ;;  %v2554_v32 = vsel %vm6317_vm6, %v5095_v11, %v2553_v6  ;;  %v2555_v50 = vrot.slane %v2553_v6, 4  ;;  %v5096_v1 = vrot.slane %v2464_v55, 9  ;;  %v2560_v39 = vrot.slane %v8627_v43, 5  ;;  %v7907_v11 = vld [vmem:[#allocation2 + $0x9c] sm:$0xf] }
 0x166   : > { %v7889_v48 = vpop.f32.mrb[29].mxu1  ;;  %v2332_v7 = vor.u32 %v2331_v2, %v2327_v37  ;;  %v2563_v12 = vrot.slane %v8628_v53, 5  ;;  %v7895_v4 = vadd.f32 %v7747_v41, %v7738_v46  ;;  %v2323_v58 = vrot.slane %v2322_v49, 4 }
 0x167   : > { %v7897_v31 = vpop.f32.mrb[30].mxu1  ;;  %v2557_v42 = vsel %vm6317_vm6, %v2555_v50, %v2556_v36  ;;  %v5617_v55 = vadd.f32 %v7731_v8, %v7727_v44  ;;  %v7905_v52 = vadd.f32 %v7754_v56, %v7749_v47  ;;  %v2561_v41 = vsel %vm6317_vm6, %v5096_v1, %v2560_v39 }
 0x168   : > { %v7909_v6 = vpop.f32.mrb[31].mxu1  ;;  %v2333_v2 = vrot.slane %v2332_v7, 4  ;;  %v5239_v46 = vcombine.low %v2554_v32, %v2557_v42  ;;  %v2562_v49 = vrot.slane %v2560_v39, 4  ;;  %v7919_v44 = vadd.f32 %v7760_v59, %v7816_v38  ;;  %v7927_v32 = vld [vmem:[#allocation2 + $0xa4] sm:$0x1] }
 0x169   : > { %v7915_v36 = vpop.f32.mrb[24].mxu0  ;;  %v2328_v8 = vsel %vm6332_vm7, %v2323_v58, %v2327_v37  ;;  %v5213_v47 = vcombine.low %v7838_v40, %v7844_v33  ;;  %v7925_v56 = vadd.f32 %v5617_v55, %v3877_v30  ;;  %v5620_v1 = vadd.f32 %v7740_v0, %v7736_v3  ;;  %v2465_v7 = vld [vmem:[#allocation2 + $0x60] sm:$0xe]  ;;  %v2466_v3 = vld [vmem:[#allocation2 + $0x6c] sm:$0xe] }
 0x16a   : > { %v7929_v50 = vpop.f32.mrb[25].mxu0  ;;  %v2338_v39 = vsel %vm6332_vm7, %v2333_v2, %v2337_v10  ;;  %5983 = vmatprep.mubr.bf16.mxu0 %v5239_v46  ;;  %v2564_v59 = vsel %vm6317_vm6, %v2562_v49, %v2563_v12  ;;  %v2340_v37 = vshrl.u32 %v7907_v11, 16  ;;  %v2343_v53 = vshll.u32 %v7907_v11, 16 }
 0x16b   : > { %v7938_v40 = vpop.f32.mrb[26].mxu0  ;;  %v5229_v30 = vcombine.low %v2328_v8, %v2338_v39  ;;  %v5240_v43 = vcombine.low %v2561_v41, %v2564_v59  ;;  %v2349_v58 = vshll.u32 %v7913_v60, 16  ;;  %v7945_v10 = vadd.f32 %v5620_v1, %v7852_v5 }
 0x16c   : > { %v7942_v42 = vpop.f32.mrb[27].mxu0  ;;  %v2342_v12 = vrot.slane %v2340_v37, 4  ;;  %v2353_v55 = vshrl.u32 %v7913_v60, 16  ;;  %v2359_v0 = vshll.u32 %v7927_v32, 16  ;;  %v2345_v2 = vrot.slane %v2343_v53, 5 }
 0x16d   : > { %4437 = vmatprep.mubr.bf16.mxu1 %v5229_v30  ;;  %5984 = vmatmul.mubr.bf16.gmra.mrb[120].mxu0 %v5240_v43  ;;  %v2351_v46 = vrot.slane %v2349_v58, 5  ;;  %v5097_v41 = vrot.slane %v2465_v7, 9  ;;  %v2567_v49 = vrot.slane %v7596_v23, 5  ;;  %v7952_v8 = vadd.f32 %v7772_v13, %v7816_v38 }
 0x16e   : > { %4438 = vmatmul.mubr.bf16.gmra.mrb[120].mxu1 %v5213_v47  ;;  %v2355_v5 = vrot.slane %v2353_v55, 4  ;;  %v2361_v39 = vrot.slane %v2359_v0, 5  ;;  %v2570_v59 = vrot.slane %v7610_v28, 5  ;;  %v2346_v1 = vor.u32 %v2345_v2, %v2342_v12 }
 0x16f   : > { %v2568_v37 = vsel %vm6317_vm6, %v5097_v41, %v2567_v49  ;;  %v2569_v30 = vrot.slane %v2567_v49, 4  ;;  %v5098_v43 = vrot.slane %v2466_v3, 9  ;;  %v2574_v23 = vrot.slane %v7662_v62, 5 }
 0x170   : > { %v7957_v53 = vpop.f32.mrb[32].mxu1  ;;  %v2356_v7 = vor.u32 %v2355_v5, %v2351_v46  ;;  %v2577_v58 = vrot.slane %v7668_v22, 5  ;;  %v7963_v13 = vadd.f32 %v7807_v18, %v7804_v20  ;;  %v2347_v12 = vrot.slane %v2346_v1, 4  ;;  %v7977_v22 = vld [vmem:[#allocation2 + $0xa8] sm:$0xf] }
 0x171   : > { %v7965_v47 = vpop.f32.mrb[28].mxu0  ;;  %v7967_v28 = vpop.f32.mrb[33].mxu1  ;;  %v2571_v55 = vsel %vm6317_vm6, %v2569_v30, %v2570_v59  ;;  %v5623_v0 = vadd.f32 %v7786_v16, %v7778_v24  ;;  %v7975_v62 = vadd.f32 %v7824_v26, %v7811_v17  ;;  %v2575_v41 = vsel %vm6317_vm6, %v5098_v43, %v2574_v23  ;;  %v7985_v5 = vld [vmem:[#allocation2 + $0xac] sm:$0xf] }
 0x172   : > { %v7979_v3 = vpop.f32.mrb[29].mxu0  ;;  %v7981_v20 = vpop.f32.mrb[34].mxu1  ;;  %v2357_v18 = vrot.slane %v2356_v7, 4  ;;  %v5241_v2 = vcombine.low %v2568_v37, %v2571_v55  ;;  %v2576_v49 = vrot.slane %v2574_v23, 4  ;;  %v7993_v16 = vadd.f32 %v7822_v15, %v7816_v38  ;;  %v8002_v37 = vld [vmem:[#allocation2 + $0xb0] sm:$0x1] }
 0x173   : > { %v7987_v59 = vpop.f32.mrb[30].mxu0  ;;  %v7989_v24 = vpop.f32.mrb[35].mxu1  ;;  %v2352_v17 = vsel %vm6332_vm7, %v2347_v12, %v2351_v46  ;;  %v5214_v26 = vcombine.low %v7907_v11, %v7913_v60  ;;  %v8000_v1 = vadd.f32 %v5623_v0, %v7875_v34  ;;  %v5626_v46 = vadd.f32 %v7799_v61, %v7794_v63  ;;  %v2467_v11 = vld [vmem:[#allocation2 + $0x78] sm:$0xe] }
 0x174   : > { %v8004_v30 = vpop.f32.mrb[31].mxu0  ;;  %v2362_v43 = vsel %vm6332_vm7, %v2357_v18, %v2361_v39  ;;  %5987 = vmatprep.mubr.bf16.mxu0 %v5241_v2  ;;  %v2578_v15 = vsel %vm6317_vm6, %v2576_v49, %v2577_v58  ;;  %v2364_v7 = vshrl.u32 %v7977_v22, 16  ;;  %v2367_v12 = vshll.u32 %v7977_v22, 16  ;;  %v2468_v2 = vld [vmem:[#allocation2 + $0x84] sm:$0xe] }
 0x175   : > { %v5230_v23 = vcombine.low %v2352_v17, %v2362_v43  ;;  %v5242_v34 = vcombine.low %v2575_v41, %v2578_v15  ;;  %v2373_v55 = vshll.u32 %v7985_v5, 16  ;;  %v8016_v0 = vadd.f32 %v5626_v46, %v7882_v19 }
 0x176   : > { %v2366_v39 = vrot.slane %v2364_v7, 4  ;;  %v2377_v18 = vshrl.u32 %v7985_v5, 16  ;;  %v2383_v58 = vshll.u32 %v8002_v37, 16  ;;  %v2369_v63 = vrot.slane %v2367_v12, 5 }
 0x177   : > { %4445 = vmatprep.mubr.bf16.mxu1 %v5230_v23  ;;  %5988 = vmatmul.mubr.bf16.gmra.mrb[124].mxu0 %v5242_v34  ;;  %v2375_v61 = vrot.slane %v2373_v55, 5  ;;  %v5099_v49 = vrot.slane %v2467_v11, 9  ;;  %v2581_v41 = vrot.slane %v7717_v57, 5  ;;  %v8023_v17 = vadd.f32 %v7836_v29, %v7816_v38 }
 0x178   : > { %4446 = vmatmul.mubr.bf16.gmra.mrb[124].mxu1 %v5214_v26  ;;  %v2379_v19 = vrot.slane %v2377_v18, 4  ;;  %v2385_v43 = vrot.slane %v2383_v58, 5  ;;  %v2584_v15 = vrot.slane %v7719_v14, 5  ;;  %v2370_v46 = vor.u32 %v2369_v63, %v2366_v39 }
 0x179   : > { %v2582_v7 = vsel %vm6317_vm6, %v5099_v49, %v2581_v41  ;;  %v2583_v23 = vrot.slane %v2581_v41, 4  ;;  %v5100_v34 = vrot.slane %v2468_v2, 9  ;;  %v2588_v57 = vrot.slane %v7776_v21, 5  ;;  %v8046_v21 = vld [vmem:[#allocation2 + $0xb4] sm:$0xf] }
 0x17a   : > { %v8028_v12 = vpop.f32.mrb[36].mxu1  ;;  %v2380_v11 = vor.u32 %v2379_v19, %v2375_v61  ;;  %v2591_v55 = vrot.slane %v7784_v51, 5  ;;  %v8034_v29 = vadd.f32 %v7929_v50, %v7915_v36  ;;  %v2371_v14 = vrot.slane %v2370_v46, 4  ;;  %v8052_v49 = vld [vmem:[#allocation2 + $0xb8] sm:$0xf] }
 0x17b   : > { %v8036_v26 = vpop.f32.mrb[37].mxu1  ;;  %v2585_v39 = vsel %vm6317_vm6, %v2583_v23, %v2584_v15  ;;  %v5629_v18 = vadd.f32 %v7840_v54, %v7826_v27  ;;  %v8044_v58 = vadd.f32 %v7942_v42, %v7938_v40  ;;  %v2589_v50 = vsel %vm6317_vm6, %v5100_v34, %v2588_v57  ;;  %v8067_v19 = vld [vmem:[#allocation2 + $0xbc] sm:$0x1] }
 0x17c   : > { %v8048_v51 = vpop.f32.mrb[38].mxu1  ;;  %v2381_v2 = vrot.slane %v2380_v11, 4  ;;  %v5243_v36 = vcombine.low %v2582_v7, %v2585_v39  ;;  %v2590_v63 = vrot.slane %v2588_v57, 4  ;;  %v8058_v27 = vadd.f32 %v7895_v4, %v7816_v38  ;;  %v8630_v7 = vld [vmem:[#allocation15_spill] sm:$0xff] }
 0x17d   : > { %v8054_v41 = vpop.f32.mrb[39].mxu1  ;;  %v2376_v54 = vsel %vm6332_vm7, %v2371_v14, %v2375_v61  ;;  %v5215_v40 = vcombine.low %v7977_v22, %v7985_v5  ;;  %v8065_v42 = vadd.f32 %v5629_v18, %v7919_v44  ;;  %v5632_v61 = vadd.f32 %v8630_v7, %v7846_v45  ;;  %v2469_v22 = vld [vmem:[#allocation2 + $0x90] sm:$0xe] }
 0x17e   : > { %v8069_v15 = vpop.f32.mrb[32].mxu0  ;;  %v2386_v46 = vsel %vm6332_vm7, %v2381_v2, %v2385_v43  ;;  %5991 = vmatprep.mubr.bf16.mxu0 %v5243_v36  ;;  %v2592_v4 = vsel %vm6317_vm6, %v2590_v63, %v2591_v55  ;;  %v2388_v23 = vshrl.u32 %v8046_v21, 16  ;;  %v2391_v57 = vshll.u32 %v8046_v21, 16  ;;  %v2470_v2 = vld [vmem:[#allocation2 + $0x9c] sm:$0xe] }
 0x17f   : > { %8629 = vst [vmem:[#allocation6_spill] sm:$0xff] %v8065_v42  ;;  %v8078_v34 = vpop.f32.mrb[33].mxu0  ;;  %v5231_v44 = vcombine.low %v2376_v54, %v2386_v46  ;;  %v5244_v11 = vcombine.low %v2589_v50, %v2592_v4  ;;  %v2397_v14 = vshll.u32 %v8052_v49, 16  ;;  %v8085_v43 = vadd.f32 %v5632_v61, %v7952_v8  ;;  %v8632_v61 = vld [vmem:[#allocation5_spill] sm:$0xff] }
 0x180   : > { %v8082_v39 = vpop.f32.mrb[34].mxu0  ;;  %v2390_v55 = vrot.slane %v2388_v23, 4  ;;  %v2401_v18 = vshrl.u32 %v8052_v49, 16  ;;  %v2407_v45 = vshll.u32 %v8067_v19, 16  ;;  %v2393_v50 = vrot.slane %v2391_v57, 5 }
 0x181   : > { %8631 = vst [vmem:[#allocation7_spill] sm:$0xff] %v8085_v43  ;;  %v8089_v36 = vpop.f32.mrb[35].mxu0  ;;  %4453 = vmatprep.mubr.bf16.mxu1 %v5231_v44  ;;  %5992 = vmatmul.mubr.bf16.gmra.mrb[128].mxu0 %v5244_v11  ;;  %v2399_v63 = vrot.slane %v2397_v14, 5  ;;  %v5101_v54 = vrot.slane %v2469_v22, 9  ;;  %v2595_v46 = vrot.slane %v7844_v33, 5  ;;  %v8094_v4 = vadd.f32 %v7905_v52, %v7816_v38 }
 0x182   : > { %4454 = vmatmul.mubr.bf16.gmra.mrb[128].mxu1 %v5215_v40  ;;  %v2403_v8 = vrot.slane %v2401_v18, 4  ;;  %v2409_v7 = vrot.slane %v2407_v45, 5  ;;  %v2598_v23 = vrot.slane %v8632_v61, 5  ;;  %v2394_v43 = vor.u32 %v2393_v50, %v2390_v55  ;;  %v8113_v45 = vld [vmem:[#allocation2 + $0xc0] sm:$0xf] }
 0x183   : > { %v2596_v42 = vsel %vm6317_vm6, %v5101_v54, %v2595_v46  ;;  %v2597_v44 = vrot.slane %v2595_v46, 4  ;;  %v5102_v11 = vrot.slane %v2470_v2, 9  ;;  %v2602_v22 = vrot.slane %v7913_v60, 5 }
 0x184   : > { %v2404_v57 = vor.u32 %v2403_v8, %v2399_v63  ;;  %v2605_v33 = vrot.slane %v7927_v32, 5  ;;  %v8103_v52 = vadd.f32 %v7979_v3, %v7965_v47  ;;  %v2395_v40 = vrot.slane %v2394_v43, 4  ;;  %v8117_v3 = vld [vmem:[#allocation2 + $0xc4] sm:$0xf] }
 0x185   : > { %v2599_v14 = vsel %vm6317_vm6, %v2597_v44, %v2598_v23  ;;  %v5635_v55 = vadd.f32 %v7889_v48, %v7885_v9  ;;  %v8111_v18 = vadd.f32 %v8004_v30, %v7987_v59  ;;  %v2603_v32 = vsel %vm6317_vm6, %v5102_v11, %v2602_v22  ;;  %v8130_v30 = vld [vmem:[#allocation2 + $0xc8] sm:$0x1]  ;;  %v2472_v11 = vld [vmem:[#allocation2 + $0xb4] sm:$0xe] }
 0x186   : > { %v2405_v60 = vrot.slane %v2404_v57, 4  ;;  %v5245_v2 = vcombine.low %v2596_v42, %v2599_v14  ;;  %v2604_v47 = vrot.slane %v2602_v22, 4  ;;  %v8121_v43 = vadd.f32 %v7963_v13, %v7816_v38  ;;  %v8134_v50 = vpop.f32.mrb[40].mxu1 }
 0x187   : > { %v2400_v9 = vsel %vm6332_vm7, %v2395_v40, %v2399_v63  ;;  %v5216_v48 = vcombine.low %v8046_v21, %v8052_v49  ;;  %v8128_v59 = vadd.f32 %v5635_v55, %v7993_v16  ;;  %v5638_v63 = vadd.f32 %v7909_v6, %v7897_v31  ;;  %v2471_v16 = vld [vmem:[#allocation2 + $0xa8] sm:$0xe]  ;;  %v8145_v8 = vpop.f32.mrb[41].mxu1 }
 0x188   : > { %v8132_v42 = vpop.f32.mrb[36].mxu0  ;;  %v2410_v54 = vsel %vm6332_vm7, %v2405_v60, %v2409_v7  ;;  %5995 = vmatprep.mubr.bf16.mxu0 %v5245_v2  ;;  %v2606_v13 = vsel %vm6317_vm6, %v2604_v47, %v2605_v33  ;;  %v2412_v21 = vshrl.u32 %v8113_v45, 16  ;;  %v2415_v44 = vshll.u32 %v8113_v45, 16  ;;  %v8151_v22 = vpop.f32.mrb[42].mxu1 }
 0x189   : > { %v8143_v46 = vpop.f32.mrb[37].mxu0  ;;  %v5232_v61 = vcombine.low %v2400_v9, %v2410_v54  ;;  %v5246_v23 = vcombine.low %v2603_v32, %v2606_v13  ;;  %v2421_v7 = vshll.u32 %v8117_v3, 16  ;;  %v8154_v31 = vadd.f32 %v5638_v63, %v8023_v17  ;;  %v8160_v55 = vpop.f32.mrb[43].mxu1 }
 0x18a   : > { %v8149_v57 = vpop.f32.mrb[38].mxu0  ;;  %v2414_v6 = vrot.slane %v2412_v21, 4  ;;  %v2425_v33 = vshrl.u32 %v8117_v3, 16  ;;  %v2431_v40 = vshll.u32 %v8130_v30, 16  ;;  %v2417_v60 = vrot.slane %v2415_v44, 5 }
 0x18b   : > { %v8158_v14 = vpop.f32.mrb[39].mxu0  ;;  %4461 = vmatprep.mubr.bf16.mxu1 %v5232_v61  ;;  %5996 = vmatmul.mubr.bf16.gmra.mrb[132].mxu0 %v5246_v23  ;;  %v2423_v2 = vrot.slane %v2421_v7, 5  ;;  %v5103_v32 = vrot.slane %v2471_v16, 9  ;;  %v2609_v47 = vrot.slane %v7985_v5, 5  ;;  %v8165_v17 = vadd.f32 %v7975_v62, %v7816_v38 }
 0x18c   : > { %4462 = vmatmul.mubr.bf16.gmra.mrb[132].mxu1 %v5216_v48  ;;  %v2427_v9 = vrot.slane %v2425_v33, 4  ;;  %v2433_v54 = vrot.slane %v2431_v40, 5  ;;  %v2612_v13 = vrot.slane %v8002_v37, 5  ;;  %v2418_v63 = vor.u32 %v2417_v60, %v2414_v6 }
 0x18d   : > { %v2610_v21 = vsel %vm6317_vm6, %v5103_v32, %v2609_v47  ;;  %v2611_v61 = vrot.slane %v2609_v47, 4  ;;  %v5104_v23 = vrot.slane %v2472_v11, 9  ;;  %v2616_v16 = vrot.slane %v8052_v49, 5  ;;  %v8184_v11 = vld [vmem:[#allocation2 + $0xcc] sm:$0xf] }
 0x18e   : > { %v2428_v44 = vor.u32 %v2427_v9, %v2423_v2  ;;  %v2619_v5 = vrot.slane %v8067_v19, 5  ;;  %v8174_v62 = vadd.f32 %v8078_v34, %v8069_v15  ;;  %v2419_v48 = vrot.slane %v2418_v63, 4  ;;  %v8188_v34 = vld [vmem:[#allocation2 + $0xd0] sm:$0xf] }
 0x18f   : > { %v2613_v7 = vsel %vm6317_vm6, %v2611_v61, %v2612_v13  ;;  %v5641_v37 = vadd.f32 %v7967_v28, %v7957_v53  ;;  %v8182_v6 = vadd.f32 %v8089_v36, %v8082_v39  ;;  %v2617_v19 = vsel %vm6317_vm6, %v5104_v23, %v2616_v16  ;;  %v2074_v36 = vld [vmem:[#allocation2 + $0xd4] sm:$0x1] }
 0x190   : > { %v2429_v49 = vrot.slane %v2428_v44, 4  ;;  %v5247_v33 = vcombine.low %v2610_v21, %v2613_v7  ;;  %v2618_v15 = vrot.slane %v2616_v16, 4  ;;  %v8194_v60 = vadd.f32 %v8034_v29, %v7816_v38 }
 0x191   : > { %v8190_v40 = vpop.f32.mrb[40].mxu0  ;;  %v2424_v53 = vsel %vm6332_vm7, %v2419_v48, %v2423_v2  ;;  %v5217_v28 = vcombine.low %v8113_v45, %v8117_v3  ;;  %v8201_v39 = vadd.f32 %v5641_v37, %v8058_v27  ;;  %v8203_v47 = vpop.f32.mrb[44].mxu1  ;;  %v5644_v2 = vadd.f32 %v7989_v24, %v7981_v20  ;;  %v2473_v45 = vld [vmem:[#allocation2 + $0xc0] sm:$0xe]  ;;  %v2474_v24 = vld [vmem:[#allocation2 + $0xcc] sm:$0xe] }
 0x192   : > { %v5564_v32 = vpop.f32.mrb[41].mxu0  ;;  %v2434_v9 = vsel %vm6332_vm7, %v2429_v49, %v2433_v54  ;;  %5999 = vmatprep.mubr.bf16.mxu0 %v5247_v33  ;;  %v2620_v29 = vsel %vm6317_vm6, %v2618_v15, %v2619_v5  ;;  %v2436_v13 = vshrl.u32 %v8184_v11, 16  ;;  %v5658_v27 = vpop.f32.mrb[45].mxu1  ;;  %v2439_v23 = vshll.u32 %v8184_v11, 16 }
 0x193   : > { %v5566_v63 = vpop.f32.mrb[42].mxu0  ;;  %v5233_v21 = vcombine.low %v2424_v53, %v2434_v9  ;;  %v5248_v61 = vcombine.low %v2617_v19, %v2620_v29  ;;  %v2445_v44 = vshll.u32 %v8188_v34, 16  ;;  %v5660_v54 = vpop.f32.mrb[46].mxu1  ;;  %v8215_v48 = vadd.f32 %v5644_v2, %v8094_v4 }
 0x194   : > { %v5567_v16 = vpop.f32.mrb[43].mxu0  ;;  %v2438_v5 = vrot.slane %v2436_v13, 4  ;;  %v2449_v7 = vshrl.u32 %v8188_v34, 16  ;;  %v2455_v20 = vshll.u32 %v2074_v36, 16  ;;  %v5661_v37 = vpop.f32.mrb[47].mxu1  ;;  %v2441_v49 = vrot.slane %v2439_v23, 5 }
 0x195   : > { %8633 = vst [vmem:[#allocation8_spill] sm:$0xff] %v8215_v48  ;;  %4469 = vmatprep.mubr.bf16.mxu1 %v5233_v21  ;;  %6000 = vmatmul.mubr.bf16.gmra.mrb[136].mxu0 %v5248_v61  ;;  %v2447_v33 = vrot.slane %v2445_v44, 5  ;;  %v5105_v19 = vrot.slane %v2473_v45, 9  ;;  %v2623_v15 = vrot.slane %v8117_v3, 5  ;;  %v3928_v53 = vadd.f32 %v8044_v58, %v7816_v38 }
 0x196   : > { %4470 = vmatmul.mubr.bf16.gmra.mrb[136].mxu1 %v5217_v28  ;;  %v2451_v9 = vrot.slane %v2449_v7, 4  ;;  %v2457_v4 = vrot.slane %v2455_v20, 5  ;;  %v2626_v29 = vrot.slane %v8130_v30, 5  ;;  %v2442_v2 = vor.u32 %v2441_v49, %v2438_v5 }
 0x197   : > { %v2624_v13 = vsel %vm6317_vm6, %v5105_v19, %v2623_v15  ;;  %v2625_v48 = vrot.slane %v2623_v15, 4  ;;  %v5106_v21 = vrot.slane %v2474_v24, 9  ;;  %v2630_v23 = vrot.slane %v8188_v34, 5 }
 0x198   : > { %v2452_v61 = vor.u32 %v2451_v9, %v2447_v33  ;;  %v2633_v45 = vrot.slane %v2074_v36, 5  ;;  %v5559_v3 = vadd.f32 %v8143_v46, %v8132_v42  ;;  %v2443_v44 = vrot.slane %v2442_v2, 4 }
 0x199   : > { %v2627_v58 = vsel %vm6317_vm6, %v2625_v48, %v2626_v29  ;;  %v5647_v30 = vadd.f32 %v8036_v26, %v8028_v12  ;;  %v5562_v28 = vadd.f32 %v8158_v14, %v8149_v57  ;;  %v5663_v5 = vpop.f32.mrb[48].mxu1  ;;  %v2631_v24 = vsel %vm6317_vm6, %v5106_v21, %v2630_v23 }
 0x19a   : > { %v2453_v7 = vrot.slane %v2452_v61, 4  ;;  %v5249_v20 = vcombine.low %v2624_v13, %v2627_v58  ;;  %v2632_v36 = vrot.slane %v2630_v23, 4  ;;  %v5664_v49 = vpop.f32.mrb[49].mxu1  ;;  %v3933_v42 = vadd.f32 %v8103_v52, %v7816_v38 }
 0x19b   : > { %v2448_v46 = vsel %vm6332_vm7, %v2443_v44, %v2447_v33  ;;  %v5218_v12 = vcombine.low %v8184_v11, %v8188_v34  ;;  %v8242_v26 = vadd.f32 %v5647_v30, %v8121_v43  ;;  %v5666_v57 = vpop.f32.mrb[50].mxu1  ;;  %v5650_v52 = vadd.f32 %v8054_v41, %v8048_v51 }
 0x19c   : > { %v2458_v14 = vsel %vm6332_vm7, %v2453_v7, %v2457_v4  ;;  %6003 = vmatprep.mubr.bf16.mxu0 %v5249_v20  ;;  %v2634_v48 = vsel %vm6317_vm6, %v2632_v36, %v2633_v45  ;;  %v5565_v19 = vadd.f32 %v5564_v32, %v8190_v40  ;;  %v5667_v33 = vpop.f32.mrb[51].mxu1  ;;  %v5653_v43 = vadd.f32 %v8145_v8, %v8134_v50 }
 0x19d   : > { %v5234_v15 = vcombine.low %v2448_v46, %v2458_v14  ;;  %v5250_v9 = vcombine.low %v2631_v24, %v2634_v48  ;;  %v5568_v11 = vadd.f32 %v5567_v16, %v5566_v63  ;;  %v3936_v35 = vadd.f32 %v8111_v18, %v7816_v38 }
 0x19e   : > { %v8256_v34 = vadd.f32 %v5650_v52, %v8165_v17  ;;  %v5656_v25 = vadd.f32 %v8160_v55, %v8151_v22  ;;  %v5569_v4 = vpop.f32.mrb[44].mxu0  ;;  %v5659_v51 = vadd.f32 %v5658_v27, %v8203_v47  ;;  %v3941_v41 = vadd.f32 %v8174_v62, %v7816_v38 }
 0x19f   : > { %4477 = vmatprep.mubr.bf16.mxu1 %v5234_v15  ;;  %6004 = vmatmul.mubr.bf16.gmra.mrb[140].mxu0 %v5250_v9  ;;  %v8264_v50 = vadd.f32 %v5653_v43, %v8194_v60  ;;  %v5570_v8 = vpop.f32.mrb[45].mxu0  ;;  %v5662_v40 = vadd.f32 %v5661_v37, %v5660_v54  ;;  %v5665_v55 = vadd.f32 %v5664_v49, %v5663_v5 }
 0x1a0   : > { %4478 = vmatmul.mubr.bf16.gmra.mrb[140].mxu1 %v5218_v12  ;;  %v8266_v18 = vadd.f32 %v5656_v25, %v3928_v53  ;;  %v5571_v17 = vadd.f32 %v5570_v8, %v5569_v4  ;;  %v8268_v32 = vadd.f32 %v5659_v51, %v3933_v42  ;;  %v5572_v22 = vpop.f32.mrb[46].mxu0  ;;  %v3944_v47 = vadd.f32 %v8182_v6, %v7816_v38 }
 0x1a1   : > { %v5573_v63 = vpop.f32.mrb[47].mxu0  ;;  %v8272_v62 = vadd.f32 %v5662_v40, %v3936_v35  ;;  %v5668_v27 = vadd.f32 %v5667_v33, %v5666_v57  ;;  %v5669_v16 = vpop.f32.mrb[52].mxu1  ;;  %v8274_v29 = vadd.f32 %v5665_v55, %v3941_v41  ;;  %v3949_v37 = vadd.f32 %v5559_v3, %v7816_v38 }
 0x1a2   : > { %v5574_v60 = vadd.f32 %v5573_v63, %v5572_v22  ;;  %v5670_v54 = vpop.f32.mrb[53].mxu1  ;;  %v3952_v61 = vadd.f32 %v5562_v28, %v7816_v38  ;;  %v3957_v49 = vadd.f32 %v5565_v19, %v7816_v38  ;;  %v3960_v57 = vadd.f32 %v5568_v11, %v7816_v38 }
 0x1a3   : > { %v8277_v53 = vadd.f32 %v5668_v27, %v3944_v47  ;;  %v5671_v2 = vadd.f32 %v5670_v54, %v5669_v16  ;;  %v5672_v13 = vpop.f32.mrb[54].mxu1  ;;  %v3965_v4 = vadd.f32 %v5571_v17, %v7816_v38  ;;  %v8634_v17 = vld [vmem:[#allocation6_spill] sm:$0xff] }
 0x1a4   : > { %v5673_v21 = vpop.f32.mrb[55].mxu1  ;;  %v3968_v40 = vadd.f32 %v5574_v60, %v7816_v38 }
 0x1a5   : > { %v8280_v23 = vadd.f32 %v5671_v2, %v3949_v37  ;;  %v5674_v6 = vadd.f32 %v5673_v21, %v5672_v13  ;;  %v8635_v21 = vld [vmem:[#allocation10_spill] sm:$0xff] }
 0x1a6   : > { %v5727_v45 = vpop.f32.mrb[48].mxu0 }
 0x1a7   : > { %v5728_v44 = vpop.f32.mrb[49].mxu0  ;;  %v8282_v58 = vadd.f32 %v5674_v6, %v3952_v61  ;;  %v3973_v61 = vadd.f32 %v8635_v21, %v7816_v38 }
 0x1a8   : > { %v5729_v30 = vadd.f32 %v5728_v44, %v5727_v45  ;;  %v5730_v5 = vpop.f32.mrb[50].mxu0  ;;  %v8636_v45 = vld [vmem:[#allocation7_spill] sm:$0xff] }
 0x1a9   : > { %v5731_v7 = vpop.f32.mrb[51].mxu0  ;;  %v5675_v20 = vpop.f32.mrb[56].mxu1 }
 0x1aa   : > { %v8285_v3 = vadd.f32 %v5729_v30, %v7925_v56  ;;  %v5732_v24 = vadd.f32 %v5731_v7, %v5730_v5  ;;  %v5676_v36 = vpop.f32.mrb[57].mxu1  ;;  %v8637_v5 = vld [vmem:[#allocation11_spill] sm:$0xff] }
 0x1ab   : > { %v5677_v42 = vadd.f32 %v5676_v36, %v5675_v20  ;;  %v5678_v28 = vpop.f32.mrb[58].mxu1  ;;  %v3976_v7 = vadd.f32 %v8637_v5, %v7816_v38 }
 0x1ac   : > { %v8289_v46 = vadd.f32 %v5732_v24, %v7945_v10  ;;  %v5679_v12 = vpop.f32.mrb[59].mxu1 }
 0x1ad   : > { %v8292_v14 = vadd.f32 %v5677_v42, %v3957_v49  ;;  %v5680_v48 = vadd.f32 %v5679_v12, %v5678_v28 }
 0x1ae   : > { %v5733_v52 = vpop.f32.mrb[52].mxu0 }
 0x1af   : > { %v5734_v33 = vpop.f32.mrb[53].mxu0  ;;  %v8294_v15 = vadd.f32 %v5680_v48, %v3960_v57 }
 0x1b0   : > { %v5735_v56 = vadd.f32 %v5734_v33, %v5733_v52  ;;  %v5736_v9 = vpop.f32.mrb[54].mxu0 }
 0x1b1   : > { %v5737_v43 = vpop.f32.mrb[55].mxu0  ;;  %v5681_v35 = vpop.f32.mrb[60].mxu1 }
 0x1b2   : > { %v8297_v19 = vadd.f32 %v5735_v56, %v8000_v1  ;;  %v5738_v25 = vadd.f32 %v5737_v43, %v5736_v9  ;;  %v5682_v10 = vpop.f32.mrb[61].mxu1  ;;  %v8638_v9 = vld [vmem:[#allocation3_spill] sm:$0xff] }
 0x1b3   : > { %v5683_v51 = vadd.f32 %v5682_v10, %v5681_v35  ;;  %v5684_v11 = vpop.f32.mrb[62].mxu1  ;;  %v3981_v43 = vadd.f32 %v8638_v9, %v7816_v38 }
 0x1b4   : > { %v8301_v41 = vadd.f32 %v5738_v25, %v8016_v0  ;;  %v5685_v8 = vpop.f32.mrb[63].mxu1 }
 0x1b5   : > { %v8304_v22 = vadd.f32 %v5683_v51, %v3965_v4  ;;  %v5686_v55 = vadd.f32 %v5685_v8, %v5684_v11  ;;  %v8639_v51 = vld [vmem:[#allocation12_spill] sm:$0xff] }
 0x1b6   : > { %v5739_v47 = vpop.f32.mrb[56].mxu0  ;;  %v3984_v11 = vadd.f32 %v8639_v51, %v7816_v38 }
 0x1b7   : > { %v5740_v63 = vpop.f32.mrb[57].mxu0  ;;  %v8306_v27 = vadd.f32 %v5686_v55, %v3968_v40 }
 0x1b8   : > { %v5741_v1 = vadd.f32 %v5740_v63, %v5739_v47  ;;  %v5742_v16 = vpop.f32.mrb[58].mxu0 }
 0x1b9   : > { %v5743_v54 = vpop.f32.mrb[59].mxu0 }
 0x1ba   : > { %v5687_v37 = vpop.f32.mrb[64].mxu1  ;;  %v8309_v2 = vadd.f32 %v5741_v1, %v8634_v17  ;;  %v5744_v13 = vadd.f32 %v5743_v54, %v5742_v16 }
 0x1bb   : > { %v5688_v0 = vpop.f32.mrb[65].mxu1 }
 0x1bc   : > { %v5689_v60 = vadd.f32 %v5688_v0, %v5687_v37  ;;  %v5690_v6 = vpop.f32.mrb[66].mxu1  ;;  %v8314_v44 = vadd.f32 %v5744_v13, %v8636_v45  ;;  %v8640_v13 = vld [vmem:[#allocation13_spill] sm:$0xff] }
 0x1bd   : > { %v5691_v30 = vpop.f32.mrb[67].mxu1  ;;  %v3989_v0 = vadd.f32 %v8640_v13, %v7816_v38 }
 0x1be   : > { %v8318_v20 = vadd.f32 %v5689_v60, %v3973_v61  ;;  %v5692_v24 = vadd.f32 %v5691_v30, %v5690_v6  ;;  %v5745_v36 = vpop.f32.mrb[60].mxu0  ;;  %v8641_v60 = vld [vmem:[#allocation8_spill] sm:$0xff]  ;;  %v8642_v30 = vld [vmem:[#allocation14_spill] sm:$0xff] }
 0x1bf   : > { %v5746_v49 = vpop.f32.mrb[61].mxu0  ;;  %v3992_v5 = vadd.f32 %v8642_v30, %v7816_v38 }
 0x1c0   : > { %v8320_v42 = vadd.f32 %v5692_v24, %v3976_v7  ;;  %v5747_v28 = vadd.f32 %v5746_v49, %v5745_v36  ;;  %v5748_v12 = vpop.f32.mrb[62].mxu0 }
 0x1c1   : > { %v5749_v57 = vpop.f32.mrb[63].mxu0 }
 0x1c2   : > { %v5693_v48 = vpop.f32.mrb[68].mxu1  ;;  %v8323_v52 = vadd.f32 %v5747_v28, %v8128_v59  ;;  %v5750_v33 = vadd.f32 %v5749_v57, %v5748_v12 }
 0x1c3   : > { %v5694_v56 = vpop.f32.mrb[69].mxu1 }
 0x1c4   : > { %v5695_v35 = vadd.f32 %v5694_v56, %v5693_v48  ;;  %v5696_v25 = vpop.f32.mrb[70].mxu1  ;;  %v8328_v10 = vadd.f32 %v5750_v33, %v8154_v31 }
 0x1c5   : > { %v5697_v4 = vpop.f32.mrb[71].mxu1 }
 0x1c6   : > { %v8332_v8 = vadd.f32 %v5695_v35, %v3981_v43  ;;  %v5698_v40 = vadd.f32 %v5697_v4, %v5696_v25  ;;  %v5751_v55 = vpop.f32.mrb[64].mxu0 }
 0x1c7   : > { %v5752_v59 = vpop.f32.mrb[65].mxu0 }
 0x1c8   : > { %v8334_v47 = vadd.f32 %v5698_v40, %v3984_v11  ;;  %v5753_v63 = vadd.f32 %v5752_v59, %v5751_v55  ;;  %v5754_v1 = vpop.f32.mrb[66].mxu0  ;;  %v8643_v59 = vld [vmem:[#allocation4_spill] sm:$0xff] }
 0x1c9   : > { %v5755_v16 = vpop.f32.mrb[67].mxu0 }
 0x1ca   : > { %v5699_v54 = vpop.f32.mrb[72].mxu1  ;;  %v8337_v37 = vadd.f32 %v5753_v63, %v8201_v39  ;;  %v5756_v31 = vadd.f32 %v5755_v16, %v5754_v1  ;;  %v3997_v63 = vadd.f32 %v8643_v59, %v7816_v38 }
 0x1cb   : > { %v5700_v17 = vpop.f32.mrb[73].mxu1 }
 0x1cc   : > { %v5701_v21 = vadd.f32 %v5700_v17, %v5699_v54  ;;  %v5702_v61 = vpop.f32.mrb[74].mxu1  ;;  %v8342_v6 = vadd.f32 %v5756_v31, %v8641_v60  ;;  %v6181_v54 = vld [vmem:[%s8565_s2] ss:$0 sm:$0xff] }
 0x1cd   : > { %v5703_v45 = vpop.f32.mrb[75].mxu1  ;;  %v8644_v31 = vld [vmem:[#allocation16_spill] sm:$0xff] }
 0x1ce   : > { %v8346_v7 = vadd.f32 %v5701_v21, %v3989_v0  ;;  %v5704_v24 = vadd.f32 %v5703_v45, %v5702_v61  ;;  %v5757_v36 = vpop.f32.mrb[68].mxu0  ;;  %v4000_v17 = vadd.f32 %v6181_v54, %v8644_v31 }
 0x1cf   : > { %v5758_v39 = vpop.f32.mrb[69].mxu0 }
 0x1d0   : > { %v8348_v49 = vadd.f32 %v5704_v24, %v3992_v5  ;;  %v5759_v28 = vadd.f32 %v5758_v39, %v5757_v36  ;;  %v5760_v12 = vpop.f32.mrb[70].mxu0 }
 0x1d1   : > { %v5761_v57 = vpop.f32.mrb[71].mxu0 }
 0x1d2   : > { %v8351_v48 = vadd.f32 %v5759_v28, %v8242_v26  ;;  %v5762_v33 = vadd.f32 %v5761_v57, %v5760_v12 }
 0x1d4   : > { %v8354_v56 = vadd.f32 %v5762_v33, %v8256_v34 }
 0x1d6   : > { %v5763_v9 = vpop.f32.mrb[72].mxu0 }
 0x1d7   : > { %v5764_v43 = vpop.f32.mrb[73].mxu0 }
 0x1d8   : > { %v5765_v35 = vadd.f32 %v5764_v43, %v5763_v9  ;;  %v5766_v25 = vpop.f32.mrb[74].mxu0 }
 0x1d9   : > { %v5767_v4 = vpop.f32.mrb[75].mxu0  ;;  %v5705_v51 = vpop.f32.mrb[76].mxu1 }
 0x1da   : > { %v8357_v11 = vadd.f32 %v5765_v35, %v8264_v50  ;;  %v5768_v40 = vadd.f32 %v5767_v4, %v5766_v25  ;;  %v5706_v55 = vpop.f32.mrb[77].mxu1 }
 0x1db   : > { %v5707_v26 = vadd.f32 %v5706_v55, %v5705_v51  ;;  %v5708_v1 = vpop.f32.mrb[78].mxu1 }
 0x1dc   : > { %v8362_v16 = vadd.f32 %v5768_v40, %v8266_v18  ;;  %v5709_v34 = vpop.f32.mrb[79].mxu1 }
 0x1dd   : > { %v8368_v13 = vadd.f32 %v5707_v26, %v3997_v63  ;;  %v5710_v50 = vadd.f32 %v5709_v34, %v5708_v1 }
 0x1de   : > { %v5769_v0 = vpop.f32.mrb[76].mxu0 }
 0x1df   : > { %v5770_v21 = vpop.f32.mrb[77].mxu0  ;;  %v8370_v61 = vadd.f32 %v5710_v50, %v4000_v17 }
 0x1e0   : > { %v5771_v38 = vadd.f32 %v5770_v21, %v5769_v0  ;;  %v5772_v60 = vpop.f32.mrb[78].mxu0 }
 0x1e1   : > { %v5773_v45 = vpop.f32.mrb[79].mxu0  ;;  %v5839_v30 = vpop.f32.mrb[80].mxu1 }
 0x1e2   : > { %v8373_v18 = vadd.f32 %v5771_v38, %v8268_v32  ;;  %v5774_v5 = vadd.f32 %v5773_v45, %v5772_v60  ;;  %v5840_v24 = vpop.f32.mrb[81].mxu1 }
 0x1e3   : > { %v5841_v36 = vadd.f32 %v5840_v24, %v5839_v30  ;;  %v5842_v39 = vpop.f32.mrb[82].mxu1 }
 0x1e4   : > { %v8376_v28 = vadd.f32 %v5774_v5, %v8272_v62  ;;  %v5843_v12 = vpop.f32.mrb[83].mxu1 }
 0x1e5   : > { %v5844_v57 = vadd.f32 %v5843_v12, %v5842_v39  ;;  %v8379_v33 = vadd.f32 %v5841_v36, %v8285_v3 }
 0x1e6   : > { %v5775_v9 = vpop.f32.mrb[80].mxu0 }
 0x1e7   : > { %v5776_v43 = vpop.f32.mrb[81].mxu0  ;;  %v8382_v35 = vadd.f32 %v5844_v57, %v8289_v46 }
 0x1e8   : > { %v5777_v25 = vadd.f32 %v5776_v43, %v5775_v9  ;;  %v5778_v32 = vpop.f32.mrb[82].mxu0 }
 0x1e9   : > { %v5779_v4 = vpop.f32.mrb[83].mxu0  ;;  %v5845_v51 = vpop.f32.mrb[84].mxu1 }
 0x1ea   : > { %v8385_v40 = vadd.f32 %v5777_v25, %v8274_v29  ;;  %v5780_v55 = vadd.f32 %v5779_v4, %v5778_v32  ;;  %v5846_v62 = vpop.f32.mrb[85].mxu1 }
 0x1eb   : > { %v5847_v59 = vadd.f32 %v5846_v62, %v5845_v51  ;;  %v5848_v63 = vpop.f32.mrb[86].mxu1 }
 0x1ec   : > { %v8388_v26 = vadd.f32 %v5780_v55, %v8277_v53  ;;  %v5849_v3 = vpop.f32.mrb[87].mxu1 }
 0x1ed   : > { %v5850_v1 = vadd.f32 %v5849_v3, %v5848_v63  ;;  %v8391_v34 = vadd.f32 %v5847_v59, %v8297_v19 }
 0x1ee   : > { %v5781_v46 = vpop.f32.mrb[84].mxu0 }
 0x1ef   : > { %v5782_v54 = vpop.f32.mrb[85].mxu0  ;;  %v8394_v31 = vadd.f32 %v5850_v1, %v8301_v41 }
 0x1f0   : > { %v5783_v17 = vadd.f32 %v5782_v54, %v5781_v46  ;;  %v5784_v29 = vpop.f32.mrb[86].mxu0 }
 0x1f1   : > { %v5785_v50 = vpop.f32.mrb[87].mxu0 }
 0x1f2   : > { %v8397_v0 = vadd.f32 %v5783_v17, %v8280_v23  ;;  %v5786_v21 = vadd.f32 %v5785_v50, %v5784_v29  ;;  %v5851_v38 = vpop.f32.mrb[88].mxu1 }
 0x1f3   : > { %v5852_v53 = vpop.f32.mrb[89].mxu1 }
 0x1f4   : > { %v8400_v60 = vadd.f32 %v5786_v21, %v8282_v58  ;;  %v5853_v45 = vadd.f32 %v5852_v53, %v5851_v38  ;;  %v5854_v19 = vpop.f32.mrb[90].mxu1 }
 0x1f5   : > { %v5855_v30 = vpop.f32.mrb[91].mxu1 }
 0x1f6   : > { %v5787_v5 = vpop.f32.mrb[88].mxu0  ;;  %v5856_v24 = vadd.f32 %v5855_v30, %v5854_v19  ;;  %v8403_v41 = vadd.f32 %v5853_v45, %v8309_v2 }
 0x1f7   : > { %v5788_v36 = vpop.f32.mrb[89].mxu0 }
 0x1f8   : > { %v5789_v39 = vadd.f32 %v5788_v36, %v5787_v5  ;;  %v5790_v12 = vpop.f32.mrb[90].mxu0  ;;  %v8406_v23 = vadd.f32 %v5856_v24, %v8314_v44 }
 0x1f9   : > { %v5791_v57 = vpop.f32.mrb[91].mxu0 }
 0x1fa   : > { %v8409_v9 = vadd.f32 %v5789_v39, %v8292_v14  ;;  %v5792_v58 = vadd.f32 %v5791_v57, %v5790_v12 }
 0x1fc   : > { %v5857_v43 = vpop.f32.mrb[92].mxu1  ;;  %v8412_v25 = vadd.f32 %v5792_v58, %v8294_v15 }
 0x1fd   : > { %v5858_v32 = vpop.f32.mrb[93].mxu1 }
 0x1fe   : > { %v5859_v4 = vadd.f32 %v5858_v32, %v5857_v43  ;;  %v5860_v51 = vpop.f32.mrb[94].mxu1 }
 0x1ff   : > { %v5793_v2 = vpop.f32.mrb[92].mxu0  ;;  %v5861_v55 = vpop.f32.mrb[95].mxu1 }
 0x200   : > { %v5794_v62 = vpop.f32.mrb[93].mxu0  ;;  %v5862_v59 = vadd.f32 %v5861_v55, %v5860_v51  ;;  %v8415_v63 = vadd.f32 %v5859_v4, %v8323_v52 }
 0x201   : > { %v5795_v44 = vadd.f32 %v5794_v62, %v5793_v2  ;;  %v5796_v3 = vpop.f32.mrb[94].mxu0 }
 0x202   : > { %v5797_v1 = vpop.f32.mrb[95].mxu0  ;;  %v8418_v14 = vadd.f32 %v5862_v59, %v8328_v10 }
 0x203   : > { %v8421_v46 = vadd.f32 %v5795_v44, %v8304_v22  ;;  %v5798_v15 = vadd.f32 %v5797_v1, %v5796_v3 }
 0x205   : > { %v8424_v54 = vadd.f32 %v5798_v15, %v8306_v27 }
 0x206   : > { %v5863_v17 = vpop.f32.mrb[96].mxu1 }
 0x207   : > { %v5799_v29 = vpop.f32.mrb[96].mxu0  ;;  %v5864_v50 = vpop.f32.mrb[97].mxu1 }
 0x208   : > { %v5800_v21 = vpop.f32.mrb[97].mxu0  ;;  %v5865_v38 = vadd.f32 %v5864_v50, %v5863_v17  ;;  %v5866_v52 = vpop.f32.mrb[98].mxu1 }
 0x209   : > { %v5801_v53 = vadd.f32 %v5800_v21, %v5799_v29  ;;  %v5802_v45 = vpop.f32.mrb[98].mxu0  ;;  %v5867_v19 = vpop.f32.mrb[99].mxu1 }
 0x20a   : > { %v5803_v30 = vpop.f32.mrb[99].mxu0  ;;  %v5868_v5 = vadd.f32 %v5867_v19, %v5866_v52  ;;  %v8427_v10 = vadd.f32 %v5865_v38, %v8337_v37 }
 0x20b   : > { %v8430_v22 = vadd.f32 %v5801_v53, %v8318_v20  ;;  %v5804_v24 = vadd.f32 %v5803_v30, %v5802_v45 }
 0x20c   : > { %v8433_v27 = vadd.f32 %v5868_v5, %v8342_v6 }
 0x20d   : > { %v8436_v36 = vadd.f32 %v5804_v24, %v8320_v42 }
 0x20f   : > { %v5869_v39 = vpop.f32.mrb[100].mxu1 }
 0x210   : > { %v5870_v57 = vpop.f32.mrb[101].mxu1 }
 0x211   : > { %v5805_v12 = vpop.f32.mrb[100].mxu0  ;;  %v5871_v43 = vadd.f32 %v5870_v57, %v5869_v39  ;;  %v5872_v32 = vpop.f32.mrb[102].mxu1 }
 0x212   : > { %v5806_v58 = vpop.f32.mrb[101].mxu0  ;;  %v5873_v37 = vpop.f32.mrb[103].mxu1 }
 0x213   : > { %v5807_v4 = vadd.f32 %v5806_v58, %v5805_v12  ;;  %v5808_v51 = vpop.f32.mrb[102].mxu0  ;;  %v5874_v55 = vadd.f32 %v5873_v37, %v5872_v32  ;;  %v8439_v20 = vadd.f32 %v5871_v43, %v8351_v48 }
 0x214   : > { %v5809_v2 = vpop.f32.mrb[103].mxu0 }
 0x215   : > { %v8442_v6 = vadd.f32 %v5807_v4, %v8332_v8  ;;  %v5810_v62 = vadd.f32 %v5809_v2, %v5808_v51  ;;  %v8445_v42 = vadd.f32 %v5874_v55, %v8354_v56 }
 0x217   : > { %v8448_v59 = vadd.f32 %v5810_v62, %v8334_v47 }
 0x218   : > { %v5875_v44 = vpop.f32.mrb[104].mxu1 }
 0x219   : > { %v5876_v3 = vpop.f32.mrb[105].mxu1 }
 0x21a   : > { %v5877_v15 = vadd.f32 %v5876_v3, %v5875_v44  ;;  %v5878_v17 = vpop.f32.mrb[106].mxu1 }
 0x21b   : > { %v5811_v1 = vpop.f32.mrb[104].mxu0  ;;  %v5879_v50 = vpop.f32.mrb[107].mxu1 }
 0x21c   : > { %v5812_v29 = vpop.f32.mrb[105].mxu0  ;;  %v5880_v38 = vadd.f32 %v5879_v50, %v5878_v17  ;;  %v8451_v8 = vadd.f32 %v5877_v15, %v8357_v11 }
 0x21d   : > { %v5813_v21 = vadd.f32 %v5812_v29, %v5811_v1  ;;  %v5814_v48 = vpop.f32.mrb[106].mxu0 }
 0x21e   : > { %v5815_v52 = vpop.f32.mrb[107].mxu0  ;;  %v8457_v47 = vadd.f32 %v5880_v38, %v8362_v16 }
 0x21f   : > { %v8454_v56 = vadd.f32 %v5813_v21, %v8346_v7  ;;  %v5816_v53 = vadd.f32 %v5815_v52, %v5814_v48 }
 0x221   : > { %v8460_v45 = vadd.f32 %v5816_v53, %v8348_v49 }
 0x223   : > { %v5881_v19 = vpop.f32.mrb[108].mxu1 }
 0x224   : > { %v5882_v30 = vpop.f32.mrb[109].mxu1 }
 0x225   : > { %v5883_v5 = vadd.f32 %v5882_v30, %v5881_v19  ;;  %v5884_v24 = vpop.f32.mrb[110].mxu1 }
 0x226   : > { %v5885_v39 = vpop.f32.mrb[111].mxu1 }
 0x227   : > { %v5817_v12 = vpop.f32.mrb[108].mxu0  ;;  %v5886_v57 = vadd.f32 %v5885_v39, %v5884_v24  ;;  %v8463_v11 = vadd.f32 %v5883_v5, %v8373_v18 }
 0x228   : > { %v5818_v58 = vpop.f32.mrb[109].mxu0 }
 0x229   : > { %v5819_v7 = vadd.f32 %v5818_v58, %v5817_v12  ;;  %v5820_v43 = vpop.f32.mrb[110].mxu0  ;;  %v8466_v32 = vadd.f32 %v5886_v57, %v8376_v28 }
 0x22a   : > { %v5821_v16 = vpop.f32.mrb[111].mxu0 }
 0x22b   : > { %v8469_v49 = vadd.f32 %v5819_v7, %v8368_v13  ;;  %v5822_v4 = vadd.f32 %v5821_v16, %v5820_v43 }
 0x22d   : > { %v8472_v51 = vadd.f32 %v5822_v4, %v8370_v61  ;;  %v5887_v37 = vpop.f32.mrb[112].mxu1 }
 0x22e   : > { %v5888_v2 = vpop.f32.mrb[113].mxu1 }
 0x22f   : > { %v5977_v55 = vpop.f32.mrb[112].mxu0  ;;  %v5889_v18 = vadd.f32 %v5888_v2, %v5887_v37  ;;  %v5890_v62 = vpop.f32.mrb[114].mxu1 }
 0x230   : > { %v4529_v44 = vadd.f32 %v5977_v55, %v8391_v34  ;;  %v4520_v3 = vpop.f32.mrb[113].mxu0  ;;  %v5891_v1 = vpop.f32.mrb[115].mxu1 }
 0x231   : > { %v4521_v28 = vadd.f32 %v4520_v3, %v8379_v33  ;;  %v5978_v15 = vpop.f32.mrb[114].mxu0  ;;  %v5892_v17 = vadd.f32 %v5891_v1, %v5890_v62  ;;  %v8477_v13 = vadd.f32 %v5889_v18, %v8385_v40 }
 0x232   : > { %v4532_v29 = vadd.f32 %v5978_v15, %v8394_v31  ;;  %v4523_v61 = vpop.f32.mrb[115].mxu0  ;;  %v4850_v31 = vmul.f32 %v4529_v44, %v4529_v44 }
 0x233   : > { %v4524_v34 = vadd.f32 %v4523_v61, %v8382_v35  ;;  %v8489_v33 = vadd.f32 %v5892_v17, %v8388_v26  ;;  %v4848_v21 = vmul.f32 %v4521_v28, %v4521_v28 }
 0x234   : > { %v5400_v50 = vpack.c.bf16 %v4532_v29, %v4529_v44  ;;  %v4851_v39 = vmul.f32 %v4532_v29, %v4532_v29 }
 0x235   : > { %v5395_v40 = vpack.c.bf16 %v4524_v34, %v4521_v28  ;;  %v4808_v48 = vadd.f32 %v4524_v34, %v4521_v28  ;;  %v4849_v38 = vmul.f32 %v4524_v34, %v4524_v34 }
 0x236   : > { %5472 = vst [vmem:[%s8485_s22 + $0x8] sm:$0xff] %v5400_v50  }
 0x237   : > { %5396 = vst [vmem:[%s8485_s22] sm:$0xff] %v5395_v40   ;;  %v4809_v52 = vadd.f32 %v4808_v48, %v4529_v44  ;;  %v4880_v53 = vadd.f32 %v4849_v38, %v4848_v21  ;;  %v5981_v19 = vpop.f32.mrb[116].mxu0  ;;  %v5893_v30 = vpop.f32.mrb[116].mxu1 }
 0x238   : > { %v4545_v5 = vadd.f32 %v5981_v19, %v8415_v63  ;;  %v4536_v24 = vpop.f32.mrb[117].mxu0  ;;  %v5894_v12 = vpop.f32.mrb[117].mxu1 }
 0x239   : > { %v4881_v35 = vadd.f32 %v4880_v53, %v4850_v31  ;;  %v4537_v26 = vadd.f32 %v4536_v24, %v8403_v41  ;;  %v4810_v57 = vadd.f32 %v4809_v52, %v4532_v29  ;;  %v5982_v58 = vpop.f32.mrb[118].mxu0  ;;  %v5895_v7 = vadd.f32 %v5894_v12, %v5893_v30  ;;  %v5896_v43 = vpop.f32.mrb[118].mxu1 }
 0x23a   : > { %v4548_v16 = vadd.f32 %v5982_v58, %v8418_v14  ;;  %v4539_v4 = vpop.f32.mrb[119].mxu0  ;;  %v5897_v18 = vpop.f32.mrb[119].mxu1  ;;  %v4854_v17 = vmul.f32 %v4545_v5, %v4545_v5 }
 0x23b   : > { %v4811_v37 = vadd.f32 %v4810_v57, %v4537_v26  ;;  %v4852_v2 = vmul.f32 %v4537_v26, %v4537_v26  ;;  %v4882_v55 = vadd.f32 %v4881_v35, %v4851_v39  ;;  %v4540_v63 = vadd.f32 %v4539_v4, %v8406_v23 }
 0x23c   : > { %v5410_v62 = vpack.c.bf16 %v4548_v16, %v4545_v5  ;;  %v5898_v44 = vadd.f32 %v5897_v18, %v5896_v43  ;;  %v8498_v3 = vadd.f32 %v5895_v7, %v8397_v0  ;;  %v4855_v34 = vmul.f32 %v4548_v16, %v4548_v16 }
 0x23d   : > { %v4883_v41 = vadd.f32 %v4882_v55, %v4852_v2  ;;  %v5405_v1 = vpack.c.bf16 %v4540_v63, %v4537_v26  ;;  %v4812_v28 = vadd.f32 %v4811_v37, %v4540_v63  ;;  %v4853_v15 = vmul.f32 %v4540_v63, %v4540_v63 }
 0x23e   : > { %5474 = vst [vmem:[%s8485_s22 + $0x18] sm:$0xff] %v5410_v62   ;;  %v8502_v14 = vadd.f32 %v5898_v44, %v8400_v60 }
 0x23f   : > { %5473 = vst [vmem:[%s8485_s22 + $0x10] sm:$0xff] %v5405_v1   ;;  %v4813_v29 = vadd.f32 %v4812_v28, %v4545_v5  ;;  %v4884_v61 = vadd.f32 %v4883_v41, %v4853_v15 }
 0x240   : > { %v5985_v23 = vpop.f32.mrb[120].mxu0 }
 0x241   : > { %v4885_v50 = vadd.f32 %v4884_v61, %v4854_v17  ;;  %v4814_v21 = vadd.f32 %v4813_v29, %v4548_v16  ;;  %v5899_v40 = vpop.f32.mrb[120].mxu1  ;;  %v4561_v0 = vadd.f32 %v5985_v23, %v8439_v20  ;;  %v4552_v48 = vpop.f32.mrb[121].mxu0 }
 0x242   : > { %v5900_v38 = vpop.f32.mrb[121].mxu1  ;;  %v4553_v31 = vadd.f32 %v4552_v48, %v8427_v10  ;;  %v5986_v53 = vpop.f32.mrb[122].mxu0 }
 0x243   : > { %v4886_v52 = vadd.f32 %v4885_v50, %v4855_v34  ;;  %v5901_v60 = vadd.f32 %v5900_v38, %v5899_v40  ;;  %v5902_v19 = vpop.f32.mrb[122].mxu1  ;;  %v4564_v30 = vadd.f32 %v5986_v53, %v8445_v42  ;;  %v4555_v5 = vpop.f32.mrb[123].mxu0  ;;  %v4858_v42 = vmul.f32 %v4561_v0, %v4561_v0 }
 0x244   : > { %v4815_v24 = vadd.f32 %v4814_v21, %v4553_v31  ;;  %v4856_v39 = vmul.f32 %v4553_v31, %v4553_v31  ;;  %v5903_v35 = vpop.f32.mrb[123].mxu1  ;;  %v4556_v12 = vadd.f32 %v4555_v5, %v8433_v27 }
 0x245   : > { %v5420_v26 = vpack.c.bf16 %v4564_v30, %v4561_v0  ;;  %v5904_v20 = vadd.f32 %v5903_v35, %v5902_v19  ;;  %v8510_v57 = vadd.f32 %v5901_v60, %v8409_v9  ;;  %v4859_v2 = vmul.f32 %v4564_v30, %v4564_v30 }
 0x246   : > { %v4887_v10 = vadd.f32 %v4886_v52, %v4856_v39  ;;  %v5415_v58 = vpack.c.bf16 %v4556_v12, %v4553_v31  ;;  %v4816_v7 = vadd.f32 %v4815_v24, %v4556_v12  ;;  %v4857_v43 = vmul.f32 %v4556_v12, %v4556_v12 }
 0x247   : > { %5476 = vst [vmem:[%s8485_s22 + $0x28] sm:$0xff] %v5420_v26   ;;  %v8514_v16 = vadd.f32 %v5904_v20, %v8412_v25 }
 0x248   : > { %5475 = vst [vmem:[%s8485_s22 + $0x20] sm:$0xff] %v5415_v58   ;;  %v4817_v4 = vadd.f32 %v4816_v7, %v4561_v0  ;;  %v4888_v37 = vadd.f32 %v4887_v10, %v4857_v43 }
 0x24a   : > { %v4889_v55 = vadd.f32 %v4888_v37, %v4858_v42  ;;  %v5989_v27 = vpop.f32.mrb[124].mxu0  ;;  %v4818_v18 = vadd.f32 %v4817_v4, %v4564_v30 }
 0x24b   : > { %v5905_v63 = vpop.f32.mrb[124].mxu1  ;;  %v4577_v9 = vadd.f32 %v5989_v27, %v8463_v11  ;;  %v4568_v62 = vpop.f32.mrb[125].mxu0 }
 0x24c   : > { %v5906_v44 = vpop.f32.mrb[125].mxu1  ;;  %v4569_v41 = vadd.f32 %v4568_v62, %v8451_v8  ;;  %v4890_v1 = vadd.f32 %v4889_v55, %v4859_v2  ;;  %v5990_v28 = vpop.f32.mrb[126].mxu0 }
 0x24d   : > { %v5907_v25 = vadd.f32 %v5906_v44, %v5905_v63  ;;  %v5908_v15 = vpop.f32.mrb[126].mxu1  ;;  %v4580_v17 = vadd.f32 %v5990_v28, %v8466_v32  ;;  %v4571_v29 = vpop.f32.mrb[127].mxu0  ;;  %v4862_v52 = vmul.f32 %v4577_v9, %v4577_v9 }
 0x24e   : > { %v4819_v61 = vadd.f32 %v4818_v18, %v4569_v41  ;;  %v4860_v34 = vmul.f32 %v4569_v41, %v4569_v41  ;;  %v5909_v50 = vpop.f32.mrb[127].mxu1  ;;  %v4572_v23 = vadd.f32 %v4571_v29, %v8457_v47 }
 0x24f   : > { %v5430_v21 = vpack.c.bf16 %v4580_v17, %v4577_v9  ;;  %v5910_v11 = vadd.f32 %v5909_v50, %v5908_v15  ;;  %v4448_v40 = vadd.f32 %v5907_v25, %v8421_v46  ;;  %v4863_v60 = vmul.f32 %v4580_v17, %v4580_v17 }
 0x250   : > { %v4891_v0 = vadd.f32 %v4890_v1, %v4860_v34  ;;  %v5425_v8 = vpack.c.bf16 %v4572_v23, %v4569_v41  ;;  %v4820_v48 = vadd.f32 %v4819_v61, %v4572_v23  ;;  %v4861_v38 = vmul.f32 %v4572_v23, %v4572_v23 }
 0x251   : > { %5478 = vst [vmem:[%s8485_s22 + $0x38] sm:$0xff] %v5430_v21   ;;  %v4451_v31 = vadd.f32 %v5910_v11, %v8424_v54 }
 0x252   : > { %5477 = vst [vmem:[%s8485_s22 + $0x30] sm:$0xff] %v5425_v8   ;;  %v4821_v32 = vadd.f32 %v4820_v48, %v4577_v9  ;;  %v4892_v53 = vadd.f32 %v4891_v0, %v4861_v38 }
 0x254   : > { %v4893_v19 = vadd.f32 %v4892_v53, %v4862_v52  ;;  %v5993_v30 = vpop.f32.mrb[128].mxu0  ;;  %v4822_v5 = vadd.f32 %v4821_v32, %v4580_v17 }
 0x255   : > { %v5911_v47 = vpop.f32.mrb[128].mxu1  ;;  %v4593_v24 = vadd.f32 %v5993_v30, %v8498_v3  ;;  %v4584_v39 = vpop.f32.mrb[129].mxu0 }
 0x256   : > { %v5912_v46 = vpop.f32.mrb[129].mxu1  ;;  %v4585_v35 = vadd.f32 %v4584_v39, %v8477_v13  ;;  %v4894_v12 = vadd.f32 %v4893_v19, %v4863_v60  ;;  %v5994_v26 = vpop.f32.mrb[130].mxu0 }
 0x257   : > { %v5913_v20 = vadd.f32 %v5912_v46, %v5911_v47  ;;  %v5914_v54 = vpop.f32.mrb[130].mxu1  ;;  %v4596_v10 = vadd.f32 %v5994_v26, %v8502_v14  ;;  %v4587_v58 = vpop.f32.mrb[131].mxu0  ;;  %v4866_v9 = vmul.f32 %v4593_v24, %v4593_v24 }
 0x258   : > { %v4823_v7 = vadd.f32 %v4822_v5, %v4585_v35  ;;  %v4864_v43 = vmul.f32 %v4585_v35, %v4585_v35  ;;  %v5915_v42 = vpop.f32.mrb[131].mxu1  ;;  %v4588_v4 = vadd.f32 %v4587_v58, %v8489_v33 }
 0x259   : > { %v5440_v37 = vpack.c.bf16 %v4596_v10, %v4593_v24  ;;  %v5916_v3 = vadd.f32 %v5915_v42, %v5914_v54  ;;  %v4456_v2 = vadd.f32 %v5913_v20, %v8430_v22  ;;  %v4867_v44 = vmul.f32 %v4596_v10, %v4596_v10 }
 0x25a   : > { %v4895_v55 = vadd.f32 %v4894_v12, %v4864_v43  ;;  %v5435_v13 = vpack.c.bf16 %v4588_v4, %v4585_v35  ;;  %v4824_v27 = vadd.f32 %v4823_v7, %v4588_v4  ;;  %v4865_v18 = vmul.f32 %v4588_v4, %v4588_v4 }
 0x25b   : > { %5480 = vst [vmem:[%s8485_s22 + $0x48] sm:$0xff] %v5440_v37   ;;  %v4459_v63 = vadd.f32 %v5916_v3, %v8436_v36 }
 0x25c   : > { %5479 = vst [vmem:[%s8485_s22 + $0x40] sm:$0xff] %v5435_v13   ;;  %v4825_v14 = vadd.f32 %v4824_v27, %v4593_v24  ;;  %v4896_v62 = vadd.f32 %v4895_v55, %v4865_v18 }
 0x25e   : > { %v4897_v41 = vadd.f32 %v4896_v62, %v4866_v9  ;;  %v5997_v1 = vpop.f32.mrb[132].mxu0  ;;  %v4826_v28 = vadd.f32 %v4825_v14, %v4596_v10 }
 0x25f   : > { %v5917_v33 = vpop.f32.mrb[132].mxu1  ;;  %v4609_v25 = vadd.f32 %v5997_v1, %v4448_v40  ;;  %v4600_v15 = vpop.f32.mrb[133].mxu0 }
 0x260   : > { %v5918_v17 = vpop.f32.mrb[133].mxu1  ;;  %v4601_v22 = vadd.f32 %v4600_v15, %v8510_v57  ;;  %v4898_v29 = vadd.f32 %v4897_v41, %v4867_v44  ;;  %v5998_v61 = vpop.f32.mrb[134].mxu0 }
 0x261   : > { %v5919_v34 = vadd.f32 %v5918_v17, %v5917_v33  ;;  %v5920_v50 = vpop.f32.mrb[134].mxu1  ;;  %v4612_v36 = vadd.f32 %v5998_v61, %v4451_v31  ;;  %v4603_v23 = vpop.f32.mrb[135].mxu0  ;;  %v4870_v19 = vmul.f32 %v4609_v25, %v4609_v25 }
 0x262   : > { %v4827_v21 = vadd.f32 %v4826_v28, %v4601_v22  ;;  %v4868_v11 = vmul.f32 %v4601_v22, %v4601_v22  ;;  %v5921_v0 = vpop.f32.mrb[135].mxu1  ;;  %v4604_v8 = vadd.f32 %v4603_v23, %v8514_v16 }
 0x263   : > { %v5450_v48 = vpack.c.bf16 %v4612_v36, %v4609_v25  ;;  %v5922_v38 = vadd.f32 %v5921_v0, %v5920_v50  ;;  %v4464_v40 = vadd.f32 %v5919_v34, %v8442_v6  ;;  %v4871_v5 = vmul.f32 %v4612_v36, %v4612_v36 }
 0x264   : > { %v4899_v52 = vadd.f32 %v4898_v29, %v4868_v11  ;;  %v5445_v32 = vpack.c.bf16 %v4604_v8, %v4601_v22  ;;  %v4828_v57 = vadd.f32 %v4827_v21, %v4604_v8  ;;  %v4869_v53 = vmul.f32 %v4604_v8, %v4604_v8 }
 0x265   : > { %5482 = vst [vmem:[%s8485_s22 + $0x58] sm:$0xff] %v5450_v48   ;;  %v4467_v60 = vadd.f32 %v5922_v38, %v8448_v59 }
 0x266   : > { %5481 = vst [vmem:[%s8485_s22 + $0x50] sm:$0xff] %v5445_v32   ;;  %v4829_v31 = vadd.f32 %v4828_v57, %v4609_v25  ;;  %v4900_v30 = vadd.f32 %v4899_v52, %v4869_v53 }
 0x268   : > { %v4901_v47 = vadd.f32 %v4900_v30, %v4870_v19  ;;  %v6001_v24 = vpop.f32.mrb[136].mxu0  ;;  %v4830_v39 = vadd.f32 %v4829_v31, %v4612_v36 }
 0x269   : > { %v5923_v16 = vpop.f32.mrb[136].mxu1  ;;  %v4625_v46 = vadd.f32 %v6001_v24, %v4464_v40  ;;  %v4616_v35 = vpop.f32.mrb[137].mxu0 }
 0x26a   : > { %v5924_v12 = vpop.f32.mrb[137].mxu1  ;;  %v4617_v6 = vadd.f32 %v4616_v35, %v4456_v2  ;;  %v4902_v26 = vadd.f32 %v4901_v47, %v4871_v5  ;;  %v6002_v20 = vpop.f32.mrb[138].mxu0 }
 0x26b   : > { %v5925_v54 = vadd.f32 %v5924_v12, %v5923_v16  ;;  %v5926_v10 = vpop.f32.mrb[138].mxu1  ;;  %v4628_v58 = vadd.f32 %v6002_v20, %v4467_v60  ;;  %v4619_v59 = vpop.f32.mrb[139].mxu0  ;;  %v4874_v14 = vmul.f32 %v4625_v46, %v4625_v46 }
 0x26c   : > { %v4831_v7 = vadd.f32 %v4830_v39, %v4617_v6  ;;  %v4872_v43 = vmul.f32 %v4617_v6, %v4617_v6  ;;  %v5927_v42 = vpop.f32.mrb[139].mxu1  ;;  %v4620_v4 = vadd.f32 %v4619_v59, %v4459_v63 }
 0x26d   : > { %v5460_v37 = vpack.c.bf16 %v4628_v58, %v4625_v46  ;;  %v5928_v3 = vadd.f32 %v5927_v42, %v5926_v10  ;;  %v4472_v55 = vadd.f32 %v5925_v54, %v8454_v56  ;;  %v4875_v41 = vmul.f32 %v4628_v58, %v4628_v58 }
 0x26e   : > { %v4903_v13 = vadd.f32 %v4902_v26, %v4872_v43  ;;  %v5455_v27 = vpack.c.bf16 %v4620_v4, %v4617_v6  ;;  %v4832_v18 = vadd.f32 %v4831_v7, %v4620_v4  ;;  %v4873_v2 = vmul.f32 %v4620_v4, %v4620_v4 }
 0x26f   : > { %5484 = vst [vmem:[%s8485_s22 + $0x68] sm:$0xff] %v5460_v37   ;;  %v4475_v9 = vadd.f32 %v5928_v3, %v8460_v45 }
 0x270   : > { %5483 = vst [vmem:[%s8485_s22 + $0x60] sm:$0xff] %v5455_v27   ;;  %v4833_v62 = vadd.f32 %v4832_v18, %v4625_v46  ;;  %v4904_v44 = vadd.f32 %v4903_v13, %v4873_v2 }
 0x272   : > { %v4905_v1 = vadd.f32 %v4904_v44, %v4874_v14  ;;  %v6005_v28 = vpop.f32.mrb[140].mxu0  ;;  %v4834_v33 = vadd.f32 %v4833_v62, %v4628_v58 }
 0x273   : > { %v5929_v63 = vpop.f32.mrb[140].mxu1  ;;  %v4632_v25 = vpop.f32.mrb[141].mxu0 }
 0x274   : > { %v5930_v15 = vpop.f32.mrb[141].mxu1  ;;  %v4633_v17 = vadd.f32 %v4632_v25, %v4472_v55  ;;  %v4906_v56 = vadd.f32 %v4905_v1, %v4875_v41  ;;  %v6006_v22 = vpop.f32.mrb[142].mxu0 }
 0x275   : > { %v5931_v29 = vadd.f32 %v5930_v15, %v5929_v63  ;;  %v5932_v61 = vpop.f32.mrb[142].mxu1  ;;  %v4635_v34 = vpop.f32.mrb[143].mxu0 }
 0x276   : > { %v4835_v50 = vadd.f32 %v4834_v33, %v4633_v17  ;;  %v4876_v45 = vmul.f32 %v4633_v17, %v4633_v17  ;;  %v5933_v36 = vpop.f32.mrb[143].mxu1  ;;  %v4636_v23 = vadd.f32 %v4635_v34, %v4475_v9 }
 0x277   : > { %v4480_v21 = vadd.f32 %v5931_v29, %v8469_v49  ;;  %v5934_v11 = vadd.f32 %v5933_v36, %v5932_v61 }
 0x278   : > { %v4907_v0 = vadd.f32 %v4906_v56, %v4876_v45  ;;  %v5465_v8 = vpack.c.bf16 %v4636_v23, %v4633_v17  ;;  %v4836_v48 = vadd.f32 %v4835_v50, %v4636_v23  ;;  %v4877_v38 = vmul.f32 %v4636_v23, %v4636_v23 }
 0x279   : > { %v4641_v40 = vadd.f32 %v6005_v28, %v4480_v21  ;;  %v4483_v52 = vadd.f32 %v5934_v11, %v8472_v51 }
 0x27a   : > { %5485 = vst [vmem:[%s8485_s22 + $0x70] sm:$0xff] %v5465_v8   ;;  %v4908_v32 = vadd.f32 %v4907_v0, %v4877_v38 }
 0x27b   : > { %v4878_v57 = vmul.f32 %v4641_v40, %v4641_v40  ;;  %v4644_v53 = vadd.f32 %v6006_v22, %v4483_v52  ;;  %v4837_v60 = vadd.f32 %v4836_v48, %v4641_v40 }
 0x27d   : > { %v5470_v19 = vpack.c.bf16 %v4644_v53, %v4641_v40  ;;  %v4879_v31 = vmul.f32 %v4644_v53, %v4644_v53  ;;  %v4838_v30 = vadd.f32 %v4837_v60, %v4644_v53  ;;  %v4909_v5 = vadd.f32 %v4908_v32, %v4878_v57 }
 0x27f   : > { %5486 = vst [vmem:[%s8485_s22 + $0x78] sm:$0xff] %v5470_v19   ;;  %v4839_v49 = vrot.slane %v4838_v30, 4  ;;  %v4910_v47 = vadd.f32 %v4909_v5, %v4879_v31 }
 0x281   : > { %v4840_v24 = vadd.f32 %v4839_v49, %v4838_v30  ;;  %v4911_v39 = vrot.slane %v4910_v47, 4 }
 0x283   : > { %v4841_v16 = vrot.slane %v4840_v24, 2  ;;  %v4912_v46 = vadd.f32 %v4911_v39, %v4910_v47 }
 0x285   : > { %v4842_v35 = vadd.f32 %v4841_v16, %v4840_v24  ;;  %v4913_v12 = vrot.slane %v4912_v46, 2 }
 0x287   : > { %v4843_v51 = vrot.slane %v4842_v35, 1  ;;  %v4914_v6 = vadd.f32 %v4913_v12, %v4912_v46 }
 0x289   : > { %v4844_v26 = vadd.f32 %v4843_v51, %v4842_v35  ;;  %v4915_v20 = vrot.slane %v4914_v6, 1 }
 0x28b   : > { %v4916_v54 = vadd.f32 %v4915_v20, %v4914_v6  ;;  %4846 = vst [vmem:[%s265_s25] sm:$0xff] %v4844_v26 }
 0x28d   : > { %4918 = vst [vmem:[%s269_s29] sm:$0xff] %v4916_v54 }
 0x28e PF: > { %s16_s20 = sadd.s32 1, %s6204_s20   ;;  %s8645_s18 = smov %s6200_s19 }
 0x28f   : > { %p13_p5 = scmp.ge.s32.totalorder %s16_s20, 4   ;;  %s8646_s19 = smov %s8648_s21 }
 0x291   :  { %15 = sbr.rel (!%p13_p5) target bundleno = 2 (0x2), region = 92 }

// kernel: residual_block_forward.4
= control target key start
LH: loop header
LB: loop body
LE: loop exit
PB: predicated region body
PF: predicated region fallthrough
CT: control target
= control target key end

     0   :  { %s6688_s24 = smov 0   ;;  %s6690_s25 = smov 0   ;;  %s9227_s0 = inlined_call_operand.vmem [shape: bf16[2,16,16,128], index: 0, kind: input, shape index: {}]   ;;  %s9228_s1 = inlined_call_operand.vmem [shape: f32[1,128], index: 1, kind: input, shape index: {}]   ;;  %s9229_s2 = inlined_call_operand.vmem [shape: f32[1,128], index: 2, kind: input, shape index: {}]   ;;  %s9230_s3 = inlined_call_operand.vmem [shape: bf16[1152,128], index: 3, kind: input, shape index: {}]   ;;  %s9231_s4 = inlined_call_operand.vmem [shape: f32[1,128], index: 4, kind: input, shape index: {}]   ;;  %s9232_s5 = inlined_call_operand.vmem [shape: bf16[2,16,16,128], index: 5, kind: output, shape index: {0}]   ;;  %s9233_s6 = inlined_call_operand.vmem [shape: f32[2,8,128], index: 6, kind: output, shape index: {1}]   ;;  %s9234_s7 = inlined_call_operand.vmem [shape: f32[2,8,128], index: 7, kind: output, shape index: {2}]  }
   0x1   :  { %s6692_s26 = smov 0  }
   0x2 LB: > { %s30_s27 = sadd.s32 1, %s6641_s25  ;;  %p5344_p0 = scmp.ge.s32.totalorder %s6645_s26, 1  ;;  %s6645_s26 = sphi %s6692_s26, %s18_s26   ;;  %s6641_s25 = sphi %s6690_s25, %s9350_s25   ;;  %s6637_s24 = sphi %s6688_s24, %s9349_s24  }
   0x3   : > { %p32_p1 = scmp.ge.s32.totalorder %s30_s27, 2  ;;  %p260_p2 = scmp.lt.s32.totalorder %s6645_s26, 3 }
   0x5   : > { %s9352_s27 = smov (%p32_p1, %s30_s27), 0  ;;  %p261_p3 = pnand %p5344_p0, %p260_p2 }
   0x7   : > { %264 = sbr.rel (%p261_p3) target bundleno = 689 (0x2b1), region = 40 }
   0xe   : > { %v6486_v0 = vld [vmem:[%s9230_s3 + $0x40] sm:$0xff]   ;;  %v6647_v2 = vmov 0   ;;  %v6488_v3 = vld [vmem:[%s9230_s3 + $0x48] sm:$0xff]   ;;  %v6490_v5 = vld [vmem:[%s9230_s3 + $0x50] sm:$0xff]   ;;  %p303_p4 = scmp.lt.s32.totalorder %s6637_s24, 1  ;;  %vm1595_vm0 = vcmask 1042432  }
   0xf   : > { %v6487_v1 = vld [vmem:[%s9230_s3] sm:$0xff]   ;;  %331 = vst [vmem:[#allocation2] sm:$0xf] %v6647_v2  ;;  %332 = vst [vmem:[#allocation2 + $0x4] sm:$0xf] %v6647_v2  ;;  %5924 = vmatprep.subr.bf16.mxu0 %v6486_v0  ;;  %6444 = vmatprep.subr.bf16.mxu1 %v6486_v0  ;;  %v6489_v4 = vld [vmem:[%s9230_s3 + $0x8] sm:$0xff]  }
  0x10   : > { %333 = vst [vmem:[#allocation2 + $0x8] sm:$0xf] %v6647_v2  ;;  %334 = vst [vmem:[#allocation2 + $0xc] sm:$0xf] %v6647_v2  ;;  %5925 = vmatpush3.bf16.msra.mxu0 %v6487_v1  ;;  %6452 = vmatpush3.bf16.msra.mxu1 %v6487_v1  ;;  %v6491_v6 = vld [vmem:[%s9230_s3 + $0x10] sm:$0xff]   ;;  %v6492_v7 = vld [vmem:[%s9230_s3 + $0x58] sm:$0xff]  }
  0x11   : > { %335 = vst [vmem:[#allocation2 + $0x10] sm:$0xf] %v6647_v2  ;;  %336 = vst [vmem:[#allocation2 + $0x14] sm:$0xf] %v6647_v2  ;;  %5926 = vmatprep.subr.bf16.mxu0 %v6488_v3  ;;  %6445 = vmatprep.subr.bf16.mxu1 %v6488_v3  ;;  %s9354_s24 = smov (!%p303_p4, %s6637_s24), 1  ;;  %v6493_v8 = vld [vmem:[%s9230_s3 + $0x18] sm:$0xff]  }
  0x12   : > { %337 = vst [vmem:[#allocation2 + $0x18] sm:$0xf] %v6647_v2  ;;  %338 = vst [vmem:[#allocation2 + $0x1c] sm:$0xf] %v6647_v2  ;;  %v6494_v9 = vld [vmem:[%s9230_s3 + $0x60] sm:$0xff]   ;;  %s5684_s23 = sshll.u32 %s9354_s24, 7 }
  0x13   : > { %339 = vst [vmem:[#allocation2 + $0x20] sm:$0xf] %v6647_v2  ;;  %340 = vst [vmem:[#allocation2 + $0x24] sm:$0xf] %v6647_v2  ;;  %v6495_v10 = vld [vmem:[%s9230_s3 + $0x20] sm:$0xff]   ;;  %v6496_v11 = vld [vmem:[%s9230_s3 + $0x68] sm:$0xff]   ;;  %s6751_s11 = scalar_lea.vmem %s9227_s0, %s5684_s23  ;;  %s9152_s17 = scalar_lea.vmem %s9232_s5, %s5684_s23 }
  0x14   : > { %341 = vst [vmem:[#allocation2 + $0x28] sm:$0xf] %v6647_v2  ;;  %342 = vst [vmem:[#allocation2 + $0x2c] sm:$0xf] %v6647_v2  ;;  %5927 = vmatpush3.bf16.msra.mxu0 %v6489_v4  ;;  %6453 = vmatpush3.bf16.msra.mxu1 %v6489_v4  ;;  %vm1596_vm1 = vcmask 1046532   ;;  %v6497_v17 = vld [vmem:[%s9230_s3 + $0x28] sm:$0xff]  }
  0x15   : > { %343 = vst [vmem:[#allocation2 + $0x30] sm:$0xf] %v6647_v2  ;;  %344 = vst [vmem:[#allocation2 + $0x34] sm:$0xf] %v6647_v2  ;;  %5928 = vmatprep.subr.bf16.mxu0 %v6490_v5  ;;  %6446 = vmatprep.subr.bf16.mxu1 %v6490_v5  ;;  %vm1144_vm2 = vsmask.f32 3328 }
  0x16   : > { %345 = vst [vmem:[#allocation2 + $0x38] sm:$0xf] %v6647_v2  ;;  %346 = vst [vmem:[#allocation2 + $0x3c] sm:$0xf] %v6647_v2  ;;  %v6753_v12 = vld [vmem:[#allocation2] sm:$0xf] }
  0x17   : > { %347 = vst [vmem:[#allocation2 + $0x40] sm:$0xf] %v6647_v2  ;;  %348 = vst [vmem:[#allocation2 + $0x44] sm:$0xf] %v6647_v2  ;;  %v6755_v13 = vld [vmem:[#allocation2 + $0x4] sm:$0xf] }
  0x18   : > { %349 = vst [vmem:[#allocation2 + $0x48] sm:$0xf] %v6647_v2  ;;  %350 = vst [vmem:[#allocation2 + $0x4c] sm:$0xf] %v6647_v2  ;;  %5929 = vmatpush3.bf16.msra.mxu0 %v6491_v6  ;;  %6454 = vmatpush3.bf16.msra.mxu1 %v6491_v6  ;;  %v1128_v14 = vld [vmem:[#allocation2 + $0x8] sm:$0x1]  ;;  %v5433_v62 = vcombine.low %v6753_v12, %v6755_v13 }
  0x19   : > { %351 = vst [vmem:[#allocation2 + $0x50] sm:$0xf] %v6647_v2  ;;  %352 = vst [vmem:[#allocation2 + $0x54] sm:$0xf] %v6647_v2  ;;  %5930 = vmatprep.subr.bf16.mxu0 %v6492_v7  ;;  %6447 = vmatprep.subr.bf16.mxu1 %v6492_v7  ;;  %v1148_v15 = vshrl.u32 %v6753_v12, 16  ;;  %v1151_v16 = vshll.u32 %v6753_v12, 16 }
  0x1a   : > { %353 = vst [vmem:[#allocation2 + $0x58] sm:$0xf] %v6647_v2  ;;  %354 = vst [vmem:[#allocation2 + $0x5c] sm:$0xf] %v6647_v2  ;;  %v1157_v18 = vshll.u32 %v6755_v13, 16  ;;  %v1161_v19 = vshrl.u32 %v6755_v13, 16 }
  0x1b   : > { %355 = vst [vmem:[#allocation2 + $0x60] sm:$0xf] %v6647_v2  ;;  %356 = vst [vmem:[#allocation2 + $0x64] sm:$0xf] %v6647_v2  ;;  %v1167_v20 = vshll.u32 %v1128_v14, 16  ;;  %v1600_v21 = vrot.slane %v6755_v13, 5 }
  0x1c   : > { %357 = vst [vmem:[#allocation2 + $0x68] sm:$0xf] %v6647_v2  ;;  %358 = vst [vmem:[#allocation2 + $0x6c] sm:$0xf] %v6647_v2  ;;  %5931 = vmatpush3.bf16.msra.mxu0 %v6493_v8  ;;  %6455 = vmatpush3.bf16.msra.mxu1 %v6493_v8  ;;  %v5751_v22 = vld [vmem:[%s6751_s11] sm:$0xff]   ;;  %v6498_v23 = vld [vmem:[%s9230_s3 + $0x70] sm:$0xff]  }
  0x1d   : > { %359 = vst [vmem:[#allocation2 + $0x70] sm:$0xf] %v6647_v2  ;;  %360 = vst [vmem:[#allocation2 + $0x74] sm:$0xf] %v6647_v2  ;;  %5932 = vmatprep.subr.bf16.mxu0 %v6494_v9  ;;  %6448 = vmatprep.subr.bf16.mxu1 %v6494_v9  ;;  %vm1145_vm3 = vsmask.f32 7440  ;;  %v5752_v34 = vunpack.c.l.bf16 %v5751_v22  ;;  %v5753_v35 = vunpack.c.h.bf16 %v5751_v22 }
  0x1e   : > { %361 = vst [vmem:[#allocation2 + $0x78] sm:$0xf] %v6647_v2  ;;  %362 = vst [vmem:[#allocation2 + $0x7c] sm:$0xf] %v6647_v2  ;;  %v1150_v24 = vrot.slane %v1148_v15, 4  ;;  %v1153_v25 = vrot.slane %v1151_v16, 5 }
  0x1f   : > { %363 = vst [vmem:[#allocation2 + $0x80] sm:$0xf] %v6647_v2  ;;  %364 = vst [vmem:[#allocation2 + $0x84] sm:$0xf] %v6647_v2  ;;  %v1603_v27 = vrot.slane %v1128_v14, 5  ;;  %v1159_v28 = vrot.slane %v1157_v18, 5 }
  0x20   : > { %365 = vst [vmem:[#allocation2 + $0x88] sm:$0xf] %v6647_v2  ;;  %366 = vst [vmem:[#allocation2 + $0x8c] sm:$0xf] %v6647_v2  ;;  %5933 = vmatpush3.bf16.msra.mxu0 %v6495_v10  ;;  %6456 = vmatpush3.bf16.msra.mxu1 %v6495_v10  ;;  %v1163_v29 = vrot.slane %v1161_v19, 4  ;;  %v1602_v30 = vrot.slane %v1600_v21, 4  ;;  %v1154_v33 = vor.u32 %v1153_v25, %v1150_v24 }
  0x21   : > { %367 = vst [vmem:[#allocation2 + $0x90] sm:$0xf] %v6647_v2  ;;  %368 = vst [vmem:[#allocation2 + $0x94] sm:$0xf] %v6647_v2  ;;  %5934 = vmatprep.subr.bf16.mxu0 %v6496_v11  ;;  %6449 = vmatprep.subr.bf16.mxu1 %v6496_v11  ;;  %v6780_v31 = vld [vmem:[%s9228_s1] ss:$0 sm:$0xff] }
  0x22   : > { %369 = vst [vmem:[#allocation2 + $0x98] sm:$0xf] %v6647_v2  ;;  %370 = vst [vmem:[#allocation2 + $0x9c] sm:$0xf] %v6647_v2  ;;  %v5904_v32 = vld [vmem:[%s6751_s11 + $0x58] sm:$0xff]   ;;  %v1164_v37 = vor.u32 %v1163_v29, %v1159_v28  ;;  %v1169_v38 = vrot.slane %v1167_v20, 5  ;;  %v456_v43 = vmul.f32 %v5752_v34, %v6780_v31  ;;  %v457_v44 = vmul.f32 %v5753_v35, %v6780_v31 }
  0x23   : > { %371 = vst [vmem:[#allocation2 + $0xa0] sm:$0xf] %v6647_v2  ;;  %372 = vst [vmem:[#allocation2 + $0xa4] sm:$0xf] %v6647_v2  ;;  %v6796_v40 = vld [vmem:[%s9229_s2] ss:$0 sm:$0xff]  ;;  %v5796_v45 = vunpack.c.l.bf16 %v5904_v32  ;;  %v5797_v48 = vunpack.c.h.bf16 %v5904_v32 }
  0x24   : > { %373 = vst [vmem:[#allocation2 + $0xa8] sm:$0xf] %v6647_v2  ;;  %374 = vst [vmem:[#allocation2 + $0xac] sm:$0xf] %v6647_v2  ;;  %vm986_vm6 = vcmask 1040384   ;;  %5935 = vmatpush3.bf16.msra.mxu0 %v6497_v17  ;;  %v6499_v41 = vld [vmem:[%s9230_s3 + $0x30] sm:$0xff]   ;;  %6457 = vmatpush3.bf16.msra.mxu1 %v6497_v17  ;;  %v495_v51 = vadd.f32 %v6796_v40, %v456_v43  ;;  %v496_v52 = vadd.f32 %v6796_v40, %v457_v44 }
  0x25   : > { %375 = vst [vmem:[#allocation2 + $0xb0] sm:$0xf] %v6647_v2  ;;  %376 = vst [vmem:[#allocation2 + $0xb4] sm:$0xf] %v6647_v2  ;;  %v1155_v42 = vrot.slane %v1154_v33, 4  ;;  %vm979_vm7 = vcmask 1043456   ;;  %5936 = vmatprep.subr.bf16.mxu0 %v6498_v23  ;;  %6450 = vmatprep.subr.bf16.mxu1 %v6498_v23  ;;  %v478_v53 = vmul.f32 %v5796_v45, %v6780_v31  ;;  %v479_v55 = vmul.f32 %v5797_v48, %v6780_v31 }
  0x26   : > { %377 = vst [vmem:[#allocation2 + $0xb8] sm:$0xf] %v6647_v2  ;;  %378 = vst [vmem:[#allocation2 + $0xbc] sm:$0xf] %v6647_v2  ;;  %v6500_v46 = vld [vmem:[%s9230_s3 + $0x78] sm:$0xff]   ;;  %v1165_v47 = vrot.slane %v1164_v37, 4 }
  0x27   : > { %379 = vst [vmem:[#allocation2 + $0xc0] sm:$0xf] %v6647_v2  ;;  %380 = vst [vmem:[#allocation2 + $0xc4] sm:$0xf] %v6647_v2  ;;  %v6501_v49 = vld [vmem:[%s9230_s3 + $0x38] sm:$0xff]   ;;  %v527_v57 = vmax.f32 %v495_v51, 0.0  ;;  %v517_v59 = vadd.f32 %v6796_v40, %v478_v53  ;;  %v518_v63 = vadd.f32 %v6796_v40, %v479_v55 }
  0x28   : > { %381 = vst [vmem:[#allocation2 + $0xc8] sm:$0xf] %v6647_v2  ;;  %382 = vst [vmem:[#allocation2 + $0xcc] sm:$0xf] %v6647_v2  ;;  %vm655_vm8 = vsmask.f32 256  ;;  %5937 = vmatpush3.bf16.msra.mxu0 %v6499_v41  ;;  %6458 = vmatpush3.bf16.msra.mxu1 %v6499_v41 }
  0x29   : > { %383 = vst [vmem:[#allocation2 + $0xd0] sm:$0xf] %v6647_v2  ;;  %384 = vst [vmem:[#allocation2 + $0xd4] sm:$0xf] %v6647_v2  ;;  %v528_v58 = vmax.f32 %v496_v52, 0.0  ;;  %v6503_v60 = vld [vmem:[%s9230_s3 + $0xc0] sm:$0xff]   ;;  %5938 = vmatprep.subr.bf16.mxu0 %v6500_v46  ;;  %6451 = vmatprep.subr.bf16.mxu1 %v6500_v46  ;;  %v5686_v0 = vpack.c.bf16 %v527_v57, %v527_v57 }
  0x2a   : > { %vm6771_vm4 = vmor %vm1595_vm0, %vm1596_vm1  ;;  %v6504_v61 = vld [vmem:[%s9230_s3 + $0x140] sm:$0xff]   ;;  %vm656_vm9 = vsmask.f32 4368  ;;  %v549_v2 = vmax.f32 %v517_v59, 0.0  ;;  %v5894_v3 = vld [vmem:[%s6751_s11 + $0x8] sm:$0xff]   ;;  %v550_v4 = vmax.f32 %v518_v63, 0.0 }
  0x2b   : > { %vm6785_vm5 = vmor %vm1144_vm2, %vm1145_vm3  ;;  %v6791_v39 = vsel %vm6771_vm4, %v1602_v30, %v1603_v27  ;;  %v5687_v1 = vpack.c.bf16 %v528_v58, %v528_v58  ;;  %vm980_vm10 = vsmask.f32 7938  ;;  %v5756_v5 = vunpack.c.l.bf16 %v5894_v3  ;;  %v5905_v7 = vld [vmem:[%s6751_s11 + $0x60] sm:$0xff]   ;;  %v982_v14 = vld [vmem:[#allocation2 + $0xc] sm:$0xf]  ;;  %s5349_s23 = sshll.u32 %s9354_s24, 3 }
  0x2c   : > { %v1160_v50 = vsel %vm6785_vm5, %v1155_v42, %v1159_v28  ;;  %v1170_v54 = vsel %vm6785_vm5, %v1165_v47, %v1169_v38  ;;  %v5757_v6 = vunpack.c.h.bf16 %v5894_v3  ;;  %5939 = vmatpush3.bf16.msra.mxu0 %v6501_v49  ;;  %6459 = vmatpush3.bf16.msra.mxu1 %v6501_v49  ;;  %v659_v8 = vshrl.u32 %v5686_v0, 16  ;;  %v6508_v12 = vld [vmem:[%s9230_s3 + $0x100] sm:$0xff]   ;;  %vm6834_vm11 = vmand %vm986_vm6, %vm655_vm8  ;;  %v988_v24 = vld [vmem:[#allocation2 + $0x14] sm:$0x1]  ;;  %s319_s20 = scalar_lea.vmem %s9233_s6, %s5349_s23  ;;  %s323_s28 = scalar_lea.vmem %s9234_s7, %s5349_s23 }
  0x2d   : > { %v5449_v56 = vcombine.low %v1160_v50, %v1170_v54  ;;  %v662_v9 = vshll.u32 %v5686_v0, 16  ;;  %v667_v10 = vshrl.u32 %v5687_v1, 16  ;;  %v670_v11 = vshll.u32 %v5687_v1, 16  ;;  %6036 = vmatprep.subr.bf16.mxu1 %v6503_v60  ;;  %6148 = vmatprep.subr.bf16.mxu0 %v6504_v61  ;;  %vm6841_vm12 = vmor %vm655_vm8, %vm656_vm9  ;;  %v1061_v41 = vld [vmem:[#allocation2 + $0x90] sm:$0xf]  ;;  %v6516_v47 = vld [vmem:[%s9230_s3 + $0x148] sm:$0xff]  }
  0x2e   : > { %v5708_v16 = vpack.c.bf16 %v549_v2, %v549_v2  ;;  %v5709_v17 = vpack.c.bf16 %v550_v4, %v550_v4  ;;  %v458_v18 = vmul.f32 %v5756_v5, %v6780_v31  ;;  %v5800_v19 = vunpack.c.l.bf16 %v5905_v7  ;;  %vm6848_vm13 = vmand %vm979_vm7, %vm980_vm10  ;;  %v1065_v42 = vld [vmem:[#allocation2 + $0x98] sm:$0x1]  ;;  %v5895_v61 = vld [vmem:[%s6751_s11 + $0x10] sm:$0xff]  }
  0x2f   : > { %4166 = vmatprep.mubr.bf16.mxu0 %v5449_v56  ;;  %v661_v22 = vrot.slane %v659_v8, 7  ;;  %v669_v23 = vrot.slane %v667_v10, 7  ;;  %v459_v25 = vmul.f32 %v5757_v6, %v6780_v31  ;;  %v5801_v27 = vunpack.c.h.bf16 %v5905_v7  ;;  %v6518_v56 = vld [vmem:[%s9230_s3 + $0x108] sm:$0xff]  }
  0x30   : > { %4167 = vmatmul.mubr.bf16.vlgmr.msra.gmra.mrb[0].mxu0 %v5433_v62  ;;  %v846_v29 = vshrl.u32 %v5708_v16, 16  ;;  %v849_v30 = vshll.u32 %v5708_v16, 16  ;;  %v854_v32 = vshrl.u32 %v5709_v17, 16  ;;  %v857_v33 = vshll.u32 %v5709_v17, 16  ;;  %v5906_v62 = vld [vmem:[%s6751_s11 + $0x68] sm:$0xff]  }
  0x31   : > { %v664_v34 = vor.u32 %v662_v9, %v661_v22  ;;  %v665_v35 = vrot.slane %v661_v22, 4  ;;  %v672_v37 = vor.u32 %v670_v11, %v669_v23  ;;  %v674_v38 = vrot.slane %v669_v23, 4  ;;  %6149 = vmatpush3.bf16.msra.mxu0 %v6508_v12 }
  0x32   : > { %v848_v43 = vrot.slane %v846_v29, 7  ;;  %v856_v44 = vrot.slane %v854_v32, 7  ;;  %v497_v45 = vadd.f32 %v6796_v40, %v458_v18  ;;  %v498_v46 = vadd.f32 %v6796_v40, %v459_v25  ;;  %6150 = vmatprep.subr.bf16.mxu0 %v6516_v47 }
  0x33   : > { %v673_v48 = vsel %vm6841_vm12, %v665_v35, %v672_v37  ;;  %v983_v49 = vsel %vm6848_vm13, %v664_v34, %v982_v14  ;;  %v989_v50 = vsel %vm6834_vm11, %v674_v38, %v988_v24  ;;  %v480_v51 = vmul.f32 %v5800_v19, %v6780_v31 }
  0x34   : > { %984 = vst [vmem:[#allocation2 + $0xc] sm:$0xf] %v983_v49  ;;  %985 = vst [vmem:[#allocation2 + $0x10] sm:$0xf] %v673_v48  ;;  %v851_v52 = vor.u32 %v849_v30, %v848_v43  ;;  %v852_v53 = vrot.slane %v848_v43, 4  ;;  %v859_v54 = vor.u32 %v857_v33, %v856_v44  ;;  %v861_v55 = vrot.slane %v856_v44, 4 }
  0x35   : > { %990 = vst [vmem:[#allocation2 + $0x14] sm:$0x1] %v989_v50  ;;  %v529_v57 = vmax.f32 %v497_v45, 0.0  ;;  %v530_v58 = vmax.f32 %v498_v46, 0.0  ;;  %v481_v59 = vmul.f32 %v5801_v27, %v6780_v31  ;;  %v519_v60 = vadd.f32 %v6796_v40, %v480_v51  ;;  %6151 = vmatpush3.bf16.msra.mxu0 %v6518_v56 }
  0x36   : > { %v860_v63 = vsel %vm6841_vm12, %v852_v53, %v859_v54  ;;  %v1062_v0 = vsel %vm6848_vm13, %v851_v52, %v1061_v41  ;;  %v1066_v1 = vsel %vm6834_vm11, %v861_v55, %v1065_v42  ;;  %v5760_v2 = vunpack.c.l.bf16 %v5895_v61 }
  0x37   : > { %1063 = vst [vmem:[#allocation2 + $0x90] sm:$0xf] %v1062_v0  ;;  %1064 = vst [vmem:[#allocation2 + $0x94] sm:$0xf] %v860_v63  ;;  %v5688_v3 = vpack.c.bf16 %v529_v57, %v529_v57  ;;  %v5689_v4 = vpack.c.bf16 %v530_v58, %v530_v58  ;;  %v6878_v5 = vadd.f32 %v6796_v40, %v481_v59  ;;  %v551_v6 = vmax.f32 %v519_v60, 0.0 }
  0x38   : > { %1067 = vst [vmem:[#allocation2 + $0x98] sm:$0x1] %v1066_v1  ;;  %v5761_v7 = vunpack.c.h.bf16 %v5895_v61  ;;  %v460_v8 = vmul.f32 %v5760_v2, %v6780_v31  ;;  %v5804_v9 = vunpack.c.l.bf16 %v5906_v62  ;;  %v5805_v14 = vunpack.c.h.bf16 %v5906_v62  ;;  %v991_v0 = vld [vmem:[#allocation2 + $0x18] sm:$0xf] }
  0x39   : > { %v676_v10 = vshrl.u32 %v5688_v3, 16  ;;  %v679_v11 = vshll.u32 %v5688_v3, 16  ;;  %v684_v12 = vshrl.u32 %v5689_v4, 16  ;;  %v687_v16 = vshll.u32 %v5689_v4, 16 }
  0x3a   : > { %v552_v17 = vmax.f32 %v6878_v5, 0.0  ;;  %v6886_v23 = vpack.c.bf16 %v551_v6, %v551_v6  ;;  %v461_v24 = vmul.f32 %v5761_v7, %v6780_v31  ;;  %v6890_v25 = vadd.f32 %v6796_v40, %v460_v8  ;;  %v995_v5 = vld [vmem:[#allocation2 + $0x20] sm:$0x1]  ;;  %v6526_v6 = vld [vmem:[%s9230_s3 + $0x150] sm:$0xff]  }
  0x3b   : > { %v6882_v18 = vld [vmem:[#allocation2 + $0xc] sm:$0xf]  ;;  %v6884_v19 = vld [vmem:[#allocation2 + $0x10] sm:$0xf]  ;;  %v6893_v27 = vmul.f32 %v5804_v9, %v6780_v31  ;;  %v678_v35 = vrot.slane %v676_v10, 7  ;;  %v686_v37 = vrot.slane %v684_v12, 7  ;;  %v6900_v38 = vmul.f32 %v5805_v14, %v6780_v31  ;;  %6152 = vmatprep.subr.bf16.mxu0 %v6526_v6 }
  0x3c   : > { %v1129_v22 = vld [vmem:[#allocation2 + $0x14] sm:$0x1]  ;;  %v1172_v29 = vshrl.u32 %v6882_v18, 16  ;;  %v1175_v30 = vshll.u32 %v6882_v18, 16  ;;  %v1181_v32 = vshll.u32 %v6884_v19, 16  ;;  %v1185_v33 = vshrl.u32 %v6884_v19, 16 }
  0x3d   : > { %v1191_v34 = vshll.u32 %v1129_v22, 16  ;;  %v5434_v50 = vcombine.low %v6882_v18, %v6884_v19  ;;  %v681_v51 = vor.u32 %v679_v11, %v678_v35  ;;  %v689_v59 = vor.u32 %v687_v16, %v686_v37 }
  0x3e   : > { %v1174_v41 = vrot.slane %v1172_v29, 4  ;;  %v1177_v42 = vrot.slane %v1175_v30, 5  ;;  %v1183_v43 = vrot.slane %v1181_v32, 5  ;;  %v1187_v44 = vrot.slane %v1185_v33, 4  ;;  %v6902_v45 = vld [vmem:[#allocation2 + $0x90] sm:$0xf] }
  0x3f   : > { %v1193_v46 = vrot.slane %v1191_v34, 5  ;;  %v6904_v47 = vld [vmem:[#allocation2 + $0x94] sm:$0xf]  ;;  %v6906_v48 = vld [vmem:[#allocation2 + $0x98] sm:$0x1]  ;;  %v1436_v49 = vshrl.u32 %v6902_v45, 16  ;;  %v992_v16 = vsel %vm6848_vm13, %v681_v51, %v991_v0  ;;  %v5711_v22 = vpack.c.bf16 %v552_v17, %v552_v17 }
  0x40   : > { %9250 = vst [vmem:[#allocation3_spill] sm:$0xff] %v6906_v48  ;;  %v1178_v52 = vor.u32 %v1177_v42, %v1174_v41  ;;  %v1188_v53 = vor.u32 %v1187_v44, %v1183_v43  ;;  %v1439_v54 = vshll.u32 %v6902_v45, 16  ;;  %v1445_v55 = vshll.u32 %v6904_v47, 16  ;;  %993 = vst [vmem:[#allocation2 + $0x18] sm:$0xf] %v992_v16  ;;  %v6949_v51 = vld [vmem:[%s6751_s11 + $0x18] sm:$0xff]  }
  0x41   : > { %v1438_v56 = vrot.slane %v1436_v49, 4  ;;  %v1449_v57 = vshrl.u32 %v6904_v47, 16  ;;  %v1455_v58 = vshll.u32 %v6906_v48, 16  ;;  %v5445_v3 = vcombine.low %v6902_v45, %v6904_v47  ;;  %v1068_v33 = vld [vmem:[#allocation2 + $0x9c] sm:$0xf] }
  0x42   : > { %v1179_v60 = vrot.slane %v1178_v52, 4  ;;  %v1189_v61 = vrot.slane %v1188_v53, 4  ;;  %v1441_v62 = vrot.slane %v1439_v54, 5  ;;  %v1447_v63 = vrot.slane %v1445_v55, 5  ;;  %v6509_v52 = vld [vmem:[%s9230_s3 + $0xc8] sm:$0xff]  }
  0x43   : > { %v1451_v1 = vrot.slane %v1449_v57, 4  ;;  %v1457_v2 = vrot.slane %v1455_v58, 5  ;;  %v682_v4 = vrot.slane %v678_v35, 4  ;;  %v691_v10 = vrot.slane %v686_v37, 4  ;;  %v6530_v37 = vld [vmem:[%s9230_s3 + $0x110] sm:$0xff]  }
  0x44   : > { %v1184_v7 = vsel %vm6785_vm5, %v1179_v60, %v1183_v43  ;;  %v1194_v8 = vsel %vm6785_vm5, %v1189_v61, %v1193_v46  ;;  %v1442_v9 = vor.u32 %v1441_v62, %v1438_v56  ;;  %v863_v29 = vshrl.u32 %v6886_v23, 16  ;;  %6153 = vmatpush3.bf16.msra.mxu0 %v6530_v37  ;;  %v6507_v46 = vld [vmem:[%s9230_s3 + $0x80] sm:$0xff]   ;;  %v6510_v56 = vld [vmem:[%s9230_s3 + $0x88] sm:$0xff]  }
  0x45   : > { %v5450_v11 = vcombine.low %v1184_v7, %v1194_v8  ;;  %v1452_v12 = vor.u32 %v1451_v1, %v1447_v63  ;;  %v690_v14 = vsel %vm6841_vm12, %v682_v4, %v689_v59  ;;  %v996_v19 = vsel %vm6834_vm11, %v691_v10, %v995_v5  ;;  %v1072_v60 = vld [vmem:[#allocation2 + $0xa4] sm:$0x1] }
  0x46   : > { %v1443_v18 = vrot.slane %v1442_v9, 4  ;;  %994 = vst [vmem:[#allocation2 + $0x1c] sm:$0xf] %v690_v14  ;;  %997 = vst [vmem:[#allocation2 + $0x20] sm:$0x1] %v996_v19  ;;  %v866_v32 = vshll.u32 %v6886_v23, 16  ;;  %v500_v34 = vadd.f32 %v6796_v40, %v461_v24  ;;  %v6943_v24 = vadd.f32 %v6796_v40, %v6893_v27 }
  0x47   : > { %4174 = vmatprep.mubr.bf16.mxu0 %v5450_v11  ;;  %v1453_v30 = vrot.slane %v1452_v12, 4  ;;  %v531_v35 = vmax.f32 %v6890_v25, 0.0  ;;  %v865_v41 = vrot.slane %v863_v29, 7  ;;  %v871_v42 = vshrl.u32 %v5711_v22, 16  ;;  %v6962_v62 = vld [vmem:[#allocation2 + $0x18] sm:$0xf] }
  0x48   : > { %v1448_v17 = vsel %vm6785_vm5, %v1443_v18, %v1447_v63  ;;  %4175 = vmatmul.mubr.bf16.gmra.mrb[4].mxu0 %v5434_v50  ;;  %v874_v43 = vshll.u32 %v5711_v22, 16  ;;  %v532_v44 = vmax.f32 %v500_v34, 0.0  ;;  %v522_v27 = vadd.f32 %v6796_v40, %v6900_v38  ;;  %v998_v8 = vld [vmem:[#allocation2 + $0x24] sm:$0xf]  ;;  %v6511_v12 = vld [vmem:[%s9230_s3 + $0xd0] sm:$0xff]  }
  0x49   : > { %v1458_v23 = vsel %vm6785_vm5, %v1453_v30, %v1457_v2  ;;  %v5690_v45 = vpack.c.bf16 %v531_v35, %v531_v35  ;;  %v868_v47 = vor.u32 %v866_v32, %v865_v41  ;;  %v869_v49 = vrot.slane %v865_v41, 4  ;;  %v6514_v29 = vld [vmem:[%s9230_s3 + $0x90] sm:$0xff]   ;;  %v1002_v30 = vld [vmem:[#allocation2 + $0x2c] sm:$0x1] }
  0x4a   : > { %v5461_v25 = vcombine.low %v1448_v17, %v1458_v23  ;;  %v873_v50 = vrot.slane %v871_v42, 7  ;;  %v5691_v53 = vpack.c.bf16 %v532_v44, %v532_v44  ;;  %v553_v61 = vmax.f32 %v6943_v24, 0.0  ;;  %v6537_v17 = vld [vmem:[%s9230_s3 + $0x158] sm:$0xff]  }
  0x4b   : > { %v693_v54 = vshrl.u32 %v5690_v45, 16  ;;  %v696_v55 = vshll.u32 %v5690_v45, 16  ;;  %v1069_v59 = vsel %vm6848_vm13, %v868_v47, %v1068_v33  ;;  %v5764_v1 = vunpack.c.l.bf16 %v6949_v51  ;;  %v6515_v33 = vld [vmem:[%s9230_s3 + $0xd8] sm:$0xff]   ;;  %6154 = vmatprep.subr.bf16.mxu0 %v6537_v17 }
  0x4c   : > { %4262 = vmatprep.mubr.bf16.mxu1 %v5461_v25  ;;  %v876_v57 = vor.u32 %v874_v43, %v873_v50  ;;  %v878_v58 = vrot.slane %v873_v50, 4  ;;  %1070 = vst [vmem:[#allocation2 + $0x9c] sm:$0xf] %v1069_v59  ;;  %v701_v0 = vshrl.u32 %v5691_v53, 16  ;;  %v5765_v2 = vunpack.c.h.bf16 %v6949_v51  ;;  %v6517_v59 = vld [vmem:[%s9230_s3 + $0x98] sm:$0xff]   ;;  %v6522_v51 = vld [vmem:[%s9230_s3 + $0xa0] sm:$0xff]  }
  0x4d   : > { %4263 = vmatmul.mubr.bf16.vlgmr.msra.gmra.mrb[0].mxu1 %v5445_v3  ;;  %v6964_v63 = vld [vmem:[#allocation2 + $0x1c] sm:$0xf]  ;;  %v695_v38 = vrot.slane %v693_v54, 7  ;;  %v6968_v4 = vld [vmem:[#allocation2 + $0x20] sm:$0x1]  ;;  %v1196_v5 = vshrl.u32 %v6962_v62, 16  ;;  %v5712_v24 = vpack.c.bf16 %v553_v61, %v553_v61  ;;  %v462_v25 = vmul.f32 %v5764_v1, %v6780_v31 }
  0x4e   : > { %6037 = vmatpush3.bf16.msra.mxu1 %v6507_v46  ;;  %v1199_v6 = vshll.u32 %v6962_v62, 16  ;;  %v1205_v3 = vshll.u32 %v6964_v63, 16  ;;  %v1209_v7 = vshrl.u32 %v6964_v63, 16  ;;  %v1215_v9 = vshll.u32 %v6968_v4, 16  ;;  %v6538_v46 = vld [vmem:[%s9230_s3 + $0x118] sm:$0xff]  }
  0x4f   : > { %6038 = vmatprep.subr.bf16.mxu1 %v6509_v52  ;;  %v877_v10 = vsel %vm6841_vm12, %v869_v49, %v876_v57  ;;  %v1073_v11 = vsel %vm6834_vm11, %v878_v58, %v1072_v60  ;;  %v5435_v14 = vcombine.low %v6962_v62, %v6964_v63  ;;  %v1198_v16 = vrot.slane %v1196_v5, 4  ;;  %6155 = vmatpush3.bf16.msra.mxu0 %v6538_v46  ;;  %v6523_v62 = vld [vmem:[%s9230_s3 + $0xe8] sm:$0xff]  }
  0x50   : > { %v1201_v18 = vrot.slane %v1199_v6, 5  ;;  %v1207_v19 = vrot.slane %v1205_v3, 5  ;;  %v1211_v22 = vrot.slane %v1209_v7, 4  ;;  %1071 = vst [vmem:[#allocation2 + $0xa0] sm:$0xf] %v877_v10  ;;  %v1217_v32 = vrot.slane %v1215_v9, 5 }
  0x51   : > { %1074 = vst [vmem:[#allocation2 + $0xa4] sm:$0x1] %v1073_v11  ;;  %v698_v34 = vor.u32 %v696_v55, %v695_v38  ;;  %v699_v35 = vrot.slane %v695_v38, 4  ;;  %v703_v37 = vrot.slane %v701_v0, 7  ;;  %v704_v43 = vshll.u32 %v5691_v53, 16  ;;  %v6519_v38 = vld [vmem:[%s9230_s3 + $0xe0] sm:$0xff]  }
  0x52   : > { %6039 = vmatpush3.bf16.msra.mxu1 %v6510_v56  ;;  %v1202_v41 = vor.u32 %v1201_v18, %v1198_v16  ;;  %v1212_v42 = vor.u32 %v1211_v22, %v1207_v19  ;;  %v554_v23 = vmax.f32 %v522_v27, 0.0  ;;  %v880_v56 = vshrl.u32 %v5712_v24, 16  ;;  %v6542_v11 = vld [vmem:[%s9230_s3 + $0x160] sm:$0xff]   ;;  %v1075_v22 = vld [vmem:[#allocation2 + $0xa8] sm:$0xf] }
  0x53   : > { %6040 = vmatprep.subr.bf16.mxu1 %v6511_v12  ;;  %v708_v44 = vrot.slane %v703_v37, 4  ;;  %v999_v45 = vsel %vm6848_vm13, %v698_v34, %v998_v8  ;;  %v6999_v50 = vld [vmem:[#allocation2 + $0x9c] sm:$0xf]  ;;  %v706_v52 = vor.u32 %v704_v43, %v703_v37  ;;  %v883_v61 = vshll.u32 %v5712_v24, 16  ;;  %6156 = vmatprep.subr.bf16.mxu0 %v6542_v11 }
  0x54   : > { %v1203_v47 = vrot.slane %v1202_v41, 4  ;;  %v1213_v49 = vrot.slane %v1212_v42, 4  ;;  %1000 = vst [vmem:[#allocation2 + $0x24] sm:$0xf] %v999_v45  ;;  %v5713_v53 = vpack.c.bf16 %v554_v23, %v554_v23  ;;  %v1460_v54 = vshrl.u32 %v6999_v50, 16 }
  0x55   : > { %v1463_v55 = vshll.u32 %v6999_v50, 16  ;;  %v1003_v27 = vsel %vm6834_vm11, %v708_v44, %v1002_v30  ;;  %v707_v60 = vsel %vm6841_vm12, %v699_v35, %v706_v52  ;;  %v463_v10 = vmul.f32 %v5765_v2, %v6780_v31  ;;  %v1079_v23 = vld [vmem:[#allocation2 + $0xb0] sm:$0x1]  ;;  %v6524_v44 = vld [vmem:[%s9230_s3 + $0xa8] sm:$0xff]  }
  0x56   : > { %v1208_v57 = vsel %vm6785_vm5, %v1203_v47, %v1207_v19  ;;  %v1218_v58 = vsel %vm6785_vm5, %v1213_v49, %v1217_v32  ;;  %6041 = vmatpush3.bf16.msra.mxu1 %v6514_v29  ;;  %1004 = vst [vmem:[#allocation2 + $0x2c] sm:$0x1] %v1003_v27  ;;  %v1462_v6 = vrot.slane %v1460_v54, 4  ;;  %1001 = vst [vmem:[#allocation2 + $0x28] sm:$0xf] %v707_v60  ;;  %v882_v16 = vrot.slane %v880_v56, 7 }
  0x57   : > { %v5451_v0 = vcombine.low %v1208_v57, %v1218_v58  ;;  %v7017_v1 = vld [vmem:[#allocation2 + $0xa0] sm:$0xf]  ;;  %v1465_v3 = vrot.slane %v1463_v55, 5  ;;  %6042 = vmatprep.subr.bf16.mxu1 %v6515_v33  ;;  %v888_v18 = vshrl.u32 %v5713_v53, 16  ;;  %v891_v19 = vshll.u32 %v5713_v53, 16  ;;  %v5907_v52 = vld [vmem:[%s6751_s11 + $0x70] sm:$0xff]  }
  0x58   : > { %v1141_v5 = vld [vmem:[#allocation2 + $0xa4] sm:$0x1]  ;;  %v1469_v7 = vshll.u32 %v7017_v1, 16  ;;  %v1473_v8 = vshrl.u32 %v7017_v1, 16  ;;  %v501_v2 = vadd.f32 %v6796_v40, %v462_v25  ;;  %v885_v37 = vor.u32 %v883_v61, %v882_v16  ;;  %v6525_v61 = vld [vmem:[%s9230_s3 + $0xf0] sm:$0xff]  }
  0x59   : > { %v1479_v9 = vshll.u32 %v1141_v5, 16  ;;  %4182 = vmatprep.mubr.bf16.mxu0 %v5451_v0  ;;  %v1466_v12 = vor.u32 %v1465_v3, %v1462_v6  ;;  %v6545_v33 = vld [vmem:[%s9230_s3 + $0x120] sm:$0xff]   ;;  %v886_v17 = vrot.slane %v882_v16, 4  ;;  %v890_v41 = vrot.slane %v888_v18, 7 }
  0x5a   : > { %v1471_v29 = vrot.slane %v1469_v7, 5  ;;  %v1475_v30 = vrot.slane %v1473_v8, 4  ;;  %4183 = vmatmul.mubr.bf16.gmra.mrb[8].mxu0 %v5435_v14  ;;  %6043 = vmatpush3.bf16.msra.mxu1 %v6517_v59  ;;  %v502_v45 = vadd.f32 %v6796_v40, %v463_v10  ;;  %v1076_v49 = vsel %vm6848_vm13, %v885_v37, %v1075_v22  ;;  %v6549_v7 = vld [vmem:[%s9230_s3 + $0x168] sm:$0xff]  }
  0x5b   : > { %v1481_v32 = vrot.slane %v1479_v9, 5  ;;  %v1467_v34 = vrot.slane %v1466_v12, 4  ;;  %v7037_v35 = vld [vmem:[#allocation2 + $0x24] sm:$0xf]  ;;  %6044 = vmatprep.subr.bf16.mxu1 %v6519_v38  ;;  %6157 = vmatpush3.bf16.msra.mxu0 %v6545_v33  ;;  %v893_v46 = vor.u32 %v891_v19, %v890_v41  ;;  %v895_v47 = vrot.slane %v890_v41, 4  ;;  %v6529_v12 = vld [vmem:[%s9230_s3 + $0xb0] sm:$0xff]  }
  0x5c   : > { %v1476_v14 = vor.u32 %v1475_v30, %v1471_v29  ;;  %v1220_v42 = vshrl.u32 %v7037_v35, 16  ;;  %v1223_v43 = vshll.u32 %v7037_v35, 16  ;;  %1077 = vst [vmem:[#allocation2 + $0xa8] sm:$0xf] %v1076_v49  ;;  %v7068_v38 = vld [vmem:[%s6751_s11 + $0x20] sm:$0xff]   ;;  %v5446_v5 = vcombine.low %v6999_v50, %v7017_v1  ;;  %v6550_v50 = vld [vmem:[%s9230_s3 + $0x128] sm:$0xff]   ;;  %6158 = vmatprep.subr.bf16.mxu0 %v6549_v7 }
  0x5d   : > { %v1472_v24 = vsel %vm6785_vm5, %v1467_v34, %v1471_v29  ;;  %v7050_v25 = vld [vmem:[#allocation2 + $0x2c] sm:$0x1]  ;;  %v7055_v54 = vld [vmem:[#allocation2 + $0x28] sm:$0xf]  ;;  %v894_v59 = vsel %vm6841_vm12, %v886_v17, %v893_v46  ;;  %v1080_v60 = vsel %vm6834_vm11, %v895_v47, %v1079_v23  ;;  %v533_v11 = vmax.f32 %v501_v2, 0.0 }
  0x5e   : > { %v1477_v53 = vrot.slane %v1476_v14, 4  ;;  %v1222_v55 = vrot.slane %v1220_v42, 4  ;;  %v1225_v27 = vrot.slane %v1223_v43, 5  ;;  %v1239_v56 = vshll.u32 %v7050_v25, 16  ;;  %6045 = vmatpush3.bf16.msra.mxu1 %v6522_v51  ;;  %1078 = vst [vmem:[#allocation2 + $0xac] sm:$0xf] %v894_v59 }
  0x5f   : > { %v1229_v57 = vshll.u32 %v7055_v54, 16  ;;  %v1233_v58 = vshrl.u32 %v7055_v54, 16  ;;  %6046 = vmatprep.subr.bf16.mxu1 %v6523_v62  ;;  %1081 = vst [vmem:[#allocation2 + $0xb0] sm:$0x1] %v1080_v60  ;;  %v534_v16 = vmax.f32 %v502_v45, 0.0  ;;  %v5808_v18 = vunpack.c.l.bf16 %v5907_v52  ;;  %v6532_v42 = vld [vmem:[%s9230_s3 + $0xb8] sm:$0xff]   ;;  %6159 = vmatpush3.bf16.msra.mxu0 %v6550_v50 }
  0x60   : > { %v1482_v0 = vsel %vm6785_vm5, %v1477_v53, %v1481_v32  ;;  %v1226_v6 = vor.u32 %v1225_v27, %v1222_v55  ;;  %v1241_v3 = vrot.slane %v1239_v56, 5  ;;  %v5809_v19 = vunpack.c.h.bf16 %v5907_v52  ;;  %v6531_v32 = vld [vmem:[%s9230_s3 + $0xf8] sm:$0xff]   ;;  %v6534_v27 = vld [vmem:[%s9230_s3 + $0x1c0] sm:$0xff]   ;;  %v6556_v50 = vld [vmem:[%s9230_s3 + $0x170] sm:$0xff]  }
  0x61   : > { %v5462_v8 = vcombine.low %v1472_v24, %v1482_v0  ;;  %v1231_v9 = vrot.slane %v1229_v57, 5  ;;  %v1235_v10 = vrot.slane %v1233_v58, 4  ;;  %v5436_v29 = vcombine.low %v7037_v35, %v7055_v54  ;;  %v1005_v24 = vld [vmem:[#allocation2 + $0x30] sm:$0xf]  ;;  %6160 = vmatprep.subr.bf16.mxu0 %v6556_v50  ;;  %v8044_v20 = vld [vmem:[#allocation2 + $0x24] sm:$0xf] }
  0x62   : > { %v1227_v1 = vrot.slane %v1226_v6, 4  ;;  %6047 = vmatpush3.bf16.msra.mxu1 %v6524_v44  ;;  %v5692_v30 = vpack.c.bf16 %v533_v11, %v533_v11  ;;  %v5768_v51 = vunpack.c.l.bf16 %v7068_v38  ;;  %v5693_v2 = vpack.c.bf16 %v534_v16, %v534_v16 }
  0x63   : > { %4270 = vmatprep.mubr.bf16.mxu1 %v5462_v8  ;;  %v1236_v22 = vor.u32 %v1235_v10, %v1231_v9  ;;  %6048 = vmatprep.subr.bf16.mxu1 %v6525_v61  ;;  %v484_v33 = vmul.f32 %v5808_v18, %v6780_v31  ;;  %v485_v34 = vmul.f32 %v5809_v19, %v6780_v31  ;;  %v5769_v37 = vunpack.c.h.bf16 %v7068_v38  ;;  %v7094_v41 = vld [vmem:[#allocation2 + $0xa8] sm:$0xf]  ;;  %v1009_v8 = vld [vmem:[#allocation2 + $0x38] sm:$0x1] }
  0x64   : > { %4271 = vmatmul.mubr.bf16.gmra.mrb[4].mxu1 %v5446_v5  ;;  %v1232_v17 = vsel %vm6785_vm5, %v1227_v1, %v1231_v9  ;;  %v710_v62 = vshrl.u32 %v5692_v30, 16  ;;  %v713_v14 = vshll.u32 %v5692_v30, 16  ;;  %v1484_v43 = vshrl.u32 %v7094_v41, 16 }
  0x65   : > { %v1237_v35 = vrot.slane %v1236_v22, 4  ;;  %v1487_v23 = vshll.u32 %v7094_v41, 16  ;;  %v718_v44 = vshrl.u32 %v5693_v2, 16  ;;  %v721_v45 = vshll.u32 %v5693_v2, 16  ;;  %v7103_v47 = vld [vmem:[#allocation2 + $0xac] sm:$0xf] }
  0x66   : > { %6049 = vmatpush3.bf16.msra.mxu1 %v6529_v12  ;;  %v1142_v49 = vld [vmem:[#allocation2 + $0xb0] sm:$0x1]  ;;  %v712_v52 = vrot.slane %v710_v62, 7  ;;  %v523_v53 = vadd.f32 %v6796_v40, %v484_v33  ;;  %v524_v55 = vadd.f32 %v6796_v40, %v485_v34  ;;  %v1486_v57 = vrot.slane %v1484_v43, 4 }
  0x67   : > { %v1242_v46 = vsel %vm6785_vm5, %v1237_v35, %v1241_v3  ;;  %6050 = vmatprep.subr.bf16.mxu1 %v6531_v32  ;;  %v1489_v58 = vrot.slane %v1487_v23, 5  ;;  %v1493_v59 = vshll.u32 %v7103_v47, 16  ;;  %v1497_v60 = vshrl.u32 %v7103_v47, 16  ;;  %v6558_v22 = vld [vmem:[%s9230_s3 + $0x130] sm:$0xff]   ;;  %v7129_v35 = vld [vmem:[#allocation2 + $0xc] sm:$0xf] }
  0x68   : > { %v5452_v56 = vcombine.low %v1232_v17, %v1242_v46  ;;  %v1503_v61 = vshll.u32 %v1142_v49, 16  ;;  %v715_v38 = vor.u32 %v713_v14, %v712_v52  ;;  %v464_v0 = vmul.f32 %v5768_v51, %v6780_v31  ;;  %6161 = vmatpush3.bf16.msra.mxu0 %v6558_v22 }
  0x69   : > { %v1490_v5 = vor.u32 %v1489_v58, %v1486_v57  ;;  %v1495_v6 = vrot.slane %v1493_v59, 5  ;;  %v716_v3 = vrot.slane %v712_v52, 4  ;;  %v720_v7 = vrot.slane %v718_v44, 7 }
  0x6a   : > { %4190 = vmatprep.mubr.bf16.mxu0 %v5452_v56  ;;  %6051 = vmatpush3.bf16.msra.mxu1 %v6532_v42  ;;  %v1499_v9 = vrot.slane %v1497_v60, 4  ;;  %v1505_v10 = vrot.slane %v1503_v61, 5  ;;  %v1006_v11 = vsel %vm6848_vm13, %v715_v38, %v1005_v24  ;;  %v555_v12 = vmax.f32 %v523_v53, 0.0  ;;  %v1086_v60 = vld [vmem:[#allocation2 + $0xbc] sm:$0x1] }
  0x6b   : > { %4191 = vmatmul.mubr.bf16.gmra.mrb[12].mxu0 %v5436_v29  ;;  %6260 = vmatprep.subr.bf16.mxu1 %v6534_v27  ;;  %v1491_v1 = vrot.slane %v1490_v5, 4  ;;  %v723_v16 = vor.u32 %v721_v45, %v720_v7  ;;  %v725_v18 = vrot.slane %v720_v7, 4  ;;  %1007 = vst [vmem:[#allocation2 + $0x30] sm:$0xf] %v1006_v11  ;;  %v556_v19 = vmax.f32 %v524_v55, 0.0 }
  0x6c   : > { %v1500_v30 = vor.u32 %v1499_v9, %v1495_v6  ;;  %v5714_v29 = vpack.c.bf16 %v555_v12, %v555_v12  ;;  %v465_v32 = vmul.f32 %v5769_v37, %v6780_v31  ;;  %v503_v51 = vadd.f32 %v6796_v40, %v464_v0  ;;  %v7134_v40 = vld [vmem:[%s9229_s2] ss:$0 sm:$0xff]  ;;  %v1082_v55 = vld [vmem:[#allocation2 + $0xb4] sm:$0xf]  ;;  %v6563_v9 = vld [vmem:[%s9230_s3 + $0x178] sm:$0xff]  }
  0x6d   : > { %v1496_v2 = vsel %vm6785_vm5, %v1491_v1, %v1495_v6  ;;  %v724_v33 = vsel %vm6841_vm12, %v716_v3, %v723_v16  ;;  %v1010_v34 = vsel %vm6834_vm11, %v725_v18, %v1009_v8  ;;  %v5715_v17 = vpack.c.bf16 %v556_v19, %v556_v19  ;;  %6162 = vmatprep.subr.bf16.mxu0 %v6563_v9 }
  0x6e   : > { %v1501_v62 = vrot.slane %v1500_v30, 4  ;;  %1008 = vst [vmem:[#allocation2 + $0x34] sm:$0xf] %v724_v33  ;;  %1011 = vst [vmem:[#allocation2 + $0x38] sm:$0x1] %v1010_v34  ;;  %v897_v31 = vshrl.u32 %v5714_v29, 16  ;;  %v504_v14 = vadd.f32 %v7134_v40, %v465_v32  ;;  %v5447_v24 = vcombine.low %v7094_v41, %v7103_v47 }
  0x6f   : > { %v900_v37 = vshll.u32 %v5714_v29, 16  ;;  %v905_v42 = vshrl.u32 %v5715_v17, 16  ;;  %v908_v43 = vshll.u32 %v5715_v17, 16  ;;  %v535_v23 = vmax.f32 %v503_v51, 0.0  ;;  %v1012_v30 = vld [vmem:[#allocation2 + $0x3c] sm:$0xf] }
  0x70   : > { %v1759_v44 = vshrl.u32 %v7129_v35, 16  ;;  %v1506_v45 = vsel %vm6785_vm5, %v1501_v62, %v1505_v10  ;;  %v899_v46 = vrot.slane %v897_v31, 7  ;;  %v536_v49 = vmax.f32 %v504_v14, 0.0  ;;  %v6564_v32 = vld [vmem:[%s9230_s3 + $0x138] sm:$0xff]   ;;  %v1016_v17 = vld [vmem:[#allocation2 + $0x44] sm:$0x1] }
  0x71   : > { %v5463_v52 = vcombine.low %v1496_v2, %v1506_v45  ;;  %v907_v53 = vrot.slane %v905_v42, 7  ;;  %v5694_v27 = vpack.c.bf16 %v535_v23, %v535_v23  ;;  %v1762_v56 = vshll.u32 %v7129_v35, 16  ;;  %v7168_v62 = vld [vmem:[#allocation2 + $0x10] sm:$0xf]  ;;  %6163 = vmatpush3.bf16.msra.mxu0 %v6564_v32  ;;  %v1030_v31 = vld [vmem:[#allocation2 + $0x5c] sm:$0x1] }
  0x72   : > { %v7143_v57 = vld [vmem:[#allocation2 + $0x30] sm:$0xf]  ;;  %v902_v58 = vor.u32 %v900_v37, %v899_v46  ;;  %v903_v59 = vrot.slane %v899_v46, 4  ;;  %v5695_v61 = vpack.c.bf16 %v536_v49, %v536_v49  ;;  %v7145_v38 = vrot.slane %v1759_v44, 4 }
  0x73   : > { %4278 = vmatprep.mubr.bf16.mxu1 %v5463_v52  ;;  %v1244_v0 = vshrl.u32 %v7143_v57, 16  ;;  %v1247_v41 = vshll.u32 %v7143_v57, 16  ;;  %v910_v47 = vor.u32 %v908_v43, %v907_v53  ;;  %v912_v5 = vrot.slane %v907_v53, 4  ;;  %v6568_v43 = vld [vmem:[%s9230_s3 + $0x200] sm:$0xff]  }
  0x74   : > { %4279 = vmatmul.mubr.bf16.gmra.mrb[8].mxu1 %v5447_v24  ;;  %v1083_v6 = vsel %vm6848_vm13, %v902_v58, %v1082_v55  ;;  %v727_v3 = vshrl.u32 %v5694_v27, 16  ;;  %v730_v7 = vshll.u32 %v5694_v27, 16  ;;  %v735_v8 = vshrl.u32 %v5695_v61, 16  ;;  %v5898_v55 = vld [vmem:[%s6751_s11 + $0x28] sm:$0xff]   ;;  %6396 = vmatprep.subr.bf16.mxu0 %v6568_v43 }
  0x75   : > { %v7154_v10 = vld [vmem:[#allocation2 + $0x34] sm:$0xf]  ;;  %v7156_v11 = vld [vmem:[#allocation2 + $0x38] sm:$0x1]  ;;  %v1246_v12 = vrot.slane %v1244_v0, 4  ;;  %v1249_v50 = vrot.slane %v1247_v41, 5  ;;  %v911_v1 = vsel %vm6841_vm12, %v903_v59, %v910_v47  ;;  %v1087_v16 = vsel %vm6834_vm11, %v912_v5, %v1086_v60 }
  0x76   : > { %1084 = vst [vmem:[#allocation2 + $0xb4] sm:$0xf] %v1083_v6  ;;  %v1253_v18 = vshll.u32 %v7154_v10, 16  ;;  %v1257_v19 = vshrl.u32 %v7154_v10, 16  ;;  %v1263_v22 = vshll.u32 %v7156_v11, 16  ;;  %v1764_v29 = vrot.slane %v1762_v56, 5 }
  0x77   : > { %1085 = vst [vmem:[#allocation2 + $0xb8] sm:$0xf] %v911_v1  ;;  %1088 = vst [vmem:[#allocation2 + $0xbc] sm:$0x1] %v1087_v16  ;;  %v1250_v51 = vor.u32 %v1249_v50, %v1246_v12  ;;  %v729_v2 = vrot.slane %v727_v3, 7  ;;  %v737_v33 = vrot.slane %v735_v8, 7  ;;  %v5437_v42 = vcombine.low %v7143_v57, %v7154_v10 }
  0x78   : > { %v738_v34 = vshll.u32 %v5695_v61, 16  ;;  %v1255_v37 = vrot.slane %v1253_v18, 5  ;;  %v1259_v14 = vrot.slane %v1257_v19, 4  ;;  %v1265_v49 = vrot.slane %v1263_v22, 5  ;;  %v1531_v1 = vld [vmem:[#allocation2] sm:$0xe] }
  0x79   : > { %v1251_v23 = vrot.slane %v1250_v51, 4  ;;  %v732_v44 = vor.u32 %v730_v7, %v729_v2  ;;  %v733_v45 = vrot.slane %v729_v2, 4  ;;  %v742_v52 = vrot.slane %v737_v33, 4  ;;  %v7204_v2 = vld [vmem:[#allocation2 + $0x18] sm:$0xf] }
  0x7a   : > { %v740_v24 = vor.u32 %v738_v34, %v737_v33  ;;  %v1260_v46 = vor.u32 %v1259_v14, %v1255_v37  ;;  %v1768_v53 = vshll.u32 %v7168_v62, 16  ;;  %v1765_v58 = vor.u32 %v1764_v29, %v7145_v38 }
  0x7b   : > { %v1256_v27 = vsel %vm6785_vm5, %v1251_v23, %v1255_v37  ;;  %v1013_v57 = vsel %vm6848_vm13, %v732_v44, %v1012_v30  ;;  %v1017_v61 = vsel %vm6834_vm11, %v742_v52, %v1016_v17  ;;  %v1772_v41 = vshrl.u32 %v7168_v62, 16  ;;  %v7209_v17 = vld [vmem:[%s9228_s1] ss:$0 sm:$0xff] }
  0x7c   : > { %v741_v56 = vsel %vm6841_vm12, %v733_v45, %v740_v24  ;;  %v1261_v59 = vrot.slane %v1260_v46, 4  ;;  %1014 = vst [vmem:[#allocation2 + $0x3c] sm:$0xf] %v1013_v57  ;;  %v7189_v0 = vrot.slane %v1768_v53, 5  ;;  %1018 = vst [vmem:[#allocation2 + $0x44] sm:$0x1] %v1017_v61  ;;  %v5772_v38 = vunpack.c.l.bf16 %v5898_v55 }
  0x7d   : > { %v7185_v60 = vld [vmem:[#allocation2 + $0xb4] sm:$0xf]  ;;  %1015 = vst [vmem:[#allocation2 + $0x40] sm:$0xf] %v741_v56  ;;  %v5773_v7 = vunpack.c.h.bf16 %v5898_v55  ;;  %v7200_v22 = vrot.slane %v1765_v58, 4  ;;  %v1774_v32 = vrot.slane %v1772_v41, 4  ;;  %v5481_v51 = vcombine.low %v7129_v35, %v7168_v62 }
  0x7e   : > { %v7192_v47 = vld [vmem:[#allocation2 + $0xb8] sm:$0xf]  ;;  %v1143_v5 = vld [vmem:[#allocation2 + $0xbc] sm:$0x1]  ;;  %v1508_v6 = vshrl.u32 %v7185_v60, 16  ;;  %v1511_v3 = vshll.u32 %v7185_v60, 16  ;;  %v1266_v8 = vsel %vm6785_vm5, %v1261_v59, %v1265_v49  ;;  %v466_v37 = vmul.f32 %v7209_v17, %v5772_v38 }
  0x7f   : > { %v1517_v9 = vshll.u32 %v7192_v47, 16  ;;  %v1521_v12 = vshrl.u32 %v7192_v47, 16  ;;  %v1527_v50 = vshll.u32 %v1143_v5, 16  ;;  %v5453_v16 = vcombine.low %v1256_v27, %v1266_v8 }
  0x80   : > { %v1510_v18 = vrot.slane %v1508_v6, 4  ;;  %v1513_v19 = vrot.slane %v1511_v3, 5  ;;  %v5385_v34 = vrot.slane %v1531_v1, 9  ;;  %v467_v14 = vmul.f32 %v7209_v17, %v5773_v7  ;;  %v7242_v7 = vld [vmem:[#allocation2 + $0x1c] sm:$0xf] }
  0x81   : > { %v1519_v30 = vrot.slane %v1517_v9, 5  ;;  %v1523_v29 = vrot.slane %v1521_v12, 4  ;;  %4198 = vmatprep.mubr.bf16.mxu0 %v5453_v16  ;;  %v1529_v23 = vrot.slane %v1527_v50, 5  ;;  %v5448_v35 = vcombine.low %v7185_v60, %v7192_v47  ;;  %v1532_v50 = vld [vmem:[#allocation2 + $0xc] sm:$0xe] }
  0x82   : > { %v1514_v33 = vor.u32 %v1513_v19, %v1510_v18  ;;  %4199 = vmatmul.mubr.bf16.gmra.mrb[16].mxu0 %v5437_v42  ;;  %v1775_v62 = vor.u32 %v1774_v32, %v7189_v0  ;;  %v505_v46 = vadd.f32 %v7134_v40, %v466_v37  ;;  %v506_v49 = vadd.f32 %v7134_v40, %v467_v14  ;;  %v6608_v14 = vld [vmem:[#allocation2 + $0x10] sm:$0xf] }
  0x83   : > { %v1524_v43 = vor.u32 %v1523_v29, %v1519_v30  ;;  %v7216_v45 = vld [vmem:[#allocation2 + $0x3c] sm:$0xf]  ;;  %v1783_v52 = vshrl.u32 %v7204_v2, 16  ;;  %v7223_v55 = vld [vmem:[#allocation2 + $0x44] sm:$0x1]  ;;  %v7236_v60 = vsel %vm6771_vm4, %v5385_v34, %v1600_v21  ;;  %v1786_v8 = vshll.u32 %v7204_v2, 16 }
  0x84   : > { %v1515_v44 = vrot.slane %v1514_v33, 4  ;;  %v7218_v24 = vld [vmem:[#allocation2 + $0x40] sm:$0xf]  ;;  %v1268_v42 = vshrl.u32 %v7216_v45, 16  ;;  %v1271_v27 = vshll.u32 %v7216_v45, 16  ;;  %v1287_v59 = vshll.u32 %v7223_v55, 16 }
  0x85   : > { %v1525_v53 = vrot.slane %v1524_v43, 4  ;;  %v1277_v56 = vshll.u32 %v7218_v24, 16  ;;  %v1281_v58 = vshrl.u32 %v7218_v24, 16  ;;  %v7240_v38 = vrot.slane %v1775_v62, 4  ;;  %v5899_v34 = vld [vmem:[%s6751_s11 + $0x30] sm:$0xff]  }
  0x86   : > { %v1520_v57 = vsel %vm6785_vm5, %v1515_v44, %v1519_v30  ;;  %v1270_v41 = vrot.slane %v1268_v42, 4  ;;  %v1273_v47 = vrot.slane %v1271_v27, 5  ;;  %v5465_v21 = vcombine.low %v7236_v60, %v6791_v39  ;;  %v7265_v60 = vld [vmem:[#allocation2 + $0x24] sm:$0xf] }
  0x87   : > { %v1530_v61 = vsel %vm6785_vm5, %v1525_v53, %v1529_v23  ;;  %v1279_v5 = vrot.slane %v1277_v56, 5  ;;  %v1283_v3 = vrot.slane %v1281_v58, 4  ;;  %v537_v9 = vmax.f32 %v505_v46, 0.0  ;;  %v6609_v23 = vld [vmem:[#allocation2 + $0x14] sm:$0x1] }
  0x88   : > { %v5464_v6 = vcombine.low %v1520_v57, %v1530_v61  ;;  %v1274_v13 = vor.u32 %v1273_v47, %v1270_v41  ;;  %v538_v12 = vmax.f32 %v506_v49, 0.0  ;;  %v1289_v16 = vrot.slane %v1287_v59, 5  ;;  %v1023_v58 = vld [vmem:[#allocation2 + $0x50] sm:$0x1] }
  0x89   : > { %v1284_v1 = vor.u32 %v1283_v3, %v1279_v5  ;;  %v5438_v18 = vcombine.low %v7216_v45, %v7218_v24  ;;  %v7249_v19 = vrot.slane %v1783_v52, 4  ;;  %v5696_v29 = vpack.c.bf16 %v537_v9, %v537_v9  ;;  %v1533_v3 = vld [vmem:[#allocation2 + $0x18] sm:$0xe] }
  0x8a   : > { %4286 = vmatprep.mubr.bf16.mxu1 %v5464_v6  ;;  %v1275_v30 = vrot.slane %v1274_v13, 4  ;;  %v5697_v32 = vpack.c.bf16 %v538_v12, %v538_v12  ;;  %v5482_v33 = vcombine.low %v7204_v2, %v7242_v7  ;;  %v5386_v37 = vrot.slane %v1532_v50, 9  ;;  %v6536_v2 = vld [vmem:[%s9230_s3 + $0x180] sm:$0xff]   ;;  %v6543_v6 = vld [vmem:[%s9230_s3 + $0x1c8] sm:$0xff]   ;;  %v5900_v13 = vld [vmem:[%s6751_s11 + $0x38] sm:$0xff]  }
  0x8b   : > { %4287 = vmatmul.mubr.bf16.gmra.mrb[12].mxu1 %v5448_v35  ;;  %v1285_v39 = vrot.slane %v1284_v1, 4  ;;  %v1607_v43 = vrot.slane %v6608_v14, 5  ;;  %v1610_v62 = vrot.slane %v6609_v23, 5  ;;  %v744_v45 = vshrl.u32 %v5696_v29, 16  ;;  %v7293_v14 = vld [vmem:[#allocation2 + $0x28] sm:$0xf] }
  0x8c   : > { %4327 = vmatprep.mubr.bf16.mxu1 %v5481_v51  ;;  %v1280_v44 = vsel %vm6785_vm5, %v1275_v30, %v1279_v5  ;;  %v747_v46 = vshll.u32 %v5696_v29, 16  ;;  %v752_v35 = vshrl.u32 %v5697_v32, 16  ;;  %v755_v52 = vshll.u32 %v5697_v32, 16  ;;  %v1019_v51 = vld [vmem:[#allocation2 + $0x48] sm:$0xf] }
  0x8d   : > { %v1290_v49 = vsel %vm6785_vm5, %v1285_v39, %v1289_v16  ;;  %v7263_v53 = vsel %vm6771_vm4, %v5386_v37, %v1607_v43  ;;  %v1609_v42 = vrot.slane %v1607_v43, 4  ;;  %v746_v56 = vrot.slane %v744_v45, 7 }
  0x8e   : > { %v5454_v27 = vcombine.low %v1280_v44, %v1290_v49  ;;  %v754_v57 = vrot.slane %v752_v35, 7  ;;  %v5776_v59 = vunpack.c.l.bf16 %v5899_v34  ;;  %v5777_v41 = vunpack.c.h.bf16 %v5899_v34  ;;  %v6546_v34 = vld [vmem:[%s9230_s3 + $0x188] sm:$0xff]   ;;  %v7303_v49 = vld [vmem:[#allocation2 + $0x30] sm:$0xf] }
  0x8f   : > { %v7269_v61 = vsel %vm6771_vm4, %v1609_v42, %v1610_v62  ;;  %v1807_v47 = vshrl.u32 %v7265_v60, 16  ;;  %v1810_v5 = vshll.u32 %v7265_v60, 16  ;;  %v749_v9 = vor.u32 %v747_v46, %v746_v56 }
  0x90   : > { %4206 = vmatprep.mubr.bf16.mxu0 %v5454_v27  ;;  %v750_v12 = vrot.slane %v746_v56, 4  ;;  %v757_v50 = vor.u32 %v755_v52, %v754_v57  ;;  %v759_v1 = vrot.slane %v754_v57, 4  ;;  %v7277_v16 = vrot.slane %v1786_v8, 5  ;;  %v7314_v56 = vld [vmem:[%s6751_s11 + $0x40] sm:$0xff]   ;;  %v6554_v57 = vld [vmem:[%s9230_s3 + $0x190] sm:$0xff]  }
  0x91   : > { %4207 = vmatmul.mubr.bf16.gmra.mrb[20].mxu0 %v5438_v18  ;;  %v468_v29 = vmul.f32 %v7209_v17, %v5776_v59  ;;  %v469_v32 = vmul.f32 %v7209_v17, %v5777_v41  ;;  %v1020_v37 = vsel %vm6848_vm13, %v749_v9, %v1019_v51  ;;  %v5466_v18 = vcombine.low %v7263_v53, %v7269_v61 }
  0x92   : > { %v758_v39 = vsel %vm6841_vm12, %v750_v12, %v757_v50  ;;  %v1024_v8 = vsel %vm6834_vm11, %v759_v1, %v1023_v58  ;;  %1021 = vst [vmem:[#allocation2 + $0x48] sm:$0xf] %v1020_v37  ;;  %v7297_v23 = vrot.slane %v1807_v47, 4  ;;  %v7299_v62 = vrot.slane %v1810_v5, 5  ;;  %v6560_v58 = vld [vmem:[%s9230_s3 + $0x1d8] sm:$0xff]  }
  0x93   : > { %4328 = vmatmul.mubr.bf16.vlgmr.msra.gmra.mrb[16].mxu1 %v5465_v21  ;;  %1022 = vst [vmem:[#allocation2 + $0x4c] sm:$0xf] %v758_v39  ;;  %1025 = vst [vmem:[#allocation2 + $0x50] sm:$0x1] %v1024_v8  ;;  %v507_v21 = vadd.f32 %v7134_v40, %v468_v29  ;;  %v508_v43 = vadd.f32 %v7134_v40, %v469_v32  ;;  %v5387_v44 = vrot.slane %v1533_v3, 9  ;;  %v1614_v45 = vrot.slane %v6964_v63, 5 }
  0x94   : > { %6261 = vmatpush3.bf16.msra.mxu1 %v6536_v2  ;;  %4335 = vmatprep.mubr.bf16.mxu1 %v5482_v33  ;;  %v1617_v46 = vrot.slane %v6968_v4, 5  ;;  %v5780_v35 = vunpack.c.l.bf16 %v5900_v13  ;;  %v6552_v33 = vld [vmem:[%s9230_s3 + $0x1d0] sm:$0xff]   ;;  %v5781_v51 = vunpack.c.h.bf16 %v5900_v13  ;;  %v1831_v53 = vshrl.u32 %v7303_v49, 16 }
  0x95   : > { %6262 = vmatprep.subr.bf16.mxu1 %v6543_v6  ;;  %v539_v2 = vmax.f32 %v507_v21, 0.0  ;;  %v540_v52 = vmax.f32 %v508_v43, 0.0  ;;  %v5483_v27 = vcombine.low %v7265_v60, %v7293_v14  ;;  %v1616_v63 = vrot.slane %v1614_v45, 4  ;;  %v7327_v47 = vld [vmem:[#allocation2 + $0x34] sm:$0xf] }
  0x96   : > { %v470_v4 = vmul.f32 %v7209_v17, %v5780_v35  ;;  %v7324_v41 = vsel %vm6771_vm4, %v5387_v44, %v1614_v45  ;;  %v471_v60 = vmul.f32 %v7209_v17, %v5781_v51  ;;  %v7332_v3 = vrot.slane %v1831_v53, 4  ;;  %v1026_v51 = vld [vmem:[#allocation2 + $0x54] sm:$0xf]  ;;  %v6567_v53 = vld [vmem:[%s9230_s3 + $0x1e0] sm:$0xff]  }
  0x97   : > { %v5698_v59 = vpack.c.bf16 %v539_v2, %v539_v2  ;;  %v5699_v61 = vpack.c.bf16 %v540_v52, %v540_v52  ;;  %v1618_v5 = vsel %vm6771_vm4, %v1616_v63, %v1617_v46  ;;  %v1834_v13 = vshll.u32 %v7303_v49, 16 }
  0x98   : > { %6263 = vmatpush3.bf16.msra.mxu1 %v6546_v34  ;;  %v509_v6 = vadd.f32 %v7134_v40, %v470_v4  ;;  %v5467_v39 = vcombine.low %v7324_v41, %v1618_v5  ;;  %v510_v37 = vadd.f32 %v7134_v40, %v471_v60  ;;  %v5484_v8 = vcombine.low %v7303_v49, %v7327_v47  ;;  %v6579_v49 = vld [vmem:[%s9230_s3 + $0x1b0] sm:$0xff]  }
  0x99   : > { %6264 = vmatprep.subr.bf16.mxu1 %v6552_v33  ;;  %v761_v9 = vshrl.u32 %v5698_v59, 16  ;;  %v764_v12 = vshll.u32 %v5698_v59, 16  ;;  %v769_v50 = vshrl.u32 %v5699_v61, 16  ;;  %v772_v1 = vshll.u32 %v5699_v61, 16  ;;  %v7335_v29 = vld [vmem:[#allocation2 + $0x48] sm:$0xf] }
  0x9a   : > { %v7337_v32 = vld [vmem:[#allocation2 + $0x4c] sm:$0xf]  ;;  %v7339_v34 = vld [vmem:[#allocation2 + $0x50] sm:$0x1]  ;;  %v5784_v21 = vunpack.c.l.bf16 %v7314_v56  ;;  %v1292_v43 = vshrl.u32 %v7335_v29, 16  ;;  %v1295_v44 = vshll.u32 %v7335_v29, 16 }
  0x9b   : > { %4336 = vmatmul.mubr.bf16.gmra.mrb[20].mxu1 %v5466_v18  ;;  %v1301_v45 = vshll.u32 %v7337_v32, 16  ;;  %v1305_v46 = vshrl.u32 %v7337_v32, 16  ;;  %v6562_v18 = vld [vmem:[%s9230_s3 + $0x198] sm:$0xff]   ;;  %v1311_v35 = vshll.u32 %v7339_v34, 16  ;;  %v5439_v33 = vcombine.low %v7335_v29, %v7337_v32  ;;  %v1534_v59 = vld [vmem:[#allocation2 + $0x24] sm:$0xe] }
  0x9c   : > { %4343 = vmatprep.mubr.bf16.mxu1 %v5483_v27  ;;  %6265 = vmatpush3.bf16.msra.mxu1 %v6554_v57  ;;  %v763_v2 = vrot.slane %v761_v9, 7  ;;  %v771_v52 = vrot.slane %v769_v50, 7  ;;  %v1294_v63 = vrot.slane %v1292_v43, 4  ;;  %v1297_v27 = vrot.slane %v1295_v44, 5 }
  0x9d   : > { %6266 = vmatprep.subr.bf16.mxu1 %v6560_v58  ;;  %v1303_v4 = vrot.slane %v1301_v45, 5  ;;  %v1307_v57 = vrot.slane %v1305_v46, 4  ;;  %v1313_v61 = vrot.slane %v1311_v35, 5  ;;  %v541_v50 = vmax.f32 %v509_v6, 0.0  ;;  %v6569_v58 = vld [vmem:[%s9230_s3 + $0x1a0] sm:$0xff]  }
  0x9e   : > { %v766_v41 = vor.u32 %v764_v12, %v763_v2  ;;  %v767_v60 = vrot.slane %v763_v2, 4  ;;  %v774_v5 = vor.u32 %v772_v1, %v771_v52  ;;  %v1298_v42 = vor.u32 %v1297_v27, %v1294_v63  ;;  %v6572_v1 = vld [vmem:[%s9230_s3 + $0x1e8] sm:$0xff]  }
  0x9f   : > { %v1308_v29 = vor.u32 %v1307_v57, %v1303_v4  ;;  %v776_v9 = vrot.slane %v771_v52, 4  ;;  %v542_v45 = vmax.f32 %v510_v37, 0.0  ;;  %v5388_v12 = vrot.slane %v1534_v59, 9  ;;  %v6574_v2 = vld [vmem:[%s9230_s3 + $0x1a8] sm:$0xff]  }
  0xa0   : > { %6267 = vmatpush3.bf16.msra.mxu1 %v6562_v18  ;;  %v775_v43 = vsel %vm6841_vm12, %v767_v60, %v774_v5  ;;  %v1027_v44 = vsel %vm6848_vm13, %v766_v41, %v1026_v51  ;;  %v1299_v46 = vrot.slane %v1298_v42, 4  ;;  %v5700_v35 = vpack.c.bf16 %v541_v50, %v541_v50  ;;  %v7390_v60 = vld [vmem:[#allocation2 + $0x3c] sm:$0xf] }
  0xa1   : > { %6268 = vmatprep.subr.bf16.mxu1 %v6567_v53  ;;  %v1309_v6 = vrot.slane %v1308_v29, 4  ;;  %1028 = vst [vmem:[#allocation2 + $0x54] sm:$0xf] %v1027_v44  ;;  %1029 = vst [vmem:[#allocation2 + $0x58] sm:$0xf] %v775_v43  ;;  %v1031_v18 = vsel %vm6834_vm11, %v776_v9, %v1030_v31  ;;  %v5701_v37 = vpack.c.bf16 %v542_v45, %v542_v45  ;;  %v1621_v52 = vrot.slane %v7055_v54, 5 }
  0xa2   : > { %1032 = vst [vmem:[#allocation2 + $0x5c] sm:$0x1] %v1031_v18  ;;  %v1624_v51 = vrot.slane %v7050_v25, 5  ;;  %v5785_v42 = vunpack.c.h.bf16 %v7314_v56  ;;  %v1304_v53 = vsel %vm6785_vm5, %v1299_v46, %v1303_v4  ;;  %v778_v63 = vshrl.u32 %v5700_v35, 16  ;;  %v6577_v25 = vld [vmem:[%s9230_s3 + $0x1f0] sm:$0xff]   ;;  %v6582_v18 = vld [vmem:[%s9230_s3 + $0x1f8] sm:$0xff]  }
  0xa3   : > { %4344 = vmatmul.mubr.bf16.gmra.mrb[24].mxu1 %v5467_v39  ;;  %v1314_v31 = vsel %vm6785_vm5, %v1309_v6, %v1313_v61  ;;  %v781_v27 = vshll.u32 %v5700_v35, 16  ;;  %v786_v59 = vshrl.u32 %v5701_v37, 16  ;;  %v789_v39 = vshll.u32 %v5701_v37, 16  ;;  %v1033_v56 = vld [vmem:[#allocation2 + $0x60] sm:$0xf] }
  0xa4   : > { %4351 = vmatprep.mubr.bf16.mxu1 %v5484_v8  ;;  %6269 = vmatpush3.bf16.msra.mxu1 %v6569_v58  ;;  %v5455_v57 = vcombine.low %v1304_v53, %v1314_v31  ;;  %v1622_v54 = vsel %vm6771_vm4, %v5388_v12, %v1621_v52  ;;  %v780_v41 = vrot.slane %v778_v63, 7  ;;  %v1623_v4 = vrot.slane %v1621_v52, 4  ;;  %v1037_v44 = vld [vmem:[#allocation2 + $0x68] sm:$0x1]  ;;  %v1047_v9 = vld [vmem:[#allocation2 + $0x78] sm:$0xf] }
  0xa5   : > { %6270 = vmatprep.subr.bf16.mxu1 %v6572_v1  ;;  %v472_v61 = vmul.f32 %v7209_v17, %v5784_v21  ;;  %v473_v8 = vmul.f32 %v7209_v17, %v5785_v42  ;;  %v788_v5 = vrot.slane %v786_v59, 7  ;;  %v7394_v29 = vrot.slane %v1834_v13, 5 }
  0xa6   : > { %4214 = vmatprep.mubr.bf16.mxu0 %v5455_v57  ;;  %v1855_v50 = vshrl.u32 %v7390_v60, 16  ;;  %v783_v58 = vor.u32 %v781_v27, %v780_v41  ;;  %v784_v43 = vrot.slane %v780_v41, 4  ;;  %v1625_v21 = vsel %vm6771_vm4, %v1623_v4, %v1624_v51  ;;  %v1535_v27 = vld [vmem:[#allocation2 + $0x30] sm:$0xe] }
  0xa7   : > { %4215 = vmatmul.mubr.bf16.gmra.mrb[24].mxu0 %v5439_v33  ;;  %v511_v45 = vadd.f32 %v7134_v40, %v472_v61  ;;  %v791_v1 = vor.u32 %v789_v39, %v788_v5  ;;  %v793_v33 = vrot.slane %v788_v5, 4  ;;  %v5468_v46 = vcombine.low %v1622_v54, %v1625_v21  ;;  %v6584_v5 = vld [vmem:[%s9230_s3 + $0x1b8] sm:$0xff]  }
  0xa8   : > { %6271 = vmatpush3.bf16.msra.mxu1 %v6574_v2  ;;  %v7404_v13 = vld [vmem:[#allocation2 + $0x54] sm:$0xf]  ;;  %v7406_v12 = vld [vmem:[#allocation2 + $0x58] sm:$0xf]  ;;  %v512_v6 = vadd.f32 %v7134_v40, %v473_v8  ;;  %v1034_v31 = vsel %vm6848_vm13, %v783_v58, %v1033_v56  ;;  %v1858_v63 = vshll.u32 %v7390_v60, 16 }
  0xa9   : > { %6272 = vmatprep.subr.bf16.mxu1 %v6577_v25  ;;  %v7412_v35 = vld [vmem:[#allocation2 + $0x5c] sm:$0x1]  ;;  %v1316_v2 = vshrl.u32 %v7404_v13, 16  ;;  %v1319_v37 = vshll.u32 %v7404_v13, 16  ;;  %v1325_v52 = vshll.u32 %v7406_v12, 16  ;;  %v1329_v51 = vshrl.u32 %v7406_v12, 16 }
  0xaa   : > { %v1335_v42 = vshll.u32 %v7412_v35, 16  ;;  %v792_v53 = vsel %vm6841_vm12, %v784_v43, %v791_v1  ;;  %1035 = vst [vmem:[#allocation2 + $0x60] sm:$0xf] %v1034_v31  ;;  %v7424_v25 = vld [vmem:[#allocation2 + $0x40] sm:$0xf]  ;;  %v1038_v41 = vsel %vm6834_vm11, %v793_v33, %v1037_v44  ;;  %v543_v4 = vmax.f32 %v511_v45, 0.0 }
  0xab   : > { %4352 = vmatmul.mubr.bf16.gmra.mrb[28].mxu1 %v5468_v46  ;;  %v1318_v57 = vrot.slane %v1316_v2, 4  ;;  %v1321_v59 = vrot.slane %v1319_v37, 5  ;;  %v1327_v39 = vrot.slane %v1325_v52, 5  ;;  %v1331_v54 = vrot.slane %v1329_v51, 4  ;;  %1036 = vst [vmem:[#allocation2 + $0x64] sm:$0xf] %v792_v53 }
  0xac   : > { %6273 = vmatpush3.bf16.msra.mxu1 %v6579_v49  ;;  %v544_v61 = vmax.f32 %v512_v6, 0.0  ;;  %v1337_v56 = vrot.slane %v1335_v42, 5  ;;  %v5440_v21 = vcombine.low %v7404_v13, %v7406_v12  ;;  %1039 = vst [vmem:[#allocation2 + $0x68] sm:$0x1] %v1038_v41  ;;  %v5702_v49 = vpack.c.bf16 %v543_v4, %v543_v4 }
  0xad   : > { %6274 = vmatprep.subr.bf16.mxu1 %v6582_v18  ;;  %v1322_v58 = vor.u32 %v1321_v59, %v1318_v57  ;;  %v1332_v43 = vor.u32 %v1331_v54, %v1327_v39  ;;  %v5485_v44 = vcombine.low %v7390_v60, %v7424_v25  ;;  %v5389_v45 = vrot.slane %v1535_v27, 9  ;;  %v5902_v27 = vld [vmem:[%s6751_s11 + $0x48] sm:$0xff]   ;;  %v5903_v60 = vld [vmem:[%s6751_s11 + $0x50] sm:$0xff]  }
  0xae   : > { %v5703_v1 = vpack.c.bf16 %v544_v61, %v544_v61  ;;  %v7436_v6 = vrot.slane %v1855_v50, 4  ;;  %v1628_v18 = vrot.slane %v7154_v10, 5  ;;  %v795_v2 = vshrl.u32 %v5702_v49, 16 }
  0xaf   : > { %v1323_v33 = vrot.slane %v1322_v58, 4  ;;  %v1333_v46 = vrot.slane %v1332_v43, 4  ;;  %v798_v37 = vshll.u32 %v5702_v49, 16  ;;  %4359 = vmatprep.mubr.bf16.mxu1 %v5485_v44  ;;  %v1631_v31 = vrot.slane %v7156_v11, 5  ;;  %v1040_v11 = vld [vmem:[#allocation2 + $0x6c] sm:$0xf] }
  0xb0   : > { %6275 = vmatpush3.bf16.msra.mxu1 %v6584_v5  ;;  %v803_v52 = vshrl.u32 %v5703_v1, 16  ;;  %v806_v51 = vshll.u32 %v5703_v1, 16  ;;  %v1630_v53 = vrot.slane %v1628_v18, 4  ;;  %v797_v59 = vrot.slane %v795_v2, 7 }
  0xb1   : > { %v1328_v13 = vsel %vm6785_vm5, %v1323_v33, %v1327_v39  ;;  %v1338_v42 = vsel %vm6785_vm5, %v1333_v46, %v1337_v56  ;;  %v7445_v57 = vld [vmem:[#allocation2 + $0x60] sm:$0xf]  ;;  %v1629_v41 = vsel %vm6771_vm4, %v5389_v45, %v1628_v18  ;;  %v5788_v1 = vunpack.c.l.bf16 %v5902_v27  ;;  %v1044_v18 = vld [vmem:[#allocation2 + $0x74] sm:$0x1] }
  0xb2   : > { %v5456_v50 = vcombine.low %v1328_v13, %v1338_v42  ;;  %v7447_v10 = vld [vmem:[#allocation2 + $0x64] sm:$0xf]  ;;  %v805_v54 = vrot.slane %v803_v52, 7  ;;  %v1340_v4 = vshrl.u32 %v7445_v57, 16  ;;  %v1343_v39 = vshll.u32 %v7445_v57, 16 }
  0xb3   : > { %v1349_v61 = vshll.u32 %v7447_v10, 16  ;;  %v1353_v5 = vshrl.u32 %v7447_v10, 16  ;;  %v7455_v58 = vld [vmem:[#allocation2 + $0x68] sm:$0x1]  ;;  %v800_v43 = vor.u32 %v798_v37, %v797_v59  ;;  %v801_v56 = vrot.slane %v797_v59, 4 }
  0xb4   : > { %4222 = vmatprep.mubr.bf16.mxu0 %v5456_v50  ;;  %v808_v49 = vor.u32 %v806_v51, %v805_v54  ;;  %v1342_v44 = vrot.slane %v1340_v4, 4  ;;  %v1345_v33 = vrot.slane %v1343_v39, 5  ;;  %v1359_v2 = vshll.u32 %v7455_v58, 16  ;;  %v7464_v59 = vld [vmem:[#allocation2 + $0x48] sm:$0xf] }
  0xb5   : > { %4223 = vmatmul.mubr.bf16.gmra.mrb[28].mxu0 %v5440_v21  ;;  %v1351_v45 = vrot.slane %v1349_v61, 5  ;;  %v1355_v46 = vrot.slane %v1353_v5, 4  ;;  %v810_v13 = vrot.slane %v805_v54, 4  ;;  %v1041_v42 = vsel %vm6848_vm13, %v800_v43, %v1040_v11  ;;  %v7466_v4 = vld [vmem:[#allocation2 + $0x4c] sm:$0xf] }
  0xb6   : > { %v809_v52 = vsel %vm6841_vm12, %v801_v56, %v808_v49  ;;  %v1346_v50 = vor.u32 %v1345_v33, %v1342_v44  ;;  %1042 = vst [vmem:[#allocation2 + $0x6c] sm:$0xf] %v1041_v42  ;;  %v1632_v21 = vsel %vm6771_vm4, %v1630_v53, %v1631_v31  ;;  %v5789_v51 = vunpack.c.h.bf16 %v5902_v27 }
  0xb7   : > { %v1356_v37 = vor.u32 %v1355_v46, %v1351_v45  ;;  %1043 = vst [vmem:[#allocation2 + $0x70] sm:$0xf] %v809_v52  ;;  %v1361_v39 = vrot.slane %v1359_v2, 5  ;;  %v1045_v61 = vsel %vm6834_vm11, %v810_v13, %v1044_v18  ;;  %v5469_v54 = vcombine.low %v1629_v41, %v1632_v21 }
  0xb8   : > { %v474_v5 = vmul.f32 %v7209_v17, %v5788_v1  ;;  %v1347_v11 = vrot.slane %v1346_v50, 4  ;;  %1046 = vst [vmem:[#allocation2 + $0x74] sm:$0x1] %v1045_v61  ;;  %v475_v56 = vmul.f32 %v7209_v17, %v5789_v51  ;;  %v1879_v53 = vshrl.u32 %v7464_v59, 16  ;;  %v1536_v1 = vld [vmem:[#allocation2 + $0x3c] sm:$0xe] }
  0xb9   : > { %v1357_v43 = vrot.slane %v1356_v37, 4  ;;  %v5441_v31 = vcombine.low %v7445_v57, %v7447_v10  ;;  %v7477_v27 = vrot.slane %v1858_v63, 5  ;;  %4360 = vmatmul.mubr.bf16.gmra.mrb[32].mxu1 %v5469_v54  ;;  %v5486_v49 = vcombine.low %v7464_v59, %v7466_v4  ;;  %v7494_v37 = vld [vmem:[#allocation2 + $0x54] sm:$0xf] }
  0xba   : > { %v513_v41 = vadd.f32 %v7134_v40, %v474_v5  ;;  %v1352_v44 = vsel %vm6785_vm5, %v1347_v11, %v1351_v45  ;;  %v514_v46 = vadd.f32 %v7134_v40, %v475_v56  ;;  %v7489_v2 = vrot.slane %v1879_v53, 4 }
  0xbb   : > { %v1362_v33 = vsel %vm6785_vm5, %v1357_v43, %v1361_v39  ;;  %4367 = vmatprep.mubr.bf16.mxu1 %v5486_v49  ;;  %v5390_v42 = vrot.slane %v1536_v1, 9  ;;  %v1635_v50 = vrot.slane %v7218_v24, 5  ;;  %v1638_v45 = vrot.slane %v7223_v55, 5 }
  0xbc   : > { %v5457_v63 = vcombine.low %v1352_v44, %v1362_v33  ;;  %v545_v18 = vmax.f32 %v513_v41, 0.0  ;;  %v546_v13 = vmax.f32 %v514_v46, 0.0  ;;  %v5792_v39 = vunpack.c.l.bf16 %v5903_v60 }
  0xbd   : > { %v7496_v40 = vld [vmem:[#allocation2 + $0x6c] sm:$0xf]  ;;  %v5793_v61 = vunpack.c.h.bf16 %v5903_v60  ;;  %v1903_v54 = vshrl.u32 %v7494_v37, 16  ;;  %v1636_v30 = vsel %vm6771_vm4, %v5390_v42, %v1635_v50  ;;  %v1637_v57 = vrot.slane %v1635_v50, 4 }
  0xbe   : > { %4230 = vmatprep.mubr.bf16.mxu0 %v5457_v63  ;;  %v7498_v21 = vld [vmem:[#allocation2 + $0x70] sm:$0xf]  ;;  %v5704_v51 = vpack.c.bf16 %v545_v18, %v545_v18  ;;  %v1364_v5 = vshrl.u32 %v7496_v40, 16  ;;  %v1367_v11 = vshll.u32 %v7496_v40, 16  ;;  %v5705_v53 = vpack.c.bf16 %v546_v13, %v546_v13 }
  0xbf   : > { %4231 = vmatmul.mubr.bf16.gmra.mrb[32].mxu0 %v5441_v31  ;;  %v1373_v24 = vshll.u32 %v7498_v21, 16  ;;  %v1377_v55 = vshrl.u32 %v7498_v21, 16  ;;  %v7505_v43 = vld [vmem:[#allocation2 + $0x74] sm:$0x1]  ;;  %v5442_v56 = vcombine.low %v7496_v40, %v7498_v21 }
  0xc0   : > { %v812_v41 = vshrl.u32 %v5704_v51, 16  ;;  %v815_v49 = vshll.u32 %v5704_v51, 16  ;;  %v1366_v1 = vrot.slane %v1364_v5, 4  ;;  %v1369_v44 = vrot.slane %v1367_v11, 5 }
  0xc1   : > { %v1375_v33 = vrot.slane %v1373_v24, 5  ;;  %v1379_v31 = vrot.slane %v1377_v55, 4  ;;  %v1383_v46 = vshll.u32 %v7505_v43, 16  ;;  %v820_v63 = vshrl.u32 %v5705_v53, 16  ;;  %v1051_v24 = vld [vmem:[#allocation2 + $0x80] sm:$0x1] }
  0xc2   : > { %v814_v60 = vrot.slane %v812_v41, 7  ;;  %v823_v18 = vshll.u32 %v5705_v53, 16  ;;  %v1370_v52 = vor.u32 %v1369_v44, %v1366_v1  ;;  %v1639_v55 = vsel %vm6771_vm4, %v1637_v57, %v1638_v45  ;;  %v7525_v57 = vld [vmem:[%s9229_s2] ss:$0 sm:$0xff]  ;;  %v7528_v45 = vld [vmem:[#allocation2 + $0x58] sm:$0xf] }
  0xc3   : > { %v1380_v8 = vor.u32 %v1379_v31, %v1375_v33  ;;  %v1385_v40 = vrot.slane %v1383_v46, 5  ;;  %v822_v51 = vrot.slane %v820_v63, 7  ;;  %v476_v41 = vmul.f32 %v7209_v17, %v5792_v39  ;;  %9251 = vst [vmem:[#allocation4_spill] sm:$0xff] %v7525_v57 }
  0xc4   : > { %v817_v13 = vor.u32 %v815_v49, %v814_v60  ;;  %v818_v48 = vrot.slane %v814_v60, 4  ;;  %v1371_v5 = vrot.slane %v1370_v52, 4  ;;  %v5470_v31 = vcombine.low %v1636_v30, %v1639_v55 }
  0xc5   : > { %v1381_v11 = vrot.slane %v1380_v8, 4  ;;  %v825_v53 = vor.u32 %v823_v18, %v822_v51  ;;  %v827_v1 = vrot.slane %v822_v51, 4  ;;  %v477_v8 = vmul.f32 %v7209_v17, %v5793_v61  ;;  %v1724_v18 = vld [vmem:[#allocation2 + $0x60] sm:$0xf] }
  0xc6   : > { %v1048_v44 = vsel %vm6848_vm13, %v817_v13, %v1047_v9  ;;  %v1376_v42 = vsel %vm6785_vm5, %v1371_v5, %v1375_v33  ;;  %v515_v52 = vadd.f32 %v7525_v57, %v476_v41  ;;  %v1537_v9 = vld [vmem:[#allocation2 + $0x48] sm:$0xe]  ;;  %4368 = vmatmul.mubr.bf16.gmra.mrb[36].mxu1 %v5470_v31  ;;  %v1906_v17 = vshll.u32 %v7494_v37, 16  ;;  %v7546_v5 = vld [vmem:[#allocation2 + $0x64] sm:$0xf] }
  0xc7   : > { %v1386_v50 = vsel %vm6785_vm5, %v1381_v11, %v1385_v40  ;;  %1049 = vst [vmem:[#allocation2 + $0x78] sm:$0xf] %v1048_v44  ;;  %v826_v39 = vsel %vm6841_vm12, %v818_v48, %v825_v53  ;;  %v1052_v49 = vsel %vm6834_vm11, %v827_v1, %v1051_v24  ;;  %v9252_v61 = vshll.u32 %v7464_v59, 16  ;;  %9253 = vst [vmem:[#allocation5_spill] sm:$0xff] %v7546_v5 }
  0xc8   : > { %v5458_v30 = vcombine.low %v1376_v42, %v1386_v50  ;;  %1050 = vst [vmem:[#allocation2 + $0x7c] sm:$0xf] %v826_v39  ;;  %1053 = vst [vmem:[#allocation2 + $0x80] sm:$0x1] %v1052_v49  ;;  %v516_v46 = vadd.f32 %v7525_v57, %v477_v8  ;;  %v547_v60 = vmax.f32 %v515_v52, 0.0  ;;  %v7540_v63 = vrot.slane %v1903_v54, 4 }
  0xc9   : > { %v7537_v33 = vrot.slane %v9252_v61, 5  ;;  %v5487_v48 = vcombine.low %v7494_v37, %v7528_v45  ;;  %v5391_v40 = vrot.slane %v1537_v9, 9  ;;  %v1642_v13 = vrot.slane %v7337_v32, 5 }
  0xca   : > { %4238 = vmatprep.mubr.bf16.mxu0 %v5458_v30  ;;  %v1645_v51 = vrot.slane %v7339_v34, 5  ;;  %v548_v59 = vmax.f32 %v516_v46, 0.0  ;;  %v5706_v11 = vpack.c.bf16 %v547_v60, %v547_v60  ;;  %v1927_v24 = vshrl.u32 %v1724_v18, 16 }
  0xcb   : > { %4239 = vmatmul.mubr.bf16.gmra.mrb[36].mxu0 %v5442_v56  ;;  %v1930_v55 = vshll.u32 %v1724_v18, 16  ;;  %v7548_v41 = vrot.slane %v1906_v17, 5  ;;  %4375 = vmatprep.mubr.bf16.mxu1 %v5487_v48  ;;  %v1643_v37 = vsel %vm6771_vm4, %v5391_v40, %v1642_v13  ;;  %v1644_v53 = vrot.slane %v1642_v13, 4  ;;  %v7555_v56 = vld [vmem:[#allocation2 + $0x14] sm:$0x1] }
  0xcc   : > { %v5707_v1 = vpack.c.bf16 %v548_v59, %v548_v59  ;;  %v829_v32 = vshrl.u32 %v5706_v11, 16  ;;  %v5488_v44 = vcombine.low %v1724_v18, %v7546_v5  ;;  %v832_v42 = vshll.u32 %v5706_v11, 16  ;;  %v2142_v17 = vld [vmem:[#allocation2 + $0xc] sm:$0xe]  ;;  %v1054_v11 = vld [vmem:[#allocation2 + $0x84] sm:$0xf] }
  0xcd   : > { %9254 = vst [vmem:[#allocation6_spill] sm:$0xff] %v7548_v41  ;;  %v1646_v50 = vsel %vm6771_vm4, %v1644_v53, %v1645_v51  ;;  %v7561_v8 = vrot.slane %v1927_v24, 4  ;;  %v7563_v52 = vrot.slane %v1930_v55, 5  ;;  %v1778_v48 = vshll.u32 %v7555_v56, 16 }
  0xce   : > { %v7557_v31 = vld [vmem:[#allocation2 + $0x78] sm:$0xf]  ;;  %v831_v39 = vrot.slane %v829_v32, 7  ;;  %v837_v49 = vshrl.u32 %v5707_v1, 16  ;;  %v840_v60 = vshll.u32 %v5707_v1, 16  ;;  %v5471_v18 = vcombine.low %v1643_v37, %v1646_v50 }
  0xcf   : > { %9255 = vst [vmem:[#allocation7_spill] sm:$0xff] %v7561_v8  ;;  %9256 = vst [vmem:[#allocation8_spill] sm:$0xff] %v7563_v52  ;;  %v1388_v9 = vshrl.u32 %v7557_v31, 16  ;;  %v1391_v30 = vshll.u32 %v7557_v31, 16  ;;  %v7567_v61 = vld [vmem:[#allocation2 + $0x7c] sm:$0xf] }
  0xd0   : > { %v7569_v46 = vld [vmem:[#allocation2 + $0x80] sm:$0x1]  ;;  %v1397_v51 = vshll.u32 %v7567_v61, 16  ;;  %v1401_v59 = vshrl.u32 %v7567_v61, 16  ;;  %v834_v55 = vor.u32 %v832_v42, %v831_v39  ;;  %v835_v53 = vrot.slane %v831_v39, 4  ;;  %4376 = vmatmul.mubr.bf16.gmra.mrb[40].mxu1 %v5471_v18 }
  0xd1   : > { %v1390_v40 = vrot.slane %v1388_v9, 4  ;;  %v1393_v13 = vrot.slane %v1391_v30, 5  ;;  %v1407_v24 = vshll.u32 %v7569_v46, 16  ;;  %v5401_v32 = vrot.slane %v2142_v17, 9  ;;  %4383 = vmatprep.mubr.bf16.mxu1 %v5488_v44  ;;  %v1538_v37 = vld [vmem:[#allocation2 + $0x54] sm:$0xe] }
  0xd2   : > { %v1399_v54 = vrot.slane %v1397_v51, 5  ;;  %v1403_v57 = vrot.slane %v1401_v59, 4  ;;  %v839_v1 = vrot.slane %v837_v49, 7  ;;  %v1055_v9 = vsel %vm6848_vm13, %v834_v55, %v1054_v11  ;;  %v1058_v30 = vld [vmem:[#allocation2 + $0x8c] sm:$0x1] }
  0xd3   : > { %v1394_v34 = vor.u32 %v1393_v13, %v1390_v40  ;;  %v1409_v50 = vrot.slane %v1407_v24, 5  ;;  %v7577_v52 = vrot.slane %v1778_v48, 5  ;;  %v6611_v8 = vld [vmem:[#allocation2 + $0x10] sm:$0xf]  ;;  %1056 = vst [vmem:[#allocation2 + $0x84] sm:$0xf] %v1055_v9  ;;  %v5443_v59 = vcombine.low %v7557_v31, %v7567_v61 }
  0xd4   : > { %v2208_v5 = vrot.slane %v6611_v8, 5  ;;  %v1404_v42 = vor.u32 %v1403_v57, %v1399_v54  ;;  %v842_v39 = vor.u32 %v840_v60, %v839_v1  ;;  %v844_v18 = vrot.slane %v839_v1, 4  ;;  %v1539_v1 = vld [vmem:[#allocation2 + $0x60] sm:$0xe] }
  0xd5   : > { %v1395_v41 = vrot.slane %v1394_v34, 4  ;;  %v2211_v40 = vrot.slane %v7555_v56, 5  ;;  %v5392_v49 = vrot.slane %v1538_v37, 9  ;;  %v1649_v44 = vrot.slane %v7406_v12, 5 }
  0xd6   : > { %v2210_v17 = vrot.slane %v2208_v5, 4  ;;  %v1405_v51 = vrot.slane %v1404_v42, 4  ;;  %v843_v48 = vsel %vm6841_vm12, %v835_v53, %v842_v39  ;;  %v1059_v34 = vsel %vm6834_vm11, %v844_v18, %v1058_v30 }
  0xd7   : > { %v1400_v13 = vsel %vm6785_vm5, %v1395_v41, %v1399_v54  ;;  %1057 = vst [vmem:[#allocation2 + $0x88] sm:$0xf] %v843_v48  ;;  %1060 = vst [vmem:[#allocation2 + $0x8c] sm:$0x1] %v1059_v34  ;;  %v1650_v57 = vsel %vm6771_vm4, %v5392_v49, %v1649_v44  ;;  %v1651_v8 = vrot.slane %v1649_v44, 4  ;;  %v1652_v56 = vrot.slane %v7412_v35, 5 }
  0xd8   : > { %v1771_v12 = vsel %vm6785_vm5, %v7200_v22, %v7189_v0  ;;  %v1726_v41 = vld [vmem:[#allocation2 + $0x6c] sm:$0xf]  ;;  %v7594_v54 = vld [vmem:[#allocation2 + $0x70] sm:$0xf]  ;;  %v1410_v60 = vsel %vm6785_vm5, %v1405_v51, %v1409_v50  ;;  %v7602_v11 = vsel %vm6771_vm4, %v5401_v32, %v2208_v5  ;;  %v2143_v35 = vld [vmem:[#allocation2 + $0x18] sm:$0xe]  ;;  %v7606_v53 = vsel %vm6771_vm4, %v2210_v17, %v2211_v40 }
  0xd9   : > { %v1951_v24 = vshrl.u32 %v1726_v41, 16  ;;  %v5459_v55 = vcombine.low %v1400_v13, %v1410_v60  ;;  %v1653_v0 = vsel %vm6771_vm4, %v1651_v8, %v1652_v56  ;;  %v1954_v22 = vshll.u32 %v1726_v41, 16  ;;  %v1743_v50 = vld [vmem:[#allocation2 + $0x20] sm:$0x1]  ;;  %v7626_v49 = vld [vmem:[#allocation2 + $0x78] sm:$0xf] }
  0xda   : > { %v5472_v37 = vcombine.low %v1650_v57, %v1653_v0  ;;  %v1781_v31 = vsel %vm6785_vm5, %v7240_v38, %v7577_v52  ;;  %v5489_v32 = vcombine.low %v1726_v41, %v7594_v54  ;;  %v7617_v9 = vld [vmem:[#allocation2 + $0x84] sm:$0xf]  ;;  %v1964_v42 = vshrl.u32 %v7594_v54, 16  ;;  %v7631_v34 = vld [vmem:[#allocation2 + $0x7c] sm:$0xf] }
  0xdb   : > { %v7614_v5 = vrot.slane %v1951_v24, 4  ;;  %4246 = vmatprep.mubr.bf16.mxu0 %v5459_v55  ;;  %v7619_v30 = vrot.slane %v1954_v22, 5  ;;  %v5402_v39 = vrot.slane %v2143_v35, 9  ;;  %v2215_v18 = vrot.slane %v7242_v7, 5 }
  0xdc   : > { %4247 = vmatmul.mubr.bf16.gmra.mrb[40].mxu0 %v5443_v59  ;;  %v1412_v17 = vshrl.u32 %v7617_v9, 16  ;;  %v1415_v38 = vshll.u32 %v7617_v9, 16  ;;  %4384 = vmatmul.mubr.bf16.gmra.mrb[44].mxu1 %v5472_v37  ;;  %v5393_v52 = vrot.slane %v1539_v1, 9  ;;  %v1656_v40 = vrot.slane %v7447_v10, 5 }
  0xdd   : > { %4391 = vmatprep.mubr.bf16.mxu1 %v5489_v32  ;;  %v2217_v44 = vrot.slane %v2215_v18, 4  ;;  %v2218_v13 = vrot.slane %v1743_v50, 5  ;;  %v1659_v51 = vrot.slane %v7455_v58, 5  ;;  %v1789_v48 = vor.u32 %v7277_v16, %v7249_v19 }
  0xde   : > { %v7633_v57 = vld [vmem:[#allocation2 + $0x88] sm:$0xf]  ;;  %v7635_v8 = vld [vmem:[#allocation2 + $0x8c] sm:$0x1]  ;;  %v1414_v56 = vrot.slane %v1412_v17, 4  ;;  %v1417_v41 = vrot.slane %v1415_v38, 5  ;;  %v5513_v10 = vcombine.low %v7602_v11, %v7606_v53  ;;  %v7639_v60 = vcombine.low %v1771_v12, %v1781_v31 }
  0xdf   : > { %v1421_v59 = vshll.u32 %v7633_v57, 16  ;;  %v1425_v58 = vshrl.u32 %v7633_v57, 16  ;;  %v1431_v24 = vshll.u32 %v7635_v8, 16  ;;  %v7646_v19 = vsel %vm6771_vm4, %v5402_v39, %v2215_v18  ;;  %v6612_v39 = vld [vmem:[#allocation2 + $0x1c] sm:$0xf] }
  0xe0   : > { %v1418_v16 = vor.u32 %v1417_v41, %v1414_v56  ;;  %v1657_v35 = vsel %vm6771_vm4, %v5393_v52, %v1656_v40  ;;  %v1658_v55 = vrot.slane %v1656_v40, 4  ;;  %v5490_v0 = vcombine.low %v7626_v49, %v7631_v34  ;;  %v2144_v52 = vld [vmem:[#allocation2 + $0x24] sm:$0xe] }
  0xe1   : > { %v1423_v12 = vrot.slane %v1421_v59, 5  ;;  %v1427_v22 = vrot.slane %v1425_v58, 4  ;;  %v7654_v1 = vsel %vm6771_vm4, %v2217_v44, %v2218_v13  ;;  %v1790_v37 = vrot.slane %v1789_v48, 4 }
  0xe2   : > { %v1419_v31 = vrot.slane %v1418_v16, 4  ;;  %v1660_v32 = vsel %vm6771_vm4, %v1658_v55, %v1659_v51  ;;  %v1792_v18 = vshll.u32 %v6612_v39, 16  ;;  %v9257_v17 = vshrl.u32 %v7242_v7, 16  ;;  %v1744_v51 = vld [vmem:[#allocation2 + $0x2c] sm:$0x1] }
  0xe3   : > { %v1428_v40 = vor.u32 %v1427_v22, %v1423_v12  ;;  %v1433_v56 = vrot.slane %v1431_v24, 5  ;;  %v5473_v41 = vcombine.low %v1657_v35, %v1660_v32  ;;  %v1802_v59 = vshll.u32 %v1743_v50, 16  ;;  %v1540_v16 = vld [vmem:[#allocation2 + $0x6c] sm:$0xe] }
  0xe4   : > { %v1798_v38 = vrot.slane %v9257_v17, 4  ;;  %v5444_v58 = vcombine.low %v7617_v9, %v7633_v57  ;;  %v5514_v44 = vcombine.low %v7646_v19, %v7654_v1  ;;  %v1794_v13 = vrot.slane %v1792_v18, 5 }
  0xe5   : > { %v1975_v48 = vshrl.u32 %v7626_v49, 16  ;;  %v1424_v7 = vsel %vm6785_vm5, %v1419_v31, %v1423_v12  ;;  %v1429_v55 = vrot.slane %v1428_v40, 4  ;;  %4392 = vmatmul.mubr.bf16.gmra.mrb[48].mxu1 %v5473_v41  ;;  %v1978_v24 = vshll.u32 %v7626_v49, 16 }
  0xe6   : > { %v5403_v35 = vrot.slane %v2144_v52, 9  ;;  %v1795_v50 = vsel %vm6785_vm5, %v1790_v37, %v1794_v13  ;;  %v1799_v9 = vor.u32 %v1798_v38, %v1794_v13  ;;  %v1804_v22 = vrot.slane %v1802_v59, 5  ;;  %4399 = vmatprep.mubr.bf16.mxu1 %v5490_v0 }
  0xe7   : > { %v2222_v32 = vrot.slane %v7293_v14, 5  ;;  %v1434_v39 = vsel %vm6785_vm5, %v1429_v55, %v1433_v56  ;;  %v2225_v18 = vrot.slane %v1744_v51, 5  ;;  %v5394_v17 = vrot.slane %v1540_v16, 9  ;;  %v7692_v55 = vld [vmem:[#allocation2 + $0x88] sm:$0xf] }
  0xe8   : > { %v1663_v12 = vrot.slane %v7498_v21, 5  ;;  %v5460_v31 = vcombine.low %v1424_v7, %v1434_v39  ;;  %v1800_v40 = vrot.slane %v1799_v9, 4  ;;  %v1666_v38 = vrot.slane %v7505_v43, 5  ;;  %v1730_v7 = vld [vmem:[#allocation2 + $0x84] sm:$0xf] }
  0xe9   : > { %v7676_v49 = vsel %vm6771_vm4, %v5403_v35, %v2222_v32  ;;  %v2224_v52 = vrot.slane %v2222_v32, 4  ;;  %v1813_v56 = vor.u32 %v7299_v62, %v7297_v23  ;;  %v1816_v59 = vshll.u32 %v7293_v14, 16  ;;  %v1745_v9 = vld [vmem:[#allocation2 + $0x38] sm:$0x1] }
  0xea   : > { %v1664_v37 = vsel %vm6771_vm4, %v5394_v17, %v1663_v12  ;;  %v1665_v0 = vrot.slane %v1663_v12, 4  ;;  %4254 = vmatprep.mubr.bf16.mxu0 %v5460_v31  ;;  %v1805_v21 = vsel %vm6785_vm5, %v1800_v40, %v1804_v22  ;;  %v9258_v13 = vshrl.u32 %v7293_v14, 16  ;;  %v5908_v62 = vld [vmem:[%s6751_s11 + $0x78] sm:$0xff]  }
  0xeb   : > { %v7687_v41 = vsel %vm6771_vm4, %v2224_v52, %v2225_v18  ;;  %4255 = vmatmul.mubr.bf16.gmra.mrb[44].mxu0 %v5444_v58  ;;  %v7694_v43 = vrot.slane %v1975_v48, 4  ;;  %v7696_v23 = vrot.slane %v1978_v24, 5  ;;  %v7704_v14 = vcombine.low %v1795_v50, %v1805_v21  ;;  %v2145_v58 = vld [vmem:[#allocation2 + $0x30] sm:$0xe]  ;;  %v1541_v48 = vld [vmem:[#allocation2 + $0x78] sm:$0xe] }
  0xec   : > { %v1822_v16 = vrot.slane %v9258_v13, 4  ;;  %v1667_v35 = vsel %vm6771_vm4, %v1665_v0, %v1666_v38  ;;  %4488 = vmatprep.mubr.bf16.mxu0 %v5513_v10  ;;  %v1818_v32 = vrot.slane %v1816_v59, 5  ;;  %v1826_v39 = vshll.u32 %v1744_v51, 16  ;;  %v6573_v13 = vld [vmem:[%s9230_s3 + $0x208] sm:$0xff]  }
  0xed   : > { %v5474_v22 = vcombine.low %v1664_v37, %v1667_v35  ;;  %v5515_v24 = vcombine.low %v7676_v49, %v7687_v41  ;;  %v1814_v18 = vrot.slane %v1813_v56, 4  ;;  %v1999_v17 = vshrl.u32 %v1730_v7, 16  ;;  %v6586_v49 = vld [vmem:[%s9230_s3 + $0x220] sm:$0xff]  }
  0xee   : > { %v5491_v12 = vcombine.low %v1730_v7, %v7692_v55  ;;  %v1823_v31 = vor.u32 %v1822_v16, %v1818_v32  ;;  %v1828_v40 = vrot.slane %v1826_v39, 5  ;;  %v2002_v52 = vshll.u32 %v1730_v7, 16 }
  0xef   : > { %4400 = vmatmul.mubr.bf16.gmra.mrb[52].mxu1 %v5474_v22  ;;  %v5404_v53 = vrot.slane %v2145_v58, 9  ;;  %v2229_v10 = vrot.slane %v7327_v47, 5  ;;  %v2232_v51 = vrot.slane %v1745_v9, 5  ;;  %v5395_v50 = vrot.slane %v1541_v48, 9  ;;  %v1732_v58 = vld [vmem:[#allocation2 + $0x90] sm:$0xf] }
  0xf0   : > { %4407 = vmatprep.mubr.bf16.mxu1 %v5491_v12  ;;  %v1824_v37 = vrot.slane %v1823_v31, 4  ;;  %v1670_v0 = vrot.slane %v7567_v61, 5  ;;  %v1673_v38 = vrot.slane %v7569_v46, 5  ;;  %v1837_v56 = vor.u32 %v7394_v29, %v7332_v3  ;;  %v7736_v48 = vld [vmem:[#allocation2 + $0x94] sm:$0xf] }
  0xf1   : > { %v1819_v21 = vsel %vm6785_vm5, %v1814_v18, %v1818_v32  ;;  %v2231_v59 = vrot.slane %v2229_v10, 4  ;;  %v1840_v16 = vshll.u32 %v7327_v47, 16  ;;  %v9259_v7 = vshrl.u32 %v7327_v47, 16 }
  0xf2   : > { %v1829_v61 = vsel %vm6785_vm5, %v1824_v37, %v1828_v40  ;;  %v1671_v46 = vsel %vm6771_vm4, %v5395_v50, %v1670_v0  ;;  %v1672_v3 = vrot.slane %v1670_v0, 4  ;;  %v1838_v29 = vrot.slane %v1837_v56, 4  ;;  %v1746_v40 = vld [vmem:[#allocation2 + $0x44] sm:$0x1]  ;;  %v6578_v50 = vld [vmem:[%s9230_s3 + $0x210] sm:$0xff]  }
  0xf3   : > { %v1846_v35 = vrot.slane %v9259_v7, 4  ;;  %4489 = vmatmul.mubr.bf16.vlgmr.msra.gmra.mrb[48].mxu0 %v7639_v60  ;;  %v7730_v22 = vsel %vm6771_vm4, %v5404_v53, %v2229_v10  ;;  %v7734_v32 = vsel %vm6771_vm4, %v2231_v59, %v2232_v51  ;;  %v1842_v47 = vrot.slane %v1840_v16, 5  ;;  %v6613_v60 = vld [vmem:[%s9230_s3 + $0x200] sm:$0xff]   ;;  %v2146_v53 = vld [vmem:[#allocation2 + $0x3c] sm:$0xe] }
  0xf4   : > { %v1850_v39 = vshll.u32 %v1745_v9, 16  ;;  %4496 = vmatprep.mubr.bf16.mxu0 %v5514_v44  ;;  %6397 = vmatpush3.bf16.msra.mxu0 %v6613_v60  ;;  %v7744_v18 = vcombine.low %v1819_v21, %v1829_v61  ;;  %v7746_v12 = vrot.slane %v1999_v17, 4  ;;  %v7748_v31 = vrot.slane %v2002_v52, 5  ;;  %v1542_v51 = vld [vmem:[#allocation2 + $0x84] sm:$0xe] }
  0xf5   : > { %v1674_v9 = vsel %vm6771_vm4, %v1672_v3, %v1673_v38  ;;  %6398 = vmatprep.subr.bf16.mxu0 %v6573_v13  ;;  %v1847_v19 = vor.u32 %v1846_v35, %v1842_v47  ;;  %v2023_v44 = vshrl.u32 %v1732_v58, 16  ;;  %v5516_v17 = vcombine.low %v7730_v22, %v7734_v32 }
  0xf6   : > { %v5475_v10 = vcombine.low %v1671_v46, %v1674_v9  ;;  %v1852_v1 = vrot.slane %v1850_v39, 5  ;;  %v1843_v52 = vsel %vm6785_vm5, %v1838_v29, %v1842_v47  ;;  %v2026_v37 = vshll.u32 %v1732_v58, 16  ;;  %v1734_v39 = vld [vmem:[#allocation2 + $0x9c] sm:$0xf] }
  0xf7   : > { %v5492_v0 = vcombine.low %v1732_v58, %v7736_v48  ;;  %v1848_v38 = vrot.slane %v1847_v19, 4  ;;  %v5405_v56 = vrot.slane %v2146_v53, 9  ;;  %v2236_v21 = vrot.slane %v7424_v25, 5  ;;  %v7788_v19 = vld [vmem:[#allocation2 + $0xa0] sm:$0xf] }
  0xf8   : > { %4408 = vmatmul.mubr.bf16.gmra.mrb[56].mxu1 %v5475_v10  ;;  %v2239_v59 = vrot.slane %v1746_v40, 5  ;;  %6399 = vmatpush3.bf16.msra.mxu0 %v6573_v13  ;;  %v5396_v16 = vrot.slane %v1542_v51, 9  ;;  %v1677_v7 = vrot.slane %v7633_v57, 5  ;;  %v1680_v35 = vrot.slane %v7635_v8, 5  ;;  %v6583_v13 = vld [vmem:[%s9230_s3 + $0x218] sm:$0xff]  }
  0xf9   : > { %4415 = vmatprep.mubr.bf16.mxu1 %v5492_v0  ;;  %v1861_v61 = vor.u32 %v7477_v27, %v7436_v6  ;;  %v1853_v46 = vsel %vm6785_vm5, %v1848_v38, %v1852_v1  ;;  %v7767_v3 = vrot.slane %v2023_v44, 4  ;;  %v2238_v29 = vrot.slane %v2236_v21, 4  ;;  %6400 = vmatprep.subr.bf16.mxu0 %v6578_v50  ;;  %v1747_v0 = vld [vmem:[#allocation2 + $0x50] sm:$0x1]  ;;  %v2147_v38 = vld [vmem:[#allocation2 + $0x48] sm:$0xe] }
  0xfa   : > { %v1864_v47 = vshll.u32 %v7424_v25, 16  ;;  %v7775_v57 = vsel %vm6771_vm4, %v5405_v56, %v2236_v21  ;;  %v1678_v6 = vsel %vm6771_vm4, %v5396_v16, %v1677_v7  ;;  %v1679_v27 = vrot.slane %v1677_v7, 4 }
  0xfb   : > { %v7779_v8 = vrot.slane %v1861_v61, 4  ;;  %4497 = vmatmul.mubr.bf16.gmra.mrb[52].mxu0 %v7704_v14  ;;  %v7784_v58 = vsel %vm6771_vm4, %v2238_v29, %v2239_v59  ;;  %v9260_v9 = vshrl.u32 %v7424_v25, 16  ;;  %v1874_v10 = vshll.u32 %v1746_v40, 16  ;;  %v1543_v59 = vld [vmem:[#allocation2 + $0x90] sm:$0xe] }
  0xfc   : > { %v1866_v60 = vrot.slane %v1864_v47, 5  ;;  %4504 = vmatprep.mubr.bf16.mxu0 %v5515_v24  ;;  %v7793_v1 = vcombine.low %v1843_v52, %v1853_v46  ;;  %v7795_v44 = vrot.slane %v2026_v37, 5  ;;  %v1681_v51 = vsel %vm6771_vm4, %v1679_v27, %v1680_v35  ;;  %6401 = vmatpush3.bf16.msra.mxu0 %v6578_v50  ;;  %v6614_v46 = vld [vmem:[#allocation2 + $0x94] sm:$0xf] }
  0xfd   : > { %v1870_v53 = vrot.slane %v9260_v9, 4  ;;  %v5476_v25 = vcombine.low %v1678_v6, %v1681_v51  ;;  %v1876_v56 = vrot.slane %v1874_v10, 5  ;;  %v2047_v21 = vshrl.u32 %v1734_v39, 16  ;;  %6402 = vmatprep.subr.bf16.mxu0 %v6583_v13  ;;  %v7821_v10 = vld [vmem:[#allocation2 + $0xac] sm:$0xf] }
  0xfe   : > { %v5517_v41 = vcombine.low %v7775_v57, %v7784_v58  ;;  %v1867_v24 = vsel %vm6785_vm5, %v7779_v8, %v1866_v60  ;;  %v2050_v52 = vshll.u32 %v1734_v39, 16  ;;  %v5493_v50 = vcombine.low %v1734_v39, %v7788_v19 }
  0xff   : > { %v1871_v40 = vor.u32 %v1870_v53, %v1866_v60  ;;  %v5406_v16 = vrot.slane %v2147_v38, 9  ;;  %v2243_v7 = vrot.slane %v7466_v4, 5  ;;  %v2246_v35 = vrot.slane %v1747_v0, 5  ;;  %v7819_v53 = vld [vmem:[#allocation2 + $0xa8] sm:$0xf] }
 0x100   : > { %4416 = vmatmul.mubr.bf16.gmra.mrb[60].mxu1 %v5476_v25  ;;  %v5397_v61 = vrot.slane %v1543_v59, 9  ;;  %v1684_v29 = vrot.slane %v6614_v46, 5  ;;  %v1885_v47 = vor.u32 %v7537_v33, %v7489_v2  ;;  %v1888_v6 = vshll.u32 %v7466_v4, 16  ;;  %6403 = vmatpush3.bf16.msra.mxu0 %v6583_v13  ;;  %v6589_v2 = vld [vmem:[%s9230_s3 + $0x228] sm:$0xff]   ;;  %v1544_v25 = vld [vmem:[#allocation2 + $0x9c] sm:$0xe] }
 0x101   : > { %v1872_v37 = vrot.slane %v1871_v40, 4  ;;  %4423 = vmatprep.mubr.bf16.mxu1 %v5493_v50  ;;  %v7815_v8 = vrot.slane %v2047_v21, 4  ;;  %v2245_v39 = vrot.slane %v2243_v7, 4  ;;  %v9261_v60 = vshrl.u32 %v7466_v4, 16  ;;  %6404 = vmatprep.subr.bf16.mxu0 %v6586_v49  ;;  %v2148_v50 = vld [vmem:[#allocation2 + $0x54] sm:$0xe] }
 0x102   : > { %v7828_v13 = vrot.slane %v2050_v52, 5  ;;  %v7832_v51 = vsel %vm6771_vm4, %v5406_v16, %v2243_v7  ;;  %v1685_v4 = vsel %vm6771_vm4, %v5397_v61, %v1684_v29  ;;  %v1686_v38 = vrot.slane %v1684_v29, 4  ;;  %v9262_v7 = vld [vmem:[#allocation3_spill] sm:$0xff] }
 0x103   : > { %v1877_v27 = vsel %vm6785_vm5, %v1872_v37, %v1876_v56  ;;  %v1894_v9 = vrot.slane %v9261_v60, 4  ;;  %v7826_v33 = vpop.f32.mrb[0].mxu0  ;;  %4505 = vmatmul.mubr.bf16.gmra.mrb[56].mxu0 %v7744_v18  ;;  %v7842_v21 = vsel %vm6771_vm4, %v2245_v39, %v2246_v35  ;;  %v1890_v59 = vrot.slane %v1888_v6, 5  ;;  %v1748_v29 = vld [vmem:[#allocation2 + $0x5c] sm:$0x1]  ;;  %v9264_v56 = vld [vmem:[#allocation6_spill] sm:$0xff] }
 0x104   : > { %v7836_v40 = vpop.f32.mrb[1].mxu0  ;;  %v1898_v52 = vshll.u32 %v1747_v0, 16  ;;  %4512 = vmatprep.mubr.bf16.mxu0 %v5516_v17  ;;  %v7849_v16 = vcombine.low %v1867_v24, %v1877_v27  ;;  %v9263_v61 = vrot.slane %v9262_v7, 5  ;;  %v1886_v46 = vrot.slane %v1885_v47, 4  ;;  %6405 = vmatpush3.bf16.msra.mxu0 %v6586_v49  ;;  %v6592_v17 = vld [vmem:[%s9230_s3 + $0x230] sm:$0xff]  }
 0x105   : > { %v7844_v37 = vpop.f32.mrb[2].mxu0  ;;  %v2071_v35 = vshrl.u32 %v7819_v53, 16  ;;  %v5518_v6 = vcombine.low %v7832_v51, %v7842_v21  ;;  %v1895_v22 = vor.u32 %v1894_v9, %v1890_v59  ;;  %6406 = vmatprep.subr.bf16.mxu0 %v6589_v2  ;;  %v2074_v24 = vshll.u32 %v7819_v53, 16 }
 0x106   : > { %v1688_v18 = vsel %vm6771_vm4, %v1686_v38, %v9263_v61  ;;  %v7856_v0 = vpop.f32.mrb[3].mxu0  ;;  %v1900_v32 = vrot.slane %v1898_v52, 5  ;;  %v5494_v49 = vcombine.low %v7819_v53, %v7821_v10  ;;  %v5407_v27 = vrot.slane %v2148_v50, 9  ;;  %v6615_v52 = vld [vmem:[#allocation2 + $0xa0] sm:$0xf] }
 0x107   : > { %v5477_v39 = vcombine.low %v1685_v4, %v1688_v18  ;;  %v1896_v60 = vrot.slane %v1895_v22, 4  ;;  %v2250_v38 = vrot.slane %v7528_v45, 5  ;;  %v2253_v4 = vrot.slane %v1748_v29, 5  ;;  %v6616_v61 = vld [vmem:[#allocation2 + $0xa4] sm:$0x1] }
 0x108   : > { %v5398_v9 = vrot.slane %v1544_v25, 9  ;;  %v1691_v7 = vrot.slane %v6615_v52, 5  ;;  %v1694_v18 = vrot.slane %v6616_v61, 5  ;;  %v1909_v14 = vor.u32 %v9264_v56, %v7540_v63  ;;  %6407 = vmatpush3.bf16.msra.mxu0 %v6589_v2  ;;  %v2149_v61 = vld [vmem:[#allocation2 + $0x60] sm:$0xe] }
 0x109   : > { %4424 = vmatmul.mubr.bf16.gmra.mrb[64].mxu1 %v5477_v39  ;;  %v1912_v47 = vshll.u32 %v7528_v45, 16  ;;  %v1891_v53 = vsel %vm6785_vm5, %v1886_v46, %v1890_v59  ;;  %v1901_v50 = vsel %vm6785_vm5, %v1896_v60, %v1900_v32  ;;  %v2252_v39 = vrot.slane %v2250_v38, 4  ;;  %6408 = vmatprep.subr.bf16.mxu0 %v6592_v17  ;;  %v7884_v59 = vld [vmem:[#allocation2 + $0xb4] sm:$0xf]  ;;  %v7895_v60 = vld [vmem:[#allocation2 + $0xb8] sm:$0xf] }
 0x10a   : > { %4431 = vmatprep.mubr.bf16.mxu1 %v5494_v49  ;;  %v9265_v25 = vshrl.u32 %v7528_v45, 16  ;;  %v6595_v49 = vld [vmem:[%s9230_s3 + $0x238] sm:$0xff]   ;;  %v7880_v52 = vrot.slane %v2071_v35, 4  ;;  %v1692_v63 = vsel %vm6771_vm4, %v5398_v9, %v1691_v7  ;;  %v1693_v2 = vrot.slane %v1691_v7, 4  ;;  %v1545_v9 = vld [vmem:[#allocation2 + $0xa8] sm:$0xe] }
 0x10b   : > { %v1910_v56 = vrot.slane %v1909_v14, 4  ;;  %4513 = vmatmul.mubr.bf16.gmra.mrb[60].mxu0 %v7793_v1  ;;  %v7889_v45 = vsel %vm6771_vm4, %v5407_v27, %v2250_v38  ;;  %v7893_v46 = vsel %vm6771_vm4, %v2252_v39, %v2253_v4  ;;  %v1914_v32 = vrot.slane %v1912_v47, 5  ;;  %v1749_v4 = vld [vmem:[#allocation2 + $0x68] sm:$0x1] }
 0x10c   : > { %v1918_v22 = vrot.slane %v9265_v25, 4  ;;  %v1922_v35 = vshll.u32 %v1748_v29, 16  ;;  %4520 = vmatprep.mubr.bf16.mxu0 %v5517_v41  ;;  %v7900_v14 = vcombine.low %v1891_v53, %v1901_v50  ;;  %v7902_v1 = vrot.slane %v2074_v24, 5  ;;  %6409 = vmatpush3.bf16.msra.mxu0 %v6592_v17  ;;  %v9266_v17 = vld [vmem:[#allocation5_spill] sm:$0xff] }
 0x10d   : > { %v1695_v27 = vsel %vm6771_vm4, %v1693_v2, %v1694_v18  ;;  %v2095_v38 = vshrl.u32 %v7884_v59, 16  ;;  %v1915_v47 = vsel %vm6785_vm5, %v1910_v56, %v1914_v32  ;;  %6410 = vmatprep.subr.bf16.mxu0 %v6595_v49  ;;  %v5519_v57 = vcombine.low %v7889_v45, %v7893_v46  ;;  %v6618_v2 = vld [vmem:[#allocation2 + $0xb0] sm:$0x1]  ;;  %v7999_v46 = vld [vmem:[#allocation2 + $0x80] sm:$0x1] }
 0x10e   : > { %v5478_v29 = vcombine.low %v1692_v63, %v1695_v27  ;;  %v1919_v7 = vor.u32 %v1918_v22, %v1914_v32  ;;  %v1924_v39 = vrot.slane %v1922_v35, 5  ;;  %v2098_v58 = vshll.u32 %v7884_v59, 16  ;;  %v6617_v22 = vld [vmem:[#allocation2 + $0xac] sm:$0xf]  ;;  %v9267_v32 = vld [vmem:[#allocation7_spill] sm:$0xff]  ;;  %v9268_v35 = vld [vmem:[#allocation8_spill] sm:$0xff] }
 0x10f   : > { %v5495_v41 = vcombine.low %v7884_v59, %v7895_v60  ;;  %v5408_v24 = vrot.slane %v2149_v61, 9  ;;  %v2257_v53 = vrot.slane %v9266_v17, 5  ;;  %v2260_v50 = vrot.slane %v1749_v4, 5 }
 0x110   : > { %v1920_v18 = vrot.slane %v1919_v7, 4  ;;  %v5399_v25 = vrot.slane %v1545_v9, 9  ;;  %v1698_v63 = vrot.slane %v6617_v22, 5  ;;  %v1701_v56 = vrot.slane %v6618_v2, 5  ;;  %6411 = vmatpush3.bf16.msra.mxu0 %v6595_v49 }
 0x111   : > { %4432 = vmatmul.mubr.bf16.gmra.mrb[68].mxu1 %v5478_v29  ;;  %v1933_v27 = vor.u32 %v9268_v35, %v9267_v32  ;;  %v1936_v11 = vshll.u32 %v9266_v17, 16  ;;  %v2259_v29 = vrot.slane %v2257_v53, 4  ;;  %v9269_v9 = vshrl.u32 %v9266_v17, 16  ;;  %v2150_v35 = vld [vmem:[#allocation2 + $0x6c] sm:$0xe] }
 0x112   : > { %4439 = vmatprep.mubr.bf16.mxu1 %v5495_v41  ;;  %v1925_v59 = vsel %vm6785_vm5, %v1920_v18, %v1924_v39  ;;  %v7926_v22 = vrot.slane %v2095_v38, 4  ;;  %v1699_v2 = vsel %vm6771_vm4, %v5399_v25, %v1698_v63  ;;  %v1700_v32 = vrot.slane %v1698_v63, 4  ;;  %v7935_v17 = vld [vmem:[#allocation2 + $0x74] sm:$0x1] }
 0x113   : > { %v1942_v7 = vrot.slane %v9269_v9, 4  ;;  %v7924_v41 = vcombine.low %v1915_v47, %v1925_v59  ;;  %4521 = vmatmul.mubr.bf16.gmra.mrb[64].mxu0 %v7849_v16  ;;  %v7933_v49 = vsel %vm6771_vm4, %v5408_v24, %v2257_v53  ;;  %v1938_v39 = vrot.slane %v1936_v11, 5  ;;  %v1546_v24 = vld [vmem:[#allocation2 + $0xb4] sm:$0xe]  ;;  %v6619_v59 = vld [vmem:[%s9228_s1] ss:$0 sm:$0xff] }
 0x114   : > { %v1946_v18 = vshll.u32 %v1749_v4, 16  ;;  %v5812_v61 = vunpack.c.l.bf16 %v5908_v62  ;;  %4528 = vmatprep.mubr.bf16.mxu0 %v5518_v6  ;;  %v7942_v38 = vsel %vm6771_vm4, %v2259_v29, %v2260_v50  ;;  %v1702_v16 = vsel %vm6771_vm4, %v1700_v32, %v1701_v56 }
 0x115   : > { %v1934_v47 = vrot.slane %v1933_v27, 4  ;;  %v5813_v25 = vunpack.c.h.bf16 %v5908_v62  ;;  %v5479_v53 = vcombine.low %v1699_v2, %v1702_v16  ;;  %v1943_v11 = vor.u32 %v1942_v7, %v1938_v39  ;;  %v6620_v27 = vld [vmem:[#allocation2 + $0xb8] sm:$0xf]  ;;  %v9270_v2 = vld [vmem:[#allocation4_spill] sm:$0xff] }
 0x116   : > { %v1948_v4 = vrot.slane %v1946_v18, 5  ;;  %v5409_v63 = vrot.slane %v2150_v35, 9  ;;  %v486_v51 = vmul.f32 %v6619_v59, %v5812_v61  ;;  %v2264_v6 = vrot.slane %v7594_v54, 5 }
 0x117   : > { %v487_v21 = vmul.f32 %v6619_v59, %v5813_v25  ;;  %v2267_v50 = vrot.slane %v7935_v17, 5  ;;  %v7951_v29 = vrot.slane %v2098_v58, 5  ;;  %v1944_v56 = vrot.slane %v1943_v11, 4  ;;  %v6621_v11 = vld [vmem:[#allocation2 + $0xbc] sm:$0x1] }
 0x118   : > { %v5400_v62 = vrot.slane %v1546_v24, 9  ;;  %v1705_v9 = vrot.slane %v6620_v27, 5  ;;  %v1939_v7 = vsel %vm6785_vm5, %v1934_v47, %v1938_v39  ;;  %v525_v32 = vadd.f32 %v9270_v2, %v486_v51 }
 0x119   : > { %4440 = vmatmul.mubr.bf16.gmra.mrb[72].mxu1 %v5479_v53  ;;  %v526_v35 = vadd.f32 %v9270_v2, %v487_v21  ;;  %v2266_v61 = vrot.slane %v2264_v6, 4  ;;  %v5520_v18 = vcombine.low %v7933_v49, %v7942_v38  ;;  %v1949_v58 = vsel %vm6785_vm5, %v1944_v56, %v1948_v4  ;;  %v7992_v56 = vld [vmem:[#allocation2 + $0x18] sm:$0xf] }
 0x11a   : > { %v7963_v16 = vsel %vm6771_vm4, %v5409_v63, %v2264_v6  ;;  %v1957_v25 = vor.u32 %v7619_v30, %v7614_v5  ;;  %v557_v39 = vmax.f32 %v525_v32, 0.0  ;;  %v1708_v49 = vrot.slane %v6621_v11, 5 }
 0x11b   : > { %v7967_v24 = vpop.f32.mrb[4].mxu0  ;;  %v558_v47 = vmax.f32 %v526_v35, 0.0  ;;  %v7971_v53 = vsel %vm6771_vm4, %v2266_v61, %v2267_v50  ;;  %4529 = vmatmul.mubr.bf16.gmra.mrb[68].mxu0 %v7900_v14  ;;  %v7976_v4 = vcombine.low %v1939_v7, %v1949_v58  ;;  %v7980_v63 = vsel %vm6771_vm4, %v5400_v62, %v1705_v9  ;;  %v2151_v50 = vld [vmem:[#allocation2 + $0x78] sm:$0xe]  ;;  %v7994_v62 = vld [vmem:[#allocation2 + $0x1c] sm:$0xf] }
 0x11c   : > { %9271 = vst [vmem:[#allocation3_spill] sm:$0xff] %v7967_v24  ;;  %v7973_v38 = vpop.f32.mrb[5].mxu0  ;;  %v1707_v5 = vrot.slane %v1705_v9, 4  ;;  %v1960_v30 = vshll.u32 %v7594_v54, 16  ;;  %4536 = vmatprep.mubr.bf16.mxu0 %v5519_v57  ;;  %v5716_v51 = vpack.c.bf16 %v557_v39, %v557_v39  ;;  %v1966_v6 = vrot.slane %v1964_v42, 4 }
 0x11d   : > { %9272 = vst [vmem:[#allocation6_spill] sm:$0xff] %v7973_v38  ;;  %v7983_v59 = vpop.f32.mrb[6].mxu0  ;;  %v5717_v21 = vpack.c.bf16 %v558_v47, %v558_v47  ;;  %v1958_v9 = vrot.slane %v1957_v25, 4  ;;  %v1970_v45 = vshll.u32 %v7935_v17, 16  ;;  %v2271_v57 = vrot.slane %v7631_v34, 5 }
 0x11e   : > { %9273 = vst [vmem:[#allocation5_spill] sm:$0xff] %v7983_v59  ;;  %v7996_v27 = vpop.f32.mrb[7].mxu0  ;;  %v1962_v7 = vrot.slane %v1960_v30, 5  ;;  %v914_v2 = vshrl.u32 %v5716_v51, 16  ;;  %v917_v32 = vshll.u32 %v5716_v51, 16  ;;  %v8006_v58 = vsel %vm6771_vm4, %v1707_v5, %v1708_v49 }
 0x11f   : > { %9274 = vst [vmem:[#allocation7_spill] sm:$0xff] %v7996_v27  ;;  %v922_v35 = vshrl.u32 %v5717_v21, 16  ;;  %v925_v54 = vshll.u32 %v5717_v21, 16  ;;  %v1089_v61 = vld [vmem:[#allocation2 + $0xc0] sm:$0xf]  ;;  %v1972_v25 = vrot.slane %v1970_v45, 5  ;;  %v5480_v28 = vcombine.low %v7980_v63, %v8006_v58 }
 0x120   : > { %v8002_v42 = vpop.f32.mrb[0].mxu1  ;;  %v1967_v39 = vor.u32 %v1966_v6, %v1962_v7  ;;  %v5410_v47 = vrot.slane %v2151_v50, 9  ;;  %v916_v17 = vrot.slane %v914_v2, 7  ;;  %v2273_v14 = vrot.slane %v2271_v57, 4  ;;  %v8059_v58 = vld [vmem:[#allocation2 + $0x28] sm:$0xf] }
 0x121   : > { %v8008_v11 = vpop.f32.mrb[1].mxu1  ;;  %v8010_v30 = vrot.slane %v922_v35, 7  ;;  %v2274_v51 = vrot.slane %v7999_v46, 5  ;;  %v2368_v59 = vshrl.u32 %v7992_v56, 16  ;;  %v2371_v38 = vshll.u32 %v7992_v56, 16 }
 0x122   : > { %v8013_v27 = vpop.f32.mrb[2].mxu1  ;;  %v1968_v21 = vrot.slane %v1967_v39, 4  ;;  %v2377_v49 = vshll.u32 %v7994_v62, 16  ;;  %v919_v6 = vor.u32 %v917_v32, %v916_v17  ;;  %v920_v50 = vrot.slane %v916_v17, 4  ;;  %v8023_v35 = vld [vmem:[#allocation2 + $0x20] sm:$0x1] }
 0x123   : > { %v8018_v5 = vpop.f32.mrb[3].mxu1  ;;  %v927_v45 = vor.u32 %v925_v54, %v8010_v30  ;;  %v1963_v2 = vsel %vm6785_vm5, %v1958_v9, %v1962_v7  ;;  %4537 = vmatmul.mubr.bf16.gmra.mrb[72].mxu0 %v7924_v41  ;;  %v8028_v39 = vsel %vm6771_vm4, %v5410_v47, %v2271_v57  ;;  %v8032_v24 = vsel %vm6771_vm4, %v2273_v14, %v2274_v51  ;;  %v8052_v51 = vld [vmem:[#allocation2 + $0x8c] sm:$0x1] }
 0x124   : > { %9275 = vst [vmem:[#allocation8_spill] sm:$0xff] %v8018_v5  ;;  %v2370_v5 = vrot.slane %v2368_v59, 4  ;;  %v2373_v32 = vrot.slane %v2371_v38, 5  ;;  %4544 = vmatprep.mubr.bf16.mxu0 %v5520_v18  ;;  %v1090_v9 = vsel %vm6848_vm13, %v919_v6, %v1089_v61  ;;  %v1973_v41 = vsel %vm6785_vm5, %v1968_v21, %v1972_v25  ;;  %v2152_v38 = vld [vmem:[#allocation2 + $0x84] sm:$0xe] }
 0x125   : > { %v928_v54 = vsel %vm6841_vm12, %v920_v50, %v927_v45  ;;  %v2379_v7 = vrot.slane %v2377_v49, 5  ;;  %1091 = vst [vmem:[#allocation2 + $0xc0] sm:$0xf] %v1090_v9  ;;  %v2381_v47 = vshrl.u32 %v7994_v62, 16  ;;  %v2387_v14 = vshll.u32 %v8023_v35, 16 }
 0x126   : > { %1092 = vst [vmem:[#allocation2 + $0xc4] sm:$0xf] %v928_v54  ;;  %v2374_v57 = vor.u32 %v2373_v32, %v2370_v5  ;;  %v1981_v18 = vor.u32 %v7696_v23, %v7694_v43  ;;  %v1984_v59 = vshll.u32 %v7631_v34, 16  ;;  %v9276_v61 = vshrl.u32 %v7631_v34, 16 }
 0x127   : > { %v1994_v17 = vshll.u32 %v7999_v46, 16  ;;  %v8054_v21 = vcombine.low %v1963_v2, %v1973_v41  ;;  %v2383_v49 = vrot.slane %v2381_v47, 4  ;;  %v2389_v5 = vrot.slane %v2387_v14, 5 }
 0x128   : > { %v1990_v25 = vrot.slane %v9276_v61, 4  ;;  %v2375_v23 = vrot.slane %v2374_v57, 4  ;;  %v1986_v6 = vrot.slane %v1984_v59, 5  ;;  %v5411_v50 = vrot.slane %v2152_v38, 9 }
 0x129   : > { %v2278_v63 = vrot.slane %v7692_v55, 5  ;;  %v2384_v34 = vor.u32 %v2383_v49, %v2379_v7  ;;  %v1982_v45 = vrot.slane %v1981_v18, 4  ;;  %v2281_v46 = vrot.slane %v8052_v51, 5 }
 0x12a   : > { %v2392_v32 = vshrl.u32 %v8044_v20, 16  ;;  %v2380_v2 = vsel %vm6785_vm5, %v2375_v23, %v2379_v7  ;;  %v1991_v54 = vor.u32 %v1990_v25, %v1986_v6  ;;  %v1996_v9 = vrot.slane %v1994_v17, 5 }
 0x12b   : > { %v2280_v41 = vrot.slane %v2278_v63, 4  ;;  %4545 = vmatmul.mubr.bf16.gmra.mrb[76].mxu0 %v7976_v4  ;;  %v2385_v57 = vrot.slane %v2384_v34, 4  ;;  %v2395_v14 = vshll.u32 %v8044_v20, 16  ;;  %v2401_v38 = vshll.u32 %v8059_v58, 16 }
 0x12c   : > { %v2394_v47 = vrot.slane %v2392_v32, 4  ;;  %v8070_v18 = vld [vmem:[#allocation2 + $0xc0] sm:$0xf]  ;;  %v9278_v7 = vcombine.low %v7963_v16, %v7971_v53  ;;  %v1992_v25 = vrot.slane %v1991_v54, 4  ;;  %v8079_v4 = vsel %vm6771_vm4, %v5411_v50, %v2278_v63  ;;  %v8093_v32 = vld [vmem:[#allocation2 + $0x2c] sm:$0x1] }
 0x12d   : > { %v8068_v59 = vpop.f32.mrb[8].mxu0  ;;  %v8072_v61 = vld [vmem:[#allocation2 + $0xc4] sm:$0xf]  ;;  %v8083_v17 = vsel %vm6771_vm4, %v2280_v41, %v2281_v46  ;;  %v2405_v23 = vshrl.u32 %v8059_v58, 16  ;;  %v2119_v49 = vshrl.u32 %v8070_v18, 16  ;;  %v1987_v16 = vsel %vm6785_vm5, %v1982_v45, %v1986_v6 }
 0x12e   : > { %9277 = vst [vmem:[#allocation4_spill] sm:$0xff] %v8068_v59  ;;  %4552 = vmatprep.mubr.bf16.mxu0 %v9278_v7  ;;  %v5496_v34 = vcombine.low %v8070_v18, %v8072_v61  ;;  %v5529_v53 = vcombine.low %v7992_v56, %v7994_v62  ;;  %v8095_v50 = vpop.f32.mrb[9].mxu0  ;;  %v2390_v63 = vsel %vm6785_vm5, %v2385_v57, %v2389_v5  ;;  %v2397_v54 = vrot.slane %v2395_v14, 5  ;;  %v8173_v59 = vld [vmem:[#allocation2 + $0x3c] sm:$0xf] }
 0x12f   : > { %9279 = vst [vmem:[#allocation9_spill] sm:$0xff] %v8095_v50  ;;  %v1997_v46 = vsel %vm6785_vm5, %v1992_v25, %v1996_v9  ;;  %v2005_v41 = vor.u32 %v7748_v31, %v7746_v12  ;;  %v8103_v7 = vpop.f32.mrb[10].mxu0  ;;  %v5545_v45 = vcombine.low %v2380_v2, %v2390_v63  ;;  %v2403_v9 = vrot.slane %v2401_v38, 5  ;;  %v2153_v12 = vld [vmem:[#allocation2 + $0x90] sm:$0xe] }
 0x130   : > { %9280 = vst [vmem:[#allocation10_spill] sm:$0xff] %v8103_v7  ;;  %4447 = vmatprep.mubr.bf16.mxu1 %v5496_v34  ;;  %v8109_v50 = vpop.f32.mrb[11].mxu0  ;;  %v2398_v5 = vor.u32 %v2397_v54, %v2394_v47  ;;  %v2407_v57 = vrot.slane %v2405_v23, 4  ;;  %v2411_v14 = vshll.u32 %v8093_v32, 16  ;;  %v8112_v31 = vrot.slane %v2119_v49, 4 }
 0x131   : > { %9281 = vst [vmem:[#allocation11_spill] sm:$0xff] %v8109_v50  ;;  %4448 = vmatmul.mubr.bf16.gmra.mrb[76].mxu1 %v5480_v28  ;;  %v5506_v25 = vcombine.low %v1987_v16, %v1997_v46  ;;  %v2008_v56 = vshll.u32 %v7692_v55, 16  ;;  %v9282_v2 = vshrl.u32 %v7692_v55, 16  ;;  %v8117_v63 = vld [vmem:[#allocation2 + $0x98] sm:$0x1]  ;;  %v2018_v47 = vshll.u32 %v8052_v51, 16 }
 0x132   : > { %4649 = vmatprep.mubr.bf16.mxu1 %v5545_v45  ;;  %v2399_v6 = vrot.slane %v2398_v5, 4  ;;  %v2408_v43 = vor.u32 %v2407_v57, %v2403_v9  ;;  %v2413_v28 = vrot.slane %v2411_v14, 5  ;;  %v8120_v38 = vld [vmem:[#allocation2 + $0x30] sm:$0xf]  ;;  %v2006_v23 = vrot.slane %v2005_v41, 4 }
 0x133   : > { %v2014_v34 = vrot.slane %v9282_v2, 4  ;;  %4553 = vmatmul.mubr.bf16.gmra.mrb[80].mxu0 %v8054_v21  ;;  %v2010_v49 = vrot.slane %v2008_v56, 5  ;;  %v5412_v54 = vrot.slane %v2153_v12, 9  ;;  %v2285_v16 = vrot.slane %v7736_v48, 5  ;;  %v8124_v46 = vld [vmem:[#allocation2 + $0x34] sm:$0xf] }
 0x134   : > { %v9283_v55 = vcombine.low %v8028_v39, %v8032_v24  ;;  %v2404_v45 = vsel %vm6785_vm5, %v2399_v6, %v2403_v9  ;;  %v2409_v5 = vrot.slane %v2408_v43, 4  ;;  %v2288_v21 = vrot.slane %v8117_v63, 5  ;;  %v8142_v39 = vld [vmem:[#allocation2 + $0x38] sm:$0x1] }
 0x135   : > { %v2015_v41 = vor.u32 %v2014_v34, %v2010_v49  ;;  %v2020_v56 = vrot.slane %v2018_v47, 5  ;;  %v8136_v57 = vsel %vm6771_vm4, %v5412_v54, %v2285_v16  ;;  %v2287_v14 = vrot.slane %v2285_v16, 4 }
 0x136   : > { %4560 = vmatprep.mubr.bf16.mxu0 %v9283_v55  ;;  %v2414_v24 = vsel %vm6785_vm5, %v2409_v5, %v2413_v28  ;;  %v2416_v43 = vshrl.u32 %v8120_v38, 16  ;;  %v2419_v6 = vshll.u32 %v8120_v38, 16  ;;  %v2425_v9 = vshll.u32 %v8124_v46, 16 }
 0x137   : > { %v8138_v12 = vpop.f32.mrb[4].mxu1  ;;  %v5546_v34 = vcombine.low %v2404_v45, %v2414_v24  ;;  %v2016_v47 = vrot.slane %v2015_v41, 4  ;;  %v8151_v54 = vsel %vm6771_vm4, %v2287_v14, %v2288_v21  ;;  %v2429_v16 = vshrl.u32 %v8124_v46, 16  ;;  %v2154_v24 = vld [vmem:[#allocation2 + $0x9c] sm:$0xe] }
 0x138   : > { %v8147_v2 = vpop.f32.mrb[5].mxu1  ;;  %v2011_v28 = vsel %vm6785_vm5, %v2006_v23, %v2010_v49  ;;  %v2418_v5 = vrot.slane %v2416_v43, 4  ;;  %v2421_v51 = vrot.slane %v2419_v6, 5  ;;  %v2427_v50 = vrot.slane %v2425_v9, 5  ;;  %v8170_v9 = vld [vmem:[#allocation2 + $0xa4] sm:$0x1] }
 0x139   : > { %v8154_v55 = vpop.f32.mrb[6].mxu1  ;;  %4650 = vmatmul.mubr.bf16.vlgmr.msra.gmra.mrb[80].mxu1 %v5529_v53  ;;  %v2021_v45 = vsel %vm6785_vm5, %v2016_v47, %v2020_v56  ;;  %v2431_v41 = vrot.slane %v2429_v16, 4  ;;  %v2435_v21 = vshll.u32 %v8142_v39, 16  ;;  %v2029_v14 = vor.u32 %v7795_v44, %v7767_v3 }
 0x13a   : > { %v8158_v7 = vpop.f32.mrb[7].mxu1  ;;  %4657 = vmatprep.mubr.bf16.mxu1 %v5546_v34  ;;  %v5524_v53 = vcombine.low %v8136_v57, %v8151_v54  ;;  %v2422_v23 = vor.u32 %v2421_v51, %v2418_v5  ;;  %v2032_v49 = vshll.u32 %v7736_v48, 16  ;;  %v9284_v43 = vshrl.u32 %v7736_v48, 16  ;;  %v8178_v48 = vld [vmem:[#allocation2 + $0x40] sm:$0xf] }
 0x13b   : > { %4561 = vmatmul.mubr.bf16.gmra.mrb[84].mxu0 %v5506_v25  ;;  %v2432_v56 = vor.u32 %v2431_v41, %v2427_v50  ;;  %v2437_v34 = vrot.slane %v2435_v21, 5  ;;  %v2030_v47 = vrot.slane %v2029_v14, 4  ;;  %v2042_v16 = vshll.u32 %v8117_v63, 16 }
 0x13c   : > { %v2038_v6 = vrot.slane %v9284_v43, 4  ;;  %v9285_v3 = vcombine.low %v8079_v4, %v8083_v17  ;;  %v5507_v44 = vcombine.low %v2011_v28, %v2021_v45  ;;  %v2423_v51 = vrot.slane %v2422_v23, 4  ;;  %v8190_v45 = vld [vmem:[#allocation2 + $0x44] sm:$0x1] }
 0x13d   : > { %v2034_v57 = vrot.slane %v2032_v49, 5  ;;  %v5413_v54 = vrot.slane %v2154_v24, 9  ;;  %v2433_v25 = vrot.slane %v2432_v56, 4  ;;  %v2044_v41 = vrot.slane %v2042_v16, 5 }
 0x13e   : > { %4568 = vmatprep.mubr.bf16.mxu0 %v9285_v3  ;;  %v8180_v5 = vpop.f32.mrb[12].mxu0  ;;  %v2292_v21 = vrot.slane %v7788_v19, 5  ;;  %v2295_v63 = vrot.slane %v8170_v9, 5  ;;  %v2428_v4 = vsel %vm6785_vm5, %v2423_v51, %v2427_v50  ;;  %v2440_v24 = vshrl.u32 %v8173_v59, 16 }
 0x13f   : > { %9286 = vst [vmem:[#allocation12_spill] sm:$0xff] %v8180_v5  ;;  %v8184_v14 = vpop.f32.mrb[13].mxu0  ;;  %v2035_v17 = vsel %vm6785_vm5, %v2030_v47, %v2034_v57  ;;  %v2039_v28 = vor.u32 %v2038_v6, %v2034_v57  ;;  %v2438_v49 = vsel %vm6785_vm5, %v2433_v25, %v2437_v34  ;;  %v2443_v50 = vshll.u32 %v8173_v59, 16 }
 0x140   : > { %9287 = vst [vmem:[#allocation13_spill] sm:$0xff] %v8184_v14  ;;  %v8193_v23 = vpop.f32.mrb[14].mxu0  ;;  %v8199_v43 = vsel %vm6771_vm4, %v5413_v54, %v2292_v21  ;;  %v2294_v56 = vrot.slane %v2292_v21, 4  ;;  %v9290_v6 = vcombine.low %v8044_v20, %v8059_v58  ;;  %v5547_v47 = vcombine.low %v2428_v4, %v2438_v49 }
 0x141   : > { %9288 = vst [vmem:[#allocation14_spill] sm:$0xff] %v8193_v23  ;;  %v8202_v16 = vpop.f32.mrb[15].mxu0  ;;  %v2040_v3 = vrot.slane %v2039_v28, 4  ;;  %v2442_v51 = vrot.slane %v2440_v24, 4  ;;  %v2449_v57 = vshll.u32 %v8178_v48, 16  ;;  %v2445_v25 = vrot.slane %v2443_v50, 5 }
 0x142   : > { %9289 = vst [vmem:[#allocation15_spill] sm:$0xff] %v8202_v16  ;;  %4658 = vmatmul.mubr.bf16.gmra.mrb[84].mxu1 %v9290_v6  ;;  %v2296_v34 = vsel %vm6771_vm4, %v2294_v56, %v2295_v63  ;;  %v2453_v54 = vshrl.u32 %v8178_v48, 16  ;;  %v2459_v21 = vshll.u32 %v8190_v45, 16  ;;  %v5531_v20 = vcombine.low %v8120_v38, %v8124_v46  ;;  %v2155_v24 = vld [vmem:[#allocation2 + $0xa8] sm:$0xe] }
 0x143   : > { %4665 = vmatprep.mubr.bf16.mxu1 %v5547_v47  ;;  %v2045_v16 = vsel %vm6785_vm5, %v2040_v3, %v2044_v41  ;;  %v2451_v4 = vrot.slane %v2449_v57, 5  ;;  %v2053_v28 = vor.u32 %v7828_v13, %v7815_v8  ;;  %4569 = vmatmul.mubr.bf16.gmra.mrb[88].mxu0 %v5507_v44  ;;  %v5525_v63 = vcombine.low %v8199_v43, %v2296_v34  ;;  %v8219_v6 = vld [vmem:[#allocation2 + $0xb0] sm:$0x1]  ;;  %v8225_v23 = vld [vmem:[#allocation2 + $0x48] sm:$0xf] }
 0x144   : > { %v5508_v49 = vcombine.low %v2035_v17, %v2045_v16  ;;  %v2446_v56 = vor.u32 %v2445_v25, %v2442_v51  ;;  %v2455_v50 = vrot.slane %v2453_v54, 4  ;;  %4576 = vmatprep.mubr.bf16.mxu0 %v5524_v53  ;;  %v2461_v47 = vrot.slane %v2459_v21, 5  ;;  %v8231_v34 = vld [vmem:[#allocation2 + $0x4c] sm:$0xf] }
 0x145   : > { %v2056_v41 = vshll.u32 %v7788_v19, 16  ;;  %v9291_v3 = vshrl.u32 %v7788_v19, 16  ;;  %v2066_v57 = vshll.u32 %v8170_v9, 16  ;;  %v2054_v44 = vrot.slane %v2053_v28, 4 }
 0x146   : > { %v2447_v8 = vrot.slane %v2446_v56, 4  ;;  %v2456_v13 = vor.u32 %v2455_v50, %v2451_v4  ;;  %v5414_v17 = vrot.slane %v2155_v24, 9  ;;  %v5532_v16 = vcombine.low %v8173_v59, %v8178_v48 }
 0x147   : > { %v2062_v38 = vrot.slane %v9291_v3, 4  ;;  %v2058_v43 = vrot.slane %v2056_v41, 5  ;;  %v2299_v53 = vrot.slane %v7821_v10, 5  ;;  %v2302_v51 = vrot.slane %v8219_v6, 5  ;;  %v8233_v19 = vpop.f32.mrb[8].mxu1 }
 0x148   : > { %v2452_v9 = vsel %vm6785_vm5, %v2447_v8, %v2451_v4  ;;  %v2457_v25 = vrot.slane %v2456_v13, 4  ;;  %v2464_v54 = vshrl.u32 %v8225_v23, 16  ;;  %v2467_v21 = vshll.u32 %v8225_v23, 16  ;;  %v8239_v28 = vpop.f32.mrb[9].mxu1  ;;  %v8243_v41 = vld [vmem:[#allocation2 + $0x50] sm:$0x1] }
 0x149   : > { %9292 = vst [vmem:[#allocation16_spill] sm:$0xff] %v8239_v28  ;;  %v2063_v59 = vor.u32 %v2062_v38, %v2058_v43  ;;  %v2068_v24 = vrot.slane %v2066_v57, 5  ;;  %v2300_v56 = vsel %vm6771_vm4, %v5414_v17, %v2299_v53  ;;  %v2301_v50 = vrot.slane %v2299_v53, 4  ;;  %v8245_v3 = vpop.f32.mrb[10].mxu1 }
 0x14a   : > { %4666 = vmatmul.mubr.bf16.gmra.mrb[88].mxu1 %v5531_v20  ;;  %9293 = vst [vmem:[#allocation17_spill] sm:$0xff] %v8245_v3  ;;  %v2462_v4 = vsel %vm6785_vm5, %v2457_v25, %v2461_v47  ;;  %v2466_v8 = vrot.slane %v2464_v54, 4  ;;  %v2469_v13 = vrot.slane %v2467_v21, 5  ;;  %v2473_v14 = vshll.u32 %v8231_v34, 16  ;;  %v8250_v5 = vpop.f32.mrb[11].mxu1 }
 0x14b   : > { %v5548_v20 = vcombine.low %v2452_v9, %v2462_v4  ;;  %v2064_v38 = vrot.slane %v2063_v59, 4  ;;  %v2303_v57 = vsel %vm6771_vm4, %v2301_v50, %v2302_v51  ;;  %v2477_v17 = vshrl.u32 %v8231_v34, 16  ;;  %4577 = vmatmul.mubr.bf16.gmra.mrb[92].mxu0 %v5508_v49  ;;  %v8263_v21 = vld [vmem:[#allocation2 + $0x54] sm:$0xf] }
 0x14c   : > { %v2059_v53 = vsel %vm6785_vm5, %v2054_v44, %v2058_v43  ;;  %v2470_v3 = vor.u32 %v2469_v13, %v2466_v8  ;;  %v2475_v28 = vrot.slane %v2473_v14, 5  ;;  %v2483_v47 = vshll.u32 %v8243_v41, 16  ;;  %4584 = vmatprep.mubr.bf16.mxu0 %v5525_v63  ;;  %v2156_v50 = vld [vmem:[#allocation2 + $0xb4] sm:$0xe] }
 0x14d   : > { %4673 = vmatprep.mubr.bf16.mxu1 %v5548_v20  ;;  %v2069_v25 = vsel %vm6785_vm5, %v2064_v38, %v2068_v24  ;;  %v2479_v9 = vrot.slane %v2477_v17, 4  ;;  %v2077_v54 = vor.u32 %v7902_v1, %v7880_v52  ;;  %v2080_v51 = vshll.u32 %v7821_v10, 16  ;;  %v1756_v52 = vld [vmem:[#allocation2 + $0xbc] sm:$0x1]  ;;  %v8275_v17 = vld [vmem:[#allocation2 + $0x58] sm:$0xf] }
 0x14e   : > { %v9294_v49 = vshll.u32 %v8070_v18, 16  ;;  %v5526_v14 = vcombine.low %v2300_v56, %v2303_v57  ;;  %v2471_v43 = vrot.slane %v2470_v3, 4  ;;  %v9295_v63 = vshrl.u32 %v7821_v10, 16 }
 0x14f   : > { %v2480_v4 = vor.u32 %v2479_v9, %v2475_v28  ;;  %v2485_v24 = vrot.slane %v2483_v47, 5  ;;  %v2082_v8 = vrot.slane %v2080_v51, 5  ;;  %v2090_v13 = vshll.u32 %v8219_v6, 16 }
 0x150   : > { %v8267_v44 = vrot.slane %v9294_v49, 5  ;;  %v2086_v59 = vrot.slane %v9295_v63, 4  ;;  %v5509_v1 = vcombine.low %v2059_v53, %v2069_v25  ;;  %v2476_v20 = vsel %vm6785_vm5, %v2471_v43, %v2475_v28 }
 0x151   : > { %v2078_v38 = vrot.slane %v2077_v54, 4  ;;  %v2306_v18 = vrot.slane %v7895_v60, 5  ;;  %v2481_v56 = vrot.slane %v2480_v4, 4  ;;  %v2092_v3 = vrot.slane %v2090_v13, 5  ;;  %v8282_v54 = vld [vmem:[#allocation2 + $0x5c] sm:$0x1] }
 0x152   : > { %4674 = vmatmul.mubr.bf16.gmra.mrb[92].mxu1 %v5532_v16  ;;  %v2087_v10 = vor.u32 %v2086_v59, %v2082_v8  ;;  %v5415_v57 = vrot.slane %v2156_v50, 9  ;;  %v5533_v47 = vcombine.low %v8225_v23, %v8231_v34  ;;  %v2309_v6 = vrot.slane %v1756_v52, 5 }
 0x153   : > { %v2308_v9 = vrot.slane %v2306_v18, 4  ;;  %v2488_v53 = vshrl.u32 %v8263_v21, 16  ;;  %v2486_v28 = vsel %vm6785_vm5, %v2481_v56, %v2485_v24  ;;  %v2491_v51 = vshll.u32 %v8263_v21, 16  ;;  %4585 = vmatmul.mubr.bf16.gmra.mrb[96].mxu0 %v5509_v1 }
 0x154   : > { %v2088_v25 = vrot.slane %v2087_v10, 4  ;;  %v2497_v16 = vshll.u32 %v8275_v17, 16  ;;  %v5549_v49 = vcombine.low %v2476_v20, %v2486_v28  ;;  %v2083_v43 = vsel %vm6785_vm5, %v2078_v38, %v2082_v8  ;;  %4592 = vmatprep.mubr.bf16.mxu0 %v5526_v14  ;;  %v1093_v38 = vld [vmem:[#allocation2 + $0xc8] sm:$0x1]  ;;  %v8305_v28 = vld [vmem:[#allocation2 + $0x60] sm:$0xf] }
 0x155   : > { %v2490_v23 = vrot.slane %v2488_v53, 4  ;;  %v2501_v63 = vshrl.u32 %v8275_v17, 16  ;;  %v2307_v50 = vsel %vm6771_vm4, %v5415_v57, %v2306_v18  ;;  %v2493_v4 = vrot.slane %v2491_v51, 5  ;;  %v8293_v13 = vpop.f32.mrb[16].mxu0 }
 0x156   : > { %v2093_v59 = vsel %vm6785_vm5, %v2088_v25, %v2092_v3  ;;  %v2499_v24 = vrot.slane %v2497_v16, 5  ;;  %4681 = vmatprep.mubr.bf16.mxu1 %v5549_v49  ;;  %v2310_v1 = vsel %vm6771_vm4, %v2308_v9, %v2309_v6  ;;  %v2507_v8 = vshll.u32 %v8282_v54, 16  ;;  %v8300_v56 = vpop.f32.mrb[17].mxu0  ;;  %v2157_v49 = vld [vmem:[#allocation2 + $0xc0] sm:$0xe] }
 0x157   : > { %v2503_v20 = vrot.slane %v2501_v63, 4  ;;  %v2101_v14 = vor.u32 %v7951_v29, %v7926_v22  ;;  %9296 = vst [vmem:[#allocation18_spill] sm:$0xff] %v8300_v56  ;;  %v2494_v10 = vor.u32 %v2493_v4, %v2490_v23  ;;  %v2104_v18 = vshll.u32 %v7895_v60, 16  ;;  %v8307_v25 = vpop.f32.mrb[18].mxu0  ;;  %v8314_v56 = vld [vmem:[#allocation2 + $0x64] sm:$0xf] }
 0x158   : > { %v9297_v3 = vshrl.u32 %v7895_v60, 16  ;;  %v2114_v53 = vshll.u32 %v1756_v52, 16  ;;  %v5510_v9 = vcombine.low %v2083_v43, %v2093_v59  ;;  %v2509_v51 = vrot.slane %v2507_v8, 5  ;;  %v8309_v22 = vpop.f32.mrb[19].mxu0 }
 0x159   : > { %v2504_v6 = vor.u32 %v2503_v20, %v2499_v24  ;;  %v2102_v16 = vrot.slane %v2101_v14, 4  ;;  %v5527_v29 = vcombine.low %v2307_v50, %v2310_v1  ;;  %v2495_v23 = vrot.slane %v2494_v10, 4  ;;  %v8321_v1 = vld [vmem:[#allocation2 + $0x68] sm:$0x1] }
 0x15a   : > { %v2110_v57 = vrot.slane %v9297_v3, 4  ;;  %4682 = vmatmul.mubr.bf16.gmra.mrb[96].mxu1 %v5533_v47  ;;  %v2106_v63 = vrot.slane %v2104_v18, 5  ;;  %v929_v4 = vrot.slane %v8010_v30, 4  ;;  %v2116_v3 = vrot.slane %v2114_v53, 5 }
 0x15b   : > { %v2505_v60 = vrot.slane %v2504_v6, 4  ;;  %v5534_v52 = vcombine.low %v8263_v21, %v8275_v17  ;;  %v2512_v43 = vshrl.u32 %v8305_v28, 16  ;;  %v2500_v59 = vsel %vm6785_vm5, %v2495_v23, %v2499_v24  ;;  %4593 = vmatmul.mubr.bf16.gmra.mrb[100].mxu0 %v5510_v9 }
 0x15c   : > { %v2111_v20 = vor.u32 %v2110_v57, %v2106_v63  ;;  %v1094_v47 = vsel %vm6834_vm11, %v929_v4, %v1093_v38  ;;  %v5416_v50 = vrot.slane %v2157_v49, 9  ;;  %v2107_v21 = vsel %vm6785_vm5, %v2102_v16, %v2106_v63  ;;  %4600 = vmatprep.mubr.bf16.mxu0 %v5527_v29 }
 0x15d   : > { %v2510_v30 = vsel %vm6785_vm5, %v2505_v60, %v2509_v51  ;;  %1095 = vst [vmem:[#allocation2 + $0xc8] sm:$0x1] %v1094_v47  ;;  %v2313_v8 = vrot.slane %v8072_v61, 5  ;;  %v2514_v14 = vrot.slane %v2512_v43, 4  ;;  %v2515_v15 = vshll.u32 %v8305_v28, 16 }
 0x15e   : > { %v5550_v24 = vcombine.low %v2500_v59, %v2510_v30  ;;  %v2112_v10 = vrot.slane %v2111_v20, 4  ;;  %v2521_v38 = vshll.u32 %v8314_v56, 16  ;;  %v8330_v18 = vpop.f32.mrb[12].mxu1  ;;  %v2525_v57 = vshrl.u32 %v8314_v56, 16 }
 0x15f   : > { %v2531_v53 = vshll.u32 %v8321_v1, 16  ;;  %v2125_v9 = vor.u32 %v8267_v44, %v8112_v31  ;;  %v2128_v6 = vshll.u32 %v8072_v61, 16  ;;  %v8337_v51 = vpop.f32.mrb[13].mxu1  ;;  %v2517_v49 = vrot.slane %v2515_v15, 5 }
 0x160   : > { %4689 = vmatprep.mubr.bf16.mxu1 %v5550_v24  ;;  %v2117_v16 = vsel %vm6785_vm5, %v2112_v10, %v2116_v3  ;;  %v2523_v29 = vrot.slane %v2521_v38, 5  ;;  %v9298_v23 = vshrl.u32 %v8072_v61, 16  ;;  %v8343_v4 = vpop.f32.mrb[14].mxu1  ;;  %v2315_v43 = vrot.slane %v2313_v8, 4  ;;  %v9300_v10 = vld [vmem:[#allocation8_spill] sm:$0xff] }
 0x161   : > { %v5511_v60 = vcombine.low %v2107_v21, %v2117_v16  ;;  %v2527_v59 = vrot.slane %v2525_v57, 4  ;;  %v2533_v20 = vrot.slane %v2531_v53, 5  ;;  %v8345_v31 = vpop.f32.mrb[15].mxu1  ;;  %v2518_v44 = vor.u32 %v2517_v49, %v2514_v14  ;;  %v8363_v57 = vld [vmem:[#allocation2 + $0x6c] sm:$0xf] }
 0x162   : > { %v2134_v63 = vrot.slane %v9298_v23, 4  ;;  %4690 = vmatmul.mubr.bf16.gmra.mrb[100].mxu1 %v5534_v52  ;;  %v2126_v47 = vrot.slane %v2125_v9, 4  ;;  %v2130_v30 = vrot.slane %v2128_v6, 5  ;;  %v8349_v3 = vadd.f32 %v7836_v40, %v7826_v33  ;;  %v8367_v53 = vld [vmem:[#allocation2 + $0x70] sm:$0xf] }
 0x163   : > { %v2528_v24 = vor.u32 %v2527_v59, %v2523_v29  ;;  %v8353_v61 = vadd.f32 %v7856_v0, %v7844_v37  ;;  %v8357_v21 = vadd.f32 %v8008_v11, %v8002_v42  ;;  %v8361_v15 = vadd.f32 %v9300_v10, %v8013_v27  ;;  %4601 = vmatmul.mubr.bf16.gmra.mrb[104].mxu0 %v5511_v60  ;;  %v8377_v16 = vld [vmem:[#allocation2 + $0x74] sm:$0x1]  ;;  %v2751_v60 = vld [vmem:[#allocation2 + $0x18] sm:$0xe] }
 0x164   : > { %v1757_v52 = vld [vmem:[#allocation2 + $0xc8] sm:$0x1]  ;;  %v2519_v14 = vrot.slane %v2518_v44, 4  ;;  %v2135_v38 = vor.u32 %v2134_v63, %v2130_v30  ;;  %v2314_v33 = vsel %vm6771_vm4, %v5416_v50, %v2313_v8  ;;  %v8369_v42 = vpop.f32.mrb[20].mxu0  ;;  %v2131_v11 = vsel %vm6785_vm5, %v2126_v47, %v2130_v30 }
 0x165   : > { %9299 = vst [vmem:[#allocation19_spill] sm:$0xff] %v8357_v21  ;;  %9301 = vst [vmem:[#allocation8_spill] sm:$0xff] %v8361_v15  ;;  %v2316_v40 = vrot.slane %v1757_v52, 5  ;;  %v2529_v37 = vrot.slane %v2528_v24, 4  ;;  %v2138_v0 = vshll.u32 %v1757_v52, 16  ;;  %v5535_v6 = vcombine.low %v8305_v28, %v8314_v56  ;;  %v8381_v8 = vpop.f32.mrb[21].mxu0 }
 0x166   : > { %v2524_v27 = vsel %vm6785_vm5, %v2519_v14, %v2523_v29  ;;  %v2136_v9 = vrot.slane %v2135_v38, 4  ;;  %v8379_v50 = vpop.f32.mrb[16].mxu1  ;;  %v2536_v63 = vshrl.u32 %v8363_v57, 16  ;;  %v8390_v44 = vpop.f32.mrb[22].mxu0  ;;  %v2539_v30 = vshll.u32 %v8363_v57, 16 }
 0x167   : > { %v2317_v49 = vsel %vm6771_vm4, %v2315_v43, %v2316_v40  ;;  %v2534_v23 = vsel %vm6785_vm5, %v2529_v37, %v2533_v20  ;;  %v2140_v29 = vrot.slane %v2138_v0, 5  ;;  %v8388_v59 = vpop.f32.mrb[17].mxu1  ;;  %9302 = vst [vmem:[#allocation20_spill] sm:$0xff] %v8390_v44  ;;  %v2545_v24 = vshll.u32 %v8367_v53, 16  ;;  %v8396_v43 = vpop.f32.mrb[23].mxu0 }
 0x168   : > { %v5528_v28 = vcombine.low %v2314_v33, %v2317_v49  ;;  %v5551_v47 = vcombine.low %v2524_v27, %v2534_v23  ;;  %v8394_v10 = vpop.f32.mrb[18].mxu1  ;;  %9303 = vst [vmem:[#allocation21_spill] sm:$0xff] %v8396_v43  ;;  %v2538_v52 = vrot.slane %v2536_v63, 4  ;;  %v2549_v14 = vshrl.u32 %v8367_v53, 16  ;;  %v2752_v40 = vld [vmem:[#allocation2 + $0x24] sm:$0xe] }
 0x169   : > { %v2141_v20 = vsel %vm6785_vm5, %v2136_v9, %v2140_v29  ;;  %v2555_v38 = vshll.u32 %v8377_v16, 16  ;;  %v8402_v37 = vpop.f32.mrb[19].mxu1  ;;  %v2541_v0 = vrot.slane %v2539_v30, 5  ;;  %v2547_v27 = vrot.slane %v2545_v24, 5  ;;  %v9305_v30 = vld [vmem:[#allocation6_spill] sm:$0xff]  ;;  %v9306_v24 = vld [vmem:[#allocation5_spill] sm:$0xff] }
 0x16a   : > { %4608 = vmatprep.mubr.bf16.mxu0 %v5528_v28  ;;  %4697 = vmatprep.mubr.bf16.mxu1 %v5551_v47  ;;  %v5512_v33 = vcombine.low %v2131_v11, %v2141_v20  ;;  %v5417_v49 = vrot.slane %v2751_v60, 9  ;;  %v2827_v23 = vrot.slane %v8093_v32, 5  ;;  %v2551_v15 = vrot.slane %v2549_v14, 4  ;;  %v9304_v60 = vld [vmem:[#allocation3_spill] sm:$0xff] }
 0x16b   : > { %4698 = vmatmul.mubr.bf16.gmra.mrb[104].mxu1 %v5535_v6  ;;  %v2817_v9 = vrot.slane %v7994_v62, 5  ;;  %v2820_v29 = vrot.slane %v8023_v35, 5  ;;  %v2542_v63 = vor.u32 %v2541_v0, %v2538_v52  ;;  %v2557_v21 = vrot.slane %v2555_v38, 5  ;;  %v9307_v20 = vld [vmem:[#allocation7_spill] sm:$0xff] }
 0x16c   : > { %v5418_v43 = vrot.slane %v2752_v40, 9  ;;  %v2824_v44 = vrot.slane %v8059_v58, 5  ;;  %4609 = vmatmul.mubr.bf16.gmra.mrb[108].mxu0 %v5512_v33  ;;  %v2552_v28 = vor.u32 %v2551_v15, %v2547_v27  ;;  %v8412_v32 = vadd.f32 %v9305_v30, %v9304_v60  ;;  %v8428_v40 = vld [vmem:[#allocation2 + $0x78] sm:$0xf]  ;;  %v8430_v33 = vld [vmem:[#allocation2 + $0x7c] sm:$0xf] }
 0x16d   : > { %v2818_v11 = vsel %vm6771_vm4, %v5417_v49, %v2817_v9  ;;  %v2819_v47 = vrot.slane %v2817_v9, 4  ;;  %v2543_v6 = vrot.slane %v2542_v63, 4  ;;  %v8418_v52 = vadd.f32 %v9307_v20, %v9306_v24  ;;  %v8438_v9 = vld [vmem:[#allocation2 + $0x80] sm:$0x1] }
 0x16e   : > { %v2825_v62 = vsel %vm6771_vm4, %v5418_v43, %v2824_v44  ;;  %v2826_v35 = vrot.slane %v2824_v44, 4  ;;  %v8420_v58 = vpop.f32.mrb[20].mxu1  ;;  %v2553_v15 = vrot.slane %v2552_v28, 4  ;;  %v8426_v38 = vadd.f32 %v8147_v2, %v8138_v12 }
 0x16f   : > { %v2821_v14 = vsel %vm6771_vm4, %v2819_v47, %v2820_v29  ;;  %v8432_v43 = vpop.f32.mrb[21].mxu1  ;;  %v2548_v44 = vsel %vm6785_vm5, %v2543_v6, %v2547_v27  ;;  %v2753_v29 = vld [vmem:[#allocation2 + $0x30] sm:$0xe]  ;;  %v5536_v2 = vcombine.low %v8363_v57, %v8367_v53  ;;  %v8448_v47 = vadd.f32 %v8158_v7, %v8154_v55 }
 0x170   : > { %9308 = vst [vmem:[#allocation3_spill] sm:$0xff] %v8426_v38  ;;  %v5561_v0 = vcombine.low %v2818_v11, %v2821_v14  ;;  %v2828_v49 = vsel %vm6771_vm4, %v2826_v35, %v2827_v23  ;;  %v8440_v63 = vpop.f32.mrb[22].mxu1  ;;  %v2558_v12 = vsel %vm6785_vm5, %v2553_v15, %v2557_v21  ;;  %v2560_v23 = vshrl.u32 %v8428_v40, 16 }
 0x171   : > { %v5562_v28 = vcombine.low %v2825_v62, %v2828_v49  ;;  %9309 = vst [vmem:[#allocation6_spill] sm:$0xff] %v8448_v47  ;;  %v8450_v27 = vpop.f32.mrb[23].mxu1  ;;  %v5552_v11 = vcombine.low %v2548_v44, %v2558_v12  ;;  %v2563_v60 = vshll.u32 %v8428_v40, 16  ;;  %v2569_v30 = vshll.u32 %v8430_v33, 16  ;;  %v2754_v62 = vld [vmem:[#allocation2 + $0x3c] sm:$0xe] }
 0x172   : > { %6412 = vmatprep.mubr.bf16.mxu0 %v5561_v0  ;;  %v2573_v21 = vshrl.u32 %v8430_v33, 16  ;;  %v2579_v6 = vshll.u32 %v8438_v9, 16  ;;  %v5419_v57 = vrot.slane %v2753_v29, 9  ;;  %v2562_v35 = vrot.slane %v2560_v23, 4 }
 0x173   : > { %4705 = vmatprep.mubr.bf16.mxu1 %v5552_v11  ;;  %v2565_v7 = vrot.slane %v2563_v60, 5  ;;  %v2571_v55 = vrot.slane %v2569_v30, 5  ;;  %v2831_v24 = vrot.slane %v8124_v46, 5  ;;  %v2834_v14 = vrot.slane %v8142_v39, 5  ;;  %v9310_v46 = vld [vmem:[#allocation4_spill] sm:$0xff] }
 0x174   : > { %4706 = vmatmul.mubr.bf16.gmra.mrb[108].mxu1 %v5536_v2  ;;  %6413 = vmatmul.mubr.bf16.vlgmr.msra.gmra.mrb[112].mxu0 %v5562_v28  ;;  %v2575_v20 = vrot.slane %v2573_v21, 4  ;;  %v2581_v15 = vrot.slane %v2579_v6, 5  ;;  %v5420_v12 = vrot.slane %v2754_v62, 9  ;;  %v2838_v23 = vrot.slane %v8178_v48, 5  ;;  %v9311_v2 = vld [vmem:[#allocation9_spill] sm:$0xff]  ;;  %v9313_v6 = vld [vmem:[#allocation10_spill] sm:$0xff] }
 0x175   : > { %v2566_v44 = vor.u32 %v2565_v7, %v2562_v35  ;;  %v2832_v0 = vsel %vm6771_vm4, %v5419_v57, %v2831_v24  ;;  %v2833_v49 = vrot.slane %v2831_v24, 4  ;;  %v2841_v60 = vrot.slane %v8190_v45, 5  ;;  %v9314_v57 = vld [vmem:[#allocation11_spill] sm:$0xff]  ;;  %v9315_v35 = vld [vmem:[#allocation16_spill] sm:$0xff] }
 0x176   : > { %v8461_v29 = vpop.f32.mrb[24].mxu1  ;;  %v2576_v11 = vor.u32 %v2575_v20, %v2571_v55  ;;  %v8467_v28 = vadd.f32 %v9311_v2, %v9310_v46  ;;  %v8475_v62 = vadd.f32 %v9314_v57, %v9313_v6  ;;  %v8479_v7 = vadd.f32 %v9315_v35, %v8233_v19  ;;  %v8481_v48 = vld [vmem:[#allocation2 + $0x84] sm:$0xf]  ;;  %v8487_v2 = vld [vmem:[#allocation2 + $0x88] sm:$0xf] }
 0x177   : > { %v8469_v30 = vpop.f32.mrb[25].mxu1  ;;  %v2567_v39 = vrot.slane %v2566_v44, 4  ;;  %v2835_v21 = vsel %vm6771_vm4, %v2833_v49, %v2834_v14  ;;  %v2839_v44 = vsel %vm6771_vm4, %v5420_v12, %v2838_v23  ;;  %v2840_v46 = vrot.slane %v2838_v23, 4  ;;  %v8495_v6 = vld [vmem:[#allocation2 + $0x8c] sm:$0x1] }
 0x178   : > { %9312 = vst [vmem:[#allocation5_spill] sm:$0xff] %v8469_v30  ;;  %9316 = vst [vmem:[#allocation7_spill] sm:$0xff] %v8479_v7  ;;  %v8483_v45 = vpop.f32.mrb[26].mxu1  ;;  %v2577_v24 = vrot.slane %v2576_v11, 4  ;;  %v5563_v20 = vcombine.low %v2832_v0, %v2835_v21  ;;  %v5537_v19 = vcombine.low %v8428_v40, %v8430_v33  ;;  %v9319_v12 = vld [vmem:[#allocation17_spill] sm:$0xff]  ;;  %v2584_v21 = vshrl.u32 %v8481_v48, 16 }
 0x179   : > { %9317 = vst [vmem:[#allocation4_spill] sm:$0xff] %v8483_v45  ;;  %v8489_v14 = vpop.f32.mrb[27].mxu1  ;;  %v2572_v49 = vsel %vm6785_vm5, %v2567_v39, %v2571_v55  ;;  %v2842_v0 = vsel %vm6771_vm4, %v2840_v46, %v2841_v60  ;;  %v8503_v23 = vadd.f32 %v8250_v5, %v9319_v12  ;;  %v2755_v57 = vld [vmem:[#allocation2 + $0x48] sm:$0xe]  ;;  %v8511_v40 = vld [vmem:[%s9231_s4] ss:$0 sm:$0xff] }
 0x17a   : > { %9318 = vst [vmem:[#allocation9_spill] sm:$0xff] %v8489_v14  ;;  %v2582_v11 = vsel %vm6785_vm5, %v2577_v24, %v2581_v15  ;;  %6416 = vmatprep.mubr.bf16.mxu0 %v5563_v20  ;;  %v8506_v55 = vpop.f32.mrb[24].mxu0  ;;  %v5564_v15 = vcombine.low %v2839_v44, %v2842_v0  ;;  %v2587_v35 = vshll.u32 %v8481_v48, 16  ;;  %v2593_v60 = vshll.u32 %v8487_v2, 16  ;;  %v2756_v12 = vld [vmem:[#allocation2 + $0x54] sm:$0xe] }
 0x17b   : > { %9320 = vst [vmem:[#allocation10_spill] sm:$0xff] %v8503_v23  ;;  %v5553_v39 = vcombine.low %v2572_v49, %v2582_v11  ;;  %v8515_v24 = vpop.f32.mrb[25].mxu0  ;;  %v2586_v5 = vrot.slane %v2584_v21, 4  ;;  %v2597_v20 = vshrl.u32 %v8487_v2, 16  ;;  %v2603_v46 = vshll.u32 %v8495_v6, 16 }
 0x17c   : > { %v8519_v23 = vpop.f32.mrb[26].mxu0  ;;  %6417 = vmatmul.mubr.bf16.gmra.mrb[116].mxu0 %v5564_v15  ;;  %v2589_v7 = vrot.slane %v2587_v35, 5  ;;  %v2595_v47 = vrot.slane %v2593_v60, 5  ;;  %v5421_v49 = vrot.slane %v2755_v57, 9  ;;  %v2845_v44 = vrot.slane %v8231_v34, 5 }
 0x17d   : > { %4713 = vmatprep.mubr.bf16.mxu1 %v5553_v39  ;;  %v8522_v11 = vpop.f32.mrb[27].mxu0  ;;  %v8528_v21 = vadd.f32 %v8349_v3, %v8511_v40  ;;  %v2599_v38 = vrot.slane %v2597_v20, 4  ;;  %v2605_v14 = vrot.slane %v2603_v46, 5  ;;  %v2848_v45 = vrot.slane %v8243_v41, 5  ;;  %v9324_v20 = vld [vmem:[#allocation13_spill] sm:$0xff] }
 0x17e   : > { %v8524_v0 = vpop.f32.mrb[28].mxu1  ;;  %4714 = vmatmul.mubr.bf16.gmra.mrb[112].mxu1 %v5537_v19  ;;  %v2590_v15 = vor.u32 %v2589_v7, %v2586_v5  ;;  %v2846_v57 = vsel %vm6771_vm4, %v5421_v49, %v2845_v44  ;;  %v2847_v34 = vrot.slane %v2845_v44, 4  ;;  %v5422_v35 = vrot.slane %v2756_v12, 9  ;;  %v9323_v19 = vld [vmem:[#allocation12_spill] sm:$0xff]  ;;  %v9325_v5 = vld [vmem:[#allocation14_spill] sm:$0xff]  ;;  %v9326_v49 = vld [vmem:[#allocation15_spill] sm:$0xff] }
 0x17f   : > { %9321 = vst [vmem:[#allocation11_spill] sm:$0xff] %v8524_v0  ;;  %v8531_v39 = vpop.f32.mrb[29].mxu1  ;;  %v2600_v0 = vor.u32 %v2599_v38, %v2595_v47  ;;  %v2852_v30 = vrot.slane %v8275_v17, 5  ;;  %v2855_v3 = vrot.slane %v8282_v54, 5  ;;  %v8541_v46 = vadd.f32 %v9324_v20, %v9323_v19  ;;  %v8555_v17 = vld [vmem:[#allocation2 + $0x90] sm:$0xf] }
 0x180   : > { %9322 = vst [vmem:[#allocation16_spill] sm:$0xff] %v8531_v39  ;;  %v8535_v60 = vpop.f32.mrb[30].mxu1  ;;  %v2591_v39 = vrot.slane %v2590_v15, 4  ;;  %v2849_v7 = vsel %vm6771_vm4, %v2847_v34, %v2848_v45  ;;  %v8549_v12 = vadd.f32 %v9326_v49, %v9325_v5  ;;  %v8553_v38 = vadd.f32 %v8337_v51, %v8330_v18  ;;  %v8559_v15 = vld [vmem:[#allocation2 + $0x94] sm:$0xf] }
 0x181   : > { %v8543_v41 = vpop.f32.mrb[31].mxu1  ;;  %v2601_v54 = vrot.slane %v2600_v0, 4  ;;  %v5565_v44 = vcombine.low %v2846_v57, %v2849_v7  ;;  %v2853_v19 = vsel %vm6771_vm4, %v5422_v35, %v2852_v30  ;;  %v2854_v20 = vrot.slane %v2852_v30, 4  ;;  %v8573_v0 = vld [vmem:[#allocation2 + $0x98] sm:$0x1] }
 0x182   : > { %9327 = vst [vmem:[#allocation17_spill] sm:$0xff] %v8553_v38  ;;  %v8563_v45 = vadd.f32 %v8353_v61, %v8511_v40  ;;  %v8567_v34 = vadd.f32 %v8412_v32, %v8511_v40  ;;  %v2596_v18 = vsel %vm6785_vm5, %v2591_v39, %v2595_v47  ;;  %v5538_v51 = vcombine.low %v8481_v48, %v8487_v2  ;;  %v2757_v35 = vld [vmem:[#allocation2 + $0x60] sm:$0xe] }
 0x183   : > { %v2606_v30 = vsel %vm6785_vm5, %v2601_v54, %v2605_v14  ;;  %6420 = vmatprep.mubr.bf16.mxu0 %v5565_v44  ;;  %v2856_v61 = vsel %vm6771_vm4, %v2854_v20, %v2855_v3  ;;  %v8581_v57 = vadd.f32 %v8345_v31, %v8343_v4  ;;  %v2608_v32 = vshrl.u32 %v8555_v17, 16  ;;  %v2758_v4 = vld [vmem:[#allocation2 + $0x6c] sm:$0xe] }
 0x184   : > { %v5554_v47 = vcombine.low %v2596_v18, %v2606_v30  ;;  %v5566_v39 = vcombine.low %v2853_v19, %v2856_v61  ;;  %v2611_v48 = vshll.u32 %v8555_v17, 16  ;;  %v2617_v7 = vshll.u32 %v8559_v15, 16 }
 0x185   : > { %9328 = vst [vmem:[#allocation12_spill] sm:$0xff] %v8581_v57  ;;  %v8588_v14 = vadd.f32 %v8418_v52, %v8511_v40  ;;  %v2610_v5 = vrot.slane %v2608_v32, 4  ;;  %v2621_v3 = vshrl.u32 %v8559_v15, 16  ;;  %v2627_v49 = vshll.u32 %v8573_v0, 16 }
 0x186   : > { %4721 = vmatprep.mubr.bf16.mxu1 %v5554_v47  ;;  %6421 = vmatmul.mubr.bf16.gmra.mrb[120].mxu0 %v5566_v39  ;;  %v2613_v31 = vrot.slane %v2611_v48, 5  ;;  %v2619_v54 = vrot.slane %v2617_v7, 5  ;;  %v5423_v44 = vrot.slane %v2757_v35, 9  ;;  %v2859_v19 = vrot.slane %v8314_v56, 5 }
 0x187   : > { %v8595_v20 = vadd.f32 %v8467_v28, %v8511_v40  ;;  %4722 = vmatmul.mubr.bf16.gmra.mrb[116].mxu1 %v5538_v51  ;;  %v2623_v52 = vrot.slane %v2621_v3, 4  ;;  %v2629_v18 = vrot.slane %v2627_v49, 5  ;;  %v2862_v30 = vrot.slane %v8321_v1, 5  ;;  %v9329_v51 = vld [vmem:[#allocation18_spill] sm:$0xff] }
 0x188   : > { %v8598_v61 = vpop.f32.mrb[28].mxu0  ;;  %v2614_v32 = vor.u32 %v2613_v31, %v2610_v5  ;;  %v2860_v47 = vsel %vm6771_vm4, %v5423_v44, %v2859_v19  ;;  %v2861_v39 = vrot.slane %v2859_v19, 4  ;;  %v5424_v48 = vrot.slane %v2758_v4, 9 }
 0x189   : > { %v8602_v35 = vpop.f32.mrb[29].mxu0  ;;  %v2624_v56 = vor.u32 %v2623_v52, %v2619_v54  ;;  %v2866_v7 = vrot.slane %v8367_v53, 5  ;;  %v2869_v28 = vrot.slane %v8377_v16, 5  ;;  %v8608_v3 = vadd.f32 %v9329_v51, %v8293_v13  ;;  %v8620_v53 = vld [vmem:[#allocation2 + $0x9c] sm:$0xf] }
 0x18a   : > { %v8610_v1 = vpop.f32.mrb[30].mxu0  ;;  %v2615_v49 = vrot.slane %v2614_v32, 4  ;;  %v2863_v5 = vsel %vm6771_vm4, %v2861_v39, %v2862_v30  ;;  %v8616_v4 = vadd.f32 %v8309_v22, %v8307_v25  ;;  %v6054_v31 = vadd.f32 %v8388_v59, %v8379_v50  ;;  %v8626_v32 = vld [vmem:[#allocation2 + $0xa0] sm:$0xf]  ;;  %v8639_v59 = vld [vmem:[#allocation2 + $0xa4] sm:$0x1] }
 0x18b   : > { %v8622_v16 = vpop.f32.mrb[31].mxu0  ;;  %v2625_v44 = vrot.slane %v2624_v56, 4  ;;  %v5567_v13 = vcombine.low %v2860_v47, %v2863_v5  ;;  %v2867_v19 = vsel %vm6771_vm4, %v5424_v48, %v2866_v7  ;;  %v2868_v52 = vrot.slane %v2866_v7, 4 }
 0x18c   : > { %v8630_v30 = vadd.f32 %v8475_v62, %v8511_v40  ;;  %v2620_v25 = vsel %vm6785_vm5, %v2615_v49, %v2619_v54  ;;  %v5539_v22 = vcombine.low %v8555_v17, %v8559_v15  ;;  %v8637_v50 = vadd.f32 %v6054_v31, %v8528_v21  ;;  %v8641_v47 = vpop.f32.mrb[32].mxu1  ;;  %v2759_v17 = vld [vmem:[#allocation2 + $0x78] sm:$0xe] }
 0x18d   : > { %v2630_v39 = vsel %vm6785_vm5, %v2625_v44, %v2629_v18  ;;  %6424 = vmatprep.mubr.bf16.mxu0 %v5567_v13  ;;  %v2870_v62 = vsel %vm6771_vm4, %v2868_v52, %v2869_v28  ;;  %v6057_v54 = vadd.f32 %v8402_v37, %v8394_v10  ;;  %v2632_v48 = vshrl.u32 %v8620_v53, 16  ;;  %v8650_v56 = vpop.f32.mrb[33].mxu1  ;;  %v2760_v37 = vld [vmem:[#allocation2 + $0x84] sm:$0xe] }
 0x18e   : > { %v5555_v21 = vcombine.low %v2620_v25, %v2630_v39  ;;  %v5568_v7 = vcombine.low %v2867_v19, %v2870_v62  ;;  %v2635_v51 = vshll.u32 %v8620_v53, 16  ;;  %v2641_v49 = vshll.u32 %v8626_v32, 16  ;;  %v8654_v5 = vpop.f32.mrb[34].mxu1 }
 0x18f   : > { %v8657_v18 = vadd.f32 %v6057_v54, %v8563_v45  ;;  %v2634_v28 = vrot.slane %v2632_v48, 4  ;;  %v2645_v31 = vshrl.u32 %v8626_v32, 16  ;;  %v2651_v10 = vshll.u32 %v8639_v59, 16  ;;  %v8661_v44 = vpop.f32.mrb[35].mxu1 }
 0x190   : > { %4729 = vmatprep.mubr.bf16.mxu1 %v5555_v21  ;;  %6425 = vmatmul.mubr.bf16.gmra.mrb[124].mxu0 %v5568_v7  ;;  %v2637_v13 = vrot.slane %v2635_v51, 5  ;;  %v2643_v19 = vrot.slane %v2641_v49, 5  ;;  %v5425_v52 = vrot.slane %v2759_v17, 9  ;;  %v2873_v25 = vrot.slane %v8430_v33, 5 }
 0x191   : > { %v8666_v39 = vadd.f32 %v8541_v46, %v8511_v40  ;;  %4730 = vmatmul.mubr.bf16.gmra.mrb[120].mxu1 %v5539_v22  ;;  %v2647_v45 = vrot.slane %v2645_v31, 4  ;;  %v2653_v62 = vrot.slane %v2651_v10, 5  ;;  %v2876_v54 = vrot.slane %v8438_v9, 5  ;;  %v9330_v10 = vld [vmem:[#allocation20_spill] sm:$0xff] }
 0x192   : > { %v8669_v48 = vpop.f32.mrb[32].mxu0  ;;  %v2638_v57 = vor.u32 %v2637_v13, %v2634_v28  ;;  %v2874_v21 = vsel %vm6771_vm4, %v5425_v52, %v2873_v25  ;;  %v2875_v7 = vrot.slane %v2873_v25, 4  ;;  %v5426_v51 = vrot.slane %v2760_v37, 9  ;;  %v9331_v13 = vld [vmem:[#allocation21_spill] sm:$0xff] }
 0x193   : > { %v8673_v17 = vpop.f32.mrb[33].mxu0  ;;  %v2648_v33 = vor.u32 %v2647_v45, %v2643_v19  ;;  %v2880_v49 = vrot.slane %v8487_v2, 5  ;;  %v2883_v46 = vrot.slane %v8495_v6, 5  ;;  %v8679_v22 = vadd.f32 %v8381_v8, %v8369_v42  ;;  %v8691_v2 = vld [vmem:[#allocation2 + $0xa8] sm:$0xf] }
 0x194   : > { %v8681_v9 = vpop.f32.mrb[34].mxu0  ;;  %v2639_v31 = vrot.slane %v2638_v57, 4  ;;  %v2877_v28 = vsel %vm6771_vm4, %v2875_v7, %v2876_v54  ;;  %v8687_v37 = vadd.f32 %v9331_v13, %v9330_v10  ;;  %v6060_v52 = vadd.f32 %v8432_v43, %v8420_v58  ;;  %v8697_v45 = vld [vmem:[#allocation2 + $0xac] sm:$0xf] }
 0x195   : > { %v8693_v6 = vpop.f32.mrb[35].mxu0  ;;  %v2649_v25 = vrot.slane %v2648_v33, 4  ;;  %v5569_v42 = vcombine.low %v2874_v21, %v2877_v28  ;;  %v2881_v8 = vsel %vm6771_vm4, %v5426_v51, %v2880_v49  ;;  %v2882_v57 = vrot.slane %v2880_v49, 4  ;;  %v8710_v21 = vld [vmem:[#allocation2 + $0xb0] sm:$0x1] }
 0x196   : > { %v8701_v54 = vadd.f32 %v8549_v12, %v8511_v40  ;;  %v2644_v7 = vsel %vm6785_vm5, %v2639_v31, %v2643_v19  ;;  %v5540_v58 = vcombine.low %v8620_v53, %v8626_v32  ;;  %v8708_v43 = vadd.f32 %v6060_v52, %v8567_v34  ;;  %v2761_v49 = vld [vmem:[#allocation2 + $0x90] sm:$0xe]  ;;  %v2762_v52 = vld [vmem:[#allocation2 + $0x9c] sm:$0xe] }
 0x197   : > { %v2654_v51 = vsel %vm6785_vm5, %v2649_v25, %v2653_v62  ;;  %6428 = vmatprep.mubr.bf16.mxu0 %v5569_v42  ;;  %v2884_v33 = vsel %vm6771_vm4, %v2882_v57, %v2883_v46  ;;  %v6063_v12 = vadd.f32 %v8450_v27, %v8440_v63  ;;  %v2656_v19 = vshrl.u32 %v8691_v2, 16 }
 0x198   : > { %v5556_v31 = vcombine.low %v2644_v7, %v2654_v51  ;;  %v5570_v53 = vcombine.low %v2881_v8, %v2884_v33  ;;  %v2659_v34 = vshll.u32 %v8691_v2, 16  ;;  %v2665_v28 = vshll.u32 %v8697_v45, 16 }
 0x199   : > { %v8722_v10 = vadd.f32 %v6063_v12, %v8588_v14  ;;  %v2658_v62 = vrot.slane %v2656_v19, 4  ;;  %v2669_v13 = vshrl.u32 %v8697_v45, 16  ;;  %v2675_v46 = vshll.u32 %v8710_v21, 16  ;;  %v8727_v8 = vpop.f32.mrb[36].mxu1 }
 0x19a   : > { %4737 = vmatprep.mubr.bf16.mxu1 %v5556_v31  ;;  %6429 = vmatmul.mubr.bf16.gmra.mrb[128].mxu0 %v5570_v53  ;;  %v2661_v63 = vrot.slane %v2659_v34, 5  ;;  %v2667_v27 = vrot.slane %v2665_v28, 5  ;;  %v5427_v25 = vrot.slane %v2761_v49, 9  ;;  %v2887_v42 = vrot.slane %v8559_v15, 5  ;;  %v8734_v33 = vpop.f32.mrb[37].mxu1 }
 0x19b   : > { %v8731_v57 = vadd.f32 %v8608_v3, %v8511_v40  ;;  %4738 = vmatmul.mubr.bf16.gmra.mrb[124].mxu1 %v5540_v58  ;;  %v2671_v14 = vrot.slane %v2669_v13, 4  ;;  %v2677_v7 = vrot.slane %v2675_v46, 5  ;;  %v2890_v51 = vrot.slane %v8573_v0, 5  ;;  %v8738_v15 = vpop.f32.mrb[38].mxu1 }
 0x19c   : > { %v2662_v12 = vor.u32 %v2661_v63, %v2658_v62  ;;  %v2888_v19 = vsel %vm6771_vm4, %v5427_v25, %v2887_v42  ;;  %v2889_v49 = vrot.slane %v2887_v42, 4  ;;  %v5428_v31 = vrot.slane %v2762_v52, 9  ;;  %v8748_v28 = vpop.f32.mrb[39].mxu1 }
 0x19d   : > { %v2672_v53 = vor.u32 %v2671_v14, %v2667_v27  ;;  %v2894_v34 = vrot.slane %v8626_v32, 5  ;;  %v2897_v3 = vrot.slane %v8639_v59, 5  ;;  %v8744_v58 = vadd.f32 %v8515_v24, %v8506_v55  ;;  %v9332_v32 = vld [vmem:[#allocation5_spill] sm:$0xff]  ;;  %v8758_v59 = vld [vmem:[#allocation2 + $0xb4] sm:$0xf] }
 0x19e   : > { %v8746_v0 = vpop.f32.mrb[36].mxu0  ;;  %v2663_v62 = vrot.slane %v2662_v12, 4  ;;  %v2891_v13 = vsel %vm6771_vm4, %v2889_v49, %v2890_v51  ;;  %v8754_v46 = vadd.f32 %v8522_v11, %v8519_v23  ;;  %v6066_v52 = vadd.f32 %v9332_v32, %v8461_v29  ;;  %v8764_v14 = vld [vmem:[#allocation2 + $0xb8] sm:$0xf] }
 0x19f   : > { %v8760_v63 = vpop.f32.mrb[37].mxu0  ;;  %v2673_v55 = vrot.slane %v2672_v53, 4  ;;  %v5571_v24 = vcombine.low %v2888_v19, %v2891_v13  ;;  %v2895_v25 = vsel %vm6771_vm4, %v5428_v31, %v2894_v34  ;;  %v2896_v42 = vrot.slane %v2894_v34, 4  ;;  %v2364_v19 = vld [vmem:[#allocation2 + $0xbc] sm:$0x1]  ;;  %v9334_v53 = vld [vmem:[#allocation4_spill] sm:$0xff] }
 0x1a0   : > { %v8766_v51 = vpop.f32.mrb[38].mxu0  ;;  %v8770_v23 = vadd.f32 %v8616_v4, %v8511_v40  ;;  %v2668_v29 = vsel %vm6785_vm5, %v2663_v62, %v2667_v27  ;;  %v5541_v11 = vcombine.low %v8691_v2, %v8697_v45  ;;  %v8777_v12 = vadd.f32 %v6066_v52, %v8595_v20  ;;  %v9335_v34 = vld [vmem:[#allocation9_spill] sm:$0xff] }
 0x1a1   : > { %v8779_v49 = vpop.f32.mrb[39].mxu0  ;;  %v2678_v31 = vsel %vm6785_vm5, %v2673_v55, %v2677_v7  ;;  %6432 = vmatprep.mubr.bf16.mxu0 %v5571_v24  ;;  %v2898_v4 = vsel %vm6771_vm4, %v2896_v42, %v2897_v3  ;;  %v6069_v13 = vadd.f32 %v9335_v34, %v9334_v53  ;;  %v2680_v27 = vshrl.u32 %v8758_v59, 16  ;;  %v2763_v62 = vld [vmem:[#allocation2 + $0xa8] sm:$0xe]  ;;  %v2764_v3 = vld [vmem:[#allocation2 + $0xb4] sm:$0xe] }
 0x1a2   : > { %9333 = vst [vmem:[#allocation13_spill] sm:$0xff] %v8777_v12  ;;  %v5557_v2 = vcombine.low %v2668_v29, %v2678_v31  ;;  %v5572_v32 = vcombine.low %v2895_v25, %v2898_v4  ;;  %v2683_v20 = vshll.u32 %v8758_v59, 16  ;;  %v2689_v52 = vshll.u32 %v8764_v14, 16  ;;  %v8827_v12 = vld [vmem:[#allocation2 + $0xc4] sm:$0xf] }
 0x1a3   : > { %v8791_v38 = vadd.f32 %v6069_v13, %v8630_v30  ;;  %v2682_v7 = vrot.slane %v2680_v27, 4  ;;  %v2693_v55 = vshrl.u32 %v8764_v14, 16  ;;  %v2699_v24 = vshll.u32 %v2364_v19, 16  ;;  %v8795_v25 = vpop.f32.mrb[40].mxu1 }
 0x1a4   : > { %4745 = vmatprep.mubr.bf16.mxu1 %v5557_v2  ;;  %6433 = vmatmul.mubr.bf16.gmra.mrb[132].mxu0 %v5572_v32  ;;  %v2685_v42 = vrot.slane %v2683_v20, 5  ;;  %v2691_v53 = vrot.slane %v2689_v52, 5  ;;  %v5429_v34 = vrot.slane %v2763_v62, 9  ;;  %v2901_v29 = vrot.slane %v8697_v45, 5  ;;  %v8802_v27 = vpop.f32.mrb[41].mxu1 }
 0x1a5   : > { %9336 = vst [vmem:[#allocation14_spill] sm:$0xff] %v8791_v38  ;;  %v8799_v31 = vadd.f32 %v8679_v22, %v8511_v40  ;;  %4746 = vmatmul.mubr.bf16.gmra.mrb[128].mxu1 %v5541_v11  ;;  %v2695_v30 = vrot.slane %v2693_v55, 4  ;;  %v2701_v4 = vrot.slane %v2699_v24, 5  ;;  %v2904_v13 = vrot.slane %v8710_v21, 5  ;;  %v8806_v45 = vpop.f32.mrb[42].mxu1 }
 0x1a6   : > { %v2686_v2 = vor.u32 %v2685_v42, %v2682_v7  ;;  %v2902_v32 = vsel %vm6771_vm4, %v5429_v34, %v2901_v29  ;;  %v2903_v62 = vrot.slane %v2901_v29, 4  ;;  %v5430_v20 = vrot.slane %v2764_v3, 9  ;;  %v8813_v55 = vpop.f32.mrb[43].mxu1  ;;  %v9337_v3 = vld [vmem:[#allocation11_spill] sm:$0xff]  ;;  %v9338_v42 = vld [vmem:[#allocation16_spill] sm:$0xff] }
 0x1a7   : > { %v2696_v52 = vor.u32 %v2695_v30, %v2691_v53  ;;  %v2908_v38 = vrot.slane %v8764_v14, 5  ;;  %v2911_v22 = vrot.slane %v2364_v19, 5  ;;  %v8811_v11 = vadd.f32 %v8602_v35, %v8598_v61  ;;  %v8823_v29 = vld [vmem:[#allocation2 + $0xc0] sm:$0xf] }
 0x1a8   : > { %v2687_v21 = vrot.slane %v2686_v2, 4  ;;  %v2905_v7 = vsel %vm6771_vm4, %v2903_v62, %v2904_v13  ;;  %v8819_v24 = vadd.f32 %v8622_v16, %v8610_v1  ;;  %v6072_v34 = vadd.f32 %v9338_v42, %v9337_v3 }
 0x1a9   : > { %v2697_v19 = vrot.slane %v2696_v52, 4  ;;  %v5573_v30 = vcombine.low %v2902_v32, %v2905_v7  ;;  %v2909_v61 = vsel %vm6771_vm4, %v5430_v20, %v2908_v38  ;;  %v2910_v35 = vrot.slane %v2908_v38, 4  ;;  %v2365_v32 = vld [vmem:[#allocation2 + $0xc8] sm:$0x1] }
 0x1aa   : > { %v8831_v13 = vadd.f32 %v8687_v37, %v8511_v40  ;;  %v2692_v1 = vsel %vm6785_vm5, %v2687_v21, %v2691_v53  ;;  %v5542_v16 = vcombine.low %v8758_v59, %v8764_v14  ;;  %v8838_v2 = vadd.f32 %v6072_v34, %v8666_v39  ;;  %v2765_v14 = vld [vmem:[#allocation2 + $0xc0] sm:$0xe]  ;;  %v2766_v34 = vld [vmem:[#allocation2 + $0xcc] sm:$0xe] }
 0x1ab   : > { %v2702_v62 = vsel %vm6785_vm5, %v2697_v19, %v2701_v4  ;;  %6436 = vmatprep.mubr.bf16.mxu0 %v5573_v30  ;;  %v2912_v38 = vsel %vm6771_vm4, %v2910_v35, %v2911_v22  ;;  %v6075_v37 = vadd.f32 %v8543_v41, %v8535_v60  ;;  %v2704_v20 = vshrl.u32 %v8823_v29, 16 }
 0x1ac   : > { %v5558_v53 = vcombine.low %v2692_v1, %v2702_v62  ;;  %v5574_v52 = vcombine.low %v2909_v61, %v2912_v38  ;;  %v2707_v59 = vshll.u32 %v8823_v29, 16  ;;  %v2713_v39 = vshll.u32 %v8827_v12, 16  ;;  %v8869_v61 = vld [vmem:[#allocation2 + $0xd0] sm:$0xf]  ;;  %v2366_v38 = vld [vmem:[#allocation2 + $0xd4] sm:$0x1] }
 0x1ad   : > { %v8850_v21 = vadd.f32 %v6075_v37, %v8701_v54  ;;  %v2706_v4 = vrot.slane %v2704_v20, 4  ;;  %v2717_v7 = vshrl.u32 %v8827_v12, 16  ;;  %v2723_v3 = vshll.u32 %v2365_v32, 16 }
 0x1ae   : > { %v8855_v22 = vadd.f32 %v8744_v58, %v8511_v40  ;;  %4753 = vmatprep.mubr.bf16.mxu1 %v5558_v53  ;;  %6437 = vmatmul.mubr.bf16.gmra.mrb[136].mxu0 %v5574_v52  ;;  %v2709_v60 = vrot.slane %v2707_v59, 5  ;;  %v2715_v41 = vrot.slane %v2713_v39, 5  ;;  %v8859_v42 = vadd.f32 %v8673_v17, %v8669_v48  ;;  %v8880_v52 = vld [vmem:[#allocation2 + $0xcc] sm:$0xf] }
 0x1af   : > { %v8863_v54 = vadd.f32 %v8754_v46, %v8511_v40  ;;  %4754 = vmatmul.mubr.bf16.gmra.mrb[132].mxu1 %v5542_v16  ;;  %v2719_v19 = vrot.slane %v2717_v7, 4  ;;  %v8867_v30 = vadd.f32 %v8693_v6, %v8681_v9  ;;  %v5431_v58 = vrot.slane %v2765_v14, 9  ;;  %v6000_v35 = vpop.f32.mrb[40].mxu0  ;;  %v8871_v1 = vpop.f32.mrb[44].mxu1 }
 0x1b0   : > { %v2710_v62 = vor.u32 %v2709_v60, %v2706_v4  ;;  %v5543_v48 = vcombine.low %v8823_v29, %v8827_v12  ;;  %v2915_v17 = vrot.slane %v8827_v12, 5  ;;  %v2918_v46 = vrot.slane %v2365_v32, 5  ;;  %v6001_v16 = vpop.f32.mrb[41].mxu0  ;;  %v8876_v37 = vpop.f32.mrb[45].mxu1 }
 0x1b1   : > { %v2720_v20 = vor.u32 %v2719_v19, %v2715_v41  ;;  %v2725_v9 = vrot.slane %v2723_v3, 5  ;;  %v6078_v6 = vadd.f32 %v8650_v56, %v8641_v47  ;;  %v5432_v53 = vrot.slane %v2766_v34, 9  ;;  %v6003_v59 = vpop.f32.mrb[42].mxu0  ;;  %v6097_v39 = vpop.f32.mrb[46].mxu1 }
 0x1b2   : > { %v2711_v14 = vrot.slane %v2710_v62, 4  ;;  %v2916_v29 = vsel %vm6771_vm4, %v5431_v58, %v2915_v17  ;;  %v2917_v12 = vrot.slane %v2915_v17, 4  ;;  %v2922_v32 = vrot.slane %v8869_v61, 5  ;;  %v6004_v4 = vpop.f32.mrb[43].mxu0  ;;  %v6098_v7 = vpop.f32.mrb[47].mxu1 }
 0x1b3   : > { %v2721_v60 = vrot.slane %v2720_v20, 4  ;;  %v8886_v3 = vadd.f32 %v6078_v6, %v8731_v57  ;;  %v2925_v19 = vrot.slane %v2366_v38, 5  ;;  %v6081_v47 = vadd.f32 %v8661_v44, %v8654_v5 }
 0x1b4   : > { %v2716_v56 = vsel %vm6785_vm5, %v2711_v14, %v2715_v41  ;;  %v2919_v34 = vsel %vm6771_vm4, %v2917_v12, %v2918_v46  ;;  %v2923_v58 = vsel %vm6771_vm4, %v5432_v53, %v2922_v32  ;;  %v2924_v62 = vrot.slane %v2922_v32, 4 }
 0x1b5   : > { %v2726_v17 = vsel %vm6785_vm5, %v2721_v60, %v2725_v9  ;;  %v5575_v20 = vcombine.low %v2916_v29, %v2919_v34  ;;  %v8899_v57 = vadd.f32 %v6081_v47, %v8770_v23  ;;  %v2728_v6 = vshrl.u32 %v8880_v52, 16 }
 0x1b6   : > { %v5559_v5 = vcombine.low %v2716_v56, %v2726_v17  ;;  %v2926_v44 = vsel %vm6771_vm4, %v2924_v62, %v2925_v19  ;;  %v2731_v41 = vshll.u32 %v8880_v52, 16  ;;  %v2737_v46 = vshll.u32 %v8869_v61, 16 }
 0x1b7   : > { %6440 = vmatprep.mubr.bf16.mxu0 %v5575_v20  ;;  %v5576_v53 = vcombine.low %v2923_v58, %v2926_v44  ;;  %v2730_v14 = vrot.slane %v2728_v6, 4  ;;  %v2741_v12 = vshrl.u32 %v8869_v61, 16  ;;  %v2747_v9 = vshll.u32 %v2366_v38, 16 }
 0x1b8   : > { %v4225_v23 = vadd.f32 %v8811_v11, %v8511_v40  ;;  %4761 = vmatprep.mubr.bf16.mxu1 %v5559_v5  ;;  %v2733_v29 = vrot.slane %v2731_v41, 5  ;;  %v2739_v32 = vrot.slane %v2737_v46, 5  ;;  %v5996_v26 = vadd.f32 %v8760_v63, %v8746_v0  ;;  %v6100_v60 = vpop.f32.mrb[48].mxu1 }
 0x1b9   : > { %v4228_v19 = vadd.f32 %v8819_v24, %v8511_v40  ;;  %4762 = vmatmul.mubr.bf16.gmra.mrb[136].mxu1 %v5543_v48  ;;  %6441 = vmatmul.mubr.bf16.gmra.mrb[140].mxu0 %v5576_v53  ;;  %v2743_v47 = vrot.slane %v2741_v12, 4  ;;  %v5999_v56 = vadd.f32 %v8779_v49, %v8766_v51  ;;  %v6084_v38 = vadd.f32 %v8734_v33, %v8727_v8  ;;  %v6101_v11 = vpop.f32.mrb[49].mxu1 }
 0x1ba   : > { %v4233_v34 = vadd.f32 %v8859_v42, %v8511_v40  ;;  %v2734_v58 = vor.u32 %v2733_v29, %v2730_v14  ;;  %v6087_v0 = vadd.f32 %v8748_v28, %v8738_v15  ;;  %v6002_v63 = vadd.f32 %v6001_v16, %v6000_v35  ;;  %v6103_v62 = vpop.f32.mrb[50].mxu1 }
 0x1bb   : > { %v2744_v24 = vor.u32 %v2743_v47, %v2739_v32  ;;  %v2749_v48 = vrot.slane %v2747_v9, 5  ;;  %v8922_v17 = vadd.f32 %v6084_v38, %v8799_v31  ;;  %v6005_v20 = vadd.f32 %v6004_v4, %v6003_v59  ;;  %v6104_v51 = vpop.f32.mrb[51].mxu1 }
 0x1bc   : > { %v4236_v8 = vadd.f32 %v8867_v30, %v8511_v40  ;;  %v2735_v33 = vrot.slane %v2734_v58, 4  ;;  %v8927_v49 = vadd.f32 %v6087_v0, %v8831_v13  ;;  %v6090_v42 = vadd.f32 %v8802_v27, %v8795_v25 }
 0x1bd   : > { %v2745_v15 = vrot.slane %v2744_v24, 4  ;;  %v5544_v28 = vcombine.low %v8880_v52, %v8869_v61  ;;  %v6093_v31 = vadd.f32 %v8813_v55, %v8806_v45  ;;  %v6096_v35 = vadd.f32 %v8876_v37, %v8871_v1 }
 0x1be   : > { %v2740_v30 = vsel %vm6785_vm5, %v2735_v33, %v2739_v32  ;;  %v8940_v16 = vadd.f32 %v6090_v42, %v8855_v22  ;;  %v6006_v13 = vpop.f32.mrb[44].mxu0  ;;  %v6099_v59 = vadd.f32 %v6098_v7, %v6097_v39  ;;  %v6102_v4 = vadd.f32 %v6101_v11, %v6100_v60 }
 0x1bf   : > { %v2750_v25 = vsel %vm6785_vm5, %v2745_v15, %v2749_v48  ;;  %v8945_v27 = vadd.f32 %v6093_v31, %v8863_v54  ;;  %v6007_v61 = vpop.f32.mrb[45].mxu0  ;;  %v8947_v45 = vadd.f32 %v6096_v35, %v4225_v23  ;;  %v6105_v55 = vadd.f32 %v6104_v51, %v6103_v62 }
 0x1c0   : > { %v5560_v1 = vcombine.low %v2740_v30, %v2750_v25  ;;  %v6008_v37 = vadd.f32 %v6007_v61, %v6006_v13  ;;  %v6009_v52 = vpop.f32.mrb[46].mxu0  ;;  %v8949_v6 = vadd.f32 %v6099_v59, %v4228_v19  ;;  %v8951_v22 = vadd.f32 %v6102_v4, %v4233_v34 }
 0x1c1   : > { %v6010_v5 = vpop.f32.mrb[47].mxu0  ;;  %v8953_v39 = vadd.f32 %v6105_v55, %v4236_v8  ;;  %v4241_v54 = vadd.f32 %v5996_v26, %v8511_v40  ;;  %v4244_v14 = vadd.f32 %v5999_v56, %v8511_v40  ;;  %v4249_v58 = vadd.f32 %v6002_v63, %v8511_v40 }
 0x1c2   : > { %v6106_v7 = vpop.f32.mrb[52].mxu1  ;;  %4769 = vmatprep.mubr.bf16.mxu1 %v5560_v1  ;;  %v6011_v36 = vadd.f32 %v6010_v5, %v6009_v52  ;;  %v4252_v48 = vadd.f32 %v6005_v20, %v8511_v40  ;;  %v4257_v13 = vadd.f32 %v6008_v37, %v8511_v40 }
 0x1c3   : > { %v6107_v44 = vpop.f32.mrb[53].mxu1  ;;  %4770 = vmatmul.mubr.bf16.gmra.mrb[140].mxu1 %v5544_v28 }
 0x1c4   : > { %v6108_v41 = vadd.f32 %v6107_v44, %v6106_v7  ;;  %v6109_v46 = vpop.f32.mrb[54].mxu1  ;;  %v4260_v61 = vadd.f32 %v6011_v36, %v8511_v40  ;;  %v9341_v36 = vld [vmem:[#allocation14_spill] sm:$0xff] }
 0x1c5   : > { %v6110_v53 = vpop.f32.mrb[55].mxu1 }
 0x1c6   : > { %v8957_v12 = vadd.f32 %v6108_v41, %v4241_v54  ;;  %v6111_v9 = vadd.f32 %v6110_v53, %v6109_v46  ;;  %v6164_v23 = vpop.f32.mrb[48].mxu0  ;;  %v9339_v41 = vld [vmem:[#allocation13_spill] sm:$0xff] }
 0x1c7   : > { %v6165_v29 = vpop.f32.mrb[49].mxu0 }
 0x1c8   : > { %v8959_v32 = vadd.f32 %v6111_v9, %v4244_v14  ;;  %v6166_v60 = vadd.f32 %v6165_v29, %v6164_v23  ;;  %v6167_v19 = vpop.f32.mrb[50].mxu0  ;;  %v9340_v14 = vld [vmem:[#allocation19_spill] sm:$0xff] }
 0x1c9   : > { %v6168_v47 = vpop.f32.mrb[51].mxu0  ;;  %v4265_v9 = vadd.f32 %v9340_v14, %v8511_v40 }
 0x1ca   : > { %v8962_v38 = vadd.f32 %v6166_v60, %v8637_v50  ;;  %v6169_v11 = vadd.f32 %v6168_v47, %v6167_v19  ;;  %v9342_v47 = vld [vmem:[#allocation8_spill] sm:$0xff] }
 0x1cb   : > { %v6112_v26 = vpop.f32.mrb[56].mxu1 }
 0x1cc   : > { %v6113_v34 = vpop.f32.mrb[57].mxu1  ;;  %v8966_v56 = vadd.f32 %v6169_v11, %v8657_v18  ;;  %v4268_v11 = vadd.f32 %v9342_v47, %v8511_v40 }
 0x1cd   : > { %v6114_v0 = vadd.f32 %v6113_v34, %v6112_v26  ;;  %v6115_v62 = vpop.f32.mrb[58].mxu1 }
 0x1ce   : > { %v6116_v24 = vpop.f32.mrb[59].mxu1  ;;  %v6170_v51 = vpop.f32.mrb[52].mxu0 }
 0x1cf   : > { %v8969_v8 = vadd.f32 %v6114_v0, %v4249_v58  ;;  %v6117_v33 = vadd.f32 %v6116_v24, %v6115_v62  ;;  %v6171_v42 = vpop.f32.mrb[53].mxu0 }
 0x1d0   : > { %v6172_v50 = vadd.f32 %v6171_v42, %v6170_v51  ;;  %v6173_v15 = vpop.f32.mrb[54].mxu0 }
 0x1d1   : > { %v8971_v28 = vadd.f32 %v6117_v33, %v4252_v48  ;;  %v6174_v31 = vpop.f32.mrb[55].mxu0 }
 0x1d2   : > { %v8974_v63 = vadd.f32 %v6172_v50, %v8708_v43  ;;  %v6175_v18 = vadd.f32 %v6174_v31, %v6173_v15  ;;  %v9343_v31 = vld [vmem:[#allocation3_spill] sm:$0xff] }
 0x1d3   : > { %v6118_v35 = vpop.f32.mrb[60].mxu1 }
 0x1d4   : > { %v6119_v30 = vpop.f32.mrb[61].mxu1  ;;  %v8978_v20 = vadd.f32 %v6175_v18, %v8722_v10  ;;  %v4273_v18 = vadd.f32 %v9343_v31, %v8511_v40 }
 0x1d5   : > { %v6120_v59 = vadd.f32 %v6119_v30, %v6118_v35  ;;  %v6121_v4 = vpop.f32.mrb[62].mxu1 }
 0x1d6   : > { %v6122_v25 = vpop.f32.mrb[63].mxu1  ;;  %v6176_v55 = vpop.f32.mrb[56].mxu0 }
 0x1d7   : > { %v8981_v1 = vadd.f32 %v6120_v59, %v4257_v13  ;;  %v6123_v52 = vadd.f32 %v6122_v25, %v6121_v4  ;;  %v6177_v5 = vpop.f32.mrb[57].mxu0  ;;  %v9344_v4 = vld [vmem:[#allocation6_spill] sm:$0xff] }
 0x1d8   : > { %v6178_v43 = vadd.f32 %v6177_v5, %v6176_v55  ;;  %v6179_v7 = vpop.f32.mrb[58].mxu0  ;;  %v4276_v25 = vadd.f32 %v9344_v4, %v8511_v40 }
 0x1d9   : > { %v8983_v44 = vadd.f32 %v6123_v52, %v4260_v61  ;;  %v6180_v54 = vpop.f32.mrb[59].mxu0 }
 0x1da   : > { %v8986_v37 = vadd.f32 %v6178_v43, %v9339_v41  ;;  %v6181_v10 = vadd.f32 %v6180_v54, %v6179_v7 }
 0x1dc   : > { %v6124_v46 = vpop.f32.mrb[64].mxu1  ;;  %v8991_v23 = vadd.f32 %v6181_v10, %v9341_v36 }
 0x1dd   : > { %v6125_v53 = vpop.f32.mrb[65].mxu1 }
 0x1de   : > { %v6126_v29 = vadd.f32 %v6125_v53, %v6124_v46  ;;  %v6127_v60 = vpop.f32.mrb[66].mxu1  ;;  %v6182_v26 = vpop.f32.mrb[60].mxu0  ;;  %v9345_v53 = vld [vmem:[#allocation7_spill] sm:$0xff] }
 0x1df   : > { %v6128_v19 = vpop.f32.mrb[67].mxu1  ;;  %v6183_v0 = vpop.f32.mrb[61].mxu0  ;;  %v4281_v14 = vadd.f32 %v9345_v53, %v8511_v40 }
 0x1e0   : > { %v8995_v34 = vadd.f32 %v6126_v29, %v4265_v9  ;;  %v6129_v58 = vadd.f32 %v6128_v19, %v6127_v60  ;;  %v6184_v62 = vadd.f32 %v6183_v0, %v6182_v26  ;;  %v6185_v24 = vpop.f32.mrb[62].mxu0  ;;  %v9346_v19 = vld [vmem:[#allocation10_spill] sm:$0xff] }
 0x1e1   : > { %v6186_v51 = vpop.f32.mrb[63].mxu0  ;;  %v4284_v47 = vadd.f32 %v9346_v19, %v8511_v40 }
 0x1e2   : > { %v8997_v48 = vadd.f32 %v6129_v58, %v4268_v11  ;;  %v9000_v33 = vadd.f32 %v6184_v62, %v8838_v2  ;;  %v6187_v42 = vadd.f32 %v6186_v51, %v6185_v24 }
 0x1e4   : > { %v6130_v50 = vpop.f32.mrb[68].mxu1  ;;  %v9005_v35 = vadd.f32 %v6187_v42, %v8850_v21 }
 0x1e5   : > { %v6131_v15 = vpop.f32.mrb[69].mxu1 }
 0x1e6   : > { %v6132_v30 = vadd.f32 %v6131_v15, %v6130_v50  ;;  %v6133_v13 = vpop.f32.mrb[70].mxu1  ;;  %v6188_v61 = vpop.f32.mrb[64].mxu0 }
 0x1e7   : > { %v6134_v59 = vpop.f32.mrb[71].mxu1  ;;  %v6189_v52 = vpop.f32.mrb[65].mxu0 }
 0x1e8   : > { %v9009_v55 = vadd.f32 %v6132_v30, %v4273_v18  ;;  %v6135_v2 = vadd.f32 %v6134_v59, %v6133_v13  ;;  %v6190_v5 = vadd.f32 %v6189_v52, %v6188_v61  ;;  %v6191_v43 = vpop.f32.mrb[66].mxu0 }
 0x1e9   : > { %v6192_v54 = vpop.f32.mrb[67].mxu0 }
 0x1ea   : > { %v9011_v7 = vadd.f32 %v6135_v2, %v4276_v25  ;;  %v9014_v41 = vadd.f32 %v6190_v5, %v8886_v3  ;;  %v6193_v21 = vadd.f32 %v6192_v54, %v6191_v43 }
 0x1ec   : > { %v6136_v10 = vpop.f32.mrb[72].mxu1  ;;  %v9019_v9 = vadd.f32 %v6193_v21, %v8899_v57 }
 0x1ed   : > { %v6137_v46 = vpop.f32.mrb[73].mxu1 }
 0x1ee   : > { %v6138_v36 = vadd.f32 %v6137_v46, %v6136_v10  ;;  %v6139_v29 = vpop.f32.mrb[74].mxu1  ;;  %v6194_v11 = vpop.f32.mrb[68].mxu0 }
 0x1ef   : > { %v6140_v60 = vpop.f32.mrb[75].mxu1  ;;  %v6195_v58 = vpop.f32.mrb[69].mxu0 }
 0x1f0   : > { %v9023_v26 = vadd.f32 %v6138_v36, %v4281_v14  ;;  %v6141_v3 = vadd.f32 %v6140_v60, %v6139_v29  ;;  %v6196_v0 = vadd.f32 %v6195_v58, %v6194_v11  ;;  %v6197_v62 = vpop.f32.mrb[70].mxu0  ;;  %v9348_v29 = vld [vmem:[#allocation12_spill] sm:$0xff] }
 0x1f1   : > { %v6198_v51 = vpop.f32.mrb[71].mxu0 }
 0x1f2   : > { %v9025_v24 = vadd.f32 %v6141_v3, %v4284_v47  ;;  %v9028_v42 = vadd.f32 %v6196_v0, %v8922_v17  ;;  %v6199_v57 = vadd.f32 %v6198_v51, %v6197_v62 }
 0x1f4   : > { %v9031_v50 = vadd.f32 %v6199_v57, %v8927_v49 }
 0x1f6   : > { %v6200_v15 = vpop.f32.mrb[72].mxu0 }
 0x1f7   : > { %v6201_v31 = vpop.f32.mrb[73].mxu0 }
 0x1f8   : > { %v6202_v40 = vadd.f32 %v6201_v31, %v6200_v15  ;;  %v6203_v18 = vpop.f32.mrb[74].mxu0 }
 0x1f9   : > { %v6204_v30 = vpop.f32.mrb[75].mxu0 }
 0x1fa   : > { %v9034_v13 = vadd.f32 %v6202_v40, %v8940_v16  ;;  %v6205_v59 = vadd.f32 %v6204_v30, %v6203_v18  ;;  %v6622_v16 = vld [vmem:[%s9231_s4] ss:$0 sm:$0xff] }
 0x1fb   : > { %v4292_v60 = vadd.f32 %v6622_v16, %v9348_v29 }
 0x1fc   : > { %v9037_v4 = vadd.f32 %v6205_v59, %v8945_v27  ;;  %v9347_v27 = vld [vmem:[#allocation17_spill] sm:$0xff] }
 0x1fd   : > { %v4289_v10 = vadd.f32 %v6622_v16, %v9347_v27 }
 0x1fe   : > { %v6206_v25 = vpop.f32.mrb[76].mxu0 }
 0x1ff   : > { %v6207_v61 = vpop.f32.mrb[77].mxu0 }
 0x200   : > { %v6208_v17 = vadd.f32 %v6207_v61, %v6206_v25  ;;  %v6209_v2 = vpop.f32.mrb[78].mxu0 }
 0x201   : > { %v6210_v52 = vpop.f32.mrb[79].mxu0 }
 0x202   : > { %v9040_v49 = vadd.f32 %v6208_v17, %v8947_v45  ;;  %v6211_v5 = vadd.f32 %v6210_v52, %v6209_v2 }
 0x204   : > { %v6142_v43 = vpop.f32.mrb[76].mxu1  ;;  %v9043_v54 = vadd.f32 %v6211_v5, %v8949_v6 }
 0x205   : > { %v6143_v21 = vpop.f32.mrb[77].mxu1 }
 0x206   : > { %v6144_v46 = vadd.f32 %v6143_v21, %v6142_v43  ;;  %v6145_v53 = vpop.f32.mrb[78].mxu1  ;;  %v6212_v14 = vpop.f32.mrb[80].mxu0 }
 0x207   : > { %v6146_v36 = vpop.f32.mrb[79].mxu1  ;;  %v6213_v19 = vpop.f32.mrb[81].mxu0 }
 0x208   : > { %v9050_v45 = vadd.f32 %v6144_v46, %v4289_v10  ;;  %v6147_v47 = vadd.f32 %v6146_v36, %v6145_v53  ;;  %v6214_v11 = vadd.f32 %v6213_v19, %v6212_v14  ;;  %v6215_v6 = vpop.f32.mrb[82].mxu0 }
 0x209   : > { %v6216_v58 = vpop.f32.mrb[83].mxu0 }
 0x20a   : > { %v9052_v3 = vadd.f32 %v6147_v47, %v4292_v60  ;;  %v9055_v0 = vadd.f32 %v6214_v11, %v8951_v22  ;;  %v6217_v62 = vadd.f32 %v6216_v58, %v6215_v6 }
 0x20c   : > { %v6276_v51 = vpop.f32.mrb[80].mxu1  ;;  %v9058_v57 = vadd.f32 %v6217_v62, %v8953_v39 }
 0x20d   : > { %v6277_v15 = vpop.f32.mrb[81].mxu1 }
 0x20e   : > { %v6278_v31 = vadd.f32 %v6277_v15, %v6276_v51  ;;  %v6279_v40 = vpop.f32.mrb[82].mxu1  ;;  %v6218_v18 = vpop.f32.mrb[84].mxu0 }
 0x20f   : > { %v6280_v30 = vpop.f32.mrb[83].mxu1  ;;  %v6219_v59 = vpop.f32.mrb[85].mxu0 }
 0x210   : > { %v6281_v25 = vadd.f32 %v6280_v30, %v6279_v40  ;;  %v9061_v61 = vadd.f32 %v6278_v31, %v8962_v38  ;;  %v6220_v17 = vadd.f32 %v6219_v59, %v6218_v18  ;;  %v6221_v2 = vpop.f32.mrb[86].mxu0 }
 0x211   : > { %v6222_v52 = vpop.f32.mrb[87].mxu0 }
 0x212   : > { %v9064_v22 = vadd.f32 %v6281_v25, %v8966_v56  ;;  %v9067_v5 = vadd.f32 %v6220_v17, %v8957_v12  ;;  %v6223_v39 = vadd.f32 %v6222_v52, %v6221_v2 }
 0x214   : > { %v9070_v21 = vadd.f32 %v6223_v39, %v8959_v32 }
 0x215   : > { %v6282_v43 = vpop.f32.mrb[84].mxu1 }
 0x216   : > { %v6283_v16 = vpop.f32.mrb[85].mxu1  ;;  %v6224_v46 = vpop.f32.mrb[88].mxu0 }
 0x217   : > { %v6284_v27 = vadd.f32 %v6283_v16, %v6282_v43  ;;  %v6285_v10 = vpop.f32.mrb[86].mxu1  ;;  %v6225_v53 = vpop.f32.mrb[89].mxu0 }
 0x218   : > { %v6286_v38 = vpop.f32.mrb[87].mxu1  ;;  %v6226_v56 = vadd.f32 %v6225_v53, %v6224_v46  ;;  %v6227_v29 = vpop.f32.mrb[90].mxu0 }
 0x219   : > { %v6287_v14 = vadd.f32 %v6286_v38, %v6285_v10  ;;  %v9073_v36 = vadd.f32 %v6284_v27, %v8974_v63  ;;  %v6228_v60 = vpop.f32.mrb[91].mxu0 }
 0x21a   : > { %v9079_v19 = vadd.f32 %v6226_v56, %v8969_v8  ;;  %v6229_v32 = vadd.f32 %v6228_v60, %v6227_v29 }
 0x21b   : > { %v9076_v12 = vadd.f32 %v6287_v14, %v8978_v20 }
 0x21c   : > { %v9082_v11 = vadd.f32 %v6229_v32, %v8971_v28 }
 0x21d   : > { %v6288_v47 = vpop.f32.mrb[88].mxu1 }
 0x21e   : > { %v6289_v6 = vpop.f32.mrb[89].mxu1  ;;  %v6230_v51 = vpop.f32.mrb[92].mxu0 }
 0x21f   : > { %v6290_v58 = vadd.f32 %v6289_v6, %v6288_v47  ;;  %v6291_v62 = vpop.f32.mrb[90].mxu1  ;;  %v6231_v15 = vpop.f32.mrb[93].mxu0 }
 0x220   : > { %v6292_v63 = vpop.f32.mrb[91].mxu1  ;;  %v6232_v20 = vadd.f32 %v6231_v15, %v6230_v51  ;;  %v6233_v18 = vpop.f32.mrb[94].mxu0 }
 0x221   : > { %v6293_v31 = vadd.f32 %v6292_v63, %v6291_v62  ;;  %v9085_v40 = vadd.f32 %v6290_v58, %v8986_v37  ;;  %v6234_v30 = vpop.f32.mrb[95].mxu0 }
 0x222   : > { %v9091_v59 = vadd.f32 %v6232_v20, %v8981_v1  ;;  %v6235_v28 = vadd.f32 %v6234_v30, %v6233_v18 }
 0x223   : > { %v9088_v8 = vadd.f32 %v6293_v31, %v8991_v23 }
 0x224   : > { %v9094_v17 = vadd.f32 %v6235_v28, %v8983_v44 }
 0x225   : > { %v6294_v25 = vpop.f32.mrb[92].mxu1 }
 0x226   : > { %v6295_v2 = vpop.f32.mrb[93].mxu1  ;;  %v6236_v43 = vpop.f32.mrb[96].mxu0 }
 0x227   : > { %v6296_v52 = vadd.f32 %v6295_v2, %v6294_v25  ;;  %v6297_v39 = vpop.f32.mrb[94].mxu1  ;;  %v6237_v16 = vpop.f32.mrb[97].mxu0 }
 0x228   : > { %v6298_v37 = vpop.f32.mrb[95].mxu1  ;;  %v6238_v23 = vadd.f32 %v6237_v16, %v6236_v43  ;;  %v6239_v46 = vpop.f32.mrb[98].mxu0 }
 0x229   : > { %v6299_v27 = vadd.f32 %v6298_v37, %v6297_v39  ;;  %v9097_v10 = vadd.f32 %v6296_v52, %v9000_v33  ;;  %v6240_v38 = vpop.f32.mrb[99].mxu0 }
 0x22a   : > { %v9103_v53 = vadd.f32 %v6238_v23, %v8995_v34  ;;  %v6241_v44 = vadd.f32 %v6240_v38, %v6239_v46 }
 0x22b   : > { %v9100_v1 = vadd.f32 %v6299_v27, %v9005_v35 }
 0x22c   : > { %v9106_v56 = vadd.f32 %v6241_v44, %v8997_v48 }
 0x22d   : > { %v6300_v14 = vpop.f32.mrb[96].mxu1 }
 0x22e   : > { %v6301_v29 = vpop.f32.mrb[97].mxu1  ;;  %v6242_v47 = vpop.f32.mrb[100].mxu0 }
 0x22f   : > { %v6302_v60 = vadd.f32 %v6301_v29, %v6300_v14  ;;  %v6303_v32 = vpop.f32.mrb[98].mxu1  ;;  %v6243_v6 = vpop.f32.mrb[101].mxu0 }
 0x230   : > { %v6304_v33 = vpop.f32.mrb[99].mxu1  ;;  %v6244_v35 = vadd.f32 %v6243_v6, %v6242_v47  ;;  %v6245_v51 = vpop.f32.mrb[102].mxu0 }
 0x231   : > { %v6305_v58 = vadd.f32 %v6304_v33, %v6303_v32  ;;  %v9109_v62 = vadd.f32 %v6302_v60, %v9014_v41  ;;  %v6246_v63 = vpop.f32.mrb[103].mxu0 }
 0x232   : > { %v9115_v15 = vadd.f32 %v6244_v35, %v9009_v55  ;;  %v6247_v48 = vadd.f32 %v6246_v63, %v6245_v51 }
 0x233   : > { %v9112_v34 = vadd.f32 %v6305_v58, %v9019_v9 }
 0x234   : > { %v9118_v20 = vadd.f32 %v6247_v48, %v9011_v7 }
 0x235   : > { %v6306_v31 = vpop.f32.mrb[100].mxu1 }
 0x236   : > { %v6307_v18 = vpop.f32.mrb[101].mxu1  ;;  %v6248_v25 = vpop.f32.mrb[104].mxu0 }
 0x237   : > { %v6308_v30 = vadd.f32 %v6307_v18, %v6306_v31  ;;  %v6309_v28 = vpop.f32.mrb[102].mxu1  ;;  %v6249_v2 = vpop.f32.mrb[105].mxu0 }
 0x238   : > { %v6310_v41 = vpop.f32.mrb[103].mxu1  ;;  %v6250_v9 = vadd.f32 %v6249_v2, %v6248_v25  ;;  %v6251_v43 = vpop.f32.mrb[106].mxu0 }
 0x239   : > { %v6311_v52 = vadd.f32 %v6310_v41, %v6309_v28  ;;  %v9121_v39 = vadd.f32 %v6308_v30, %v9028_v42  ;;  %v6252_v37 = vpop.f32.mrb[107].mxu0 }
 0x23a   : > { %v9127_v16 = vadd.f32 %v6250_v9, %v9023_v26  ;;  %v6253_v7 = vadd.f32 %v6252_v37, %v6251_v43 }
 0x23b   : > { %v9124_v55 = vadd.f32 %v6311_v52, %v9031_v50 }
 0x23c   : > { %v9130_v27 = vadd.f32 %v6253_v7, %v9025_v24 }
 0x23e   : > { %v6312_v23 = vpop.f32.mrb[104].mxu1 }
 0x23f   : > { %v6313_v46 = vpop.f32.mrb[105].mxu1  ;;  %v6254_v38 = vpop.f32.mrb[108].mxu0 }
 0x240   : > { %v6314_v44 = vadd.f32 %v6313_v46, %v6312_v23  ;;  %v6315_v14 = vpop.f32.mrb[106].mxu1  ;;  %v6255_v42 = vpop.f32.mrb[109].mxu0 }
 0x241   : > { %v6316_v29 = vpop.f32.mrb[107].mxu1  ;;  %v6256_v60 = vadd.f32 %v6255_v42, %v6254_v38  ;;  %v6257_v32 = vpop.f32.mrb[110].mxu0 }
 0x242   : > { %v6317_v47 = vadd.f32 %v6316_v29, %v6315_v14  ;;  %v9133_v50 = vadd.f32 %v6314_v44, %v9034_v13  ;;  %v6258_v33 = vpop.f32.mrb[111].mxu0 }
 0x243   : > { %v9136_v26 = vadd.f32 %v6256_v60, %v9050_v45  ;;  %v6259_v24 = vadd.f32 %v6258_v33, %v6257_v32 }
 0x244   : > { %v9139_v6 = vadd.f32 %v6317_v47, %v9037_v4 }
 0x245   : > { %v9142_v58 = vadd.f32 %v6259_v24, %v9052_v3 }
 0x247   : > { %v6318_v35 = vpop.f32.mrb[108].mxu1  ;;  %v6414_v51 = vpop.f32.mrb[112].mxu0 }
 0x248   : > { %v4821_v63 = vadd.f32 %v6414_v51, %v9073_v36  ;;  %v6319_v48 = vpop.f32.mrb[109].mxu1  ;;  %v4812_v31 = vpop.f32.mrb[113].mxu0 }
 0x249   : > { %v6320_v13 = vadd.f32 %v6319_v48, %v6318_v35  ;;  %v4813_v18 = vadd.f32 %v4812_v31, %v9061_v61  ;;  %v6321_v30 = vpop.f32.mrb[110].mxu1  ;;  %v6415_v45 = vpop.f32.mrb[114].mxu0 }
 0x24a   : > { %v4824_v28 = vadd.f32 %v6415_v45, %v9076_v12  ;;  %v6322_v25 = vpop.f32.mrb[111].mxu1  ;;  %v4815_v41 = vpop.f32.mrb[115].mxu0  ;;  %v5142_v37 = vmul.f32 %v4821_v63, %v4821_v63 }
 0x24b   : > { %v6323_v4 = vadd.f32 %v6322_v25, %v6321_v30  ;;  %v4816_v3 = vadd.f32 %v4815_v41, %v9064_v22  ;;  %v9156_v36 = vadd.f32 %v6320_v13, %v9040_v49  ;;  %v5140_v61 = vmul.f32 %v4813_v18, %v4813_v18 }
 0x24c   : > { %v5822_v2 = vpack.c.bf16 %v4824_v28, %v4821_v63  ;;  %v5143_v38 = vmul.f32 %v4824_v28, %v4824_v28 }
 0x24d   : > { %v5817_v52 = vpack.c.bf16 %v4816_v3, %v4813_v18  ;;  %v5100_v12 = vadd.f32 %v4816_v3, %v4813_v18  ;;  %v5141_v9 = vmul.f32 %v4816_v3, %v4816_v3  ;;  %v9159_v43 = vadd.f32 %v6323_v4, %v9043_v54 }
 0x24e   : > { %5909 = vst [vmem:[%s9152_s17 + $0x8] sm:$0xff] %v5822_v2  }
 0x24f   : > { %5818 = vst [vmem:[%s9152_s17] sm:$0xff] %v5817_v52   ;;  %v5101_v7 = vadd.f32 %v5100_v12, %v4821_v63  ;;  %v5172_v23 = vadd.f32 %v5141_v9, %v5140_v61  ;;  %v6418_v46 = vpop.f32.mrb[116].mxu0 }
 0x250   : > { %v4837_v49 = vadd.f32 %v6418_v46, %v9097_v10  ;;  %v4828_v14 = vpop.f32.mrb[117].mxu0 }
 0x251   : > { %v5173_v44 = vadd.f32 %v5172_v23, %v5142_v37  ;;  %v6324_v22 = vpop.f32.mrb[112].mxu1  ;;  %v5102_v42 = vadd.f32 %v5101_v7, %v4824_v28  ;;  %v4829_v60 = vadd.f32 %v4828_v14, %v9085_v40  ;;  %v6419_v32 = vpop.f32.mrb[118].mxu0 }
 0x252   : > { %v6325_v29 = vpop.f32.mrb[113].mxu1  ;;  %v4840_v24 = vadd.f32 %v6419_v32, %v9100_v1  ;;  %v4831_v35 = vpop.f32.mrb[119].mxu0  ;;  %v5146_v1 = vmul.f32 %v4837_v49, %v4837_v49 }
 0x253   : > { %v6326_v47 = vadd.f32 %v6325_v29, %v6324_v22  ;;  %v5174_v54 = vadd.f32 %v5173_v44, %v5143_v38  ;;  %v6327_v33 = vpop.f32.mrb[114].mxu1  ;;  %v5103_v51 = vadd.f32 %v5102_v42, %v4829_v60  ;;  %v5144_v63 = vmul.f32 %v4829_v60, %v4829_v60 }
 0x254   : > { %v6328_v48 = vpop.f32.mrb[115].mxu1  ;;  %v4832_v31 = vadd.f32 %v4831_v35, %v9088_v8  ;;  %v5832_v10 = vpack.c.bf16 %v4840_v24, %v4837_v49  ;;  %v5147_v3 = vmul.f32 %v4840_v24, %v4840_v24 }
 0x255   : > { %v6329_v13 = vadd.f32 %v6328_v48, %v6327_v33  ;;  %v9168_v18 = vadd.f32 %v6326_v47, %v9055_v0  ;;  %v5175_v40 = vadd.f32 %v5174_v54, %v5144_v63 }
 0x256   : > { %v5827_v30 = vpack.c.bf16 %v4832_v31, %v4829_v60  ;;  %v5104_v45 = vadd.f32 %v5103_v51, %v4832_v31  ;;  %v5145_v28 = vmul.f32 %v4832_v31, %v4832_v31  ;;  %5911 = vst [vmem:[%s9152_s17 + $0x18] sm:$0xff] %v5832_v10  }
 0x257   : > { %v9172_v25 = vadd.f32 %v6329_v13, %v9058_v57 }
 0x258   : > { %5910 = vst [vmem:[%s9152_s17 + $0x10] sm:$0xff] %v5827_v30   ;;  %v5105_v41 = vadd.f32 %v5104_v45, %v4837_v49  ;;  %v5176_v4 = vadd.f32 %v5175_v40, %v5145_v28 }
 0x259   : > { %v6422_v8 = vpop.f32.mrb[120].mxu0 }
 0x25a   : > { %v5177_v61 = vadd.f32 %v5176_v4, %v5146_v1  ;;  %v5106_v2 = vadd.f32 %v5105_v41, %v4840_v24  ;;  %v6330_v52 = vpop.f32.mrb[116].mxu1  ;;  %v4853_v0 = vadd.f32 %v6422_v8, %v9121_v39  ;;  %v4844_v12 = vpop.f32.mrb[121].mxu0 }
 0x25b   : > { %v6331_v9 = vpop.f32.mrb[117].mxu1  ;;  %v4845_v37 = vadd.f32 %v4844_v12, %v9109_v62  ;;  %v6423_v23 = vpop.f32.mrb[122].mxu0 }
 0x25c   : > { %v5178_v7 = vadd.f32 %v5177_v61, %v5147_v3  ;;  %v6332_v57 = vadd.f32 %v6331_v9, %v6330_v52  ;;  %v6333_v46 = vpop.f32.mrb[118].mxu1  ;;  %v4856_v38 = vadd.f32 %v6423_v23, %v9124_v55  ;;  %v4847_v44 = vpop.f32.mrb[123].mxu0  ;;  %v5150_v24 = vmul.f32 %v4853_v0, %v4853_v0 }
 0x25d   : > { %v5107_v22 = vadd.f32 %v5106_v2, %v4845_v37  ;;  %v5148_v49 = vmul.f32 %v4845_v37, %v4845_v37  ;;  %v6334_v14 = vpop.f32.mrb[119].mxu1  ;;  %v4848_v42 = vadd.f32 %v4847_v44, %v9112_v34 }
 0x25e   : > { %v5842_v29 = vpack.c.bf16 %v4856_v38, %v4853_v0  ;;  %v6335_v39 = vadd.f32 %v6334_v14, %v6333_v46  ;;  %v4724_v60 = vadd.f32 %v6332_v57, %v9067_v5  ;;  %v5151_v51 = vmul.f32 %v4856_v38, %v4856_v38 }
 0x25f   : > { %v5179_v32 = vadd.f32 %v5178_v7, %v5148_v49  ;;  %v5837_v62 = vpack.c.bf16 %v4848_v42, %v4845_v37  ;;  %v5108_v47 = vadd.f32 %v5107_v22, %v4848_v42  ;;  %v5149_v54 = vmul.f32 %v4848_v42, %v4848_v42 }
 0x260   : > { %5913 = vst [vmem:[%s9152_s17 + $0x28] sm:$0xff] %v5842_v29   ;;  %v4727_v33 = vadd.f32 %v6335_v39, %v9070_v21 }
 0x261   : > { %5912 = vst [vmem:[%s9152_s17 + $0x20] sm:$0xff] %v5837_v62   ;;  %v5109_v55 = vadd.f32 %v5108_v47, %v4853_v0  ;;  %v5180_v35 = vadd.f32 %v5179_v32, %v5149_v54 }
 0x263   : > { %v5181_v63 = vadd.f32 %v5180_v35, %v5150_v24  ;;  %v6426_v48 = vpop.f32.mrb[124].mxu0  ;;  %v5110_v31 = vadd.f32 %v5109_v55, %v4856_v38 }
 0x264   : > { %v6336_v34 = vpop.f32.mrb[120].mxu1  ;;  %v4869_v10 = vadd.f32 %v6426_v48, %v9156_v36  ;;  %v4860_v13 = vpop.f32.mrb[125].mxu0 }
 0x265   : > { %v6337_v5 = vpop.f32.mrb[121].mxu1  ;;  %v4861_v40 = vadd.f32 %v4860_v13, %v9133_v50  ;;  %v5182_v30 = vadd.f32 %v5181_v63, %v5151_v51  ;;  %v6427_v45 = vpop.f32.mrb[126].mxu0 }
 0x266   : > { %v6338_v28 = vadd.f32 %v6337_v5, %v6336_v34  ;;  %v6339_v21 = vpop.f32.mrb[122].mxu1  ;;  %v4872_v1 = vadd.f32 %v6427_v45, %v9159_v43  ;;  %v4863_v41 = vpop.f32.mrb[127].mxu0  ;;  %v5154_v7 = vmul.f32 %v4869_v10, %v4869_v10 }
 0x267   : > { %v5111_v4 = vadd.f32 %v5110_v31, %v4861_v40  ;;  %v5152_v3 = vmul.f32 %v4861_v40, %v4861_v40  ;;  %v6340_v61 = vpop.f32.mrb[123].mxu1  ;;  %v4864_v8 = vadd.f32 %v4863_v41, %v9139_v6 }
 0x268   : > { %v5852_v2 = vpack.c.bf16 %v4872_v1, %v4869_v10  ;;  %v6341_v36 = vadd.f32 %v6340_v61, %v6339_v21  ;;  %v4732_v52 = vadd.f32 %v6338_v28, %v9079_v19  ;;  %v5155_v57 = vmul.f32 %v4872_v1, %v4872_v1 }
 0x269   : > { %v5183_v0 = vadd.f32 %v5182_v30, %v5152_v3  ;;  %v5847_v50 = vpack.c.bf16 %v4864_v8, %v4861_v40  ;;  %v5112_v12 = vadd.f32 %v5111_v4, %v4864_v8  ;;  %v5153_v9 = vmul.f32 %v4864_v8, %v4864_v8 }
 0x26a   : > { %5915 = vst [vmem:[%s9152_s17 + $0x38] sm:$0xff] %v5852_v2   ;;  %v4735_v37 = vadd.f32 %v6341_v36, %v9082_v11 }
 0x26b   : > { %5914 = vst [vmem:[%s9152_s17 + $0x30] sm:$0xff] %v5847_v50   ;;  %v5113_v43 = vadd.f32 %v5112_v12, %v4869_v10  ;;  %v5184_v23 = vadd.f32 %v5183_v0, %v5153_v9 }
 0x26d   : > { %v5185_v46 = vadd.f32 %v5184_v23, %v5154_v7  ;;  %v6430_v38 = vpop.f32.mrb[128].mxu0  ;;  %v5114_v44 = vadd.f32 %v5113_v43, %v4872_v1 }
 0x26e   : > { %v6342_v6 = vpop.f32.mrb[124].mxu1  ;;  %v4885_v22 = vadd.f32 %v6430_v38, %v4724_v60  ;;  %v4876_v49 = vpop.f32.mrb[129].mxu0 }
 0x26f   : > { %v6343_v14 = vpop.f32.mrb[125].mxu1  ;;  %v4877_v19 = vadd.f32 %v4876_v49, %v9168_v18  ;;  %v5186_v42 = vadd.f32 %v5185_v46, %v5155_v57  ;;  %v6431_v29 = vpop.f32.mrb[130].mxu0 }
 0x270   : > { %v6344_v39 = vadd.f32 %v6343_v14, %v6342_v6  ;;  %v6345_v32 = vpop.f32.mrb[126].mxu1  ;;  %v4888_v11 = vadd.f32 %v6431_v29, %v4727_v33  ;;  %v4879_v62 = vpop.f32.mrb[131].mxu0  ;;  %v5158_v10 = vmul.f32 %v4885_v22, %v4885_v22 }
 0x271   : > { %v5115_v47 = vadd.f32 %v5114_v44, %v4877_v19  ;;  %v5156_v54 = vmul.f32 %v4877_v19, %v4877_v19  ;;  %v6346_v24 = vpop.f32.mrb[127].mxu1  ;;  %v4880_v55 = vadd.f32 %v4879_v62, %v9172_v25 }
 0x272   : > { %v5862_v35 = vpack.c.bf16 %v4888_v11, %v4885_v22  ;;  %v6347_v51 = vadd.f32 %v6346_v24, %v6345_v32  ;;  %v4740_v60 = vadd.f32 %v6344_v39, %v9091_v59  ;;  %v5159_v5 = vmul.f32 %v4888_v11, %v4888_v11 }
 0x273   : > { %v5187_v63 = vadd.f32 %v5186_v42, %v5156_v54  ;;  %v5857_v48 = vpack.c.bf16 %v4880_v55, %v4877_v19  ;;  %v5116_v18 = vadd.f32 %v5115_v47, %v4880_v55  ;;  %v5157_v31 = vmul.f32 %v4880_v55, %v4880_v55 }
 0x274   : > { %5917 = vst [vmem:[%s9152_s17 + $0x48] sm:$0xff] %v5862_v35   ;;  %v4743_v34 = vadd.f32 %v6347_v51, %v9094_v17 }
 0x275   : > { %5916 = vst [vmem:[%s9152_s17 + $0x40] sm:$0xff] %v5857_v48   ;;  %v5117_v33 = vadd.f32 %v5116_v18, %v4885_v22  ;;  %v5188_v13 = vadd.f32 %v5187_v63, %v5157_v31 }
 0x277   : > { %v5189_v40 = vadd.f32 %v5188_v13, %v5158_v10  ;;  %v6434_v30 = vpop.f32.mrb[132].mxu0  ;;  %v5118_v45 = vadd.f32 %v5117_v33, %v4888_v11 }
 0x278   : > { %v6348_v25 = vpop.f32.mrb[128].mxu1  ;;  %v4901_v28 = vadd.f32 %v6434_v30, %v4740_v60  ;;  %v4892_v21 = vpop.f32.mrb[133].mxu0 }
 0x279   : > { %v6349_v1 = vpop.f32.mrb[129].mxu1  ;;  %v4893_v59 = vadd.f32 %v4892_v21, %v4732_v52  ;;  %v5190_v41 = vadd.f32 %v5189_v40, %v5159_v5  ;;  %v6435_v4 = vpop.f32.mrb[134].mxu0 }
 0x27a   : > { %v6350_v3 = vadd.f32 %v6349_v1, %v6348_v25  ;;  %v6351_v61 = vpop.f32.mrb[130].mxu1  ;;  %v4904_v8 = vadd.f32 %v6435_v4, %v4743_v34  ;;  %v4895_v17 = vpop.f32.mrb[135].mxu0  ;;  %v5162_v38 = vmul.f32 %v4901_v28, %v4901_v28 }
 0x27b   : > { %v5119_v2 = vadd.f32 %v5118_v45, %v4893_v59  ;;  %v5160_v36 = vmul.f32 %v4893_v59, %v4893_v59  ;;  %v6352_v0 = vpop.f32.mrb[131].mxu1  ;;  %v4896_v50 = vadd.f32 %v4895_v17, %v4735_v37 }
 0x27c   : > { %v5872_v12 = vpack.c.bf16 %v4904_v8, %v4901_v28  ;;  %v6353_v9 = vadd.f32 %v6352_v0, %v6351_v61  ;;  %v4748_v7 = vadd.f32 %v6350_v3, %v9103_v53  ;;  %v5163_v22 = vmul.f32 %v4904_v8, %v4904_v8 }
 0x27d   : > { %v5191_v43 = vadd.f32 %v5190_v41, %v5160_v36  ;;  %v5867_v23 = vpack.c.bf16 %v4896_v50, %v4893_v59  ;;  %v5120_v57 = vadd.f32 %v5119_v2, %v4896_v50  ;;  %v5161_v52 = vmul.f32 %v4896_v50, %v4896_v50 }
 0x27e   : > { %5919 = vst [vmem:[%s9152_s17 + $0x58] sm:$0xff] %v5872_v12   ;;  %v4751_v46 = vadd.f32 %v6353_v9, %v9106_v56 }
 0x27f   : > { %5918 = vst [vmem:[%s9152_s17 + $0x50] sm:$0xff] %v5867_v23   ;;  %v5121_v44 = vadd.f32 %v5120_v57, %v4901_v28  ;;  %v5192_v6 = vadd.f32 %v5191_v43, %v5161_v52 }
 0x281   : > { %v5193_v49 = vadd.f32 %v5192_v6, %v5162_v38  ;;  %v6438_v14 = vpop.f32.mrb[136].mxu0  ;;  %v5122_v19 = vadd.f32 %v5121_v44, %v4904_v8 }
 0x282   : > { %v6354_v37 = vpop.f32.mrb[132].mxu1  ;;  %v4908_v42 = vpop.f32.mrb[137].mxu0 }
 0x283   : > { %v6355_v29 = vpop.f32.mrb[133].mxu1  ;;  %v4909_v39 = vadd.f32 %v4908_v42, %v4748_v7  ;;  %v5194_v53 = vadd.f32 %v5193_v49, %v5163_v22  ;;  %v6439_v32 = vpop.f32.mrb[138].mxu0 }
 0x284   : > { %v6356_v11 = vadd.f32 %v6355_v29, %v6354_v37  ;;  %v6357_v62 = vpop.f32.mrb[134].mxu1  ;;  %v4911_v47 = vpop.f32.mrb[139].mxu0 }
 0x285   : > { %v5123_v54 = vadd.f32 %v5122_v19, %v4909_v39  ;;  %v5164_v56 = vmul.f32 %v4909_v39, %v4909_v39  ;;  %v6358_v24 = vpop.f32.mrb[135].mxu1  ;;  %v4912_v55 = vadd.f32 %v4911_v47, %v4751_v46 }
 0x286   : > { %v4756_v35 = vadd.f32 %v6356_v11, %v9115_v15  ;;  %v6359_v51 = vadd.f32 %v6358_v24, %v6357_v62 }
 0x287   : > { %v5195_v60 = vadd.f32 %v5194_v53, %v5164_v56  ;;  %v5877_v63 = vpack.c.bf16 %v4912_v55, %v4909_v39  ;;  %v5124_v48 = vadd.f32 %v5123_v54, %v4912_v55  ;;  %v5165_v18 = vmul.f32 %v4912_v55, %v4912_v55 }
 0x288   : > { %v4917_v31 = vadd.f32 %v6438_v14, %v4756_v35  ;;  %v4759_v34 = vadd.f32 %v6359_v51, %v9118_v20 }
 0x289   : > { %5920 = vst [vmem:[%s9152_s17 + $0x60] sm:$0xff] %v5877_v63   ;;  %v5196_v10 = vadd.f32 %v5195_v60, %v5165_v18 }
 0x28a   : > { %v5166_v33 = vmul.f32 %v4917_v31, %v4917_v31  ;;  %v4920_v13 = vadd.f32 %v6439_v32, %v4759_v34  ;;  %v5125_v5 = vadd.f32 %v5124_v48, %v4917_v31 }
 0x28c   : > { %v5882_v40 = vpack.c.bf16 %v4920_v13, %v4917_v31  ;;  %v5167_v30 = vmul.f32 %v4920_v13, %v4920_v13  ;;  %v5197_v45 = vadd.f32 %v5196_v10, %v5166_v33  ;;  %v6360_v25 = vpop.f32.mrb[136].mxu1  ;;  %v6442_v28 = vpop.f32.mrb[140].mxu0  ;;  %v5126_v15 = vadd.f32 %v5125_v5, %v4920_v13 }
 0x28d   : > { %v6361_v21 = vpop.f32.mrb[137].mxu1  ;;  %v4924_v1 = vpop.f32.mrb[141].mxu0 }
 0x28e   : > { %5921 = vst [vmem:[%s9152_s17 + $0x68] sm:$0xff] %v5882_v40   ;;  %v6362_v59 = vadd.f32 %v6361_v21, %v6360_v25  ;;  %v6363_v41 = vpop.f32.mrb[138].mxu1  ;;  %v5198_v4 = vadd.f32 %v5197_v45, %v5167_v30  ;;  %v6443_v3 = vpop.f32.mrb[142].mxu0 }
 0x28f   : > { %v6364_v20 = vpop.f32.mrb[139].mxu1  ;;  %v4927_v61 = vpop.f32.mrb[143].mxu0 }
 0x290   : > { %v6365_v8 = vadd.f32 %v6364_v20, %v6363_v41  ;;  %v4764_v17 = vadd.f32 %v6362_v59, %v9127_v16 }
 0x292   : > { %v4925_v2 = vadd.f32 %v4924_v1, %v4764_v17  ;;  %v4767_v36 = vadd.f32 %v6365_v8, %v9130_v27 }
 0x294   : > { %v5127_v0 = vadd.f32 %v5126_v15, %v4925_v2  ;;  %v5168_v50 = vmul.f32 %v4925_v2, %v4925_v2  ;;  %v4928_v12 = vadd.f32 %v4927_v61, %v4767_v36 }
 0x296   : > { %v5199_v9 = vadd.f32 %v5198_v4, %v5168_v50  ;;  %v5887_v7 = vpack.c.bf16 %v4928_v12, %v4925_v2  ;;  %v5128_v43 = vadd.f32 %v5127_v0, %v4928_v12  ;;  %v5169_v23 = vmul.f32 %v4928_v12, %v4928_v12  ;;  %v6366_v57 = vpop.f32.mrb[140].mxu1 }
 0x297   : > { %v6367_v52 = vpop.f32.mrb[141].mxu1 }
 0x298   : > { %5922 = vst [vmem:[%s9152_s17 + $0x70] sm:$0xff] %v5887_v7   ;;  %v5200_v46 = vadd.f32 %v5199_v9, %v5169_v23  ;;  %v6368_v38 = vadd.f32 %v6367_v52, %v6366_v57  ;;  %v6369_v44 = vpop.f32.mrb[142].mxu1 }
 0x299   : > { %v6370_v6 = vpop.f32.mrb[143].mxu1 }
 0x29a   : > { %v4772_v16 = vadd.f32 %v6368_v38, %v9136_v26  ;;  %v6371_v22 = vadd.f32 %v6370_v6, %v6369_v44 }
 0x29c   : > { %v4933_v49 = vadd.f32 %v6442_v28, %v4772_v16  ;;  %v4775_v27 = vadd.f32 %v6371_v22, %v9142_v58 }
 0x29e   : > { %v5129_v14 = vadd.f32 %v5128_v43, %v4933_v49  ;;  %v5170_v19 = vmul.f32 %v4933_v49, %v4933_v49  ;;  %v4936_v37 = vadd.f32 %v6443_v3, %v4775_v27 }
 0x2a0   : > { %v5201_v42 = vadd.f32 %v5200_v46, %v5170_v19  ;;  %v5892_v29 = vpack.c.bf16 %v4936_v37, %v4933_v49  ;;  %v5130_v39 = vadd.f32 %v5129_v14, %v4936_v37  ;;  %v5171_v53 = vmul.f32 %v4936_v37, %v4936_v37 }
 0x2a2   : > { %5923 = vst [vmem:[%s9152_s17 + $0x78] sm:$0xff] %v5892_v29   ;;  %v5131_v32 = vrot.slane %v5130_v39, 4  ;;  %v5202_v11 = vadd.f32 %v5201_v42, %v5171_v53 }
 0x2a4   : > { %v5132_v62 = vadd.f32 %v5131_v32, %v5130_v39  ;;  %v5203_v47 = vrot.slane %v5202_v11, 4 }
 0x2a6   : > { %v5133_v54 = vrot.slane %v5132_v62, 2  ;;  %v5204_v56 = vadd.f32 %v5203_v47, %v5202_v11 }
 0x2a8   : > { %v5134_v26 = vadd.f32 %v5133_v54, %v5132_v62  ;;  %v5205_v24 = vrot.slane %v5204_v56, 2 }
 0x2aa   : > { %v5135_v55 = vrot.slane %v5134_v26, 1  ;;  %v5206_v58 = vadd.f32 %v5205_v24, %v5204_v56 }
 0x2ac   : > { %v5136_v35 = vadd.f32 %v5135_v55, %v5134_v26  ;;  %v5207_v51 = vrot.slane %v5206_v58, 1 }
 0x2ae   : > { %v5208_v60 = vadd.f32 %v5207_v51, %v5206_v58  ;;  %5138 = vst [vmem:[%s319_s20] sm:$0xff] %v5136_v35 }
 0x2b0   : > { %5210 = vst [vmem:[%s323_s28] sm:$0xff] %v5208_v60 }
 0x2b1 PF: > { %s18_s26 = sadd.s32 1, %s6645_s26   ;;  %s9349_s24 = smov %s6641_s25 }
 0x2b2   : > { %p15_p5 = scmp.ge.s32.totalorder %s18_s26, 4   ;;  %s9350_s25 = smov %s9352_s27 }
 0x2b4   :  { %17 = sbr.rel (!%p15_p5) target bundleno = 2 (0x2), region = 100 }

</bundles_post_ra>
